<compile_context>
chip_gen: v6e
topology: v6e:2x2x1
jax: 0.10.0
libtpu: 0.0.40
codegen_flags: <defaults>
</compile_context>

<pallas_src>
import numpy as np
import jax
import jax.numpy as jnp
from jax.experimental import pallas as pl
from jax.experimental.pallas import tpu as pltpu

_B_TILE = 8   # images processed per grid step
_K = 5        # conv kernel size


# --------------------------------------------------------------------------- #
# Host-side constant builders (0/1 pickers / selectors, layout plumbing only)  #
# --------------------------------------------------------------------------- #
def _shift_mats(w_in, k=_K):
    """S[kw, r, j] = 1 iff r == j + kw   (band-shift matrices, w_in x (w_in-k+1))."""
    hc = w_in - k + 1
    r = np.arange(w_in)[:, None]
    j = np.arange(hc)[None, :]
    return np.stack([(r == j + kw) for kw in range(k)]).astype(np.float32)


def _col_pool_pickers(c_out, hc):
    """Block-diagonal 0/1 pickers selecting even/odd columns inside each channel block."""
    hp = hc // 2
    cp = np.zeros((2, c_out * hc, c_out * hp), np.float32)
    for c in range(c_out):
        for q in range(hp):
            cp[0, c * hc + 2 * q, c * hp + q] = 1.0
            cp[1, c * hc + 2 * q + 1, c * hp + q] = 1.0
    return cp


def _row_pool_selectors(b_tile, rows_per_img, k=_K):
    """0/1 matrices picking the even/odd valid conv rows of every image in the slab
    (and dropping the cross-image garbage rows of the slab convolution)."""
    hc = rows_per_img - k + 1
    hp = hc // 2
    rows_in = b_tile * rows_per_img - (k - 1)
    rs = np.zeros((2, b_tile * hp, rows_in), np.float32)
    for b in range(b_tile):
        for q in range(hp):
            rs[0, b * hp + q, b * rows_per_img + 2 * q] = 1.0
            rs[1, b * hp + q, b * rows_per_img + 2 * q + 1] = 1.0
    return rs


def _flatten_selectors(b_tile, hp=5):
    """sel[h, b, b*hp + h] = 1 : picks spatial row h of every image (flatten helper)."""
    sel = np.zeros((hp, b_tile, b_tile * hp), np.float32)
    for h in range(hp):
        for b in range(b_tile):
            sel[h, b, b * hp + h] = 1.0
    return sel


def _combined_conv_mats(dw_w, dw_b, pw_w, pw_b, w_in, k=_K):
    """Fuse depthwise(kxk) + pointwise(1x1) (both linear, no nonlinearity between)
    into banded block-matmul operands.

      m[kh, c*w_in + j + kw, o*hc + j] = pw_w[o, c] * dw_w[c, kh*k + kw]
      bias[o*hc + j]                   = pw_w[o, :] @ dw_b + pw_b[o]
    """
    c_out, c_in = pw_w.shape
    hc = w_in - k + 1
    s = jnp.asarray(_shift_mats(w_in, k))                              # (k, w_in, hc)
    wc = pw_w[:, :, None, None] * dw_w.reshape(c_in, k, k)[None]       # (o, c, kh, kw)
    m = jnp.einsum('ochw,wrj->hcroj', wc, s,
                   precision=jax.lax.Precision.HIGHEST)
    m = m.reshape(k, c_in * w_in, c_out * hc)
    bias = jnp.sum(pw_w * dw_b[None, :], axis=1) + pw_b                # (c_out,)
    bias = jnp.repeat(bias, hc).reshape(1, c_out * hc)
    return m, bias


# --------------------------------------------------------------------------- #
# Fused kernel: conv block 1 -> conv block 2 -> FC head                        #
# --------------------------------------------------------------------------- #
def _lenet_kernel(x_ref, m1_ref, b1_ref, cp1_ref, rs1_ref,
                  m2_ref, b2_ref, cp2_ref, rs2_ref,
                  sel_ref, w1_ref, fb1_ref, w2_ref, fb2_ref, w3_ref, fb3_ref,
                  o_ref):
    f32 = jnp.float32

    def conv_relu_pool(x_any, m_ref, b_ref, cp_ref, rs_ref):
        k = m_ref.shape[0]
        rows = x_any.shape[0] - (k - 1)
        # fused depthwise+pointwise conv == k banded MXU matmuls (shift rows, matmul, add)
        y = jnp.dot(x_any[0:rows, :], m_ref[0], preferred_element_type=f32)
        for kh in range(1, k):
            y = y + jnp.dot(x_any[kh:kh + rows, :], m_ref[kh],
                            preferred_element_type=f32)
        y = jnp.maximum(y + b_ref[...], 0.0)                           # bias + ReLU
        # 2x2 max pool: columns via block-diag 0/1 pickers, rows via 0/1 selectors
        yw = jnp.maximum(jnp.dot(y, cp_ref[0], preferred_element_type=f32),
                         jnp.dot(y, cp_ref[1], preferred_element_type=f32))
        return jnp.maximum(jnp.dot(rs_ref[0], yw, preferred_element_type=f32),
                           jnp.dot(rs_ref[1], yw, preferred_element_type=f32))

    x2 = conv_relu_pool(x_ref, m1_ref, b1_ref, cp1_ref, rs1_ref)       # (B*14, 6*14)
    x3 = conv_relu_pool(x2, m2_ref, b2_ref, cp2_ref, rs2_ref)          # (B*5, 16*5)

    # fc1: flatten (row-gather per image) folded into 5 selector matmuls
    acc = jnp.dot(jnp.dot(sel_ref[0], x3, preferred_element_type=f32),
                  w1_ref[0], preferred_element_type=f32)
    for h in range(1, w1_ref.shape[0]):
        acc = acc + jnp.dot(jnp.dot(sel_ref[h], x3, preferred_element_type=f32),
                            w1_ref[h], preferred_element_type=f32)
    h1 = jnp.maximum(acc + fb1_ref[...], 0.0)                          # (B, 120)
    h2 = jnp.maximum(jnp.dot(h1, w2_ref[...], preferred_element_type=f32)
                     + fb2_ref[...], 0.0)                              # (B, 84)
    o_ref[...] = jnp.dot(h2, w3_ref[...], preferred_element_type=f32) + fb3_ref[...]


def _const_index_map(ndim):
    return lambda i: (0,) * ndim


@jax.jit
def lenet5_d_forward(x, params):
    n, c_in, h_in, w_in = x.shape          # LeNet geometry: h_in = w_in = 32
    b_tile = _B_TILE
    n_pad = -(-n // b_tile) * b_tile
    x = jnp.pad(x.astype(jnp.float32), ((0, n_pad - n), (0, 0), (0, 0), (0, 0)))
    # NCHW -> lane-dense 2-D slab (N*H, C*W), channels packed along lanes.
    x_slab = jnp.transpose(x, (0, 2, 1, 3)).reshape(n_pad * h_in, c_in * w_in)

    h1p = (h_in - _K + 1) // 2             # 14: per-image spatial size entering block 2

    m1, b1 = _combined_conv_mats(params['dw1_w'], params['dw1_b'],
                                 params['pw1_w'], params['pw1_b'], w_in)
    m2, b2 = _combined_conv_mats(params['dw2_w'], params['dw2_b'],
                                 params['pw2_w'], params['pw2_b'], h1p)
    cp1 = jnp.asarray(_col_pool_pickers(6, h_in - _K + 1))             # (2, 168, 84)
    cp2 = jnp.asarray(_col_pool_pickers(16, h1p - _K + 1))             # (2, 160, 80)
    rs1 = jnp.asarray(_row_pool_selectors(b_tile, h_in))               # (2, B*14, B*32-4)
    rs2 = jnp.asarray(_row_pool_selectors(b_tile, h1p))                # (2, B*5,  B*14-4)
    sel = jnp.asarray(_flatten_selectors(b_tile))                      # (5, B, B*5)
    # fc1 weights permuted to the slab's (h-major, then c*5+w) flatten order.
    w1r = params['fc1_w'].reshape(16, 5, 5, -1).transpose(1, 0, 2, 3).reshape(5, 80, -1)

    const_args = (m1, b1, cp1, rs1, m2, b2, cp2, rs2, sel, w1r,
                  params['fc1_b'], params['fc2_w'], params['fc2_b'],
                  params['fc3_w'], params['fc3_b'])
    const_specs = [pl.BlockSpec(a.shape, _const_index_map(a.ndim)) for a in const_args]

    out = pl.pallas_call(
        _lenet_kernel,
        out_shape=jax.ShapeDtypeStruct((n_pad, 10), jnp.float32),
        grid=(n_pad // b_tile,),
        in_specs=[pl.BlockSpec((b_tile * h_in, c_in * w_in), lambda i: (i, 0))]
                 + const_specs,
        out_specs=pl.BlockSpec((b_tile, 10), lambda i: (i, 0)),
        compiler_params=pltpu.CompilerParams(dimension_semantics=("parallel",)),
    )(x_slab, *const_args)
    return out[:n]


# --------------------------------------------------------------------------- #
# Parameters (deterministic, PyTorch-default-like uniform init)               #
# --------------------------------------------------------------------------- #
def init_params(key, num_channels):
    def unif(k, shape, fan_in):
        bound = 1.0 / np.sqrt(fan_in)
        return jax.random.uniform(k, shape, jnp.float32, -bound, bound)

    ks = jax.random.split(key, 14)
    c = num_channels
    return dict(
        dw1_w=unif(ks[0], (c, 25), 25),      dw1_b=unif(ks[1], (c,), 25),
        pw1_w=unif(ks[2], (6, c), c),        pw1_b=unif(ks[3], (6,), c),
        dw2_w=unif(ks[4], (6, 25), 25),      dw2_b=unif(ks[5], (6,), 25),
        pw2_w=unif(ks[6], (16, 6), 6),       pw2_b=unif(ks[7], (16,), 6),
        fc1_w=unif(ks[8], (400, 120), 400),  fc1_b=unif(ks[9], (1, 120), 400),
        fc2_w=unif(ks[10], (120, 84), 120),  fc2_b=unif(ks[11], (1, 84), 120),
        fc3_w=unif(ks[12], (84, 10), 84),    fc3_b=unif(ks[13], (1, 10), 84),
    )


# --------------------------------------------------------------------------- #
# Pure-JAX reference (for correctness check only)                             #
# --------------------------------------------------------------------------- #
def reference_forward(x, p):
    hi = jax.lax.Precision.HIGHEST

    def dwconv(h, w, b, k=5):
        c = h.shape[1]
        wk = w.reshape(c, 1, k, k)
        y = jax.lax.conv_general_dilated(
            h, wk, (1, 1), 'VALID',
            dimension_numbers=('NCHW', 'OIHW', 'NCHW'),
            feature_group_count=c, precision=hi)
        return y + b.reshape(1, c, 1, 1)

    def pwconv(h, w, b):
        co, ci = w.shape
        wk = w.reshape(co, ci, 1, 1)
        y = jax.lax.conv_general_dilated(
            h, wk, (1, 1), 'VALID',
            dimension_numbers=('NCHW', 'OIHW', 'NCHW'), precision=hi)
        return y + b.reshape(1, co, 1, 1)

    def pool2(h):
        return jax.lax.reduce_window(h, -jnp.inf, jax.lax.max,
                                     (1, 1, 2, 2), (1, 1, 2, 2), 'VALID')

    h = jax.nn.relu(pwconv(dwconv(x, p['dw1_w'], p['dw1_b']), p['pw1_w'], p['pw1_b']))
    h = pool2(h)
    h = jax.nn.relu(pwconv(dwconv(h, p['dw2_w'], p['dw2_b']), p['pw2_w'], p['pw2_b']))
    h = pool2(h)
    h = h.reshape(h.shape[0], -1)
    h = jax.nn.relu(jnp.dot(h, p['fc1_w'], precision=hi) + p['fc1_b'])
    h = jax.nn.relu(jnp.dot(h, p['fc2_w'], precision=hi) + p['fc2_b'])
    return jnp.dot(h, p['fc3_w'], precision=hi) + p['fc3_b']


if __name__ == "__main__":
    key = jax.random.PRNGKey(0)
    pkey, xkey = jax.random.split(key)
    num_channels = 3
    params = init_params(pkey, num_channels)
    # LeNet geometry requires 32x32 spatial so the flatten is 16*5*5 = 400.
    x = jax.random.normal(xkey, (2, num_channels, 32, 32), jnp.float32)

    out = lenet5_d_forward(x, params)
    out = jax.block_until_ready(out)
    assert out.shape == (2, 10)

    ref = reference_forward(x, params)
    np.testing.assert_allclose(np.asarray(out), np.asarray(ref), rtol=1e-2, atol=1e-2)
    print("KERNEL_OK")
</pallas_src>

<mosaic_0001>
module attributes {stable_mosaic.version = 11 : i64} {
  func.func @_lenet_kernel(%arg0: i32, %arg1: memref<256x96xf32, #tpu.memory_space<vmem>>, %arg2: memref<5x96x168xf32, #tpu.memory_space<vmem>>, %arg3: memref<1x168xf32, #tpu.memory_space<vmem>>, %arg4: memref<2x168x84xf32, #tpu.memory_space<vmem>>, %arg5: memref<2x112x252xf32, #tpu.memory_space<vmem>>, %arg6: memref<5x84x160xf32, #tpu.memory_space<vmem>>, %arg7: memref<1x160xf32, #tpu.memory_space<vmem>>, %arg8: memref<2x160x80xf32, #tpu.memory_space<vmem>>, %arg9: memref<2x40x108xf32, #tpu.memory_space<vmem>>, %arg10: memref<5x8x40xf32, #tpu.memory_space<vmem>>, %arg11: memref<5x80x120xf32, #tpu.memory_space<vmem>>, %arg12: memref<1x120xf32, #tpu.memory_space<vmem>>, %arg13: memref<120x84xf32, #tpu.memory_space<vmem>>, %arg14: memref<1x84xf32, #tpu.memory_space<vmem>>, %arg15: memref<84x10xf32, #tpu.memory_space<vmem>>, %arg16: memref<1x10xf32, #tpu.memory_space<vmem>>, %arg17: memref<8x10xf32, #tpu.memory_space<vmem>>) attributes {dimension_semantics = [#tpu.dimension_semantics<parallel>], iteration_bounds = array<i64: 1>, scalar_prefetch = 0 : i64, scratch_operands = 0 : i64, tpu.core_type = #tpu.core_type<tc>, window_params = [{transform_indices = @transform_0, window_bounds = array<i64: 256, 96>}, {pipeline_mode = #tpu.pipeline_mode<synchronous>, transform_indices = @transform_1, window_bounds = array<i64: 5, 96, 168>}, {pipeline_mode = #tpu.pipeline_mode<synchronous>, transform_indices = @transform_2, window_bounds = array<i64: 1, 168>}, {pipeline_mode = #tpu.pipeline_mode<synchronous>, transform_indices = @transform_3, window_bounds = array<i64: 2, 168, 84>}, {pipeline_mode = #tpu.pipeline_mode<synchronous>, transform_indices = @transform_4, window_bounds = array<i64: 2, 112, 252>}, {pipeline_mode = #tpu.pipeline_mode<synchronous>, transform_indices = @transform_5, window_bounds = array<i64: 5, 84, 160>}, {pipeline_mode = #tpu.pipeline_mode<synchronous>, transform_indices = @transform_6, window_bounds = array<i64: 1, 160>}, {pipeline_mode = #tpu.pipeline_mode<synchronous>, transform_indices = @transform_7, window_bounds = array<i64: 2, 160, 80>}, {pipeline_mode = #tpu.pipeline_mode<synchronous>, transform_indices = @transform_8, window_bounds = array<i64: 2, 40, 108>}, {pipeline_mode = #tpu.pipeline_mode<synchronous>, transform_indices = @transform_9, window_bounds = array<i64: 5, 8, 40>}, {pipeline_mode = #tpu.pipeline_mode<synchronous>, transform_indices = @transform_10, window_bounds = array<i64: 5, 80, 120>}, {pipeline_mode = #tpu.pipeline_mode<synchronous>, transform_indices = @transform_11, window_bounds = array<i64: 1, 120>}, {pipeline_mode = #tpu.pipeline_mode<synchronous>, transform_indices = @transform_12, window_bounds = array<i64: 120, 84>}, {pipeline_mode = #tpu.pipeline_mode<synchronous>, transform_indices = @transform_13, window_bounds = array<i64: 1, 84>}, {pipeline_mode = #tpu.pipeline_mode<synchronous>, transform_indices = @transform_14, window_bounds = array<i64: 84, 10>}, {pipeline_mode = #tpu.pipeline_mode<synchronous>, transform_indices = @transform_15, window_bounds = array<i64: 1, 10>}, {transform_indices = @transform_16, window_bounds = array<i64: 8, 10>}]} {
    %c0 = arith.constant 0 : index
    %c0_0 = arith.constant 0 : index
    %0 = vector.load %arg1[%c0, %c0_0] : memref<256x96xf32, #tpu.memory_space<vmem>>, vector<252x96xf32>
    %c0_1 = arith.constant 0 : index
    %c0_2 = arith.constant 0 : index
    %c0_3 = arith.constant 0 : index
    %1 = vector.load %arg2[%c0_1, %c0_2, %c0_3] : memref<5x96x168xf32, #tpu.memory_space<vmem>>, vector<1x96x168xf32>
    %2 = vector.shape_cast %1 : vector<1x96x168xf32> to vector<96x168xf32>
    %cst = arith.constant dense<0.000000e+00> : vector<252x168xf32>
    %3 = tpu.matmul %0, %2, %cst {dimension_numbers = #tpu.dot_dimension_numbers<[1], [0], [0], [1], [0, 0, 1, 1], [], []>} : vector<252x96xf32>, vector<96x168xf32>, vector<252x168xf32> -> vector<252x168xf32>
    %c1 = arith.constant 1 : index
    %c0_4 = arith.constant 0 : index
    %4 = vector.load %arg1[%c1, %c0_4] : memref<256x96xf32, #tpu.memory_space<vmem>>, vector<252x96xf32>
    %c1_5 = arith.constant 1 : index
    %c0_6 = arith.constant 0 : index
    %c0_7 = arith.constant 0 : index
    %5 = vector.load %arg2[%c1_5, %c0_6, %c0_7] : memref<5x96x168xf32, #tpu.memory_space<vmem>>, vector<1x96x168xf32>
    %6 = vector.shape_cast %5 : vector<1x96x168xf32> to vector<96x168xf32>
    %cst_8 = arith.constant dense<0.000000e+00> : vector<252x168xf32>
    %7 = tpu.matmul %4, %6, %cst_8 {dimension_numbers = #tpu.dot_dimension_numbers<[1], [0], [0], [1], [0, 0, 1, 1], [], []>} : vector<252x96xf32>, vector<96x168xf32>, vector<252x168xf32> -> vector<252x168xf32>
    %8 = arith.addf %3, %7 : vector<252x168xf32>
    %c2 = arith.constant 2 : index
    %c0_9 = arith.constant 0 : index
    %9 = vector.load %arg1[%c2, %c0_9] : memref<256x96xf32, #tpu.memory_space<vmem>>, vector<252x96xf32>
    %c2_10 = arith.constant 2 : index
    %c0_11 = arith.constant 0 : index
    %c0_12 = arith.constant 0 : index
    %10 = vector.load %arg2[%c2_10, %c0_11, %c0_12] : memref<5x96x168xf32, #tpu.memory_space<vmem>>, vector<1x96x168xf32>
    %11 = vector.shape_cast %10 : vector<1x96x168xf32> to vector<96x168xf32>
    %cst_13 = arith.constant dense<0.000000e+00> : vector<252x168xf32>
    %12 = tpu.matmul %9, %11, %cst_13 {dimension_numbers = #tpu.dot_dimension_numbers<[1], [0], [0], [1], [0, 0, 1, 1], [], []>} : vector<252x96xf32>, vector<96x168xf32>, vector<252x168xf32> -> vector<252x168xf32>
    %13 = arith.addf %8, %12 : vector<252x168xf32>
    %c3 = arith.constant 3 : index
    %c0_14 = arith.constant 0 : index
    %14 = vector.load %arg1[%c3, %c0_14] : memref<256x96xf32, #tpu.memory_space<vmem>>, vector<252x96xf32>
    %c3_15 = arith.constant 3 : index
    %c0_16 = arith.constant 0 : index
    %c0_17 = arith.constant 0 : index
    %15 = vector.load %arg2[%c3_15, %c0_16, %c0_17] : memref<5x96x168xf32, #tpu.memory_space<vmem>>, vector<1x96x168xf32>
    %16 = vector.shape_cast %15 : vector<1x96x168xf32> to vector<96x168xf32>
    %cst_18 = arith.constant dense<0.000000e+00> : vector<252x168xf32>
    %17 = tpu.matmul %14, %16, %cst_18 {dimension_numbers = #tpu.dot_dimension_numbers<[1], [0], [0], [1], [0, 0, 1, 1], [], []>} : vector<252x96xf32>, vector<96x168xf32>, vector<252x168xf32> -> vector<252x168xf32>
    %18 = arith.addf %13, %17 : vector<252x168xf32>
    %c4 = arith.constant 4 : index
    %c0_19 = arith.constant 0 : index
    %19 = vector.load %arg1[%c4, %c0_19] : memref<256x96xf32, #tpu.memory_space<vmem>>, vector<252x96xf32>
    %c4_20 = arith.constant 4 : index
    %c0_21 = arith.constant 0 : index
    %c0_22 = arith.constant 0 : index
    %20 = vector.load %arg2[%c4_20, %c0_21, %c0_22] : memref<5x96x168xf32, #tpu.memory_space<vmem>>, vector<1x96x168xf32>
    %21 = vector.shape_cast %20 : vector<1x96x168xf32> to vector<96x168xf32>
    %cst_23 = arith.constant dense<0.000000e+00> : vector<252x168xf32>
    %22 = tpu.matmul %19, %21, %cst_23 {dimension_numbers = #tpu.dot_dimension_numbers<[1], [0], [0], [1], [0, 0, 1, 1], [], []>} : vector<252x96xf32>, vector<96x168xf32>, vector<252x168xf32> -> vector<252x168xf32>
    %23 = arith.addf %18, %22 : vector<252x168xf32>
    %c0_24 = arith.constant 0 : index
    %c0_25 = arith.constant 0 : index
    %24 = vector.load %arg3[%c0_24, %c0_25] : memref<1x168xf32, #tpu.memory_space<vmem>>, vector<1x168xf32>
    %25 = vector.broadcast %24 : vector<1x168xf32> to vector<252x168xf32>
    %26 = arith.addf %23, %25 : vector<252x168xf32>
    %cst_26 = arith.constant 0.000000e+00 : f32
    %27 = vector.broadcast %cst_26 : f32 to vector<252x168xf32>
    %28 = arith.maximumf %26, %27 : vector<252x168xf32>
    %c0_27 = arith.constant 0 : index
    %c0_28 = arith.constant 0 : index
    %c0_29 = arith.constant 0 : index
    %29 = vector.load %arg4[%c0_27, %c0_28, %c0_29] : memref<2x168x84xf32, #tpu.memory_space<vmem>>, vector<1x168x84xf32>
    %30 = vector.shape_cast %29 : vector<1x168x84xf32> to vector<168x84xf32>
    %cst_30 = arith.constant dense<0.000000e+00> : vector<252x84xf32>
    %31 = tpu.matmul %28, %30, %cst_30 {dimension_numbers = #tpu.dot_dimension_numbers<[1], [0], [0], [1], [0, 0, 1, 1], [], []>} : vector<252x168xf32>, vector<168x84xf32>, vector<252x84xf32> -> vector<252x84xf32>
    %c1_31 = arith.constant 1 : index
    %c0_32 = arith.constant 0 : index
    %c0_33 = arith.constant 0 : index
    %32 = vector.load %arg4[%c1_31, %c0_32, %c0_33] : memref<2x168x84xf32, #tpu.memory_space<vmem>>, vector<1x168x84xf32>
    %33 = vector.shape_cast %32 : vector<1x168x84xf32> to vector<168x84xf32>
    %cst_34 = arith.constant dense<0.000000e+00> : vector<252x84xf32>
    %34 = tpu.matmul %28, %33, %cst_34 {dimension_numbers = #tpu.dot_dimension_numbers<[1], [0], [0], [1], [0, 0, 1, 1], [], []>} : vector<252x168xf32>, vector<168x84xf32>, vector<252x84xf32> -> vector<252x84xf32>
    %35 = arith.maximumf %31, %34 : vector<252x84xf32>
    %c0_35 = arith.constant 0 : index
    %c0_36 = arith.constant 0 : index
    %c0_37 = arith.constant 0 : index
    %36 = vector.load %arg5[%c0_35, %c0_36, %c0_37] : memref<2x112x252xf32, #tpu.memory_space<vmem>>, vector<1x112x252xf32>
    %37 = vector.shape_cast %36 : vector<1x112x252xf32> to vector<112x252xf32>
    %cst_38 = arith.constant dense<0.000000e+00> : vector<112x84xf32>
    %38 = tpu.matmul %37, %35, %cst_38 {dimension_numbers = #tpu.dot_dimension_numbers<[1], [0], [0], [1], [0, 0, 1, 1], [], []>} : vector<112x252xf32>, vector<252x84xf32>, vector<112x84xf32> -> vector<112x84xf32>
    %c1_39 = arith.constant 1 : index
    %c0_40 = arith.constant 0 : index
    %c0_41 = arith.constant 0 : index
    %39 = vector.load %arg5[%c1_39, %c0_40, %c0_41] : memref<2x112x252xf32, #tpu.memory_space<vmem>>, vector<1x112x252xf32>
    %40 = vector.shape_cast %39 : vector<1x112x252xf32> to vector<112x252xf32>
    %cst_42 = arith.constant dense<0.000000e+00> : vector<112x84xf32>
    %41 = tpu.matmul %40, %35, %cst_42 {dimension_numbers = #tpu.dot_dimension_numbers<[1], [0], [0], [1], [0, 0, 1, 1], [], []>} : vector<112x252xf32>, vector<252x84xf32>, vector<112x84xf32> -> vector<112x84xf32>
    %42 = arith.maximumf %38, %41 : vector<112x84xf32>
    %43 = vector.extract_strided_slice %42 {offsets = [0, 0], sizes = [108, 84], strides = [1, 1]} : vector<112x84xf32> to vector<108x84xf32>
    %c0_43 = arith.constant 0 : index
    %c0_44 = arith.constant 0 : index
    %c0_45 = arith.constant 0 : index
    %44 = vector.load %arg6[%c0_43, %c0_44, %c0_45] : memref<5x84x160xf32, #tpu.memory_space<vmem>>, vector<1x84x160xf32>
    %45 = vector.shape_cast %44 : vector<1x84x160xf32> to vector<84x160xf32>
    %cst_46 = arith.constant dense<0.000000e+00> : vector<108x160xf32>
    %46 = tpu.matmul %43, %45, %cst_46 {dimension_numbers = #tpu.dot_dimension_numbers<[1], [0], [0], [1], [0, 0, 1, 1], [], []>} : vector<108x84xf32>, vector<84x160xf32>, vector<108x160xf32> -> vector<108x160xf32>
    %47 = vector.extract_strided_slice %42 {offsets = [1, 0], sizes = [108, 84], strides = [1, 1]} : vector<112x84xf32> to vector<108x84xf32>
    %c1_47 = arith.constant 1 : index
    %c0_48 = arith.constant 0 : index
    %c0_49 = arith.constant 0 : index
    %48 = vector.load %arg6[%c1_47, %c0_48, %c0_49] : memref<5x84x160xf32, #tpu.memory_space<vmem>>, vector<1x84x160xf32>
    %49 = vector.shape_cast %48 : vector<1x84x160xf32> to vector<84x160xf32>
    %cst_50 = arith.constant dense<0.000000e+00> : vector<108x160xf32>
    %50 = tpu.matmul %47, %49, %cst_50 {dimension_numbers = #tpu.dot_dimension_numbers<[1], [0], [0], [1], [0, 0, 1, 1], [], []>} : vector<108x84xf32>, vector<84x160xf32>, vector<108x160xf32> -> vector<108x160xf32>
    %51 = arith.addf %46, %50 : vector<108x160xf32>
    %52 = vector.extract_strided_slice %42 {offsets = [2, 0], sizes = [108, 84], strides = [1, 1]} : vector<112x84xf32> to vector<108x84xf32>
    %c2_51 = arith.constant 2 : index
    %c0_52 = arith.constant 0 : index
    %c0_53 = arith.constant 0 : index
    %53 = vector.load %arg6[%c2_51, %c0_52, %c0_53] : memref<5x84x160xf32, #tpu.memory_space<vmem>>, vector<1x84x160xf32>
    %54 = vector.shape_cast %53 : vector<1x84x160xf32> to vector<84x160xf32>
    %cst_54 = arith.constant dense<0.000000e+00> : vector<108x160xf32>
    %55 = tpu.matmul %52, %54, %cst_54 {dimension_numbers = #tpu.dot_dimension_numbers<[1], [0], [0], [1], [0, 0, 1, 1], [], []>} : vector<108x84xf32>, vector<84x160xf32>, vector<108x160xf32> -> vector<108x160xf32>
    %56 = arith.addf %51, %55 : vector<108x160xf32>
    %57 = vector.extract_strided_slice %42 {offsets = [3, 0], sizes = [108, 84], strides = [1, 1]} : vector<112x84xf32> to vector<108x84xf32>
    %c3_55 = arith.constant 3 : index
    %c0_56 = arith.constant 0 : index
    %c0_57 = arith.constant 0 : index
    %58 = vector.load %arg6[%c3_55, %c0_56, %c0_57] : memref<5x84x160xf32, #tpu.memory_space<vmem>>, vector<1x84x160xf32>
    %59 = vector.shape_cast %58 : vector<1x84x160xf32> to vector<84x160xf32>
    %cst_58 = arith.constant dense<0.000000e+00> : vector<108x160xf32>
    %60 = tpu.matmul %57, %59, %cst_58 {dimension_numbers = #tpu.dot_dimension_numbers<[1], [0], [0], [1], [0, 0, 1, 1], [], []>} : vector<108x84xf32>, vector<84x160xf32>, vector<108x160xf32> -> vector<108x160xf32>
    %61 = arith.addf %56, %60 : vector<108x160xf32>
    %62 = vector.extract_strided_slice %42 {offsets = [4, 0], sizes = [108, 84], strides = [1, 1]} : vector<112x84xf32> to vector<108x84xf32>
    %c4_59 = arith.constant 4 : index
    %c0_60 = arith.constant 0 : index
    %c0_61 = arith.constant 0 : index
    %63 = vector.load %arg6[%c4_59, %c0_60, %c0_61] : memref<5x84x160xf32, #tpu.memory_space<vmem>>, vector<1x84x160xf32>
    %64 = vector.shape_cast %63 : vector<1x84x160xf32> to vector<84x160xf32>
    %cst_62 = arith.constant dense<0.000000e+00> : vector<108x160xf32>
    %65 = tpu.matmul %62, %64, %cst_62 {dimension_numbers = #tpu.dot_dimension_numbers<[1], [0], [0], [1], [0, 0, 1, 1], [], []>} : vector<108x84xf32>, vector<84x160xf32>, vector<108x160xf32> -> vector<108x160xf32>
    %66 = arith.addf %61, %65 : vector<108x160xf32>
    %c0_63 = arith.constant 0 : index
    %c0_64 = arith.constant 0 : index
    %67 = vector.load %arg7[%c0_63, %c0_64] : memref<1x160xf32, #tpu.memory_space<vmem>>, vector<1x160xf32>
    %68 = vector.broadcast %67 : vector<1x160xf32> to vector<108x160xf32>
    %69 = arith.addf %66, %68 : vector<108x160xf32>
    %cst_65 = arith.constant 0.000000e+00 : f32
    %70 = vector.broadcast %cst_65 : f32 to vector<108x160xf32>
    %71 = arith.maximumf %69, %70 : vector<108x160xf32>
    %c0_66 = arith.constant 0 : index
    %c0_67 = arith.constant 0 : index
    %c0_68 = arith.constant 0 : index
    %72 = vector.load %arg8[%c0_66, %c0_67, %c0_68] : memref<2x160x80xf32, #tpu.memory_space<vmem>>, vector<1x160x80xf32>
    %73 = vector.shape_cast %72 : vector<1x160x80xf32> to vector<160x80xf32>
    %cst_69 = arith.constant dense<0.000000e+00> : vector<108x80xf32>
    %74 = tpu.matmul %71, %73, %cst_69 {dimension_numbers = #tpu.dot_dimension_numbers<[1], [0], [0], [1], [0, 0, 1, 1], [], []>} : vector<108x160xf32>, vector<160x80xf32>, vector<108x80xf32> -> vector<108x80xf32>
    %c1_70 = arith.constant 1 : index
    %c0_71 = arith.constant 0 : index
    %c0_72 = arith.constant 0 : index
    %75 = vector.load %arg8[%c1_70, %c0_71, %c0_72] : memref<2x160x80xf32, #tpu.memory_space<vmem>>, vector<1x160x80xf32>
    %76 = vector.shape_cast %75 : vector<1x160x80xf32> to vector<160x80xf32>
    %cst_73 = arith.constant dense<0.000000e+00> : vector<108x80xf32>
    %77 = tpu.matmul %71, %76, %cst_73 {dimension_numbers = #tpu.dot_dimension_numbers<[1], [0], [0], [1], [0, 0, 1, 1], [], []>} : vector<108x160xf32>, vector<160x80xf32>, vector<108x80xf32> -> vector<108x80xf32>
    %78 = arith.maximumf %74, %77 : vector<108x80xf32>
    %c0_74 = arith.constant 0 : index
    %c0_75 = arith.constant 0 : index
    %c0_76 = arith.constant 0 : index
    %79 = vector.load %arg9[%c0_74, %c0_75, %c0_76] : memref<2x40x108xf32, #tpu.memory_space<vmem>>, vector<1x40x108xf32>
    %80 = vector.shape_cast %79 : vector<1x40x108xf32> to vector<40x108xf32>
    %cst_77 = arith.constant dense<0.000000e+00> : vector<40x80xf32>
    %81 = tpu.matmul %80, %78, %cst_77 {dimension_numbers = #tpu.dot_dimension_numbers<[1], [0], [0], [1], [0, 0, 1, 1], [], []>} : vector<40x108xf32>, vector<108x80xf32>, vector<40x80xf32> -> vector<40x80xf32>
    %c1_78 = arith.constant 1 : index
    %c0_79 = arith.constant 0 : index
    %c0_80 = arith.constant 0 : index
    %82 = vector.load %arg9[%c1_78, %c0_79, %c0_80] : memref<2x40x108xf32, #tpu.memory_space<vmem>>, vector<1x40x108xf32>
    %83 = vector.shape_cast %82 : vector<1x40x108xf32> to vector<40x108xf32>
    %cst_81 = arith.constant dense<0.000000e+00> : vector<40x80xf32>
    %84 = tpu.matmul %83, %78, %cst_81 {dimension_numbers = #tpu.dot_dimension_numbers<[1], [0], [0], [1], [0, 0, 1, 1], [], []>} : vector<40x108xf32>, vector<108x80xf32>, vector<40x80xf32> -> vector<40x80xf32>
    %85 = arith.maximumf %81, %84 : vector<40x80xf32>
    %c0_82 = arith.constant 0 : index
    %c0_83 = arith.constant 0 : index
    %c0_84 = arith.constant 0 : index
    %86 = vector.load %arg10[%c0_82, %c0_83, %c0_84] : memref<5x8x40xf32, #tpu.memory_space<vmem>>, vector<1x8x40xf32>
    %87 = vector.shape_cast %86 : vector<1x8x40xf32> to vector<8x40xf32>
    %cst_85 = arith.constant dense<0.000000e+00> : vector<8x80xf32>
    %88 = tpu.matmul %87, %85, %cst_85 {dimension_numbers = #tpu.dot_dimension_numbers<[1], [0], [0], [1], [0, 0, 1, 1], [], []>} : vector<8x40xf32>, vector<40x80xf32>, vector<8x80xf32> -> vector<8x80xf32>
    %c0_86 = arith.constant 0 : index
    %c0_87 = arith.constant 0 : index
    %c0_88 = arith.constant 0 : index
    %89 = vector.load %arg11[%c0_86, %c0_87, %c0_88] : memref<5x80x120xf32, #tpu.memory_space<vmem>>, vector<1x80x120xf32>
    %90 = vector.shape_cast %89 : vector<1x80x120xf32> to vector<80x120xf32>
    %cst_89 = arith.constant dense<0.000000e+00> : vector<8x120xf32>
    %91 = tpu.matmul %88, %90, %cst_89 {dimension_numbers = #tpu.dot_dimension_numbers<[1], [0], [0], [1], [0, 0, 1, 1], [], []>} : vector<8x80xf32>, vector<80x120xf32>, vector<8x120xf32> -> vector<8x120xf32>
    %c1_90 = arith.constant 1 : index
    %c0_91 = arith.constant 0 : index
    %c0_92 = arith.constant 0 : index
    %92 = vector.load %arg10[%c1_90, %c0_91, %c0_92] : memref<5x8x40xf32, #tpu.memory_space<vmem>>, vector<1x8x40xf32>
    %93 = vector.shape_cast %92 : vector<1x8x40xf32> to vector<8x40xf32>
    %cst_93 = arith.constant dense<0.000000e+00> : vector<8x80xf32>
    %94 = tpu.matmul %93, %85, %cst_93 {dimension_numbers = #tpu.dot_dimension_numbers<[1], [0], [0], [1], [0, 0, 1, 1], [], []>} : vector<8x40xf32>, vector<40x80xf32>, vector<8x80xf32> -> vector<8x80xf32>
    %c1_94 = arith.constant 1 : index
    %c0_95 = arith.constant 0 : index
    %c0_96 = arith.constant 0 : index
    %95 = vector.load %arg11[%c1_94, %c0_95, %c0_96] : memref<5x80x120xf32, #tpu.memory_space<vmem>>, vector<1x80x120xf32>
    %96 = vector.shape_cast %95 : vector<1x80x120xf32> to vector<80x120xf32>
    %cst_97 = arith.constant dense<0.000000e+00> : vector<8x120xf32>
    %97 = tpu.matmul %94, %96, %cst_97 {dimension_numbers = #tpu.dot_dimension_numbers<[1], [0], [0], [1], [0, 0, 1, 1], [], []>} : vector<8x80xf32>, vector<80x120xf32>, vector<8x120xf32> -> vector<8x120xf32>
    %98 = arith.addf %91, %97 : vector<8x120xf32>
    %c2_98 = arith.constant 2 : index
    %c0_99 = arith.constant 0 : index
    %c0_100 = arith.constant 0 : index
    %99 = vector.load %arg10[%c2_98, %c0_99, %c0_100] : memref<5x8x40xf32, #tpu.memory_space<vmem>>, vector<1x8x40xf32>
    %100 = vector.shape_cast %99 : vector<1x8x40xf32> to vector<8x40xf32>
    %cst_101 = arith.constant dense<0.000000e+00> : vector<8x80xf32>
    %101 = tpu.matmul %100, %85, %cst_101 {dimension_numbers = #tpu.dot_dimension_numbers<[1], [0], [0], [1], [0, 0, 1, 1], [], []>} : vector<8x40xf32>, vector<40x80xf32>, vector<8x80xf32> -> vector<8x80xf32>
    %c2_102 = arith.constant 2 : index
    %c0_103 = arith.constant 0 : index
    %c0_104 = arith.constant 0 : index
    %102 = vector.load %arg11[%c2_102, %c0_103, %c0_104] : memref<5x80x120xf32, #tpu.memory_space<vmem>>, vector<1x80x120xf32>
    %103 = vector.shape_cast %102 : vector<1x80x120xf32> to vector<80x120xf32>
    %cst_105 = arith.constant dense<0.000000e+00> : vector<8x120xf32>
    %104 = tpu.matmul %101, %103, %cst_105 {dimension_numbers = #tpu.dot_dimension_numbers<[1], [0], [0], [1], [0, 0, 1, 1], [], []>} : vector<8x80xf32>, vector<80x120xf32>, vector<8x120xf32> -> vector<8x120xf32>
    %105 = arith.addf %98, %104 : vector<8x120xf32>
    %c3_106 = arith.constant 3 : index
    %c0_107 = arith.constant 0 : index
    %c0_108 = arith.constant 0 : index
    %106 = vector.load %arg10[%c3_106, %c0_107, %c0_108] : memref<5x8x40xf32, #tpu.memory_space<vmem>>, vector<1x8x40xf32>
    %107 = vector.shape_cast %106 : vector<1x8x40xf32> to vector<8x40xf32>
    %cst_109 = arith.constant dense<0.000000e+00> : vector<8x80xf32>
    %108 = tpu.matmul %107, %85, %cst_109 {dimension_numbers = #tpu.dot_dimension_numbers<[1], [0], [0], [1], [0, 0, 1, 1], [], []>} : vector<8x40xf32>, vector<40x80xf32>, vector<8x80xf32> -> vector<8x80xf32>
    %c3_110 = arith.constant 3 : index
    %c0_111 = arith.constant 0 : index
    %c0_112 = arith.constant 0 : index
    %109 = vector.load %arg11[%c3_110, %c0_111, %c0_112] : memref<5x80x120xf32, #tpu.memory_space<vmem>>, vector<1x80x120xf32>
    %110 = vector.shape_cast %109 : vector<1x80x120xf32> to vector<80x120xf32>
    %cst_113 = arith.constant dense<0.000000e+00> : vector<8x120xf32>
    %111 = tpu.matmul %108, %110, %cst_113 {dimension_numbers = #tpu.dot_dimension_numbers<[1], [0], [0], [1], [0, 0, 1, 1], [], []>} : vector<8x80xf32>, vector<80x120xf32>, vector<8x120xf32> -> vector<8x120xf32>
    %112 = arith.addf %105, %111 : vector<8x120xf32>
    %c4_114 = arith.constant 4 : index
    %c0_115 = arith.constant 0 : index
    %c0_116 = arith.constant 0 : index
    %113 = vector.load %arg10[%c4_114, %c0_115, %c0_116] : memref<5x8x40xf32, #tpu.memory_space<vmem>>, vector<1x8x40xf32>
    %114 = vector.shape_cast %113 : vector<1x8x40xf32> to vector<8x40xf32>
    %cst_117 = arith.constant dense<0.000000e+00> : vector<8x80xf32>
    %115 = tpu.matmul %114, %85, %cst_117 {dimension_numbers = #tpu.dot_dimension_numbers<[1], [0], [0], [1], [0, 0, 1, 1], [], []>} : vector<8x40xf32>, vector<40x80xf32>, vector<8x80xf32> -> vector<8x80xf32>
    %c4_118 = arith.constant 4 : index
    %c0_119 = arith.constant 0 : index
    %c0_120 = arith.constant 0 : index
    %116 = vector.load %arg11[%c4_118, %c0_119, %c0_120] : memref<5x80x120xf32, #tpu.memory_space<vmem>>, vector<1x80x120xf32>
    %117 = vector.shape_cast %116 : vector<1x80x120xf32> to vector<80x120xf32>
    %cst_121 = arith.constant dense<0.000000e+00> : vector<8x120xf32>
    %118 = tpu.matmul %115, %117, %cst_121 {dimension_numbers = #tpu.dot_dimension_numbers<[1], [0], [0], [1], [0, 0, 1, 1], [], []>} : vector<8x80xf32>, vector<80x120xf32>, vector<8x120xf32> -> vector<8x120xf32>
    %119 = arith.addf %112, %118 : vector<8x120xf32>
    %c0_122 = arith.constant 0 : index
    %c0_123 = arith.constant 0 : index
    %120 = vector.load %arg12[%c0_122, %c0_123] : memref<1x120xf32, #tpu.memory_space<vmem>>, vector<1x120xf32>
    %121 = vector.broadcast %120 : vector<1x120xf32> to vector<8x120xf32>
    %122 = arith.addf %119, %121 : vector<8x120xf32>
    %cst_124 = arith.constant 0.000000e+00 : f32
    %123 = vector.broadcast %cst_124 : f32 to vector<8x120xf32>
    %124 = arith.maximumf %122, %123 : vector<8x120xf32>
    %c0_125 = arith.constant 0 : index
    %c0_126 = arith.constant 0 : index
    %125 = vector.load %arg13[%c0_125, %c0_126] : memref<120x84xf32, #tpu.memory_space<vmem>>, vector<120x84xf32>
    %cst_127 = arith.constant dense<0.000000e+00> : vector<8x84xf32>
    %126 = tpu.matmul %124, %125, %cst_127 {dimension_numbers = #tpu.dot_dimension_numbers<[1], [0], [0], [1], [0, 0, 1, 1], [], []>} : vector<8x120xf32>, vector<120x84xf32>, vector<8x84xf32> -> vector<8x84xf32>
    %c0_128 = arith.constant 0 : index
    %c0_129 = arith.constant 0 : index
    %127 = vector.load %arg14[%c0_128, %c0_129] : memref<1x84xf32, #tpu.memory_space<vmem>>, vector<1x84xf32>
    %128 = vector.broadcast %127 : vector<1x84xf32> to vector<8x84xf32>
    %129 = arith.addf %126, %128 : vector<8x84xf32>
    %cst_130 = arith.constant 0.000000e+00 : f32
    %130 = vector.broadcast %cst_130 : f32 to vector<8x84xf32>
    %131 = arith.maximumf %129, %130 : vector<8x84xf32>
    %c0_131 = arith.constant 0 : index
    %c0_132 = arith.constant 0 : index
    %132 = vector.load %arg15[%c0_131, %c0_132] : memref<84x10xf32, #tpu.memory_space<vmem>>, vector<84x10xf32>
    %cst_133 = arith.constant dense<0.000000e+00> : vector<8x10xf32>
    %133 = tpu.matmul %131, %132, %cst_133 {dimension_numbers = #tpu.dot_dimension_numbers<[1], [0], [0], [1], [0, 0, 1, 1], [], []>} : vector<8x84xf32>, vector<84x10xf32>, vector<8x10xf32> -> vector<8x10xf32>
    %c0_134 = arith.constant 0 : index
    %c0_135 = arith.constant 0 : index
    %134 = vector.load %arg16[%c0_134, %c0_135] : memref<1x10xf32, #tpu.memory_space<vmem>>, vector<1x10xf32>
    %135 = vector.broadcast %134 : vector<1x10xf32> to vector<8x10xf32>
    %136 = arith.addf %133, %135 : vector<8x10xf32>
    %c0_136 = arith.constant 0 : index
    %c0_137 = arith.constant 0 : index
    %137 = vector.load %arg17[%c0_136, %c0_137] : memref<8x10xf32, #tpu.memory_space<vmem>>, vector<8x10xf32>
    tpu.vector_store %arg17[%c0_136, %c0_137], %136 {strides = array<i32>} : memref<8x10xf32, #tpu.memory_space<vmem>>, vector<8x10xf32>,
    return
  }
  func.func @transform_0(%arg0: i32) -> (i32, i32) {
    %c0_i32 = arith.constant 0 : i32
    %c0_i32_0 = arith.constant 0 : i32
    return %arg0, %c0_i32 : i32, i32
  }
  func.func @transform_1(%arg0: i32) -> (i32, i32, i32) {
    %c0_i32 = arith.constant 0 : i32
    %c0_i32_0 = arith.constant 0 : i32
    %c0_i32_1 = arith.constant 0 : i32
    %c0_i32_2 = arith.constant 0 : i32
    return %c0_i32, %c0_i32_0, %c0_i32_1 : i32, i32, i32
  }
  func.func @transform_2(%arg0: i32) -> (i32, i32) {
    %c0_i32 = arith.constant 0 : i32
    %c0_i32_0 = arith.constant 0 : i32
    %c0_i32_1 = arith.constant 0 : i32
    return %c0_i32, %c0_i32_0 : i32, i32
  }
  func.func @transform_3(%arg0: i32) -> (i32, i32, i32) {
    %c0_i32 = arith.constant 0 : i32
    %c0_i32_0 = arith.constant 0 : i32
    %c0_i32_1 = arith.constant 0 : i32
    %c0_i32_2 = arith.constant 0 : i32
    return %c0_i32, %c0_i32_0, %c0_i32_1 : i32, i32, i32
  }
  func.func @transform_4(%arg0: i32) -> (i32, i32, i32) {
    %c0_i32 = arith.constant 0 : i32
    %c0_i32_0 = arith.constant 0 : i32
    %c0_i32_1 = arith.constant 0 : i32
    %c0_i32_2 = arith.constant 0 : i32
    return %c0_i32, %c0_i32_0, %c0_i32_1 : i32, i32, i32
  }
  func.func @transform_5(%arg0: i32) -> (i32, i32, i32) {
    %c0_i32 = arith.constant 0 : i32
    %c0_i32_0 = arith.constant 0 : i32
    %c0_i32_1 = arith.constant 0 : i32
    %c0_i32_2 = arith.constant 0 : i32
    return %c0_i32, %c0_i32_0, %c0_i32_1 : i32, i32, i32
  }
  func.func @transform_6(%arg0: i32) -> (i32, i32) {
    %c0_i32 = arith.constant 0 : i32
    %c0_i32_0 = arith.constant 0 : i32
    %c0_i32_1 = arith.constant 0 : i32
    return %c0_i32, %c0_i32_0 : i32, i32
  }
  func.func @transform_7(%arg0: i32) -> (i32, i32, i32) {
    %c0_i32 = arith.constant 0 : i32
    %c0_i32_0 = arith.constant 0 : i32
    %c0_i32_1 = arith.constant 0 : i32
    %c0_i32_2 = arith.constant 0 : i32
    return %c0_i32, %c0_i32_0, %c0_i32_1 : i32, i32, i32
  }
  func.func @transform_8(%arg0: i32) -> (i32, i32, i32) {
    %c0_i32 = arith.constant 0 : i32
    %c0_i32_0 = arith.constant 0 : i32
    %c0_i32_1 = arith.constant 0 : i32
    %c0_i32_2 = arith.constant 0 : i32
    return %c0_i32, %c0_i32_0, %c0_i32_1 : i32, i32, i32
  }
  func.func @transform_9(%arg0: i32) -> (i32, i32, i32) {
    %c0_i32 = arith.constant 0 : i32
    %c0_i32_0 = arith.constant 0 : i32
    %c0_i32_1 = arith.constant 0 : i32
    %c0_i32_2 = arith.constant 0 : i32
    return %c0_i32, %c0_i32_0, %c0_i32_1 : i32, i32, i32
  }
  func.func @transform_10(%arg0: i32) -> (i32, i32, i32) {
    %c0_i32 = arith.constant 0 : i32
    %c0_i32_0 = arith.constant 0 : i32
    %c0_i32_1 = arith.constant 0 : i32
    %c0_i32_2 = arith.constant 0 : i32
    return %c0_i32, %c0_i32_0, %c0_i32_1 : i32, i32, i32
  }
  func.func @transform_11(%arg0: i32) -> (i32, i32) {
    %c0_i32 = arith.constant 0 : i32
    %c0_i32_0 = arith.constant 0 : i32
    %c0_i32_1 = arith.constant 0 : i32
    return %c0_i32, %c0_i32_0 : i32, i32
  }
  func.func @transform_12(%arg0: i32) -> (i32, i32) {
    %c0_i32 = arith.constant 0 : i32
    %c0_i32_0 = arith.constant 0 : i32
    %c0_i32_1 = arith.constant 0 : i32
    return %c0_i32, %c0_i32_0 : i32, i32
  }
  func.func @transform_13(%arg0: i32) -> (i32, i32) {
    %c0_i32 = arith.constant 0 : i32
    %c0_i32_0 = arith.constant 0 : i32
    %c0_i32_1 = arith.constant 0 : i32
    return %c0_i32, %c0_i32_0 : i32, i32
  }
  func.func @transform_14(%arg0: i32) -> (i32, i32) {
    %c0_i32 = arith.constant 0 : i32
    %c0_i32_0 = arith.constant 0 : i32
    %c0_i32_1 = arith.constant 0 : i32
    return %c0_i32, %c0_i32_0 : i32, i32
  }
  func.func @transform_15(%arg0: i32) -> (i32, i32) {
    %c0_i32 = arith.constant 0 : i32
    %c0_i32_0 = arith.constant 0 : i32
    %c0_i32_1 = arith.constant 0 : i32
    return %c0_i32, %c0_i32_0 : i32, i32
  }
  func.func @transform_16(%arg0: i32) -> (i32, i32) {
    %c0_i32 = arith.constant 0 : i32
    %c0_i32_0 = arith.constant 0 : i32
    return %arg0, %c0_i32 : i32, i32
  }
}

</mosaic_0001>

<bundles_post_ra>
// kernel: mul.37
= control target key start
LH: loop header
LB: loop body
LE: loop exit
PB: predicated region body
PF: predicated region fallthrough
CT: control target
= control target key end

     0   :  { %2 = vsyncpa [#allocation1], 0  ;;  %s84_s6 = smov [#allocation0]   ;;  %s142_s0 = inlined_call_operand.hbm [shape: f32[6,25], index: 0, kind: input, shape index: {}]   ;;  %s143_s1 = inlined_call_operand.vmem [shape: f32[6,5,5], index: 1, kind: output, shape index: {}]  }
   0x1   :  { %s7_s7 = sshll.u32 %s84_s6, 4  ;;  %s8_s7 = int_to_ptr.vmem [resolvable:$true] %s7_s7 }
   0x2   :  { %s70_s8 = scalar_lea.vmem %s8_s7, 128  ;;  %p75_p1 = scmp.lt.s32.totalorder %s8_s7, %s8_s7 }
   0x3   :  { %p71_p0 = scmp.ne.s32.totalorder %s8_s7, %s70_s8  ;;  %p76_p2 = scmp.lt.s32.totalorder %s70_s8, %s70_s8 }
   0x5   :  { %p77_p3 = por %p76_p2, %p75_p1 }
   0x7   :  { %p78_p4 = pnand %p77_p3, %p71_p0 }
   0x9   :  { %81 = shalt.err (!%p78_p4)
}
   0xa   :  { %10 = dma.hbm_to_vmem [thread:$0]  %s142_s0, 128, %s8_s7, [#allocation1]  }
   0xb   :  { %82 = dma.done.wait [#allocation1], 128  }
   0xc   :  { %83 = vsyncadd [#allocation1], 4294967168  ;;  %v32_v0 = vld [vmem:[#allocation0] sm:$0x3f]   ;;  %s85_s0 = smov 113   ;;  %s86_s11 = smov 123  }
   0xd   :  { %v16_v1 = vld [vmem:[#allocation0] sm:$0x3f]   ;;  %33 = vrot.lane.b32.xlu1 %v32_v0, %s85_s0  ;;  %vm13_vm0 = vcmask 39936   ;;  %s87_s16 = smov 108   ;;  %s88_s17 = smov 118  }
   0xe   :  { %17 = vrot.lane.b32.xlu0 %v16_v1, %s86_s11  ;;  %v12_v2 = vld [vmem:[#allocation0] sm:$0x3f]  }
   0xf   :  { %v40_v3 = vld [vmem:[#allocation0] sm:$0x3f]   ;;  %14 = vst.msk [vmem:[%s143_s1] ss:$8 sm:$0xf] %vm13_vm0, %v12_v2  }
  0x10   :  { %v24_v4 = vld [vmem:[#allocation0] sm:$0x3f]   ;;  %15 = vst.msk [vmem:[%s143_s1] ss:$8 sm:$0x30] %vm13_vm0, %v12_v2  }
  0x11   :  { %41 = vrot.lane.b32.xlu1 %v40_v3, %s87_s16 }
  0x12   :  { %25 = vrot.lane.b32.xlu0 %v24_v4, %s88_s17 }
  0x7f   :  { %v34_v5 = vpop.permute.xlu1 %33  }
  0x80   :  { %v18_v6 = vpop.permute.xlu0 %17   ;;  %53 = vst.msk [vmem:[%s143_s1 + $0x3] ss:$8 sm:$0xf] %vm13_vm0, %v34_v5   ;;  %54 = vst.msk [vmem:[%s143_s1 + $0x3] ss:$8 sm:$0x30] %vm13_vm0, %v34_v5  }
  0x81   :  { %49 = vst.msk [vmem:[%s143_s1 + $0x1] ss:$8 sm:$0xf] %vm13_vm0, %v18_v6   ;;  %50 = vst.msk [vmem:[%s143_s1 + $0x1] ss:$8 sm:$0x30] %vm13_vm0, %v18_v6  }
  0x83   :  { %v42_v7 = vpop.permute.xlu1 %41  }
  0x84   :  { %v26_v8 = vpop.permute.xlu0 %25   ;;  %55 = vst.msk [vmem:[%s143_s1 + $0x4] ss:$8 sm:$0xf] %vm13_vm0, %v42_v7   ;;  %56 = vst.msk [vmem:[%s143_s1 + $0x4] ss:$8 sm:$0x30] %vm13_vm0, %v42_v7  }
  0x85   :  { %51 = vst.msk [vmem:[%s143_s1 + $0x2] ss:$8 sm:$0xf] %vm13_vm0, %v26_v8   ;;  %52 = vst.msk [vmem:[%s143_s1 + $0x2] ss:$8 sm:$0x30] %vm13_vm0, %v26_v8  }
  0x86   :  { %48 = vsyncpa [#allocation1], 1 }

// kernel: mul.26
= control target key start
LH: loop header
LB: loop body
LE: loop exit
PB: predicated region body
PF: predicated region fallthrough
CT: control target
= control target key end

     0   :  { %s43_s8 = smov 123   ;;  %vm8_vm0 = vcmask 39936   ;;  %s44_s11 = smov 108   ;;  %s79_s0 = inlined_call_operand.vmem [shape: f32[3,25], index: 0, kind: input, shape index: {}]   ;;  %s80_s1 = inlined_call_operand.vmem [shape: f32[3,5,5], index: 1, kind: output, shape index: {}]  }
   0x1   :  { %v5_v0 = vld [vmem:[%s79_s0] sm:$0xf]  ;;  %s42_s0 = smov 113   ;;  %s45_s12 = smov 118  }
   0x2   :  { %6 = vst [vmem:[#allocation0] sm:$0xf] %v5_v0 }
   0x9   :  { %v22_v1 = vld [vmem:[#allocation0] sm:$0x7]  }
   0xa   :  { %v10_v2 = vld [vmem:[#allocation0] sm:$0x7]   ;;  %23 = vrot.lane.b32.xlu1 %v22_v1, %s42_s0 }
   0xb   :  { %11 = vrot.lane.b32.xlu0 %v10_v2, %s43_s8  ;;  %v7_v3 = vld [vmem:[#allocation0] sm:$0x7]  }
   0xc   :  { %v28_v4 = vld [vmem:[#allocation0] sm:$0x7]   ;;  %9 = vst.msk [vmem:[%s80_s1] ss:$8 sm:$0x7] %vm8_vm0, %v7_v3  }
   0xd   :  { %v16_v5 = vld [vmem:[#allocation0] sm:$0x7]  }
   0xe   :  { %29 = vrot.lane.b32.xlu1 %v28_v4, %s44_s11 }
   0xf   :  { %17 = vrot.lane.b32.xlu0 %v16_v5, %s45_s12 }
  0x7c   :  { %v24_v6 = vpop.permute.xlu1 %23  }
  0x7d   :  { %v12_v7 = vpop.permute.xlu0 %11   ;;  %36 = vst.msk [vmem:[%s80_s1 + $0x3] ss:$8 sm:$0x7] %vm8_vm0, %v24_v6  }
  0x7e   :  { %34 = vst.msk [vmem:[%s80_s1 + $0x1] ss:$8 sm:$0x7] %vm8_vm0, %v12_v7  }
  0x80   :  { %v30_v8 = vpop.permute.xlu1 %29  }
  0x81   :  { %v18_v9 = vpop.permute.xlu0 %17   ;;  %37 = vst.msk [vmem:[%s80_s1 + $0x4] ss:$8 sm:$0x7] %vm8_vm0, %v30_v8  }
  0x82   :  { %35 = vst.msk [vmem:[%s80_s1 + $0x2] ss:$8 sm:$0x7] %vm8_vm0, %v18_v9  }

// kernel: lenet5_d_forward.1
= control target key start
LH: loop header
LB: loop body
LE: loop exit
PB: predicated region body
PF: predicated region fallthrough
CT: control target
= control target key end

     0   :  { %v12007_v3 = vmov 0.0   ;;  %vm166_vm0 = vcmask 785408   ;;  %vm2456_vm1 = vcmask 326656   ;;  %vm3085_vm2 = vcmask 1014784   ;;  %s11989_s1 = inlined_call_operand.vmem [shape: f32[5,96,168], index: 1, kind: input, shape index: {}]   ;;  %s11990_s0 = inlined_call_operand.vmem [shape: f32[256,96], index: 0, kind: input, shape index: {}]   ;;  %s11991_s3 = inlined_call_operand.vmem [shape: f32[2,168,84], index: 3, kind: input, shape index: {}]   ;;  %s11992_s2 = inlined_call_operand.vmem [shape: f32[1,168], index: 2, kind: input, shape index: {}]   ;;  %s11993_s4 = inlined_call_operand.vmem [shape: f32[2,112,252], index: 4, kind: input, shape index: {}]   ;;  %s11994_s5 = inlined_call_operand.vmem [shape: f32[5,84,160], index: 5, kind: input, shape index: {}]   ;;  %s11995_s7 = inlined_call_operand.vmem [shape: f32[2,160,80], index: 7, kind: input, shape index: {}]   ;;  %s11996_s6 = inlined_call_operand.vmem [shape: f32[1,160], index: 6, kind: input, shape index: {}]   ;;  %s11997_s8 = inlined_call_operand.vmem [shape: f32[2,40,108], index: 8, kind: input, shape index: {}]   ;;  %s11998_s9 = inlined_call_operand.vmem [shape: f32[5,8,40], index: 9, kind: input, shape index: {}]   ;;  %s11999_s10 = inlined_call_operand.vmem [shape: f32[5,80,120], index: 10, kind: input, shape index: {}]   ;;  %s12000_s12 = inlined_call_operand.vmem [shape: f32[120,84], index: 12, kind: input, shape index: {}]   ;;  %s12001_s14 = inlined_call_operand.vmem [shape: f32[84,10], index: 14, kind: input, shape index: {}]   ;;  %s12002_s11 = inlined_call_operand.vmem [shape: f32[1,120], index: 11, kind: input, shape index: {}]   ;;  %s12003_s13 = inlined_call_operand.vmem [shape: f32[1,84], index: 13, kind: input, shape index: {}]   ;;  %s12004_s15 = inlined_call_operand.vmem [shape: f32[1,10], index: 15, kind: input, shape index: {}]   ;;  %s12005_s16 = inlined_call_operand.vmem [shape: f32[8,10], index: 16, kind: output, shape index: {}]  }
   0x1   :  { %12014 = sst [smem:[#allocation98_spill]] %s11989_s1  ;;  %327 = vmatprep.mubr.f32.mxu0 %v12007_v3  ;;  %680 = vmatprep.mubr.f32.mxu1 %v12007_v3  ;;  %v109_v49 = vld [vmem:[%s11990_s0 + $0x1] sm:$0xff]  ;;  %v110_v51 = vld [vmem:[%s11990_s0 + $0x9] sm:$0xff]  ;;  %v111_v53 = vld [vmem:[%s11990_s0 + $0x11] sm:$0xff]  ;;  %vm3128_vm3 = vcmask 1043456   ;;  %vm3574_vm4 = vcmask 687104  }
   0x2   :  { %s12015_s23 = sld [smem:[#allocation98_spill]]  ;;  %v53_v50 = vld [vmem:[%s11990_s0] sm:$0xff]  ;;  %v54_v52 = vld [vmem:[%s11990_s0 + $0x8] sm:$0xff]  ;;  %v55_v54 = vld [vmem:[%s11990_s0 + $0x10] sm:$0xff]  ;;  %vm3546_vm5 = vcmask 1046528   ;;  %vm4226_vm6 = vcmask 1044480  }
   0x3   :  { %v112_v57 = vld [vmem:[%s11990_s0 + $0x19] sm:$0xff]  ;;  %vm3964_vm7 = vcmask 1045504   ;;  %vm4814_vm8 = vcmask 261120   ;;  %vm7713_vm9 = vmmov 0   ;;  %vm5167_vm10 = vcmask 883712  }
   0x4   :  { %v56_v58 = vld [vmem:[%s11990_s0 + $0x18] sm:$0xff]  ;;  %vm5562_vm11 = vcmask 654336   ;;  %vm6220_vm12 = vcmask 982016   ;;  %vm6389_vm13 = vcmask 80896  }
   0x8   :  { %v6418_v0 = vld [vmem:[%s12015_s23 + $0x178] sm:$0xff]  ;;  %v6417_v2 = vld [vmem:[%s12015_s23 + $0x170] sm:$0xff]  ;;  %v6416_v5 = vld [vmem:[%s12015_s23 + $0x168] sm:$0xff] }
   0x9   :  { %v108_v1 = vld [vmem:[%s12015_s23 + $0xb8] sm:$0xff]  ;;  %271 = vmatprep.subr.mxu0 %v6418_v0  ;;  %v107_v4 = vld [vmem:[%s12015_s23 + $0xb0] sm:$0xff]  ;;  %v106_v6 = vld [vmem:[%s12015_s23 + $0xa8] sm:$0xff] }
   0xa   :  { %624 = vmatprep.subr.mxu1 %v108_v1  ;;  %272 = vmatpush1.msra.mxu0 %v6417_v2  ;;  %v6415_v7 = vld [vmem:[%s12015_s23 + $0x160] sm:$0xff]  ;;  %v6414_v9 = vld [vmem:[%s12015_s23 + $0x158] sm:$0xff]  ;;  %v6413_v11 = vld [vmem:[%s12015_s23 + $0x150] sm:$0xff] }
   0xb   :  { %625 = vmatpush1.msra.mxu1 %v107_v4  ;;  %v105_v8 = vld [vmem:[%s12015_s23 + $0xa0] sm:$0xff]  ;;  %273 = vmatprep.subr.mxu0 %v6416_v5  ;;  %v104_v10 = vld [vmem:[%s12015_s23 + $0x98] sm:$0xff]  ;;  %v103_v12 = vld [vmem:[%s12015_s23 + $0x90] sm:$0xff] }
   0xc   :  { %626 = vmatprep.subr.mxu1 %v106_v6  ;;  %274 = vmatpush1.msra.mxu0 %v6415_v7  ;;  %v6412_v13 = vld [vmem:[%s12015_s23 + $0x148] sm:$0xff]  ;;  %v6411_v15 = vld [vmem:[%s12015_s23 + $0x140] sm:$0xff]  ;;  %v6410_v17 = vld [vmem:[%s12015_s23 + $0x138] sm:$0xff] }
   0xd   :  { %627 = vmatpush1.msra.mxu1 %v105_v8  ;;  %v102_v14 = vld [vmem:[%s12015_s23 + $0x88] sm:$0xff]  ;;  %275 = vmatprep.subr.mxu0 %v6414_v9  ;;  %v101_v16 = vld [vmem:[%s12015_s23 + $0x80] sm:$0xff]  ;;  %v100_v18 = vld [vmem:[%s12015_s23 + $0x78] sm:$0xff] }
   0xe   :  { %628 = vmatprep.subr.mxu1 %v104_v10  ;;  %276 = vmatpush1.msra.mxu0 %v6413_v11  ;;  %v6409_v19 = vld [vmem:[%s12015_s23 + $0x130] sm:$0xff]  ;;  %v6408_v21 = vld [vmem:[%s12015_s23 + $0x128] sm:$0xff]  ;;  %v6407_v23 = vld [vmem:[%s12015_s23 + $0x120] sm:$0xff] }
   0xf   :  { %629 = vmatpush1.msra.mxu1 %v103_v12  ;;  %277 = vmatprep.subr.mxu0 %v6412_v13  ;;  %v99_v20 = vld [vmem:[%s12015_s23 + $0x70] sm:$0xff]  ;;  %v98_v22 = vld [vmem:[%s12015_s23 + $0x68] sm:$0xff]  ;;  %v97_v24 = vld [vmem:[%s12015_s23 + $0x60] sm:$0xff] }
  0x10   :  { %630 = vmatprep.subr.mxu1 %v102_v14  ;;  %278 = vmatpush1.msra.mxu0 %v6411_v15  ;;  %v6406_v25 = vld [vmem:[%s12015_s23 + $0x118] sm:$0xff]  ;;  %v6405_v27 = vld [vmem:[%s12015_s23 + $0x110] sm:$0xff]  ;;  %v6404_v29 = vld [vmem:[%s12015_s23 + $0x108] sm:$0xff] }
  0x11   :  { %631 = vmatpush1.msra.mxu1 %v101_v16  ;;  %279 = vmatprep.subr.mxu0 %v6410_v17  ;;  %v96_v26 = vld [vmem:[%s12015_s23 + $0x58] sm:$0xff]  ;;  %v95_v28 = vld [vmem:[%s12015_s23 + $0x50] sm:$0xff]  ;;  %v94_v30 = vld [vmem:[%s12015_s23 + $0x48] sm:$0xff] }
  0x12   :  { %632 = vmatprep.subr.mxu1 %v100_v18  ;;  %280 = vmatpush1.msra.mxu0 %v6409_v19  ;;  %v6403_v31 = vld [vmem:[%s12015_s23 + $0x100] sm:$0xff]  ;;  %v6402_v33 = vld [vmem:[%s12015_s23 + $0xf8] sm:$0xff]  ;;  %v6401_v35 = vld [vmem:[%s12015_s23 + $0xf0] sm:$0xff] }
  0x13   :  { %633 = vmatpush1.msra.mxu1 %v99_v20  ;;  %281 = vmatprep.subr.mxu0 %v6408_v21  ;;  %v93_v32 = vld [vmem:[%s12015_s23 + $0x40] sm:$0xff]  ;;  %v92_v34 = vld [vmem:[%s12015_s23 + $0x38] sm:$0xff]  ;;  %v91_v36 = vld [vmem:[%s12015_s23 + $0x30] sm:$0xff] }
  0x14   :  { %634 = vmatprep.subr.mxu1 %v98_v22  ;;  %282 = vmatpush1.msra.mxu0 %v6407_v23  ;;  %v6400_v37 = vld [vmem:[%s12015_s23 + $0xe8] sm:$0xff]  ;;  %v6399_v39 = vld [vmem:[%s12015_s23 + $0xe0] sm:$0xff]  ;;  %v6398_v41 = vld [vmem:[%s12015_s23 + $0xd8] sm:$0xff] }
  0x15   :  { %635 = vmatpush1.msra.mxu1 %v97_v24  ;;  %283 = vmatprep.subr.mxu0 %v6406_v25  ;;  %v90_v38 = vld [vmem:[%s12015_s23 + $0x28] sm:$0xff]  ;;  %v89_v40 = vld [vmem:[%s12015_s23 + $0x20] sm:$0xff]  ;;  %v88_v42 = vld [vmem:[%s12015_s23 + $0x18] sm:$0xff] }
  0x16   :  { %636 = vmatprep.subr.mxu1 %v96_v26  ;;  %284 = vmatpush1.msra.mxu0 %v6405_v27  ;;  %v6397_v43 = vld [vmem:[%s12015_s23 + $0xd0] sm:$0xff]  ;;  %v6396_v45 = vld [vmem:[%s12015_s23 + $0xc8] sm:$0xff]  ;;  %v6395_v47 = vld [vmem:[%s12015_s23 + $0xc0] sm:$0xff] }
  0x17   :  { %637 = vmatpush1.msra.mxu1 %v95_v28  ;;  %285 = vmatprep.subr.mxu0 %v6404_v29  ;;  %v87_v44 = vld [vmem:[%s12015_s23 + $0x10] sm:$0xff]  ;;  %v86_v46 = vld [vmem:[%s12015_s23 + $0x8] sm:$0xff]  ;;  %v85_v48 = vld [vmem:[%s12015_s23] sm:$0xff] }
  0x18   :  { %638 = vmatprep.subr.mxu1 %v94_v30  ;;  %286 = vmatpush1.msra.mxu0 %v6403_v31  ;;  %v6506_v55 = vld [vmem:[%s12015_s23 + $0x238] sm:$0xff]  ;;  %v6505_v56 = vld [vmem:[%s12015_s23 + $0x230] sm:$0xff]  ;;  %v6504_v60 = vld [vmem:[%s12015_s23 + $0x228] sm:$0xff] }
  0x19   :  { %639 = vmatpush1.msra.mxu1 %v93_v32  ;;  %287 = vmatprep.subr.mxu0 %v6402_v33  ;;  %v6562_v59 = vld [vmem:[%s12015_s23 + $0x2f8] sm:$0xff]  ;;  %v6561_v61 = vld [vmem:[%s12015_s23 + $0x2f0] sm:$0xff]  ;;  %v6503_v62 = vld [vmem:[%s12015_s23 + $0x220] sm:$0xff] }
  0x1a   :  { %640 = vmatprep.subr.mxu1 %v92_v34  ;;  %288 = vmatpush1.msra.mxu0 %v6401_v35  ;;  %v6560_v63 = vld [vmem:[%s12015_s23 + $0x2e8] sm:$0xff]  ;;  %v57_v1 = vld [vmem:[%s11990_s0 + $0x20] sm:$0xff]  ;;  %v6502_v2 = vld [vmem:[%s12015_s23 + $0x218] sm:$0xff] }
  0x1b   :  { %641 = vmatpush1.msra.mxu1 %v91_v36  ;;  %289 = vmatprep.subr.mxu0 %v6400_v37  ;;  %v113_v0 = vld [vmem:[%s11990_s0 + $0x21] sm:$0xff]  ;;  %v6501_v5 = vld [vmem:[%s12015_s23 + $0x210] sm:$0xff]  ;;  %v6558_v6 = vld [vmem:[%s12015_s23 + $0x2d8] sm:$0xff] }
  0x1c   :  { %642 = vmatprep.subr.mxu1 %v90_v38  ;;  %290 = vmatpush1.msra.mxu0 %v6399_v39  ;;  %v6559_v4 = vld [vmem:[%s12015_s23 + $0x2e0] sm:$0xff]  ;;  %v114_v7 = vld [vmem:[%s11990_s0 + $0x29] sm:$0xff]  ;;  %v115_v13 = vld [vmem:[%s11990_s0 + $0x31] sm:$0xff] }
  0x1d   :  { %643 = vmatpush1.msra.mxu1 %v89_v40  ;;  %291 = vmatprep.subr.mxu0 %v6398_v41  ;;  %v58_v8 = vld [vmem:[%s11990_s0 + $0x28] sm:$0xff]  ;;  %v6557_v10 = vld [vmem:[%s12015_s23 + $0x2d0] sm:$0xff]  ;;  %v6499_v11 = vld [vmem:[%s12015_s23 + $0x200] sm:$0xff] }
  0x1e   :  { %644 = vmatprep.subr.mxu1 %v88_v42  ;;  %292 = vmatpush1.msra.mxu0 %v6397_v43  ;;  %v6500_v9 = vld [vmem:[%s12015_s23 + $0x208] sm:$0xff]  ;;  %v59_v14 = vld [vmem:[%s11990_s0 + $0x30] sm:$0xff]  ;;  %v6498_v15 = vld [vmem:[%s12015_s23 + $0x1f8] sm:$0xff] }
  0x1f   :  { %645 = vmatpush1.msra.mxu1 %v87_v44  ;;  %293 = vmatprep.subr.mxu0 %v6396_v45  ;;  %v6556_v12 = vld [vmem:[%s12015_s23 + $0x2c8] sm:$0xff]  ;;  %v6555_v16 = vld [vmem:[%s12015_s23 + $0x2c0] sm:$0xff]  ;;  %v6497_v17 = vld [vmem:[%s12015_s23 + $0x1f0] sm:$0xff] }
  0x20   :  { %646 = vmatprep.subr.mxu1 %v86_v46  ;;  %294 = vmatpush1.msra.mxu0 %v6395_v47  ;;  %v6554_v18 = vld [vmem:[%s12015_s23 + $0x2b8] sm:$0xff]  ;;  %v6496_v21 = vld [vmem:[%s12015_s23 + $0x1e8] sm:$0xff]  ;;  %v6553_v22 = vld [vmem:[%s12015_s23 + $0x2b0] sm:$0xff] }
  0x21   :  { %647 = vmatpush1.msra.mxu1 %v85_v48  ;;  %6419 = vmatmul.mubr.msk.f32.vlgmr.msra.gmra.mxu0 %vm166_vm0, %v109_v49  ;;  %v116_v19 = vld [vmem:[%s11990_s0 + $0x39] sm:$0xff]  ;;  %v6552_v24 = vld [vmem:[%s12015_s23 + $0x2a8] sm:$0xff]  ;;  %v6493_v29 = vld [vmem:[%s12015_s23 + $0x1d0] sm:$0xff] }
  0x22   :  { %6451 = vmatmul.mubr.msk.f32.vlgmr.msra.gmra.mxu1 %vm166_vm0, %v53_v50  ;;  %333 = vmatprep.mubr.f32.mxu0 %v12007_v3  ;;  %v60_v20 = vld [vmem:[%s11990_s0 + $0x38] sm:$0xff]  ;;  %v6495_v23 = vld [vmem:[%s12015_s23 + $0x1e0] sm:$0xff]  ;;  %v118_v31 = vld [vmem:[%s11990_s0 + $0x49] sm:$0xff] }
  0x23   :  { %686 = vmatprep.mubr.f32.mxu1 %v12007_v3  ;;  %1034 = vmatprep.subr.mxu0 %v6506_v55  ;;  %v117_v25 = vld [vmem:[%s11990_s0 + $0x41] sm:$0xff]  ;;  %v6494_v27 = vld [vmem:[%s12015_s23 + $0x1d8] sm:$0xff]  ;;  %v6549_v34 = vld [vmem:[%s12015_s23 + $0x290] sm:$0xff] }
  0x24   :  { %1035 = vmatpush1.msra.mxu0 %v6505_v56  ;;  %1508 = vmatprep.subr.mxu1 %v6562_v59  ;;  %v61_v26 = vld [vmem:[%s11990_s0 + $0x40] sm:$0xff]  ;;  %v6550_v30 = vld [vmem:[%s12015_s23 + $0x298] sm:$0xff]  ;;  %v62_v32 = vld [vmem:[%s11990_s0 + $0x48] sm:$0xff] }
  0x25   :  { %6420 = vmatmul.mubr.msk.f32.gmra.mxu0 %vm166_vm0, %v110_v51  ;;  %1036 = vmatprep.subr.mxu0 %v6504_v60  ;;  %v6551_v28 = vld [vmem:[%s12015_s23 + $0x2a0] sm:$0xff]  ;;  %v6492_v33 = vld [vmem:[%s12015_s23 + $0x1c8] sm:$0xff]  ;;  %v119_v37 = vld [vmem:[%s11990_s0 + $0x51] sm:$0xff] }
  0x26   :  { %6452 = vmatmul.mubr.msk.f32.gmra.mxu1 %vm166_vm0, %v54_v52  ;;  %339 = vmatprep.mubr.f32.mxu0 %v12007_v3  ;;  %v6491_v35 = vld [vmem:[%s12015_s23 + $0x1c0] sm:$0xff]  ;;  %v6548_v36 = vld [vmem:[%s12015_s23 + $0x288] sm:$0xff]  ;;  %v63_v38 = vld [vmem:[%s11990_s0 + $0x50] sm:$0xff] }
  0x27   :  { %692 = vmatprep.mubr.f32.mxu1 %v12007_v3  ;;  %1509 = vmatpush1.msra.mxu1 %v6561_v61  ;;  %v6490_v39 = vld [vmem:[%s12015_s23 + $0x1b8] sm:$0xff]  ;;  %v6547_v40 = vld [vmem:[%s12015_s23 + $0x280] sm:$0xff]  ;;  %v6489_v41 = vld [vmem:[%s12015_s23 + $0x1b0] sm:$0xff] }
  0x28   :  { %1037 = vmatpush1.msra.mxu0 %v6503_v62  ;;  %1510 = vmatprep.subr.mxu1 %v6560_v63  ;;  %v6546_v42 = vld [vmem:[%s12015_s23 + $0x278] sm:$0xff]  ;;  %v6488_v45 = vld [vmem:[%s12015_s23 + $0x1a8] sm:$0xff]  ;;  %v6545_v46 = vld [vmem:[%s12015_s23 + $0x270] sm:$0xff] }
  0x29   :  { %6421 = vmatmul.mubr.msk.f32.gmra.mxu0 %vm166_vm0, %v111_v53  ;;  %1038 = vmatprep.subr.mxu0 %v6502_v2  ;;  %v120_v43 = vld [vmem:[%s11990_s0 + $0x59] sm:$0xff]  ;;  %v6544_v48 = vld [vmem:[%s12015_s23 + $0x268] sm:$0xff]  ;;  %v6485_v53 = vld [vmem:[%s12015_s23 + $0x190] sm:$0xff] }
  0x2a   :  { %6453 = vmatmul.mubr.msk.f32.gmra.mxu1 %vm166_vm0, %v55_v54  ;;  %345 = vmatprep.mubr.f32.mxu0 %v12007_v3  ;;  %v64_v44 = vld [vmem:[%s11990_s0 + $0x58] sm:$0xff]  ;;  %v6487_v47 = vld [vmem:[%s12015_s23 + $0x1a0] sm:$0xff]  ;;  %v122_v55 = vld [vmem:[%s11990_s0 + $0x69] sm:$0xff] }
  0x2b   :  { %698 = vmatprep.mubr.f32.mxu1 %v12007_v3  ;;  %1511 = vmatpush1.msra.mxu1 %v6559_v4  ;;  %v121_v49 = vld [vmem:[%s11990_s0 + $0x61] sm:$0xff]  ;;  %v6486_v51 = vld [vmem:[%s12015_s23 + $0x198] sm:$0xff]  ;;  %v67_v62 = vld [vmem:[%s11990_s0 + $0x70] sm:$0xff] }
  0x2c   :  { %1039 = vmatpush1.msra.mxu0 %v6501_v5  ;;  %1512 = vmatprep.subr.mxu1 %v6558_v6  ;;  %v65_v50 = vld [vmem:[%s11990_s0 + $0x60] sm:$0xff]  ;;  %v6542_v54 = vld [vmem:[%s12015_s23 + $0x258] sm:$0xff]  ;;  %v66_v56 = vld [vmem:[%s11990_s0 + $0x68] sm:$0xff] }
  0x2d   :  { %6422 = vmatmul.mubr.msk.f32.gmra.mxu0 %vm166_vm0, %v112_v57  ;;  %1040 = vmatprep.subr.mxu0 %v6500_v9  ;;  %v6543_v52 = vld [vmem:[%s12015_s23 + $0x260] sm:$0xff]  ;;  %v6484_v57 = vld [vmem:[%s12015_s23 + $0x188] sm:$0xff]  ;;  %v123_v61 = vld [vmem:[%s11990_s0 + $0x71] sm:$0xff] }
  0x2e   :  { %6454 = vmatmul.mubr.msk.f32.gmra.mxu1 %vm166_vm0, %v56_v58  ;;  %351 = vmatprep.mubr.f32.mxu0 %v12007_v3  ;;  %v6541_v58 = vld [vmem:[%s12015_s23 + $0x250] sm:$0xff]  ;;  %v6483_v59 = vld [vmem:[%s12015_s23 + $0x180] sm:$0xff]  ;;  %v6540_v60 = vld [vmem:[%s12015_s23 + $0x248] sm:$0xff] }
  0x2f   :  { %704 = vmatprep.mubr.f32.mxu1 %v12007_v3  ;;  %1513 = vmatpush1.msra.mxu1 %v6557_v10  ;;  %v6539_v63 = vld [vmem:[%s12015_s23 + $0x240] sm:$0xff]  ;;  %v126_v5 = vld [vmem:[%s11990_s0 + $0x89] sm:$0xff]  ;;  %v72_v10 = vld [vmem:[%s11990_s0 + $0x98] sm:$0xff] }
  0x30   :  { %1041 = vmatpush1.msra.mxu0 %v6499_v11  ;;  %1514 = vmatprep.subr.mxu1 %v6556_v12  ;;  %v125_v2 = vld [vmem:[%s11990_s0 + $0x81] sm:$0xff]  ;;  %v128_v9 = vld [vmem:[%s11990_s0 + $0x99] sm:$0xff] }
  0x31   :  { %6423 = vmatmul.mubr.msk.f32.gmra.mxu0 %vm166_vm0, %v113_v0  ;;  %1042 = vmatprep.subr.mxu0 %v6498_v15  ;;  %v124_v0 = vld [vmem:[%s11990_s0 + $0x79] sm:$0xff]  ;;  %v70_v6 = vld [vmem:[%s11990_s0 + $0x88] sm:$0xff]  ;;  %v131_v15 = vld [vmem:[%s11990_s0 + $0xb1] sm:$0xff] }
  0x32   :  { %6455 = vmatmul.mubr.msk.f32.gmra.mxu1 %vm166_vm0, %v57_v1  ;;  %357 = vmatprep.mubr.f32.mxu0 %v12007_v3  ;;  %v68_v1 = vld [vmem:[%s11990_s0 + $0x78] sm:$0xff]  ;;  %v69_v4 = vld [vmem:[%s11990_s0 + $0x80] sm:$0xff] }
  0x33   :  { %710 = vmatprep.mubr.f32.mxu1 %v12007_v3  ;;  %1515 = vmatpush1.msra.mxu1 %v6555_v16  ;;  %v129_v11 = vld [vmem:[%s11990_s0 + $0xa1] sm:$0xff]  ;;  %v75_v16 = vld [vmem:[%s11990_s0 + $0xb0] sm:$0xff] }
  0x34   :  { %1043 = vmatpush1.msra.mxu0 %v6497_v17  ;;  %1516 = vmatprep.subr.mxu1 %v6554_v18  ;;  %v73_v12 = vld [vmem:[%s11990_s0 + $0xa0] sm:$0xff]  ;;  %v76_v18 = vld [vmem:[%s11990_s0 + $0xb8] sm:$0xff] }
  0x35   :  { %6424 = vmatmul.mubr.msk.f32.gmra.mxu0 %vm166_vm0, %v114_v7  ;;  %1044 = vmatprep.subr.mxu0 %v6496_v21  ;;  %v127_v7 = vld [vmem:[%s11990_s0 + $0x91] sm:$0xff]  ;;  %v132_v17 = vld [vmem:[%s11990_s0 + $0xb9] sm:$0xff]  ;;  %v134_v21 = vld [vmem:[%s11990_s0 + $0xc9] sm:$0xff] }
  0x36   :  { %6456 = vmatmul.mubr.msk.f32.gmra.mxu1 %vm166_vm0, %v58_v8  ;;  %363 = vmatprep.mubr.f32.mxu0 %v12007_v3  ;;  %v71_v8 = vld [vmem:[%s11990_s0 + $0x90] sm:$0xff] }
  0x37   :  { %716 = vmatprep.mubr.f32.mxu1 %v12007_v3  ;;  %1517 = vmatpush1.msra.mxu1 %v6553_v22  ;;  %v78_v22 = vld [vmem:[%s11990_s0 + $0xc8] sm:$0xff] }
  0x38   :  { %1045 = vmatpush1.msra.mxu0 %v6495_v23  ;;  %1518 = vmatprep.subr.mxu1 %v6552_v24  ;;  %v6618_v23 = vld [vmem:[%s12015_s23 + $0x3b8] sm:$0xff] }
  0x39   :  { %6425 = vmatmul.mubr.msk.f32.gmra.mxu0 %vm166_vm0, %v115_v13  ;;  %1046 = vmatprep.subr.mxu0 %v6494_v27  ;;  %v130_v13 = vld [vmem:[%s11990_s0 + $0xa9] sm:$0xff]  ;;  %v135_v24 = vld [vmem:[%s11990_s0 + $0xd1] sm:$0xff] }
  0x3a   :  { %6457 = vmatmul.mubr.msk.f32.gmra.mxu1 %vm166_vm0, %v59_v14  ;;  %369 = vmatprep.mubr.f32.mxu0 %v12007_v3  ;;  %v74_v14 = vld [vmem:[%s11990_s0 + $0xa8] sm:$0xff]  ;;  %v80_v27 = vld [vmem:[%s11990_s0 + $0xd8] sm:$0xff] }
  0x3b   :  { %722 = vmatprep.mubr.f32.mxu1 %v12007_v3  ;;  %1519 = vmatpush1.msra.mxu1 %v6551_v28  ;;  %v137_v28 = vld [vmem:[%s11990_s0 + $0xe1] sm:$0xff] }
  0x3c   :  { %1047 = vmatpush1.msra.mxu0 %v6493_v29  ;;  %1520 = vmatprep.subr.mxu1 %v6550_v30  ;;  %v81_v29 = vld [vmem:[%s11990_s0 + $0xe0] sm:$0xff]  ;;  %v138_v30 = vld [vmem:[%s11990_s0 + $0xe9] sm:$0xff] }
  0x3d   :  { %6426 = vmatmul.mubr.msk.f32.gmra.mxu0 %vm166_vm0, %v116_v19  ;;  %1048 = vmatprep.subr.mxu0 %v6492_v33  ;;  %v133_v19 = vld [vmem:[%s11990_s0 + $0xc1] sm:$0xff]  ;;  %v83_v33 = vld [vmem:[%s11990_s0 + $0xf0] sm:$0xff] }
  0x3e   :  { %6458 = vmatmul.mubr.msk.f32.gmra.mxu1 %vm166_vm0, %v60_v20  ;;  %375 = vmatprep.mubr.f32.mxu0 %v12007_v3  ;;  %v77_v20 = vld [vmem:[%s11990_s0 + $0xc0] sm:$0xff] }
  0x3f   :  { %728 = vmatprep.mubr.f32.mxu1 %v12007_v3  ;;  %1521 = vmatpush1.msra.mxu1 %v6549_v34  ;;  %v140_v34 = vld [vmem:[%s11990_s0 + $0xf9] sm:$0xf] }
  0x40   :  { %1049 = vmatpush1.msra.mxu0 %v6491_v35  ;;  %1522 = vmatprep.subr.mxu1 %v6548_v36  ;;  %v84_v35 = vld [vmem:[%s11990_s0 + $0xf8] sm:$0xf]  ;;  %v873_v36 = vld [vmem:[%s11990_s0 + $0x2] sm:$0xff] }
  0x41   :  { %6427 = vmatmul.mubr.msk.f32.gmra.mxu0 %vm166_vm0, %v117_v25  ;;  %1050 = vmatprep.subr.mxu0 %v6490_v39  ;;  %v79_v25 = vld [vmem:[%s11990_s0 + $0xd0] sm:$0xff]  ;;  %v6616_v39 = vld [vmem:[%s12015_s23 + $0x3a8] sm:$0xff] }
  0x42   :  { %6459 = vmatmul.mubr.msk.f32.gmra.mxu1 %vm166_vm0, %v61_v26  ;;  %381 = vmatprep.mubr.f32.mxu0 %v12007_v3  ;;  %v136_v26 = vld [vmem:[%s11990_s0 + $0xd9] sm:$0xff] }
  0x43   :  { %734 = vmatprep.mubr.f32.mxu1 %v12007_v3  ;;  %1523 = vmatpush1.msra.mxu1 %v6547_v40  ;;  %v874_v40 = vld [vmem:[%s11990_s0 + $0xa] sm:$0xff] }
  0x44   :  { %1051 = vmatpush1.msra.mxu0 %v6489_v41  ;;  %1524 = vmatprep.subr.mxu1 %v6546_v42  ;;  %v1348_v41 = vld [vmem:[%s11990_s0 + $0xb] sm:$0xff]  ;;  %v6615_v42 = vld [vmem:[%s12015_s23 + $0x3a0] sm:$0xff] }
  0x45   :  { %6428 = vmatmul.mubr.msk.f32.gmra.mxu0 %vm166_vm0, %v118_v31  ;;  %1052 = vmatprep.subr.mxu0 %v6488_v45  ;;  %v82_v31 = vld [vmem:[%s11990_s0 + $0xe8] sm:$0xff]  ;;  %v1349_v45 = vld [vmem:[%s11990_s0 + $0x13] sm:$0xff] }
  0x46   :  { %6460 = vmatmul.mubr.msk.f32.gmra.mxu1 %vm166_vm0, %v62_v32  ;;  %387 = vmatprep.mubr.f32.mxu0 %v12007_v3  ;;  %v139_v32 = vld [vmem:[%s11990_s0 + $0xf1] sm:$0xff] }
  0x47   :  { %740 = vmatprep.mubr.f32.mxu1 %v12007_v3  ;;  %1525 = vmatpush1.msra.mxu1 %v6545_v46  ;;  %v6613_v46 = vld [vmem:[%s12015_s23 + $0x390] sm:$0xff] }
  0x48   :  { %1053 = vmatpush1.msra.mxu0 %v6487_v47  ;;  %1526 = vmatprep.subr.mxu1 %v6544_v48  ;;  %v6612_v47 = vld [vmem:[%s12015_s23 + $0x388] sm:$0xff]  ;;  %v876_v48 = vld [vmem:[%s11990_s0 + $0x1a] sm:$0xff] }
  0x49   :  { %6429 = vmatmul.mubr.msk.f32.gmra.mxu0 %vm166_vm0, %v119_v37  ;;  %1054 = vmatprep.subr.mxu0 %v6486_v51  ;;  %v1347_v37 = vld [vmem:[%s11990_s0 + $0x3] sm:$0xff]  ;;  %v6610_v51 = vld [vmem:[%s12015_s23 + $0x378] sm:$0xff] }
  0x4a   :  { %6461 = vmatmul.mubr.msk.f32.gmra.mxu1 %vm166_vm0, %v63_v38  ;;  %393 = vmatprep.mubr.f32.mxu0 %v12007_v3  ;;  %v6617_v38 = vld [vmem:[%s12015_s23 + $0x3b0] sm:$0xff] }
  0x4b   :  { %746 = vmatprep.mubr.f32.mxu1 %v12007_v3  ;;  %1527 = vmatpush1.msra.mxu1 %v6543_v52  ;;  %v877_v52 = vld [vmem:[%s11990_s0 + $0x22] sm:$0xff] }
  0x4c   :  { %1055 = vmatpush1.msra.mxu0 %v6485_v53  ;;  %1528 = vmatprep.subr.mxu1 %v6542_v54  ;;  %v1351_v53 = vld [vmem:[%s11990_s0 + $0x23] sm:$0xff]  ;;  %v6609_v54 = vld [vmem:[%s12015_s23 + $0x370] sm:$0xff] }
  0x4d   :  { %6430 = vmatmul.mubr.msk.f32.gmra.mxu0 %vm166_vm0, %v120_v43  ;;  %1056 = vmatprep.subr.mxu0 %v6484_v57  ;;  %v6614_v43 = vld [vmem:[%s12015_s23 + $0x398] sm:$0xff]  ;;  %v1352_v57 = vld [vmem:[%s11990_s0 + $0x2b] sm:$0xff] }
  0x4e   :  { %6462 = vmatmul.mubr.msk.f32.gmra.mxu1 %vm166_vm0, %v64_v44  ;;  %399 = vmatprep.mubr.f32.mxu0 %v12007_v3  ;;  %v875_v44 = vld [vmem:[%s11990_s0 + $0x12] sm:$0xff] }
  0x4f   :  { %752 = vmatprep.mubr.f32.mxu1 %v12007_v3  ;;  %1529 = vmatpush1.msra.mxu1 %v6541_v58  ;;  %v6607_v58 = vld [vmem:[%s12015_s23 + $0x360] sm:$0xff] }
  0x50   :  { %1057 = vmatpush1.msra.mxu0 %v6483_v59  ;;  %1530 = vmatprep.subr.mxu1 %v6540_v60  ;;  %v6606_v59 = vld [vmem:[%s12015_s23 + $0x358] sm:$0xff] }
  0x51   :  { %6431 = vmatmul.mubr.msk.f32.gmra.mxu0 %vm166_vm0, %v121_v49  ;;  %1531 = vmatpush1.msra.mxu1 %v6539_v63  ;;  %v1350_v49 = vld [vmem:[%s11990_s0 + $0x1b] sm:$0xff]  ;;  %v879_v60 = vld [vmem:[%s11990_s0 + $0x32] sm:$0xff]  ;;  %v6604_v63 = vld [vmem:[%s12015_s23 + $0x348] sm:$0xff] }
  0x52   :  { %6463 = vmatmul.mubr.msk.f32.gmra.mxu1 %vm166_vm0, %v65_v50  ;;  %405 = vmatprep.mubr.f32.mxu0 %v12007_v3  ;;  %v6611_v50 = vld [vmem:[%s12015_s23 + $0x380] sm:$0xff] }
  0x53   :  { %758 = vmatprep.mubr.f32.mxu1 %v12007_v3  ;;  %2553 = vmatprep.subr.mxu1 %v12007_v3 }
  0x54   :  { %1982 = vmatprep.subr.mxu0 %v6618_v23  ;;  %v1360_v23 = vld [vmem:[%s11990_s0 + $0x6b] sm:$0xff] }
  0x55   :  { %6432 = vmatmul.mubr.msk.f32.gmra.mxu0 %vm166_vm0, %v122_v55  ;;  %v6608_v55 = vld [vmem:[%s12015_s23 + $0x368] sm:$0xff] }
  0x56   :  { %6464 = vmatmul.mubr.msk.f32.gmra.mxu1 %vm166_vm0, %v66_v56  ;;  %411 = vmatprep.mubr.f32.mxu0 %v12007_v3  ;;  %v878_v56 = vld [vmem:[%s11990_s0 + $0x2a] sm:$0xff] }
  0x57   :  { %764 = vmatprep.mubr.f32.mxu1 %v12007_v3 }
  0x59   :  { %6433 = vmatmul.mubr.msk.f32.gmra.mxu0 %vm166_vm0, %v123_v61  ;;  %v1353_v61 = vld [vmem:[%s11990_s0 + $0x33] sm:$0xff] }
  0x5a   :  { %6465 = vmatmul.mubr.msk.f32.gmra.mxu1 %vm166_vm0, %v67_v62  ;;  %417 = vmatprep.mubr.f32.mxu0 %v12007_v3  ;;  %v6605_v62 = vld [vmem:[%s12015_s23 + $0x350] sm:$0xff] }
  0x5b   :  { %770 = vmatprep.mubr.f32.mxu1 %v12007_v3 }
  0x5d   :  { %6434 = vmatmul.mubr.msk.f32.gmra.mxu0 %vm166_vm0, %v124_v0  ;;  %v880_v0 = vld [vmem:[%s11990_s0 + $0x3a] sm:$0xff] }
  0x5e   :  { %6466 = vmatmul.mubr.msk.f32.gmra.mxu1 %vm166_vm0, %v68_v1  ;;  %423 = vmatprep.mubr.f32.mxu0 %v12007_v3  ;;  %v1354_v1 = vld [vmem:[%s11990_s0 + $0x3b] sm:$0xff] }
  0x5f   :  { %776 = vmatprep.mubr.f32.mxu1 %v12007_v3 }
  0x61   :  { %6435 = vmatmul.mubr.msk.f32.gmra.mxu0 %vm166_vm0, %v125_v2  ;;  %v6603_v2 = vld [vmem:[%s12015_s23 + $0x340] sm:$0xff] }
  0x62   :  { %6467 = vmatmul.mubr.msk.f32.gmra.mxu1 %vm166_vm0, %v69_v4  ;;  %429 = vmatprep.mubr.f32.mxu0 %v12007_v3  ;;  %v6602_v4 = vld [vmem:[%s12015_s23 + $0x338] sm:$0xff] }
  0x63   :  { %782 = vmatprep.mubr.f32.mxu1 %v12007_v3 }
  0x65   :  { %6436 = vmatmul.mubr.msk.f32.gmra.mxu0 %vm166_vm0, %v126_v5  ;;  %v881_v5 = vld [vmem:[%s11990_s0 + $0x42] sm:$0xff] }
  0x66   :  { %6468 = vmatmul.mubr.msk.f32.gmra.mxu1 %vm166_vm0, %v70_v6  ;;  %435 = vmatprep.mubr.f32.mxu0 %v12007_v3  ;;  %v1355_v6 = vld [vmem:[%s11990_s0 + $0x43] sm:$0xff] }
  0x67   :  { %788 = vmatprep.mubr.f32.mxu1 %v12007_v3 }
  0x69   :  { %6437 = vmatmul.mubr.msk.f32.gmra.mxu0 %vm166_vm0, %v127_v7  ;;  %v6601_v7 = vld [vmem:[%s12015_s23 + $0x330] sm:$0xff] }
  0x6a   :  { %6469 = vmatmul.mubr.msk.f32.gmra.mxu1 %vm166_vm0, %v71_v8  ;;  %441 = vmatprep.mubr.f32.mxu0 %v12007_v3  ;;  %v6600_v8 = vld [vmem:[%s12015_s23 + $0x328] sm:$0xff] }
  0x6b   :  { %794 = vmatprep.mubr.f32.mxu1 %v12007_v3 }
  0x6d   :  { %6438 = vmatmul.mubr.msk.f32.gmra.mxu0 %vm166_vm0, %v128_v9  ;;  %v882_v9 = vld [vmem:[%s11990_s0 + $0x4a] sm:$0xff] }
  0x6e   :  { %6470 = vmatmul.mubr.msk.f32.gmra.mxu1 %vm166_vm0, %v72_v10  ;;  %447 = vmatprep.mubr.f32.mxu0 %v12007_v3  ;;  %v1356_v10 = vld [vmem:[%s11990_s0 + $0x4b] sm:$0xff] }
  0x6f   :  { %800 = vmatprep.mubr.f32.mxu1 %v12007_v3 }
  0x71   :  { %6439 = vmatmul.mubr.msk.f32.gmra.mxu0 %vm166_vm0, %v129_v11  ;;  %v6599_v11 = vld [vmem:[%s12015_s23 + $0x320] sm:$0xff] }
  0x72   :  { %6471 = vmatmul.mubr.msk.f32.gmra.mxu1 %vm166_vm0, %v73_v12  ;;  %453 = vmatprep.mubr.f32.mxu0 %v12007_v3  ;;  %v6598_v12 = vld [vmem:[%s12015_s23 + $0x318] sm:$0xff] }
  0x73   :  { %806 = vmatprep.mubr.f32.mxu1 %v12007_v3 }
  0x75   :  { %6440 = vmatmul.mubr.msk.f32.gmra.mxu0 %vm166_vm0, %v130_v13  ;;  %v883_v13 = vld [vmem:[%s11990_s0 + $0x52] sm:$0xff] }
  0x76   :  { %6472 = vmatmul.mubr.msk.f32.gmra.mxu1 %vm166_vm0, %v74_v14  ;;  %459 = vmatprep.mubr.f32.mxu0 %v12007_v3  ;;  %v1357_v14 = vld [vmem:[%s11990_s0 + $0x53] sm:$0xff] }
  0x77   :  { %812 = vmatprep.mubr.f32.mxu1 %v12007_v3 }
  0x79   :  { %6441 = vmatmul.mubr.msk.f32.gmra.mxu0 %vm166_vm0, %v131_v15  ;;  %v6597_v15 = vld [vmem:[%s12015_s23 + $0x310] sm:$0xff] }
  0x7a   :  { %6473 = vmatmul.mubr.msk.f32.gmra.mxu1 %vm166_vm0, %v75_v16  ;;  %465 = vmatprep.mubr.f32.mxu0 %v12007_v3  ;;  %v6596_v16 = vld [vmem:[%s12015_s23 + $0x308] sm:$0xff] }
  0x7b   :  { %818 = vmatprep.mubr.f32.mxu1 %v12007_v3 }
  0x7d   :  { %6442 = vmatmul.mubr.msk.f32.gmra.mxu0 %vm166_vm0, %v132_v17  ;;  %v884_v17 = vld [vmem:[%s11990_s0 + $0x5a] sm:$0xff] }
  0x7e   :  { %6474 = vmatmul.mubr.msk.f32.gmra.mxu1 %vm166_vm0, %v76_v18  ;;  %471 = vmatprep.mubr.f32.mxu0 %v12007_v3  ;;  %v1358_v18 = vld [vmem:[%s11990_s0 + $0x5b] sm:$0xff] }
  0x7f   :  { %824 = vmatprep.mubr.f32.mxu1 %v12007_v3 }
  0x81   :  { %6443 = vmatmul.mubr.msk.f32.gmra.mxu0 %vm166_vm0, %v133_v19  ;;  %v6595_v19 = vld [vmem:[%s12015_s23 + $0x300] sm:$0xff] }
  0x82   :  { %6475 = vmatmul.mubr.msk.f32.gmra.mxu1 %vm166_vm0, %v77_v20  ;;  %477 = vmatprep.mubr.f32.mxu0 %v12007_v3  ;;  %v885_v20 = vld [vmem:[%s11990_s0 + $0x62] sm:$0xff] }
  0x83   :  { %830 = vmatprep.mubr.f32.mxu1 %v12007_v3 }
  0x85   :  { %6444 = vmatmul.mubr.msk.f32.gmra.mxu0 %vm166_vm0, %v134_v21  ;;  %v1359_v21 = vld [vmem:[%s11990_s0 + $0x63] sm:$0xff] }
  0x86   :  { %6476 = vmatmul.mubr.msk.f32.gmra.mxu1 %vm166_vm0, %v78_v22  ;;  %483 = vmatprep.mubr.f32.mxu0 %v12007_v3  ;;  %v886_v22 = vld [vmem:[%s11990_s0 + $0x6a] sm:$0xff] }
  0x87   :  { %836 = vmatprep.mubr.f32.mxu1 %v12007_v3 }
  0x89   :  { %6445 = vmatmul.mubr.msk.f32.gmra.mxu0 %vm166_vm0, %v135_v24  ;;  %v887_v24 = vld [vmem:[%s11990_s0 + $0x72] sm:$0xff] }
  0x8a   :  { %6477 = vmatmul.mubr.msk.f32.gmra.mxu1 %vm166_vm0, %v79_v25  ;;  %489 = vmatprep.mubr.f32.mxu0 %v12007_v3  ;;  %v1361_v25 = vld [vmem:[%s11990_s0 + $0x73] sm:$0xff] }
  0x8b   :  { %842 = vmatprep.mubr.f32.mxu1 %v12007_v3 }
  0x8d   :  { %6446 = vmatmul.mubr.msk.f32.gmra.mxu0 %vm166_vm0, %v136_v26  ;;  %v888_v26 = vld [vmem:[%s11990_s0 + $0x7a] sm:$0xff] }
  0x8e   :  { %6478 = vmatmul.mubr.msk.f32.gmra.mxu1 %vm166_vm0, %v80_v27  ;;  %495 = vmatprep.mubr.f32.mxu0 %v12007_v3  ;;  %v1362_v27 = vld [vmem:[%s11990_s0 + $0x7b] sm:$0xff] }
  0x8f   :  { %848 = vmatprep.mubr.f32.mxu1 %v12007_v3 }
  0x91   :  { %6447 = vmatmul.mubr.msk.f32.gmra.mxu0 %vm166_vm0, %v137_v28  ;;  %v889_v28 = vld [vmem:[%s11990_s0 + $0x82] sm:$0xff] }
  0x92   :  { %6479 = vmatmul.mubr.msk.f32.gmra.mxu1 %vm166_vm0, %v81_v29  ;;  %501 = vmatprep.mubr.f32.mxu0 %v12007_v3  ;;  %v1363_v29 = vld [vmem:[%s11990_s0 + $0x83] sm:$0xff] }
  0x93   :  { %854 = vmatprep.mubr.f32.mxu1 %v12007_v3 }
  0x95   :  { %6448 = vmatmul.mubr.msk.f32.gmra.mxu0 %vm166_vm0, %v138_v30 }
  0x96   :  { %6480 = vmatmul.mubr.msk.f32.gmra.mxu1 %vm166_vm0, %v82_v31  ;;  %507 = vmatprep.mubr.f32.mxu0 %v12007_v3 }
  0x97   :  { %860 = vmatprep.mubr.f32.mxu1 %v12007_v3 }
  0x99   :  { %6449 = vmatmul.mubr.msk.f32.gmra.mxu0 %vm166_vm0, %v139_v32 }
  0x9a   :  { %6481 = vmatmul.mubr.msk.f32.gmra.mxu1 %vm166_vm0, %v83_v33  ;;  %513 = vmatprep.mubr.f32.mxu0 %v12007_v3  ;;  %v890_v33 = vld [vmem:[%s11990_s0 + $0x8a] sm:$0xff] }
  0x9b   :  { %866 = vmatprep.mubr.f32.mxu1 %v12007_v3 }
  0x9d   :  { %6450 = vmatmul.mubr.msk.f32.gmra.mxu0 %vm166_vm0, %v140_v34  ;;  %v1364_v34 = vld [vmem:[%s11990_s0 + $0x8b] sm:$0xff] }
  0x9e   :  { %6482 = vmatmul.mubr.msk.f32.gmra.mxu1 %vm166_vm0, %v84_v35  ;;  %1090 = vmatprep.mubr.f32.mxu0 %v12007_v3 }
  0x9f   :  { %1564 = vmatprep.mubr.f32.mxu1 %v12007_v3 }
  0xa1   :  { %6507 = vmatmul.mubr.msk.f32.vlgmr.msra.gmra.mxu0 %vm166_vm0, %v873_v36 }
  0xa2   :  { %6563 = vmatmul.mubr.msk.f32.vlgmr.msra.gmra.mxu1 %vm166_vm0, %v1347_v37  ;;  %1096 = vmatprep.mubr.f32.mxu0 %v12007_v3 }
  0xa3   :  { %1570 = vmatprep.mubr.f32.mxu1 %v12007_v3  ;;  %1983 = vmatpush1.msra.mxu0 %v6617_v38 }
  0xa4   :  { %1984 = vmatprep.subr.mxu0 %v6616_v39 }
  0xa5   :  { %6508 = vmatmul.mubr.msk.f32.gmra.mxu0 %vm166_vm0, %v874_v40 }
  0xa6   :  { %6564 = vmatmul.mubr.msk.f32.gmra.mxu1 %vm166_vm0, %v1348_v41  ;;  %1102 = vmatprep.mubr.f32.mxu0 %v12007_v3  ;;  %v891_v41 = vld [vmem:[%s11990_s0 + $0x92] sm:$0xff] }
  0xa7   :  { %1576 = vmatprep.mubr.f32.mxu1 %v12007_v3  ;;  %1985 = vmatpush1.msra.mxu0 %v6615_v42  ;;  %v1365_v42 = vld [vmem:[%s11990_s0 + $0x93] sm:$0xff] }
  0xa8   :  { %1986 = vmatprep.subr.mxu0 %v6614_v43 }
  0xa9   :  { %6509 = vmatmul.mubr.msk.f32.gmra.mxu0 %vm166_vm0, %v875_v44 }
  0xaa   :  { %6565 = vmatmul.mubr.msk.f32.gmra.mxu1 %vm166_vm0, %v1349_v45  ;;  %1108 = vmatprep.mubr.f32.mxu0 %v12007_v3 }
  0xab   :  { %1582 = vmatprep.mubr.f32.mxu1 %v12007_v3  ;;  %1987 = vmatpush1.msra.mxu0 %v6613_v46 }
  0xac   :  { %1988 = vmatprep.subr.mxu0 %v6612_v47 }
  0xad   :  { %6510 = vmatmul.mubr.msk.f32.gmra.mxu0 %vm166_vm0, %v876_v48 }
  0xae   :  { %6566 = vmatmul.mubr.msk.f32.gmra.mxu1 %vm166_vm0, %v1350_v49  ;;  %1114 = vmatprep.mubr.f32.mxu0 %v12007_v3  ;;  %v892_v49 = vld [vmem:[%s11990_s0 + $0x9a] sm:$0xff] }
  0xaf   :  { %1588 = vmatprep.mubr.f32.mxu1 %v12007_v3  ;;  %1989 = vmatpush1.msra.mxu0 %v6611_v50  ;;  %v1366_v50 = vld [vmem:[%s11990_s0 + $0x9b] sm:$0xff] }
  0xb0   :  { %1990 = vmatprep.subr.mxu0 %v6610_v51 }
  0xb1   :  { %6511 = vmatmul.mubr.msk.f32.gmra.mxu0 %vm166_vm0, %v877_v52 }
  0xb2   :  { %6567 = vmatmul.mubr.msk.f32.gmra.mxu1 %vm166_vm0, %v1351_v53  ;;  %1120 = vmatprep.mubr.f32.mxu0 %v12007_v3 }
  0xb3   :  { %1594 = vmatprep.mubr.f32.mxu1 %v12007_v3  ;;  %1991 = vmatpush1.msra.mxu0 %v6609_v54 }
  0xb4   :  { %1992 = vmatprep.subr.mxu0 %v6608_v55 }
  0xb5   :  { %6512 = vmatmul.mubr.msk.f32.gmra.mxu0 %vm166_vm0, %v878_v56 }
  0xb6   :  { %6568 = vmatmul.mubr.msk.f32.gmra.mxu1 %vm166_vm0, %v1352_v57  ;;  %1126 = vmatprep.mubr.f32.mxu0 %v12007_v3  ;;  %v893_v57 = vld [vmem:[%s11990_s0 + $0xa2] sm:$0xff] }
  0xb7   :  { %1600 = vmatprep.mubr.f32.mxu1 %v12007_v3  ;;  %1993 = vmatpush1.msra.mxu0 %v6607_v58  ;;  %v1367_v58 = vld [vmem:[%s11990_s0 + $0xa3] sm:$0xff] }
  0xb8   :  { %1994 = vmatprep.subr.mxu0 %v6606_v59 }
  0xb9   :  { %6513 = vmatmul.mubr.msk.f32.gmra.mxu0 %vm166_vm0, %v879_v60 }
  0xba   :  { %6569 = vmatmul.mubr.msk.f32.gmra.mxu1 %vm166_vm0, %v1353_v61  ;;  %1132 = vmatprep.mubr.f32.mxu0 %v12007_v3 }
  0xbb   :  { %1606 = vmatprep.mubr.f32.mxu1 %v12007_v3  ;;  %1995 = vmatpush1.msra.mxu0 %v6605_v62 }
  0xbc   :  { %1996 = vmatprep.subr.mxu0 %v6604_v63 }
  0xbd   :  { %6514 = vmatmul.mubr.msk.f32.gmra.mxu0 %vm166_vm0, %v880_v0 }
  0xbe   :  { %6570 = vmatmul.mubr.msk.f32.gmra.mxu1 %vm166_vm0, %v1354_v1  ;;  %1138 = vmatprep.mubr.f32.mxu0 %v12007_v3  ;;  %v894_v1 = vld [vmem:[%s11990_s0 + $0xaa] sm:$0xff] }
  0xbf   :  { %1612 = vmatprep.mubr.f32.mxu1 %v12007_v3  ;;  %1997 = vmatpush1.msra.mxu0 %v6603_v2  ;;  %v1368_v2 = vld [vmem:[%s11990_s0 + $0xab] sm:$0xff] }
  0xc0   :  { %1998 = vmatprep.subr.mxu0 %v6602_v4 }
  0xc1   :  { %6515 = vmatmul.mubr.msk.f32.gmra.mxu0 %vm166_vm0, %v881_v5 }
  0xc2   :  { %6571 = vmatmul.mubr.msk.f32.gmra.mxu1 %vm166_vm0, %v1355_v6  ;;  %1144 = vmatprep.mubr.f32.mxu0 %v12007_v3 }
  0xc3   :  { %1618 = vmatprep.mubr.f32.mxu1 %v12007_v3  ;;  %1999 = vmatpush1.msra.mxu0 %v6601_v7 }
  0xc4   :  { %2000 = vmatprep.subr.mxu0 %v6600_v8 }
  0xc5   :  { %6516 = vmatmul.mubr.msk.f32.gmra.mxu0 %vm166_vm0, %v882_v9 }
  0xc6   :  { %6572 = vmatmul.mubr.msk.f32.gmra.mxu1 %vm166_vm0, %v1356_v10  ;;  %1150 = vmatprep.mubr.f32.mxu0 %v12007_v3  ;;  %v895_v10 = vld [vmem:[%s11990_s0 + $0xb2] sm:$0xff] }
  0xc7   :  { %1624 = vmatprep.mubr.f32.mxu1 %v12007_v3  ;;  %2001 = vmatpush1.msra.mxu0 %v6599_v11  ;;  %v1369_v11 = vld [vmem:[%s11990_s0 + $0xb3] sm:$0xff] }
  0xc8   :  { %2002 = vmatprep.subr.mxu0 %v6598_v12 }
  0xc9   :  { %6517 = vmatmul.mubr.msk.f32.gmra.mxu0 %vm166_vm0, %v883_v13 }
  0xca   :  { %6573 = vmatmul.mubr.msk.f32.gmra.mxu1 %vm166_vm0, %v1357_v14  ;;  %1156 = vmatprep.mubr.f32.mxu0 %v12007_v3 }
  0xcb   :  { %1630 = vmatprep.mubr.f32.mxu1 %v12007_v3  ;;  %2003 = vmatpush1.msra.mxu0 %v6597_v15 }
  0xcc   :  { %2004 = vmatprep.subr.mxu0 %v6596_v16 }
  0xcd   :  { %6518 = vmatmul.mubr.msk.f32.gmra.mxu0 %vm166_vm0, %v884_v17 }
  0xce   :  { %6574 = vmatmul.mubr.msk.f32.gmra.mxu1 %vm166_vm0, %v1358_v18  ;;  %1162 = vmatprep.mubr.f32.mxu0 %v12007_v3  ;;  %v896_v18 = vld [vmem:[%s11990_s0 + $0xba] sm:$0xff] }
  0xcf   :  { %1636 = vmatprep.mubr.f32.mxu1 %v12007_v3  ;;  %2005 = vmatpush1.msra.mxu0 %v6595_v19  ;;  %v1370_v19 = vld [vmem:[%s11990_s0 + $0xbb] sm:$0xff] }
  0xd0   :  { %2800 = vmatprep.subr.mxu0 %v12007_v3 }
  0xd1   :  { %6519 = vmatmul.mubr.msk.f32.gmra.mxu0 %vm166_vm0, %v885_v20 }
  0xd2   :  { %6575 = vmatmul.mubr.msk.f32.gmra.mxu1 %vm166_vm0, %v1359_v21  ;;  %1168 = vmatprep.mubr.f32.mxu0 %v12007_v3 }
  0xd3   :  { %1642 = vmatprep.mubr.f32.mxu1 %v12007_v3 }
  0xd5   :  { %6520 = vmatmul.mubr.msk.f32.gmra.mxu0 %vm166_vm0, %v886_v22 }
  0xd6   :  { %6576 = vmatmul.mubr.msk.f32.gmra.mxu1 %vm166_vm0, %v1360_v23  ;;  %1174 = vmatprep.mubr.f32.mxu0 %v12007_v3 }
  0xd7   :  { %1648 = vmatprep.mubr.f32.mxu1 %v12007_v3 }
  0xd9   :  { %6521 = vmatmul.mubr.msk.f32.gmra.mxu0 %vm166_vm0, %v887_v24 }
  0xda   :  { %6577 = vmatmul.mubr.msk.f32.gmra.mxu1 %vm166_vm0, %v1361_v25  ;;  %1180 = vmatprep.mubr.f32.mxu0 %v12007_v3 }
  0xdb   :  { %1654 = vmatprep.mubr.f32.mxu1 %v12007_v3 }
  0xdd   :  { %6522 = vmatmul.mubr.msk.f32.gmra.mxu0 %vm166_vm0, %v888_v26  ;;  %v897_v26 = vld [vmem:[%s11990_s0 + $0xc2] sm:$0xff] }
  0xde   :  { %6578 = vmatmul.mubr.msk.f32.gmra.mxu1 %vm166_vm0, %v1362_v27  ;;  %1186 = vmatprep.mubr.f32.mxu0 %v12007_v3  ;;  %v1371_v27 = vld [vmem:[%s11990_s0 + $0xc3] sm:$0xff] }
  0xdf   :  { %1660 = vmatprep.mubr.f32.mxu1 %v12007_v3 }
  0xe1   :  { %v329_v30 = vpop.f32.mrf.mxu0  ;;  %6523 = vmatmul.mubr.msk.f32.gmra.mxu0 %vm166_vm0, %v889_v28 }
  0xe2   :  { %v682_v31 = vpop.f32.mrf.mxu1  ;;  %6579 = vmatmul.mubr.msk.f32.gmra.mxu1 %vm166_vm0, %v1363_v29  ;;  %1192 = vmatprep.mubr.f32.mxu0 %v12007_v3 }
  0xe3   :  { %v8651_v32 = vadd.f32 %v682_v31, %v329_v30  ;;  %1666 = vmatprep.mubr.f32.mxu1 %v12007_v3  ;;  %v331_v35 = vpop.f32.mrf.mxu0 }
  0xe4   :  { %v684_v36 = vpop.f32.mrf.mxu1 }
  0xe5   :  { %v8661_v37 = vadd.f32 %v684_v36, %v331_v35  ;;  %v335_v38 = vpop.f32.mrf.mxu0  ;;  %6524 = vmatmul.mubr.msk.f32.gmra.mxu0 %vm166_vm0, %v890_v33  ;;  %v898_v35 = vld [vmem:[%s11990_s0 + $0xca] sm:$0xff] }
  0xe6   :  { %v688_v39 = vpop.f32.mrf.mxu1  ;;  %6580 = vmatmul.mubr.msk.f32.gmra.mxu1 %vm166_vm0, %v1364_v34  ;;  %1198 = vmatprep.mubr.f32.mxu0 %v12007_v3  ;;  %v1372_v36 = vld [vmem:[%s11990_s0 + $0xcb] sm:$0xff] }
  0xe7   :  { %v8665_v40 = vadd.f32 %v688_v39, %v335_v38  ;;  %1672 = vmatprep.mubr.f32.mxu1 %v12007_v3  ;;  %v337_v43 = vpop.f32.mrf.mxu0 }
  0xe8   :  { %v690_v44 = vpop.f32.mrf.mxu1 }
  0xe9   :  { %v8675_v45 = vadd.f32 %v690_v44, %v337_v43  ;;  %v341_v46 = vpop.f32.mrf.mxu0  ;;  %6525 = vmatmul.mubr.msk.f32.gmra.mxu0 %vm166_vm0, %v891_v41  ;;  %v899_v44 = vld [vmem:[%s11990_s0 + $0xd2] sm:$0xff] }
  0xea   :  { %v694_v47 = vpop.f32.mrf.mxu1  ;;  %6581 = vmatmul.mubr.msk.f32.gmra.mxu1 %vm166_vm0, %v1365_v42  ;;  %1204 = vmatprep.mubr.f32.mxu0 %v12007_v3 }
  0xeb   :  { %v8679_v48 = vadd.f32 %v694_v47, %v341_v46  ;;  %1678 = vmatprep.mubr.f32.mxu1 %v12007_v3  ;;  %v343_v51 = vpop.f32.mrf.mxu0  ;;  %v1373_v46 = vld [vmem:[%s11990_s0 + $0xd3] sm:$0xff] }
  0xec   :  { %v696_v52 = vpop.f32.mrf.mxu1 }
  0xed   :  { %v8689_v53 = vadd.f32 %v696_v52, %v343_v51  ;;  %v347_v54 = vpop.f32.mrf.mxu0  ;;  %6526 = vmatmul.mubr.msk.f32.gmra.mxu0 %vm166_vm0, %v892_v49 }
  0xee   :  { %v700_v55 = vpop.f32.mrf.mxu1  ;;  %6582 = vmatmul.mubr.msk.f32.gmra.mxu1 %vm166_vm0, %v1366_v50  ;;  %1210 = vmatprep.mubr.f32.mxu0 %v12007_v3 }
  0xef   :  { %v8693_v56 = vadd.f32 %v700_v55, %v347_v54  ;;  %1684 = vmatprep.mubr.f32.mxu1 %v12007_v3  ;;  %v349_v59 = vpop.f32.mrf.mxu0  ;;  %v900_v54 = vld [vmem:[%s11990_s0 + $0xda] sm:$0xff] }
  0xf0   :  { %v702_v60 = vpop.f32.mrf.mxu1  ;;  %v1374_v55 = vld [vmem:[%s11990_s0 + $0xdb] sm:$0xff] }
  0xf1   :  { %v8703_v61 = vadd.f32 %v702_v60, %v349_v59  ;;  %v353_v62 = vpop.f32.mrf.mxu0  ;;  %6527 = vmatmul.mubr.msk.f32.gmra.mxu0 %vm166_vm0, %v893_v57 }
  0xf2   :  { %v706_v63 = vpop.f32.mrf.mxu1  ;;  %6583 = vmatmul.mubr.msk.f32.gmra.mxu1 %vm166_vm0, %v1367_v58  ;;  %1216 = vmatprep.mubr.f32.mxu0 %v12007_v3 }
  0xf3   :  { %v8707_v0 = vadd.f32 %v706_v63, %v353_v62  ;;  %1690 = vmatprep.mubr.f32.mxu1 %v12007_v3  ;;  %v355_v4 = vpop.f32.mrf.mxu0  ;;  %v901_v63 = vld [vmem:[%s11990_s0 + $0xe2] sm:$0xff] }
  0xf4   :  { %v708_v5 = vpop.f32.mrf.mxu1 }
  0xf5   :  { %v8717_v6 = vadd.f32 %v708_v5, %v355_v4  ;;  %v359_v7 = vpop.f32.mrf.mxu0  ;;  %6528 = vmatmul.mubr.msk.f32.gmra.mxu0 %vm166_vm0, %v894_v1  ;;  %v1375_v1 = vld [vmem:[%s11990_s0 + $0xe3] sm:$0xff] }
  0xf6   :  { %v712_v8 = vpop.f32.mrf.mxu1  ;;  %6584 = vmatmul.mubr.msk.f32.gmra.mxu1 %vm166_vm0, %v1368_v2  ;;  %1222 = vmatprep.mubr.f32.mxu0 %v12007_v3 }
  0xf7   :  { %v8721_v9 = vadd.f32 %v712_v8, %v359_v7  ;;  %1696 = vmatprep.mubr.f32.mxu1 %v12007_v3  ;;  %v361_v12 = vpop.f32.mrf.mxu0 }
  0xf8   :  { %v714_v13 = vpop.f32.mrf.mxu1 }
  0xf9   :  { %v8731_v14 = vadd.f32 %v714_v13, %v361_v12  ;;  %v365_v15 = vpop.f32.mrf.mxu0  ;;  %6529 = vmatmul.mubr.msk.f32.gmra.mxu0 %vm166_vm0, %v895_v10  ;;  %v902_v10 = vld [vmem:[%s11990_s0 + $0xea] sm:$0xff] }
  0xfa   :  { %v718_v16 = vpop.f32.mrf.mxu1  ;;  %6585 = vmatmul.mubr.msk.f32.gmra.mxu1 %vm166_vm0, %v1369_v11  ;;  %1228 = vmatprep.mubr.f32.mxu0 %v12007_v3  ;;  %v1376_v11 = vld [vmem:[%s11990_s0 + $0xeb] sm:$0xff] }
  0xfb   :  { %v8735_v17 = vadd.f32 %v718_v16, %v365_v15  ;;  %1702 = vmatprep.mubr.f32.mxu1 %v12007_v3  ;;  %v367_v20 = vpop.f32.mrf.mxu0 }
  0xfc   :  { %v720_v21 = vpop.f32.mrf.mxu1 }
  0xfd   :  { %v8745_v22 = vadd.f32 %v720_v21, %v367_v20  ;;  %v371_v23 = vpop.f32.mrf.mxu0  ;;  %6530 = vmatmul.mubr.msk.f32.gmra.mxu0 %vm166_vm0, %v896_v18  ;;  %v1377_v20 = vld [vmem:[%s11990_s0 + $0xf3] sm:$0xff] }
  0xfe   :  { %v724_v24 = vpop.f32.mrf.mxu1  ;;  %6586 = vmatmul.mubr.msk.f32.gmra.mxu1 %vm166_vm0, %v1370_v19  ;;  %1234 = vmatprep.mubr.f32.mxu0 %v12007_v3  ;;  %v903_v19 = vld [vmem:[%s11990_s0 + $0xf2] sm:$0xff] }
  0xff   :  { %v8749_v25 = vadd.f32 %v724_v24, %v371_v23  ;;  %1708 = vmatprep.mubr.f32.mxu1 %v12007_v3  ;;  %v373_v28 = vpop.f32.mrf.mxu0 }
 0x100   :  { %v726_v29 = vpop.f32.mrf.mxu1 }
 0x101   :  { %v8759_v30 = vadd.f32 %v726_v29, %v373_v28  ;;  %v377_v31 = vpop.f32.mrf.mxu0  ;;  %6531 = vmatmul.mubr.msk.f32.gmra.mxu0 %vm166_vm0, %v897_v26  ;;  %v904_v28 = vld [vmem:[%s11990_s0 + $0xfa] sm:$0xf] }
 0x102   :  { %v730_v33 = vpop.f32.mrf.mxu1  ;;  %6587 = vmatmul.mubr.msk.f32.gmra.mxu1 %vm166_vm0, %v1371_v27  ;;  %1240 = vmatprep.mubr.f32.mxu0 %v12007_v3  ;;  %v1378_v29 = vld [vmem:[%s11990_s0 + $0xfb] sm:$0xf] }
 0x103   :  { %v8763_v34 = vadd.f32 %v730_v33, %v377_v31  ;;  %1714 = vmatprep.mubr.f32.mxu1 %v12007_v3  ;;  %v8773_v38 = vpop.f32.mrf.mxu0 }
 0x104   :  { %v8775_v39 = vpop.f32.mrf.mxu1 }
 0x105   :  { %v383_v41 = vpop.f32.mrf.mxu0  ;;  %6532 = vmatmul.mubr.msk.f32.gmra.mxu0 %vm166_vm0, %v898_v35 }
 0x106   :  { %v736_v42 = vpop.f32.mrf.mxu1  ;;  %6588 = vmatmul.mubr.msk.f32.gmra.mxu1 %vm166_vm0, %v1372_v36  ;;  %1246 = vmatprep.mubr.f32.mxu0 %v12007_v3 }
 0x107   :  { %v8779_v43 = vadd.f32 %v736_v42, %v383_v41  ;;  %1720 = vmatprep.mubr.f32.mxu1 %v12007_v3  ;;  %v8789_v47 = vpop.f32.mrf.mxu0  ;;  %v1821_v42 = vld [vmem:[%s11990_s0 + $0x4] sm:$0xff] }
 0x108   :  { %v8791_v49 = vpop.f32.mrf.mxu1 }
 0x109   :  { %12016 = vst [vmem:[#allocation2_spill] sm:$0xff] %v8791_v49  ;;  %v389_v50 = vpop.f32.mrf.mxu0  ;;  %6533 = vmatmul.mubr.msk.f32.gmra.mxu0 %vm166_vm0, %v899_v44 }
 0x10a   :  { %v742_v51 = vpop.f32.mrf.mxu1  ;;  %6589 = vmatmul.mubr.msk.f32.gmra.mxu1 %vm166_vm0, %v1373_v46  ;;  %1252 = vmatprep.mubr.f32.mxu0 %v12007_v3 }
 0x10b   :  { %v8795_v52 = vadd.f32 %v742_v51, %v389_v50  ;;  %1726 = vmatprep.mubr.f32.mxu1 %v12007_v3  ;;  %v8805_v57 = vpop.f32.mrf.mxu0 }
 0x10c   :  { %12017 = vst [vmem:[#allocation3_spill] sm:$0xff] %v8805_v57  ;;  %v8807_v58 = vpop.f32.mrf.mxu1 }
 0x10d   :  { %12018 = vst [vmem:[#allocation4_spill] sm:$0xff] %v8807_v58  ;;  %v395_v59 = vpop.f32.mrf.mxu0  ;;  %6534 = vmatmul.mubr.msk.f32.gmra.mxu0 %vm166_vm0, %v900_v54 }
 0x10e   :  { %v748_v60 = vpop.f32.mrf.mxu1  ;;  %6590 = vmatmul.mubr.msk.f32.gmra.mxu1 %vm166_vm0, %v1374_v55  ;;  %1258 = vmatprep.mubr.f32.mxu0 %v12007_v3  ;;  %v1822_v55 = vld [vmem:[%s11990_s0 + $0xc] sm:$0xff] }
 0x10f   :  { %v8811_v62 = vadd.f32 %v748_v60, %v395_v59  ;;  %1732 = vmatprep.mubr.f32.mxu1 %v12007_v3  ;;  %v8821_v2 = vpop.f32.mrf.mxu0 }
 0x110   :  { %12019 = vst [vmem:[#allocation5_spill] sm:$0xff] %v8821_v2  ;;  %v8823_v4 = vpop.f32.mrf.mxu1 }
 0x111   :  { %12020 = vst [vmem:[#allocation6_spill] sm:$0xff] %v8823_v4  ;;  %v401_v5 = vpop.f32.mrf.mxu0  ;;  %6535 = vmatmul.mubr.msk.f32.gmra.mxu0 %vm166_vm0, %v901_v63 }
 0x112   :  { %v754_v7 = vpop.f32.mrf.mxu1  ;;  %6591 = vmatmul.mubr.msk.f32.gmra.mxu1 %vm166_vm0, %v1375_v1  ;;  %1264 = vmatprep.mubr.f32.mxu0 %v12007_v3 }
 0x113   :  { %v8827_v8 = vadd.f32 %v754_v7, %v401_v5  ;;  %1738 = vmatprep.mubr.f32.mxu1 %v12007_v3  ;;  %v8837_v12 = vpop.f32.mrf.mxu0  ;;  %v1823_v7 = vld [vmem:[%s11990_s0 + $0x14] sm:$0xff] }
 0x114   :  { %12021 = vst [vmem:[#allocation7_spill] sm:$0xff] %v8837_v12  ;;  %v8839_v13 = vpop.f32.mrf.mxu1 }
 0x115   :  { %12022 = vst [vmem:[#allocation8_spill] sm:$0xff] %v8839_v13  ;;  %v407_v15 = vpop.f32.mrf.mxu0  ;;  %6536 = vmatmul.mubr.msk.f32.gmra.mxu0 %vm166_vm0, %v902_v10 }
 0x116   :  { %v760_v16 = vpop.f32.mrf.mxu1  ;;  %6592 = vmatmul.mubr.msk.f32.gmra.mxu1 %vm166_vm0, %v1376_v11  ;;  %1270 = vmatprep.mubr.f32.mxu0 %v12007_v3 }
 0x117   :  { %v8843_v18 = vadd.f32 %v760_v16, %v407_v15  ;;  %1744 = vmatprep.mubr.f32.mxu1 %v12007_v3  ;;  %v8853_v21 = vpop.f32.mrf.mxu0 }
 0x118   :  { %12023 = vst [vmem:[#allocation9_spill] sm:$0xff] %v8853_v21  ;;  %v8855_v23 = vpop.f32.mrf.mxu1 }
 0x119   :  { %12024 = vst [vmem:[#allocation10_spill] sm:$0xff] %v8855_v23  ;;  %v413_v24 = vpop.f32.mrf.mxu0  ;;  %6537 = vmatmul.mubr.msk.f32.gmra.mxu0 %vm166_vm0, %v903_v19 }
 0x11a   :  { %v766_v26 = vpop.f32.mrf.mxu1  ;;  %6593 = vmatmul.mubr.msk.f32.gmra.mxu1 %vm166_vm0, %v1377_v20  ;;  %1276 = vmatprep.mubr.f32.mxu0 %v12007_v3  ;;  %v1824_v20 = vld [vmem:[%s11990_s0 + $0x1c] sm:$0xff] }
 0x11b   :  { %v8859_v27 = vadd.f32 %v766_v26, %v413_v24  ;;  %1750 = vmatprep.mubr.f32.mxu1 %v12007_v3  ;;  %v8869_v31 = vpop.f32.mrf.mxu0 }
 0x11c   :  { %12025 = vst [vmem:[#allocation11_spill] sm:$0xff] %v8869_v31  ;;  %v8871_v33 = vpop.f32.mrf.mxu1 }
 0x11d   :  { %12026 = vst [vmem:[#allocation12_spill] sm:$0xff] %v8871_v33  ;;  %v419_v35 = vpop.f32.mrf.mxu0  ;;  %6538 = vmatmul.mubr.msk.f32.gmra.mxu0 %vm166_vm0, %v904_v28  ;;  %v6685_v33 = vld [vmem:[%s11991_s3 + $0xb8] sm:$0xff] }
 0x11e   :  { %v772_v36 = vpop.f32.mrf.mxu1  ;;  %6594 = vmatmul.mubr.msk.f32.gmra.mxu1 %vm166_vm0, %v1378_v29  ;;  %2038 = vmatprep.mubr.f32.mxu0 %v12007_v3 }
 0x11f   :  { %v8875_v41 = vadd.f32 %v772_v36, %v419_v35  ;;  %v8881_v44 = vpop.f32.mrf.mxu0  ;;  %v1825_v36 = vld [vmem:[%s11990_s0 + $0x24] sm:$0xff] }
 0x120   :  { %12027 = vst [vmem:[#allocation13_spill] sm:$0xff] %v8881_v44  ;;  %v8883_v46 = vpop.f32.mrf.mxu1 }
 0x121   :  { %12028 = vst [vmem:[#allocation14_spill] sm:$0xff] %v8883_v46  ;;  %v425_v50 = vpop.f32.mrf.mxu0  ;;  %6619 = vmatmul.mubr.msk.f32.vlgmr.msra.gmra.mxu0 %vm166_vm0, %v1821_v42 }
 0x122   :  { %v778_v51 = vpop.f32.mrf.mxu1  ;;  %2044 = vmatprep.mubr.f32.mxu0 %v12007_v3 }
 0x123   :  { %v8886_v54 = vadd.f32 %v778_v51, %v425_v50  ;;  %v8892_v59 = vpop.f32.mrf.mxu0 }
 0x124   :  { %12029 = vst [vmem:[#allocation15_spill] sm:$0xff] %v8892_v59  ;;  %v8894_v60 = vpop.f32.mrf.mxu1 }
 0x125   :  { %12030 = vst [vmem:[#allocation16_spill] sm:$0xff] %v8894_v60  ;;  %v431_v63 = vpop.f32.mrf.mxu0  ;;  %6620 = vmatmul.mubr.msk.f32.gmra.mxu0 %vm166_vm0, %v1822_v55 }
 0x126   :  { %v784_v1 = vpop.f32.mrf.mxu1  ;;  %2050 = vmatprep.mubr.f32.mxu0 %v12007_v3 }
 0x127   :  { %v8897_v5 = vadd.f32 %v784_v1, %v431_v63  ;;  %v8903_v10 = vpop.f32.mrf.mxu0  ;;  %v1826_v1 = vld [vmem:[%s11990_s0 + $0x2c] sm:$0xff] }
 0x128   :  { %12031 = vst [vmem:[#allocation17_spill] sm:$0xff] %v8903_v10  ;;  %v8905_v11 = vpop.f32.mrf.mxu1 }
 0x129   :  { %12032 = vst [vmem:[#allocation18_spill] sm:$0xff] %v8905_v11  ;;  %v437_v15 = vpop.f32.mrf.mxu0  ;;  %6621 = vmatmul.mubr.msk.f32.gmra.mxu0 %vm166_vm0, %v1823_v7 }
 0x12a   :  { %v790_v16 = vpop.f32.mrf.mxu1  ;;  %2056 = vmatprep.mubr.f32.mxu0 %v12007_v3 }
 0x12b   :  { %v8908_v19 = vadd.f32 %v790_v16, %v437_v15  ;;  %v8914_v24 = vpop.f32.mrf.mxu0 }
 0x12c   :  { %12033 = vst [vmem:[#allocation19_spill] sm:$0xff] %v8914_v24  ;;  %v8916_v26 = vpop.f32.mrf.mxu1  ;;  %v2447_v24 = vld [vmem:[%s11991_s3 + $0x60] sm:$0xff] }
 0x12d   :  { %12034 = vst [vmem:[#allocation20_spill] sm:$0xff] %v8916_v26  ;;  %v443_v28 = vpop.f32.mrf.mxu0  ;;  %6622 = vmatmul.mubr.msk.f32.gmra.mxu0 %vm166_vm0, %v1824_v20 }
 0x12e   :  { %v796_v29 = vpop.f32.mrf.mxu1  ;;  %2062 = vmatprep.mubr.f32.mxu0 %v12007_v3 }
 0x12f   :  { %v8919_v35 = vadd.f32 %v796_v29, %v443_v28  ;;  %v8925_v42 = vpop.f32.mrf.mxu0  ;;  %v1827_v29 = vld [vmem:[%s11990_s0 + $0x34] sm:$0xff] }
 0x130   :  { %12035 = vst [vmem:[#allocation21_spill] sm:$0xff] %v8925_v42  ;;  %v8927_v50 = vpop.f32.mrf.mxu1 }
 0x131   :  { %12036 = vst [vmem:[#allocation22_spill] sm:$0xff] %v8927_v50  ;;  %v449_v51 = vpop.f32.mrf.mxu0  ;;  %6623 = vmatmul.mubr.msk.f32.gmra.mxu0 %vm166_vm0, %v1825_v36 }
 0x132   :  { %v802_v55 = vpop.f32.mrf.mxu1  ;;  %2068 = vmatprep.mubr.f32.mxu0 %v12007_v3 }
 0x133   :  { %v8930_v63 = vadd.f32 %v802_v55, %v449_v51  ;;  %v8936_v7 = vpop.f32.mrf.mxu0 }
 0x134   :  { %12037 = vst [vmem:[#allocation23_spill] sm:$0xff] %v8936_v7  ;;  %v8938_v15 = vpop.f32.mrf.mxu1 }
 0x135   :  { %12038 = vst [vmem:[#allocation24_spill] sm:$0xff] %v8938_v15  ;;  %v455_v16 = vpop.f32.mrf.mxu0  ;;  %6624 = vmatmul.mubr.msk.f32.gmra.mxu0 %vm166_vm0, %v1826_v1  ;;  %v1828_v1 = vld [vmem:[%s11990_s0 + $0x3c] sm:$0xff] }
 0x136   :  { %v808_v20 = vpop.f32.mrf.mxu1  ;;  %2074 = vmatprep.mubr.f32.mxu0 %v12007_v3 }
 0x137   :  { %v8941_v28 = vadd.f32 %v808_v20, %v455_v16  ;;  %v8947_v36 = vpop.f32.mrf.mxu0 }
 0x138   :  { %12039 = vst [vmem:[#allocation25_spill] sm:$0xff] %v8947_v36  ;;  %v8949_v51 = vpop.f32.mrf.mxu1 }
 0x139   :  { %12040 = vst [vmem:[#allocation26_spill] sm:$0xff] %v8949_v51  ;;  %v461_v55 = vpop.f32.mrf.mxu0  ;;  %6625 = vmatmul.mubr.msk.f32.gmra.mxu0 %vm166_vm0, %v1827_v29 }
 0x13a   :  { %v814_v7 = vpop.f32.mrf.mxu1  ;;  %2080 = vmatprep.mubr.f32.mxu0 %v12007_v3 }
 0x13b   :  { %v8952_v15 = vadd.f32 %v814_v7, %v461_v55  ;;  %v8958_v16 = vpop.f32.mrf.mxu0  ;;  %v1829_v7 = vld [vmem:[%s11990_s0 + $0x44] sm:$0xff] }
 0x13c   :  { %12041 = vst [vmem:[#allocation27_spill] sm:$0xff] %v8958_v16  ;;  %v8960_v20 = vpop.f32.mrf.mxu1 }
 0x13d   :  { %12042 = vst [vmem:[#allocation28_spill] sm:$0xff] %v8960_v20  ;;  %v467_v50 = vpop.f32.mrf.mxu0  ;;  %6626 = vmatmul.mubr.msk.f32.gmra.mxu0 %vm166_vm0, %v1828_v1  ;;  %v2450_v1 = vld [vmem:[%s11991_s3 + $0x78] sm:$0xff]  ;;  %v2449_v20 = vld [vmem:[%s11991_s3 + $0x70] sm:$0xff] }
 0x13e   :  { %v820_v36 = vpop.f32.mrf.mxu1  ;;  %2086 = vmatprep.mubr.f32.mxu0 %v12007_v3  ;;  %2554 = vmatpush1.msra.mxu1 %v2450_v1 }
 0x13f   :  { %v8963_v51 = vadd.f32 %v820_v36, %v467_v50  ;;  %v8969_v29 = vpop.f32.mrf.mxu0  ;;  %v6698_v50 = vld [vmem:[%s11991_s3 + $0x120] sm:$0xff]  ;;  %2555 = vmatprep.subr.mxu1 %v12007_v3 }
 0x140   :  { %12043 = vst [vmem:[#allocation29_spill] sm:$0xff] %v8969_v29  ;;  %v8971_v55 = vpop.f32.mrf.mxu1  ;;  %2801 = vmatpush1.msra.mxu0 %v6698_v50  ;;  %2556 = vmatpush1.msra.mxu1 %v2449_v20  ;;  %v2448_v50 = vld [vmem:[%s11991_s3 + $0x68] sm:$0xff]  ;;  %v1831_v20 = vld [vmem:[%s11990_s0 + $0x54] sm:$0xff] }
 0x141   :  { %12044 = vst [vmem:[#allocation30_spill] sm:$0xff] %v8971_v55  ;;  %v473_v42 = vpop.f32.mrf.mxu0  ;;  %6627 = vmatmul.mubr.msk.f32.gmra.mxu0 %vm166_vm0, %v1829_v7  ;;  %v1830_v55 = vld [vmem:[%s11990_s0 + $0x4c] sm:$0xff]  ;;  %2802 = vmatprep.subr.mxu0 %v12007_v3 }
 0x142   :  { %v826_v16 = vpop.f32.mrf.mxu1  ;;  %2092 = vmatprep.mubr.f32.mxu0 %v12007_v3  ;;  %2557 = vmatprep.subr.mxu1 %v12007_v3 }
 0x143   :  { %v8980_v36 = vadd.f32 %v826_v16, %v473_v42  ;;  %v8986_v29 = vpop.f32.mrf.mxu0  ;;  %v6697_v42 = vld [vmem:[%s11991_s3 + $0x118] sm:$0xff]  ;;  %2558 = vmatpush1.msra.mxu1 %v2448_v50 }
 0x144   :  { %12045 = vst [vmem:[#allocation31_spill] sm:$0xff] %v8986_v29  ;;  %v8988_v7 = vpop.f32.mrf.mxu1  ;;  %2803 = vmatpush1.msra.mxu0 %v6697_v42  ;;  %2559 = vmatprep.subr.mxu1 %v12007_v3  ;;  %v2446_v50 = vld [vmem:[%s11991_s3 + $0x58] sm:$0xff] }
 0x145   :  { %12046 = vst [vmem:[#allocation32_spill] sm:$0xff] %v8988_v7  ;;  %v479_v16 = vpop.f32.mrf.mxu0  ;;  %6628 = vmatmul.mubr.msk.f32.gmra.mxu0 %vm166_vm0, %v1830_v55  ;;  %v6696_v7 = vld [vmem:[%s11991_s3 + $0x110] sm:$0xff]  ;;  %2804 = vmatprep.subr.mxu0 %v12007_v3 }
 0x146   :  { %v832_v1 = vpop.f32.mrf.mxu1  ;;  %2098 = vmatprep.mubr.f32.mxu0 %v12007_v3  ;;  %2805 = vmatpush1.msra.mxu0 %v6696_v7  ;;  %v1832_v7 = vld [vmem:[%s11990_s0 + $0x5c] sm:$0xff] }
 0x147   :  { %v9006_v29 = vadd.f32 %v832_v1, %v479_v16  ;;  %v9012_v55 = vpop.f32.mrf.mxu0  ;;  %v6695_v16 = vld [vmem:[%s11991_s3 + $0x108] sm:$0xff]  ;;  %2806 = vmatprep.subr.mxu0 %v12007_v3  ;;  %2560 = vmatpush1.msra.mxu1 %v2447_v24 }
 0x148   :  { %12047 = vst [vmem:[#allocation33_spill] sm:$0xff] %v9012_v55  ;;  %v9014_v26 = vpop.f32.mrf.mxu1  ;;  %2807 = vmatpush1.msra.mxu0 %v6695_v16  ;;  %2561 = vmatprep.subr.mxu1 %v12007_v3  ;;  %v6693_v16 = vld [vmem:[%s11991_s3 + $0xf8] sm:$0xff] }
 0x149   :  { %12048 = vst [vmem:[#allocation34_spill] sm:$0xff] %v9014_v26  ;;  %v485_v1 = vpop.f32.mrf.mxu0  ;;  %6629 = vmatmul.mubr.msk.f32.gmra.mxu0 %vm166_vm0, %v1831_v20  ;;  %v6694_v20 = vld [vmem:[%s11991_s3 + $0x100] sm:$0xff]  ;;  %2808 = vmatprep.subr.mxu0 %v12007_v3 }
 0x14a   :  { %v838_v42 = vpop.f32.mrf.mxu1  ;;  %2104 = vmatprep.mubr.f32.mxu0 %v12007_v3  ;;  %2562 = vmatpush1.msra.mxu1 %v2446_v50  ;;  %v1833_v50 = vld [vmem:[%s11990_s0 + $0x64] sm:$0xff] }
 0x14b   :  { %v9029_v26 = vadd.f32 %v838_v42, %v485_v1  ;;  %v9035_v55 = vpop.f32.mrf.mxu0  ;;  %v2445_v1 = vld [vmem:[%s11991_s3 + $0x50] sm:$0xff]  ;;  %2563 = vmatprep.subr.mxu1 %v12007_v3  ;;  %2809 = vmatpush1.msra.mxu0 %v6694_v20 }
 0x14c   :  { %12049 = vst [vmem:[#allocation35_spill] sm:$0xff] %v9035_v55  ;;  %v9037_v11 = vpop.f32.mrf.mxu1  ;;  %2810 = vmatprep.subr.mxu0 %v12007_v3  ;;  %2564 = vmatpush1.msra.mxu1 %v2445_v1  ;;  %v2443_v1 = vld [vmem:[%s11991_s3 + $0x40] sm:$0xff] }
 0x14d   :  { %12050 = vst [vmem:[#allocation36_spill] sm:$0xff] %v9037_v11  ;;  %v491_v42 = vpop.f32.mrf.mxu0  ;;  %6630 = vmatmul.mubr.msk.f32.gmra.mxu0 %vm166_vm0, %v1832_v7  ;;  %v2444_v7 = vld [vmem:[%s11991_s3 + $0x48] sm:$0xff]  ;;  %2565 = vmatprep.subr.mxu1 %v12007_v3 }
 0x14e   :  { %v844_v24 = vpop.f32.mrf.mxu1  ;;  %2110 = vmatprep.mubr.f32.mxu0 %v12007_v3  ;;  %2811 = vmatpush1.msra.mxu0 %v6693_v16  ;;  %v1834_v16 = vld [vmem:[%s11990_s0 + $0x6c] sm:$0xff] }
 0x14f   :  { %v9052_v11 = vadd.f32 %v844_v24, %v491_v42  ;;  %v9058_v55 = vpop.f32.mrf.mxu0  ;;  %v6692_v42 = vld [vmem:[%s11991_s3 + $0xf0] sm:$0xff]  ;;  %2812 = vmatprep.subr.mxu0 %v12007_v3  ;;  %2566 = vmatpush1.msra.mxu1 %v2444_v7 }
 0x150   :  { %12051 = vst [vmem:[#allocation37_spill] sm:$0xff] %v9058_v55  ;;  %v9060_v10 = vpop.f32.mrf.mxu1  ;;  %2813 = vmatpush1.msra.mxu0 %v6692_v42  ;;  %2567 = vmatprep.subr.mxu1 %v12007_v3  ;;  %v6690_v42 = vld [vmem:[%s11991_s3 + $0xe0] sm:$0xff] }
 0x151   :  { %12052 = vst [vmem:[#allocation38_spill] sm:$0xff] %v9060_v10  ;;  %v497_v24 = vpop.f32.mrf.mxu0  ;;  %6631 = vmatmul.mubr.msk.f32.gmra.mxu0 %vm166_vm0, %v1833_v50  ;;  %v6691_v50 = vld [vmem:[%s11991_s3 + $0xe8] sm:$0xff]  ;;  %2814 = vmatprep.subr.mxu0 %v12007_v3 }
 0x152   :  { %v850_v20 = vpop.f32.mrf.mxu1  ;;  %2116 = vmatprep.mubr.f32.mxu0 %v12007_v3  ;;  %2568 = vmatpush1.msra.mxu1 %v2443_v1  ;;  %v1835_v1 = vld [vmem:[%s11990_s0 + $0x74] sm:$0xff] }
 0x153   :  { %v9075_v10 = vadd.f32 %v850_v20, %v497_v24  ;;  %v9081_v55 = vpop.f32.mrf.mxu0  ;;  %v2442_v24 = vld [vmem:[%s11991_s3 + $0x38] sm:$0xff]  ;;  %2569 = vmatprep.subr.mxu1 %v12007_v3  ;;  %2815 = vmatpush1.msra.mxu0 %v6691_v50 }
 0x154   :  { %12053 = vst [vmem:[#allocation39_spill] sm:$0xff] %v9081_v55  ;;  %v9083_v60 = vpop.f32.mrf.mxu1  ;;  %2816 = vmatprep.subr.mxu0 %v12007_v3  ;;  %2570 = vmatpush1.msra.mxu1 %v2442_v24  ;;  %v2440_v24 = vld [vmem:[%s11991_s3 + $0x28] sm:$0xff] }
 0x155   :  { %12054 = vst [vmem:[#allocation40_spill] sm:$0xff] %v9083_v60  ;;  %v503_v20 = vpop.f32.mrf.mxu0  ;;  %6632 = vmatmul.mubr.msk.f32.gmra.mxu0 %vm166_vm0, %v1834_v16  ;;  %v2441_v16 = vld [vmem:[%s11991_s3 + $0x30] sm:$0xff]  ;;  %2571 = vmatprep.subr.mxu1 %v12007_v3 }
 0x156   :  { %v856_v7 = vpop.f32.mrf.mxu1  ;;  %2122 = vmatprep.mubr.f32.mxu0 %v12007_v3  ;;  %2817 = vmatpush1.msra.mxu0 %v6690_v42  ;;  %v1836_v42 = vld [vmem:[%s11990_s0 + $0x7c] sm:$0xff] }
 0x157   :  { %v9098_v60 = vadd.f32 %v856_v7, %v503_v20  ;;  %v9104_v55 = vpop.f32.mrf.mxu0  ;;  %v6689_v20 = vld [vmem:[%s11991_s3 + $0xd8] sm:$0xff]  ;;  %2818 = vmatprep.subr.mxu0 %v12007_v3  ;;  %2572 = vmatpush1.msra.mxu1 %v2441_v16 }
 0x158   :  { %12055 = vst [vmem:[#allocation41_spill] sm:$0xff] %v9104_v55  ;;  %v9106_v59 = vpop.f32.mrf.mxu1  ;;  %2819 = vmatpush1.msra.mxu0 %v6689_v20  ;;  %2573 = vmatprep.subr.mxu1 %v12007_v3  ;;  %v6687_v20 = vld [vmem:[%s11991_s3 + $0xc8] sm:$0xff] }
 0x159   :  { %12056 = vst [vmem:[#allocation42_spill] sm:$0xff] %v9106_v59  ;;  %v509_v7 = vpop.f32.mrf.mxu0  ;;  %6633 = vmatmul.mubr.msk.f32.gmra.mxu0 %vm166_vm0, %v1835_v1  ;;  %v6688_v1 = vld [vmem:[%s11991_s3 + $0xd0] sm:$0xff]  ;;  %2820 = vmatprep.subr.mxu0 %v12007_v3 }
 0x15a   :  { %v862_v50 = vpop.f32.mrf.mxu1  ;;  %2128 = vmatprep.mubr.f32.mxu0 %v12007_v3  ;;  %2574 = vmatpush1.msra.mxu1 %v2440_v24  ;;  %v1837_v24 = vld [vmem:[%s11990_s0 + $0x84] sm:$0xff] }
 0x15b   :  { %v9121_v59 = vadd.f32 %v862_v50, %v509_v7  ;;  %v9127_v55 = vpop.f32.mrf.mxu0  ;;  %v2439_v7 = vld [vmem:[%s11991_s3 + $0x20] sm:$0xff]  ;;  %2575 = vmatprep.subr.mxu1 %v12007_v3  ;;  %2821 = vmatpush1.msra.mxu0 %v6688_v1 }
 0x15c   :  { %12057 = vst [vmem:[#allocation43_spill] sm:$0xff] %v9127_v55  ;;  %v9129_v46 = vpop.f32.mrf.mxu1  ;;  %2822 = vmatprep.subr.mxu0 %v12007_v3  ;;  %2576 = vmatpush1.msra.mxu1 %v2439_v7  ;;  %v2437_v7 = vld [vmem:[%s11991_s3 + $0x10] sm:$0xff] }
 0x15d   :  { %12058 = vst [vmem:[#allocation44_spill] sm:$0xff] %v9129_v46  ;;  %v515_v50 = vpop.f32.mrf.mxu0  ;;  %6634 = vmatmul.mubr.msk.f32.gmra.mxu0 %vm166_vm0, %v1836_v42  ;;  %v2438_v42 = vld [vmem:[%s11991_s3 + $0x18] sm:$0xff]  ;;  %2577 = vmatprep.subr.mxu1 %v12007_v3 }
 0x15e   :  { %v868_v16 = vpop.f32.mrf.mxu1  ;;  %2134 = vmatprep.mubr.f32.mxu0 %v12007_v3  ;;  %2823 = vmatpush1.msra.mxu0 %v6687_v20  ;;  %v1838_v20 = vld [vmem:[%s11990_s0 + $0x8c] sm:$0xff] }
 0x15f   :  { %v9144_v46 = vadd.f32 %v868_v16, %v515_v50  ;;  %v9150_v55 = vpop.f32.mrf.mxu0  ;;  %v6686_v50 = vld [vmem:[%s11991_s3 + $0xc0] sm:$0xff]  ;;  %2824 = vmatprep.subr.mxu0 %v12007_v3  ;;  %2578 = vmatpush1.msra.mxu1 %v2438_v42  ;;  %v2436_v42 = vld [vmem:[%s11991_s3 + $0x8] sm:$0xff] }
 0x160   :  { %12059 = vst [vmem:[#allocation45_spill] sm:$0xff] %v9150_v55  ;;  %v9152_v44 = vpop.f32.mrf.mxu1  ;;  %2825 = vmatpush1.msra.mxu0 %v6686_v50  ;;  %2579 = vmatprep.subr.mxu1 %v12007_v3  ;;  %v6684_v50 = vld [vmem:[%s11991_s3 + $0xb0] sm:$0xff] }
 0x161   :  { %12060 = vst [vmem:[#allocation46_spill] sm:$0xff] %v9152_v44  ;;  %v1092_v16 = vpop.f32.mrf.mxu0  ;;  %6635 = vmatmul.mubr.msk.f32.gmra.mxu0 %vm166_vm0, %v1837_v24  ;;  %2826 = vmatprep.subr.mxu0 %v12007_v3 }
 0x162   :  { %v9163_v1 = vpop.f32.mrf.mxu1  ;;  %v9170_v44 = vadd.f32 %v1092_v16, %v8651_v32  ;;  %2140 = vmatprep.mubr.f32.mxu0 %v12007_v3  ;;  %2580 = vmatpush1.msra.mxu1 %v2437_v7 }
 0x163   :  { %v1094_v55 = vpop.f32.mrf.mxu0  ;;  %2581 = vmatprep.subr.mxu1 %v12007_v3  ;;  %2827 = vmatpush1.msra.mxu0 %v6685_v33  ;;  %v6683_v33 = vld [vmem:[%s11991_s3 + $0xa8] sm:$0xff] }
 0x164   :  { %v9176_v24 = vpop.f32.mrf.mxu1  ;;  %v9183_v32 = vadd.f32 %v1094_v55, %v8661_v37  ;;  %v1839_v37 = vld [vmem:[%s11990_s0 + $0x94] sm:$0xff]  ;;  %2828 = vmatprep.subr.mxu0 %v12007_v3  ;;  %2582 = vmatpush1.msra.mxu1 %v2436_v42  ;;  %v2455_v42 = vld [vmem:[%s11991_s3 + $0xa0] sm:$0xff] }
 0x165   :  { %v1098_v16 = vpop.f32.mrf.mxu0  ;;  %6636 = vmatmul.mubr.msk.f32.gmra.mxu0 %vm166_vm0, %v1838_v20  ;;  %v2435_v20 = vld [vmem:[%s11991_s3] sm:$0xff]  ;;  %2583 = vmatprep.subr.mxu1 %v12007_v3 }
 0x166   :  { %v9195_v31 = vadd.f32 %v1098_v16, %v8665_v40  ;;  %2146 = vmatprep.mubr.f32.mxu0 %v12007_v3  ;;  %v9201_v7 = vpop.f32.mrf.mxu1  ;;  %2829 = vmatpush1.msra.mxu0 %v6684_v50 }
 0x167   :  { %v1100_v55 = vpop.f32.mrf.mxu0  ;;  %2830 = vmatprep.subr.mxu0 %v12007_v3  ;;  %2584 = vmatpush1.msra.mxu1 %v2435_v20  ;;  %v2454_v20 = vld [vmem:[%s11991_s3 + $0x98] sm:$0xff] }
 0x168   :  { %v9208_v40 = vadd.f32 %v1100_v55, %v8675_v45  ;;  %v1840_v45 = vld [vmem:[%s11990_s0 + $0x9c] sm:$0xff]  ;;  %v9226_v50 = vpop.f32.mrf.mxu1  ;;  %2831 = vmatpush1.msra.mxu0 %v6683_v33  ;;  %2607 = vmatprep.subr.mxu1 %v12007_v3 }
 0x169   :  { %v1104_v16 = vpop.f32.mrf.mxu0  ;;  %6637 = vmatmul.mubr.msk.f32.gmra.mxu0 %vm166_vm0, %v1839_v37  ;;  %v6703_v37 = vld [vmem:[%s11991_s3 + $0x148] sm:$0xff]  ;;  %2854 = vmatprep.subr.mxu0 %v12007_v3  ;;  %v6702_v33 = vld [vmem:[%s11991_s3 + $0x140] sm:$0xff] }
 0x16a   :  { %v9220_v23 = vadd.f32 %v1104_v16, %v8679_v48  ;;  %2152 = vmatprep.mubr.f32.mxu0 %v12007_v3  ;;  %2608 = vmatpush2.msra.mxu1 %v2455_v42  ;;  %v9251_v42 = vpop.f32.mrf.mxu1 }
 0x16b   :  { %v1106_v55 = vpop.f32.mrf.mxu0  ;;  %2609 = vmatprep.subr.mxu1 %v12007_v3  ;;  %2855 = vmatpush2.msra.mxu0 %v6703_v37  ;;  %v6701_v37 = vld [vmem:[%s11991_s3 + $0x138] sm:$0xff] }
 0x16c   :  { %v9233_v48 = vadd.f32 %v1106_v55, %v8689_v53  ;;  %v1841_v53 = vld [vmem:[%s11990_s0 + $0xa4] sm:$0xff]  ;;  %2856 = vmatprep.subr.mxu0 %v12007_v3  ;;  %2610 = vmatpush2.msra.mxu1 %v2454_v20 }
 0x16d   :  { %v1110_v16 = vpop.f32.mrf.mxu0  ;;  %6638 = vmatmul.mubr.msk.f32.gmra.mxu0 %vm166_vm0, %v1840_v45  ;;  %v2453_v45 = vld [vmem:[%s11991_s3 + $0x90] sm:$0xff]  ;;  %2611 = vmatprep.subr.mxu1 %v12007_v3  ;;  %v2452_v20 = vld [vmem:[%s11991_s3 + $0x88] sm:$0xff] }
 0x16e   :  { %v9245_v21 = vadd.f32 %v1110_v16, %v8693_v56  ;;  %2158 = vmatprep.mubr.f32.mxu0 %v12007_v3  ;;  %2857 = vmatpush2.msra.mxu0 %v6702_v33  ;;  %v9276_v33 = vpop.f32.mrf.mxu1 }
 0x16f   :  { %v1112_v55 = vpop.f32.mrf.mxu0  ;;  %2858 = vmatprep.subr.mxu0 %v12007_v3  ;;  %2612 = vmatpush2.msra.mxu1 %v2453_v45  ;;  %v2451_v45 = vld [vmem:[%s11991_s3 + $0x80] sm:$0xff] }
 0x170   :  { %v9258_v56 = vadd.f32 %v1112_v55, %v8703_v61  ;;  %v1842_v61 = vld [vmem:[%s11990_s0 + $0xac] sm:$0xff]  ;;  %2859 = vmatpush2.msra.mxu0 %v6701_v37  ;;  %2613 = vmatprep.subr.mxu1 %v12007_v3 }
 0x171   :  { %v1116_v16 = vpop.f32.mrf.mxu0  ;;  %6639 = vmatmul.mubr.msk.f32.gmra.mxu0 %vm166_vm0, %v1841_v53  ;;  %v6700_v53 = vld [vmem:[%s11991_s3 + $0x130] sm:$0xff]  ;;  %2860 = vmatprep.subr.mxu0 %v12007_v3  ;;  %v6699_v37 = vld [vmem:[%s11991_s3 + $0x128] sm:$0xff] }
 0x172   :  { %v9270_v13 = vadd.f32 %v1116_v16, %v8707_v0  ;;  %2164 = vmatprep.mubr.f32.mxu0 %v12007_v3  ;;  %2614 = vmatpush2.msra.mxu1 %v2452_v20  ;;  %v9301_v20 = vpop.f32.mrf.mxu1 }
 0x173   :  { %v1118_v55 = vpop.f32.mrf.mxu0  ;;  %2615 = vmatprep.subr.mxu1 %v12007_v3  ;;  %2861 = vmatpush2.msra.mxu0 %v6700_v53  ;;  %v1844_v53 = vld [vmem:[%s11990_s0 + $0xbc] sm:$0xff] }
 0x174   :  { %v9283_v0 = vadd.f32 %v1118_v55, %v8717_v6  ;;  %v1843_v6 = vld [vmem:[%s11990_s0 + $0xb4] sm:$0xff]  ;;  %2862 = vmatprep.subr.mxu0 %v12007_v3  ;;  %2616 = vmatpush2.msra.mxu1 %v2451_v45 }
 0x175   :  { %v1122_v16 = vpop.f32.mrf.mxu0  ;;  %6640 = vmatmul.mubr.msk.f32.gmra.mxu0 %vm166_vm0, %v1842_v61 }
 0x176   :  { %v9295_v12 = vadd.f32 %v1122_v16, %v8721_v9  ;;  %2170 = vmatprep.mubr.f32.mxu0 %v12007_v3  ;;  %2863 = vmatpush2.msra.mxu0 %v6699_v37  ;;  %v9315_v16 = vpop.f32.mrf.mxu1 }
 0x177   :  { %v1124_v55 = vpop.f32.mrf.mxu0 }
 0x178   :  { %v9305_v61 = vadd.f32 %v1124_v55, %v8731_v14 }
 0x179   :  { %v1128_v4 = vpop.f32.mrf.mxu0  ;;  %6641 = vmatmul.mubr.msk.f32.gmra.mxu0 %vm166_vm0, %v1843_v6 }
 0x17a   :  { %v9309_v9 = vadd.f32 %v1128_v4, %v8735_v17  ;;  %2176 = vmatprep.mubr.f32.mxu0 %v12007_v3  ;;  %v1845_v17 = vld [vmem:[%s11990_s0 + $0xc4] sm:$0xff]  ;;  %v9328_v4 = vpop.f32.mrf.mxu1 }
 0x17b   :  { %v1130_v2 = vpop.f32.mrf.mxu0 }
 0x17c   :  { %v9318_v45 = vadd.f32 %v1130_v2, %v8745_v22 }
 0x17d   :  { %v1134_v14 = vpop.f32.mrf.mxu0  ;;  %6642 = vmatmul.mubr.msk.f32.gmra.mxu0 %vm166_vm0, %v1844_v53  ;;  %v9341_v53 = vpop.f32.mrf.mxu1 }
 0x17e   :  { %v9322_v37 = vadd.f32 %v1134_v14, %v8749_v25  ;;  %2182 = vmatprep.mubr.f32.mxu0 %v12007_v3  ;;  %v1846_v25 = vld [vmem:[%s11990_s0 + $0xcc] sm:$0xff] }
 0x17f   :  { %v1136_v6 = vpop.f32.mrf.mxu0 }
 0x180   :  { %v9331_v55 = vadd.f32 %v1136_v6, %v8759_v30 }
 0x181   :  { %v1140_v22 = vpop.f32.mrf.mxu0  ;;  %6643 = vmatmul.mubr.msk.f32.gmra.mxu0 %vm166_vm0, %v1845_v17  ;;  %v9353_v17 = vpop.f32.mrf.mxu1 }
 0x182   :  { %v9335_v2 = vadd.f32 %v1140_v22, %v8763_v34  ;;  %2188 = vmatprep.mubr.f32.mxu0 %v12007_v3  ;;  %v1847_v34 = vld [vmem:[%s11990_s0 + $0xd4] sm:$0xff] }
 0x183   :  { %v9343_v14 = vpop.f32.mrf.mxu0 }
 0x184   :  { %12061 = vst [vmem:[#allocation47_spill] sm:$0xff] %v9335_v2 }
 0x185   :  { %v1146_v58 = vpop.f32.mrf.mxu0  ;;  %6644 = vmatmul.mubr.msk.f32.gmra.mxu0 %vm166_vm0, %v1846_v25 }
 0x186   :  { %v9347_v30 = vadd.f32 %v1146_v58, %v8779_v43  ;;  %2194 = vmatprep.mubr.f32.mxu0 %v12007_v3  ;;  %v1848_v43 = vld [vmem:[%s11990_s0 + $0xdc] sm:$0xff]  ;;  %v9365_v58 = vpop.f32.mrf.mxu1 }
 0x187   :  { %v9355_v6 = vpop.f32.mrf.mxu0 }
 0x188   :  { %12062 = vst [vmem:[#allocation48_spill] sm:$0xff] %v9347_v30  ;;  %12063 = vst [vmem:[#allocation49_spill] sm:$0xff] %v9355_v6 }
 0x189   :  { %v1152_v22 = vpop.f32.mrf.mxu0  ;;  %6645 = vmatmul.mubr.msk.f32.gmra.mxu0 %vm166_vm0, %v1847_v34  ;;  %v9377_v34 = vpop.f32.mrf.mxu1 }
 0x18a   :  { %v9359_v57 = vadd.f32 %v1152_v22, %v8795_v52  ;;  %2200 = vmatprep.mubr.f32.mxu0 %v12007_v3  ;;  %v1849_v52 = vld [vmem:[%s11990_s0 + $0xe4] sm:$0xff] }
 0x18b   :  { %v9367_v25 = vpop.f32.mrf.mxu0 }
 0x18c   :  { %12064 = vst [vmem:[#allocation50_spill] sm:$0xff] %v9359_v57  ;;  %12065 = vst [vmem:[#allocation51_spill] sm:$0xff] %v9367_v25 }
 0x18d   :  { %v1158_v30 = vpop.f32.mrf.mxu0  ;;  %6646 = vmatmul.mubr.msk.f32.gmra.mxu0 %vm166_vm0, %v1848_v43 }
 0x18e   :  { %v9371_v6 = vadd.f32 %v1158_v30, %v8811_v62  ;;  %2206 = vmatprep.mubr.f32.mxu0 %v12007_v3  ;;  %v1850_v62 = vld [vmem:[%s11990_s0 + $0xec] sm:$0xff]  ;;  %v9389_v30 = vpop.f32.mrf.mxu1 }
 0x18f   :  { %v9379_v22 = vpop.f32.mrf.mxu0 }
 0x190   :  { %12066 = vst [vmem:[#allocation52_spill] sm:$0xff] %v9371_v6  ;;  %12067 = vst [vmem:[#allocation53_spill] sm:$0xff] %v9379_v22 }
 0x191   :  { %v1164_v57 = vpop.f32.mrf.mxu0  ;;  %6647 = vmatmul.mubr.msk.f32.gmra.mxu0 %vm166_vm0, %v1849_v52 }
 0x192   :  { %v9383_v25 = vadd.f32 %v1164_v57, %v8827_v8  ;;  %2212 = vmatprep.mubr.f32.mxu0 %v12007_v3  ;;  %v1851_v57 = vld [vmem:[%s11990_s0 + $0xf4] sm:$0xff]  ;;  %v9401_v8 = vpop.f32.mrf.mxu1 }
 0x193   :  { %v9391_v43 = vpop.f32.mrf.mxu0 }
 0x194   :  { %12068 = vst [vmem:[#allocation54_spill] sm:$0xff] %v9383_v25  ;;  %12069 = vst [vmem:[#allocation55_spill] sm:$0xff] %v9391_v43 }
 0x195   :  { %v1170_v6 = vpop.f32.mrf.mxu0  ;;  %6648 = vmatmul.mubr.msk.f32.gmra.mxu0 %vm166_vm0, %v1850_v62 }
 0x196   :  { %v9395_v22 = vadd.f32 %v1170_v6, %v8843_v18  ;;  %2218 = vmatprep.mubr.f32.mxu0 %v12007_v3  ;;  %v1852_v18 = vld [vmem:[%s11990_s0 + $0xfc] sm:$0xf]  ;;  %v9413_v6 = vpop.f32.mrf.mxu1 }
 0x197   :  { %v9403_v52 = vpop.f32.mrf.mxu0 }
 0x198   :  { %12070 = vst [vmem:[#allocation56_spill] sm:$0xff] %v9395_v22  ;;  %12071 = vst [vmem:[#allocation57_spill] sm:$0xff] %v9403_v52 }
 0x199   :  { %v1176_v25 = vpop.f32.mrf.mxu0  ;;  %6649 = vmatmul.mubr.msk.f32.gmra.mxu0 %vm166_vm0, %v1851_v57  ;;  %v9421_v57 = vpop.f32.mrf.mxu1 }
 0x19a   :  { %v9407_v43 = vadd.f32 %v1176_v25, %v8859_v27  ;;  %2224 = vmatprep.mubr.f32.mxu0 %v12007_v3 }
 0x19b   :  { %v9415_v62 = vpop.f32.mrf.mxu0 }
 0x19c   :  { %12072 = vst [vmem:[#allocation58_spill] sm:$0xff] %v9407_v43  ;;  %12073 = vst [vmem:[#allocation59_spill] sm:$0xff] %v9415_v62  ;;  %v9428_v43 = vpop.f32.mrf.mxu1 }
 0x19d   :  { %v1182_v22 = vpop.f32.mrf.mxu0  ;;  %6650 = vmatmul.mubr.msk.f32.gmra.mxu0 %vm166_vm0, %v1852_v18 }
 0x19e   :  { %v9419_v52 = vadd.f32 %v1182_v22, %v8875_v41  ;;  %v9435_v18 = vpop.f32.mrf.mxu1 }
 0x19f   :  { %v9423_v27 = vpop.f32.mrf.mxu0 }
 0x1a0   :  { %12074 = vst [vmem:[#allocation60_spill] sm:$0xff] %v9419_v52  ;;  %12075 = vst [vmem:[#allocation61_spill] sm:$0xff] %v9423_v27  ;;  %v9442_v27 = vpop.f32.mrf.mxu1 }
 0x1a1   :  { %v1188_v25 = vpop.f32.mrf.mxu0 }
 0x1a2   :  { %v9426_v3 = vadd.f32 %v1188_v25, %v8886_v54 }
 0x1a3   :  { %v9430_v2 = vpop.f32.mrf.mxu0 }
 0x1a4   :  { %12076 = vst [vmem:[#allocation62_spill] sm:$0xff] %v9426_v3  ;;  %12077 = vst [vmem:[#allocation63_spill] sm:$0xff] %v9430_v2  ;;  %v9449_v2 = vpop.f32.mrf.mxu1 }
 0x1a5   :  { %v1194_v49 = vpop.f32.mrf.mxu0 }
 0x1a6   :  { %v9433_v62 = vadd.f32 %v1194_v49, %v8897_v5 }
 0x1a7   :  { %v9437_v41 = vpop.f32.mrf.mxu0 }
 0x1a8   :  { %12078 = vst [vmem:[#allocation64_spill] sm:$0xff] %v9433_v62  ;;  %12079 = vst [vmem:[#allocation65_spill] sm:$0xff] %v9437_v41  ;;  %v9456_v41 = vpop.f32.mrf.mxu1 }
 0x1a9   :  { %v1200_v22 = vpop.f32.mrf.mxu0 }
 0x1aa   :  { %v9440_v52 = vadd.f32 %v1200_v22, %v8908_v19 }
 0x1ab   :  { %v9444_v54 = vpop.f32.mrf.mxu0 }
 0x1ac   :  { %12080 = vst [vmem:[#allocation66_spill] sm:$0xff] %v9440_v52  ;;  %12081 = vst [vmem:[#allocation67_spill] sm:$0xff] %v9444_v54  ;;  %v9463_v54 = vpop.f32.mrf.mxu1 }
 0x1ad   :  { %v1206_v25 = vpop.f32.mrf.mxu0 }
 0x1ae   :  { %v9447_v3 = vadd.f32 %v1206_v25, %v8919_v35 }
 0x1af   :  { %v9451_v49 = vpop.f32.mrf.mxu0 }
 0x1b0   :  { %12082 = vst [vmem:[#allocation68_spill] sm:$0xff] %v9447_v3  ;;  %12083 = vst [vmem:[#allocation69_spill] sm:$0xff] %v9451_v49  ;;  %v9470_v49 = vpop.f32.mrf.mxu1 }
 0x1b1   :  { %v1212_v5 = vpop.f32.mrf.mxu0 }
 0x1b2   :  { %v9454_v62 = vadd.f32 %v1212_v5, %v8930_v63 }
 0x1b3   :  { %v9458_v19 = vpop.f32.mrf.mxu0 }
 0x1b4   :  { %12084 = vst [vmem:[#allocation70_spill] sm:$0xff] %v9454_v62  ;;  %12085 = vst [vmem:[#allocation71_spill] sm:$0xff] %v9458_v19  ;;  %v9477_v19 = vpop.f32.mrf.mxu1 }
 0x1b5   :  { %v1218_v22 = vpop.f32.mrf.mxu0 }
 0x1b6   :  { %v9461_v52 = vadd.f32 %v1218_v22, %v8941_v28 }
 0x1b7   :  { %v9465_v35 = vpop.f32.mrf.mxu0 }
 0x1b8   :  { %12086 = vst [vmem:[#allocation72_spill] sm:$0xff] %v9461_v52  ;;  %12087 = vst [vmem:[#allocation73_spill] sm:$0xff] %v9465_v35  ;;  %v9484_v35 = vpop.f32.mrf.mxu1 }
 0x1b9   :  { %v1224_v25 = vpop.f32.mrf.mxu0 }
 0x1ba   :  { %v9468_v3 = vadd.f32 %v1224_v25, %v8952_v15 }
 0x1bb   :  { %v9472_v63 = vpop.f32.mrf.mxu0 }
 0x1bc   :  { %12088 = vst [vmem:[#allocation74_spill] sm:$0xff] %v9468_v3  ;;  %12089 = vst [vmem:[#allocation75_spill] sm:$0xff] %v9472_v63  ;;  %v9491_v63 = vpop.f32.mrf.mxu1 }
 0x1bd   :  { %v1230_v5 = vpop.f32.mrf.mxu0 }
 0x1be   :  { %v9475_v62 = vadd.f32 %v1230_v5, %v8963_v51 }
 0x1bf   :  { %v9479_v28 = vpop.f32.mrf.mxu0 }
 0x1c0   :  { %12090 = vst [vmem:[#allocation76_spill] sm:$0xff] %v9475_v62  ;;  %12091 = vst [vmem:[#allocation77_spill] sm:$0xff] %v9479_v28  ;;  %v9498_v28 = vpop.f32.mrf.mxu1 }
 0x1c1   :  { %v1236_v22 = vpop.f32.mrf.mxu0  ;;  %12097 = vst [vmem:[#allocation83_spill] sm:$0xff] %v9498_v28 }
 0x1c2   :  { %v9482_v52 = vadd.f32 %v1236_v22, %v8980_v36 }
 0x1c3   :  { %v9486_v15 = vpop.f32.mrf.mxu0 }
 0x1c4   :  { %12092 = vst [vmem:[#allocation78_spill] sm:$0xff] %v9482_v52  ;;  %12093 = vst [vmem:[#allocation79_spill] sm:$0xff] %v9486_v15  ;;  %v9505_v15 = vpop.f32.mrf.mxu1 }
 0x1c5   :  { %v1242_v25 = vpop.f32.mrf.mxu0 }
 0x1c6   :  { %v9489_v3 = vadd.f32 %v1242_v25, %v9006_v29 }
 0x1c7   :  { %v9493_v51 = vpop.f32.mrf.mxu0 }
 0x1c8   :  { %12094 = vst [vmem:[#allocation80_spill] sm:$0xff] %v9489_v3  ;;  %12095 = vst [vmem:[#allocation81_spill] sm:$0xff] %v9493_v51  ;;  %v9512_v51 = vpop.f32.mrf.mxu1 }
 0x1c9   :  { %v1248_v5 = vpop.f32.mrf.mxu0 }
 0x1ca   :  { %v9496_v62 = vadd.f32 %v1248_v5, %v9029_v26  ;;  %v9519_v28 = vpop.f32.mrf.mxu1 }
 0x1cb   :  { %v9500_v36 = vpop.f32.mrf.mxu0 }
 0x1cc   :  { %12096 = vst [vmem:[#allocation82_spill] sm:$0xff] %v9496_v62  ;;  %12098 = vst [vmem:[#allocation84_spill] sm:$0xff] %v9500_v36  ;;  %v2297_v62 = vlaneseq }
 0x1cd   :  { %v1254_v22 = vpop.f32.mrf.mxu0 }
 0x1ce   :  { %v9503_v52 = vadd.f32 %v1254_v22, %v9052_v11 }
 0x1cf   :  { %v9507_v29 = vpop.f32.mrf.mxu0 }
 0x1d0   :  { %12099 = vst [vmem:[#allocation85_spill] sm:$0xff] %v9503_v52  ;;  %12100 = vst [vmem:[#allocation86_spill] sm:$0xff] %v9507_v29  ;;  %v9523_v52 = vshrl.u32 %v2297_v62, 7 }
 0x1d1   :  { %v1260_v25 = vpop.f32.mrf.mxu0 }
 0x1d2   :  { %v9510_v3 = vadd.f32 %v1260_v25, %v9075_v10  ;;  %12105 = vst [vmem:[#allocation91_spill] sm:$0xff] %v9523_v52  ;;  %v9528_v10 = vpop.f32.mrf.mxu1  ;;  %v12010_v62 = vsub.s32 1, %v9523_v52 }
 0x1d3   :  { %v9514_v26 = vpop.f32.mrf.mxu0  ;;  %12107 = vst [vmem:[#allocation93_spill] sm:$0xff] %v9528_v10 }
 0x1d4   :  { %12101 = vst [vmem:[#allocation87_spill] sm:$0xff] %v9510_v3  ;;  %12102 = vst [vmem:[#allocation88_spill] sm:$0xff] %v9514_v26  ;;  %v12009_v26 = vsub.s32 0, %v9523_v52 }
 0x1d5   :  { %v1266_v5 = vpop.f32.mrf.mxu0 }
 0x1d6   :  { %v9517_v36 = vadd.f32 %v1266_v5, %v9098_v60  ;;  %v2295_v5 = vld [vmem:[%s11992_s2] sm:$0x3] }
 0x1d7   :  { %v9521_v11 = vpop.f32.mrf.mxu0 }
 0x1d8   :  { %12103 = vst [vmem:[#allocation89_spill] sm:$0xff] %v9517_v36  ;;  %12104 = vst [vmem:[#allocation90_spill] sm:$0xff] %v9521_v11  ;;  %v9540_v36 = vpop.f32.mrf.mxu1 }
 0x1d9   :  { %v1272_v22 = vpop.f32.mrf.mxu0  ;;  %12110 = vst [vmem:[#allocation96_spill] sm:$0xff] %v9540_v36 }
 0x1da   :  { %v9526_v29 = vadd.f32 %v1272_v22, %v9121_v59  ;;  %v1757_v22 = vadd.f32 %v9163_v1, %v9170_v44  ;;  %v9556_v11 = vpop.f32.mrf.mxu1 }
 0x1db   :  { %v9530_v25 = vpop.f32.mrf.mxu0 }
 0x1dc   :  { %12106 = vst [vmem:[#allocation92_spill] sm:$0xff] %v9526_v29  ;;  %12108 = vst [vmem:[#allocation94_spill] sm:$0xff] %v9530_v25  ;;  %v9548_v25 = vrot.slane %v2295_v5, %v12009_v26  ;;  %v1760_v26 = vadd.f32 %v9226_v50, %v9208_v40 }
 0x1dd   :  { %v1278_v3 = vpop.f32.mrf.mxu0 }
 0x1de   :  { %v9534_v60 = vadd.f32 %v1278_v3, %v9144_v46  ;;  %v1758_v3 = vadd.f32 %v9176_v24, %v9183_v32 }
 0x1df   :  { %v9542_v59 = vpop.f32.mrf.mxu0 }
 0x1e0   :  { %12109 = vst [vmem:[#allocation95_spill] sm:$0xff] %v9534_v60  ;;  %12111 = vst [vmem:[#allocation97_spill] sm:$0xff] %v9542_v59  ;;  %v9554_v60 = vrot.slane %v2295_v5, %v12010_v62  ;;  %v1759_v59 = vadd.f32 %v9201_v7, %v9195_v31 }
 0x1e1   :  { %v2040_v29 = vpop.f32.mrf.mxu0 }
 0x1e2   :  { %v2231_v46 = vadd.f32 %v2040_v29, %v1757_v22  ;;  %v9564_v29 = vpop.f32.mrf.mxu1  ;;  %v1761_v22 = vadd.f32 %v9251_v42, %v9220_v23  ;;  %v1763_v23 = vadd.f32 %v9301_v20, %v9245_v21  ;;  %v1765_v21 = vadd.f32 %v9328_v4, %v9270_v13 }
 0x1e3   :  { %v2042_v36 = vpop.f32.mrf.mxu0  ;;  %v1767_v13 = vadd.f32 %v9353_v17, %v9295_v12  ;;  %v1769_v12 = vadd.f32 %v9377_v34, %v9309_v9 }
 0x1e4   :  { %v2232_v44 = vadd.f32 %v2042_v36, %v1758_v3  ;;  %v2307_v1 = vadd.f32 %v9548_v25, %v2231_v46  ;;  %v1762_v3 = vadd.f32 %v9276_v33, %v9233_v48 }
 0x1e5   :  { %v2046_v10 = vpop.f32.mrf.mxu0 }
 0x1e6   :  { %v2308_v24 = vadd.f32 %v9554_v60, %v2232_v44  ;;  %v2233_v32 = vadd.f32 %v2046_v10, %v1759_v59  ;;  %v2371_v31 = vmax.f32 %v2307_v1, 0.0  ;;  %v9574_v10 = vpop.f32.mrf.mxu1 }
 0x1e7   :  { %v2048_v5 = vpop.f32.mrf.mxu0 }
 0x1e8   :  { %v2372_v62 = vmax.f32 %v2308_v24, 0.0  ;;  %v2234_v52 = vadd.f32 %v2048_v5, %v1760_v26  ;;  %v2309_v7 = vadd.f32 %v9548_v25, %v2233_v32  ;;  %v9584_v1 = vpop.f32.mrf.mxu1 }
 0x1e9   :  { %v2052_v36 = vpop.f32.mrf.mxu0 }
 0x1ea   :  { %v2310_v40 = vadd.f32 %v9554_v60, %v2234_v52  ;;  %v2235_v50 = vadd.f32 %v2052_v36, %v1761_v22  ;;  %6651 = vmatprep.mubr.msk.f32.mxu1 %vm2456_vm1, %v2372_v62  ;;  %6704 = vmatprep.mubr.msk.f32.mxu0 %vm2456_vm1, %v2372_v62  ;;  %v2373_v46 = vmax.f32 %v2309_v7, 0.0  ;;  %v1764_v52 = vadd.f32 %v9315_v16, %v9258_v56  ;;  %v9594_v36 = vpop.f32.mrf.mxu1 }
 0x1eb   :  { %v2054_v59 = vpop.f32.mrf.mxu0  ;;  %2618 = vmatmul.mubr.f32.vlgmr.msra.gmra.mxu1 %v2371_v31  ;;  %2865 = vmatmul.mubr.f32.vlgmr.msra.gmra.mxu0 %v2371_v31  ;;  %v1766_v22 = vadd.f32 %v9341_v53, %v9283_v0 }
 0x1ec   :  { %v2374_v42 = vmax.f32 %v2310_v40, 0.0  ;;  %v2236_v26 = vadd.f32 %v2054_v59, %v1762_v3  ;;  %v2311_v48 = vadd.f32 %v9548_v25, %v2235_v50  ;;  %v1768_v59 = vadd.f32 %v9365_v58, %v9305_v61 }
 0x1ed   :  { %v2058_v33 = vpop.f32.mrf.mxu0 }
 0x1ee   :  { %v2312_v44 = vadd.f32 %v9554_v60, %v2236_v26  ;;  %v2237_v62 = vadd.f32 %v2058_v33, %v1763_v23  ;;  %6652 = vmatprep.mubr.msk.f32.mxu1 %vm2456_vm1, %v2374_v42  ;;  %6705 = vmatprep.mubr.msk.f32.mxu0 %vm2456_vm1, %v2374_v42  ;;  %v2375_v5 = vmax.f32 %v2311_v48, 0.0  ;;  %v9604_v26 = vpop.f32.mrf.mxu1 }
 0x1ef   :  { %v2060_v24 = vpop.f32.mrf.mxu0  ;;  %2623 = vmatmul.mubr.f32.gmra.mxu1 %v2373_v46  ;;  %2870 = vmatmul.mubr.f32.gmra.mxu0 %v2373_v46 }
 0x1f0   :  { %v2376_v20 = vmax.f32 %v2312_v44, 0.0  ;;  %v2238_v32 = vadd.f32 %v2060_v24, %v1764_v52  ;;  %v2313_v56 = vadd.f32 %v9548_v25, %v2237_v62  ;;  %v1770_v52 = vadd.f32 %v9389_v30, %v9318_v45  ;;  %v9616_v9 = vpop.f32.mrf.mxu1 }
 0x1f1   :  { %v2064_v16 = vpop.f32.mrf.mxu0  ;;  %v733_v24 = vadd.f32 %v8775_v39, %v8773_v38 }
 0x1f2   :  { %v2314_v31 = vadd.f32 %v9554_v60, %v2238_v32  ;;  %v2239_v7 = vadd.f32 %v2064_v16, %v1765_v21  ;;  %6653 = vmatprep.mubr.msk.f32.mxu1 %vm2456_vm1, %v2376_v20  ;;  %6706 = vmatprep.mubr.msk.f32.mxu0 %vm2456_vm1, %v2376_v20  ;;  %v2377_v50 = vmax.f32 %v2313_v56, 0.0  ;;  %v1771_v21 = vadd.f32 %v9401_v8, %v9322_v37 }
 0x1f3   :  { %v2066_v3 = vpop.f32.mrf.mxu0  ;;  %2628 = vmatmul.mubr.f32.gmra.mxu1 %v2375_v5  ;;  %2875 = vmatmul.mubr.f32.gmra.mxu0 %v2375_v5  ;;  %v1300_v30 = vadd.f32 %v9343_v14, %v733_v24  ;;  %v1772_v16 = vadd.f32 %v9413_v6, %v9331_v55  ;;  %v12112_v14 = vld [vmem:[#allocation2_spill] sm:$0xff] }
 0x1f4   :  { %v2378_v4 = vmax.f32 %v2314_v31, 0.0  ;;  %v2240_v40 = vadd.f32 %v2066_v3, %v1766_v22  ;;  %v2315_v0 = vadd.f32 %v9548_v25, %v2239_v7  ;;  %v9627_v22 = vpop.f32.mrf.mxu1  ;;  %v739_v8 = vadd.f32 %v12112_v14, %v8789_v47  ;;  %v12113_v31 = vld [vmem:[#allocation47_spill] sm:$0xff]  ;;  %v12122_v14 = vld [vmem:[#allocation53_spill] sm:$0xff] }
 0x1f5   :  { %v2070_v53 = vpop.f32.mrf.mxu0  ;;  %v1773_v7 = vadd.f32 %v9421_v57, %v12113_v31  ;;  %v1774_v6 = vadd.f32 %v9428_v43, %v1300_v30  ;;  %v12115_v47 = vld [vmem:[#allocation3_spill] sm:$0xff]  ;;  %v12117_v43 = vld [vmem:[#allocation48_spill] sm:$0xff] }
 0x1f6   :  { %v2316_v23 = vadd.f32 %v9554_v60, %v2240_v40  ;;  %v2241_v42 = vadd.f32 %v2070_v53, %v1767_v13  ;;  %6654 = vmatprep.mubr.msk.f32.mxu1 %vm2456_vm1, %v2378_v4  ;;  %6707 = vmatprep.mubr.msk.f32.mxu0 %vm2456_vm1, %v2378_v4  ;;  %v2379_v33 = vmax.f32 %v2315_v0, 0.0 }
 0x1f7   :  { %v2072_v46 = vpop.f32.mrf.mxu0  ;;  %2633 = vmatmul.mubr.f32.gmra.mxu1 %v2377_v50  ;;  %2880 = vmatmul.mubr.f32.gmra.mxu0 %v2377_v50  ;;  %v12114_v50 = vld [vmem:[#allocation49_spill] sm:$0xff] }
 0x1f8   :  { %v2380_v17 = vmax.f32 %v2316_v23, 0.0  ;;  %v2242_v48 = vadd.f32 %v2072_v46, %v1768_v59  ;;  %v2317_v61 = vadd.f32 %v9548_v25, %v2241_v42  ;;  %v1302_v0 = vadd.f32 %v12114_v50, %v739_v8  ;;  %v12116_v23 = vld [vmem:[#allocation4_spill] sm:$0xff]  ;;  %v9641_v42 = vpop.f32.mrf.mxu1 }
 0x1f9   :  { %v2076_v58 = vpop.f32.mrf.mxu0  ;;  %v745_v57 = vadd.f32 %v12116_v23, %v12115_v47 }
 0x1fa   :  { %v2318_v44 = vadd.f32 %v9554_v60, %v2242_v48  ;;  %v2243_v62 = vadd.f32 %v2076_v58, %v1769_v12  ;;  %6655 = vmatprep.mubr.msk.f32.mxu1 %vm2456_vm1, %v2380_v17  ;;  %6708 = vmatprep.mubr.msk.f32.mxu0 %vm2456_vm1, %v2380_v17  ;;  %v2381_v32 = vmax.f32 %v2317_v61, 0.0  ;;  %v1775_v12 = vadd.f32 %v9435_v18, %v12117_v43 }
 0x1fb   :  { %v2078_v34 = vpop.f32.mrf.mxu0  ;;  %2638 = vmatmul.mubr.f32.gmra.mxu1 %v2379_v33  ;;  %2885 = vmatmul.mubr.f32.gmra.mxu0 %v2379_v33  ;;  %v12118_v33 = vld [vmem:[#allocation51_spill] sm:$0xff] }
 0x1fc   :  { %v2382_v20 = vmax.f32 %v2318_v44, 0.0  ;;  %v2244_v45 = vadd.f32 %v2078_v34, %v1770_v52  ;;  %v2319_v5 = vadd.f32 %v9548_v25, %v2243_v62  ;;  %v1304_v61 = vadd.f32 %v12118_v33, %v745_v57 }
 0x1fd   :  { %v2082_v56 = vpop.f32.mrf.mxu0  ;;  %v1776_v62 = vadd.f32 %v9442_v27, %v1302_v0  ;;  %v12126_v0 = vld [vmem:[#allocation55_spill] sm:$0xff] }
 0x1fe   :  { %v2320_v38 = vadd.f32 %v9554_v60, %v2244_v45  ;;  %v2245_v39 = vadd.f32 %v2082_v56, %v1771_v21  ;;  %6656 = vmatprep.mubr.msk.f32.mxu1 %vm2456_vm1, %v2382_v20  ;;  %6709 = vmatprep.mubr.msk.f32.mxu0 %vm2456_vm1, %v2382_v20  ;;  %v2383_v13 = vmax.f32 %v2319_v5, 0.0  ;;  %v9651_v21 = vpop.f32.mrf.mxu1  ;;  %v12119_v20 = vld [vmem:[#allocation5_spill] sm:$0xff]  ;;  %v12120_v45 = vld [vmem:[#allocation6_spill] sm:$0xff] }
 0x1ff   :  { %v2084_v37 = vpop.f32.mrf.mxu0  ;;  %2643 = vmatmul.mubr.f32.gmra.mxu1 %v2381_v32  ;;  %2890 = vmatmul.mubr.f32.gmra.mxu0 %v2381_v32  ;;  %v751_v30 = vadd.f32 %v12120_v45, %v12119_v20  ;;  %v12121_v32 = vld [vmem:[#allocation50_spill] sm:$0xff] }
 0x200   :  { %v2384_v3 = vmax.f32 %v2320_v38, 0.0  ;;  %v2246_v55 = vadd.f32 %v2084_v37, %v1772_v16  ;;  %v2321_v4 = vadd.f32 %v9548_v25, %v2245_v39  ;;  %v1777_v5 = vadd.f32 %v9449_v2, %v12121_v32  ;;  %v12131_v32 = vld [vmem:[#allocation11_spill] sm:$0xff] }
 0x201   :  { %v2088_v40 = vpop.f32.mrf.mxu0  ;;  %v1778_v16 = vadd.f32 %v9456_v41, %v1304_v61  ;;  %v1306_v8 = vadd.f32 %v12122_v14, %v751_v30  ;;  %v12125_v41 = vld [vmem:[#allocation52_spill] sm:$0xff]  ;;  %v12129_v61 = vld [vmem:[#allocation54_spill] sm:$0xff] }
 0x202   :  { %v2322_v53 = vadd.f32 %v9554_v60, %v2246_v55  ;;  %v2247_v59 = vadd.f32 %v2088_v40, %v1773_v7  ;;  %6657 = vmatprep.mubr.msk.f32.mxu1 %vm2456_vm1, %v2384_v3  ;;  %6710 = vmatprep.mubr.msk.f32.mxu0 %vm2456_vm1, %v2384_v3  ;;  %v2385_v58 = vmax.f32 %v2321_v4, 0.0  ;;  %v12123_v3 = vld [vmem:[#allocation7_spill] sm:$0xff]  ;;  %v12124_v55 = vld [vmem:[#allocation8_spill] sm:$0xff]  ;;  %v1779_v4 = vadd.f32 %v9463_v54, %v12125_v41 }
 0x203   :  { %v2090_v46 = vpop.f32.mrf.mxu0  ;;  %2648 = vmatmul.mubr.f32.gmra.mxu1 %v2383_v13  ;;  %2895 = vmatmul.mubr.f32.gmra.mxu0 %v2383_v13  ;;  %v757_v2 = vadd.f32 %v12124_v55, %v12123_v3  ;;  %v1780_v57 = vadd.f32 %v9470_v49, %v1306_v8  ;;  %v12135_v3 = vld [vmem:[#allocation83_spill] sm:$0xff] }
 0x204   :  { %v2386_v17 = vmax.f32 %v2322_v53, 0.0  ;;  %v2248_v48 = vadd.f32 %v2090_v46, %v1774_v6  ;;  %v2323_v52 = vadd.f32 %v9548_v25, %v2247_v59  ;;  %v9665_v6 = vpop.f32.mrf.mxu1 }
 0x205   :  { %v2094_v44 = vpop.f32.mrf.mxu0  ;;  %v1308_v53 = vadd.f32 %v12126_v0, %v757_v2  ;;  %v12138_v0 = vld [vmem:[#allocation58_spill] sm:$0xff] }
 0x206   :  { %v2324_v24 = vadd.f32 %v9554_v60, %v2248_v48  ;;  %v2249_v34 = vadd.f32 %v2094_v44, %v1775_v12  ;;  %6658 = vmatprep.mubr.msk.f32.mxu1 %vm2456_vm1, %v2386_v17  ;;  %6711 = vmatprep.mubr.msk.f32.mxu0 %vm2456_vm1, %v2386_v17  ;;  %v2387_v38 = vmax.f32 %v2323_v52, 0.0  ;;  %v9675_v12 = vpop.f32.mrf.mxu1  ;;  %v12127_v17 = vld [vmem:[#allocation9_spill] sm:$0xff]  ;;  %v12128_v48 = vld [vmem:[#allocation10_spill] sm:$0xff] }
 0x207   :  { %v2096_v18 = vpop.f32.mrf.mxu0  ;;  %2653 = vmatmul.mubr.f32.gmra.mxu1 %v2385_v58  ;;  %2900 = vmatmul.mubr.f32.gmra.mxu0 %v2385_v58  ;;  %v763_v33 = vadd.f32 %v12128_v48, %v12127_v17  ;;  %v1781_v58 = vadd.f32 %v9477_v19, %v12129_v61  ;;  %v1782_v44 = vadd.f32 %v9484_v35, %v1308_v53  ;;  %v12133_v35 = vld [vmem:[#allocation56_spill] sm:$0xff]  ;;  %v12140_v61 = vld [vmem:[#allocation15_spill] sm:$0xff] }
 0x208   :  { %v2388_v56 = vmax.f32 %v2324_v24, 0.0  ;;  %v2250_v27 = vadd.f32 %v2096_v18, %v1776_v62  ;;  %v2325_v39 = vadd.f32 %v9548_v25, %v2249_v34  ;;  %v12130_v18 = vld [vmem:[#allocation57_spill] sm:$0xff]  ;;  %v1785_v53 = vadd.f32 %v9505_v15, %v12138_v0  ;;  %v12150_v0 = vld [vmem:[#allocation19_spill] sm:$0xff] }
 0x209   :  { %v2100_v37 = vpop.f32.mrf.mxu0  ;;  %v1310_v20 = vadd.f32 %v12130_v18, %v763_v33 }
 0x20a   :  { %v2326_v31 = vadd.f32 %v9554_v60, %v2250_v27  ;;  %v2251_v7 = vadd.f32 %v2100_v37, %v1777_v5  ;;  %6659 = vmatprep.mubr.msk.f32.mxu1 %vm2456_vm1, %v2388_v56  ;;  %6712 = vmatprep.mubr.msk.f32.mxu0 %vm2456_vm1, %v2388_v56  ;;  %v2389_v59 = vmax.f32 %v2325_v39, 0.0  ;;  %v12132_v5 = vld [vmem:[#allocation12_spill] sm:$0xff]  ;;  %v9689_v56 = vpop.f32.mrf.mxu1  ;;  %v12134_v37 = vld [vmem:[#allocation59_spill] sm:$0xff] }
 0x20b   :  { %v2102_v13 = vpop.f32.mrf.mxu0  ;;  %2658 = vmatmul.mubr.f32.gmra.mxu1 %v2387_v38  ;;  %2905 = vmatmul.mubr.f32.gmra.mxu0 %v2387_v38  ;;  %v769_v19 = vadd.f32 %v12132_v5, %v12131_v32  ;;  %v1784_v55 = vadd.f32 %v12135_v3, %v1310_v20  ;;  %v12144_v32 = vld [vmem:[#allocation93_spill] sm:$0xff] }
 0x20c   :  { %v2390_v40 = vmax.f32 %v2326_v31, 0.0  ;;  %v2252_v50 = vadd.f32 %v2102_v13, %v1778_v16  ;;  %v2327_v47 = vadd.f32 %v9548_v25, %v2251_v7  ;;  %v1783_v16 = vadd.f32 %v9491_v63, %v12133_v35  ;;  %v9699_v41 = vpop.f32.mrf.mxu1 }
 0x20d   :  { %v2106_v23 = vpop.f32.mrf.mxu0  ;;  %v1312_v14 = vadd.f32 %v12134_v37, %v769_v19  ;;  %v12147_v37 = vld [vmem:[#allocation62_spill] sm:$0xff] }
 0x20e   :  { %v2328_v46 = vadd.f32 %v9554_v60, %v2252_v50  ;;  %v2253_v43 = vadd.f32 %v2106_v23, %v1779_v4  ;;  %6660 = vmatprep.mubr.msk.f32.mxu1 %vm2456_vm1, %v2390_v40  ;;  %6713 = vmatprep.mubr.msk.f32.mxu0 %vm2456_vm1, %v2390_v40  ;;  %v2391_v62 = vmax.f32 %v2327_v47, 0.0  ;;  %v12136_v4 = vld [vmem:[#allocation13_spill] sm:$0xff]  ;;  %v12137_v40 = vld [vmem:[#allocation14_spill] sm:$0xff] }
 0x20f   :  { %v2108_v54 = vpop.f32.mrf.mxu0  ;;  %2663 = vmatmul.mubr.f32.gmra.mxu1 %v2389_v59  ;;  %2910 = vmatmul.mubr.f32.gmra.mxu0 %v2389_v59  ;;  %v775_v50 = vadd.f32 %v12137_v40, %v12136_v4  ;;  %v1786_v23 = vadd.f32 %v9512_v51, %v1312_v14  ;;  %v12142_v51 = vld [vmem:[#allocation60_spill] sm:$0xff] }
 0x210   :  { %v2392_v52 = vmax.f32 %v2328_v46, 0.0  ;;  %v2254_v49 = vadd.f32 %v2108_v54, %v1780_v57  ;;  %v2329_v24 = vadd.f32 %v9548_v25, %v2253_v43  ;;  %v12139_v54 = vld [vmem:[#allocation61_spill] sm:$0xff]  ;;  %v12148_v14 = vld [vmem:[#allocation96_spill] sm:$0xff] }
 0x211   :  { %v2112_v34 = vpop.f32.mrf.mxu0  ;;  %v1314_v17 = vadd.f32 %v12139_v54, %v775_v50  ;;  %v12153_v54 = vld [vmem:[#allocation67_spill] sm:$0xff] }
 0x212   :  { %v2330_v45 = vadd.f32 %v9554_v60, %v2254_v49  ;;  %v2255_v30 = vadd.f32 %v2112_v34, %v1781_v58  ;;  %6661 = vmatprep.mubr.msk.f32.mxu1 %vm2456_vm1, %v2392_v52  ;;  %6714 = vmatprep.mubr.msk.f32.mxu0 %vm2456_vm1, %v2392_v52  ;;  %v2393_v8 = vmax.f32 %v2329_v24, 0.0  ;;  %v12141_v58 = vld [vmem:[#allocation16_spill] sm:$0xff]  ;;  %v9713_v52 = vpop.f32.mrf.mxu1  ;;  %v12143_v34 = vld [vmem:[#allocation63_spill] sm:$0xff] }
 0x213   :  { %v2114_v27 = vpop.f32.mrf.mxu0  ;;  %2668 = vmatmul.mubr.f32.gmra.mxu1 %v2391_v62  ;;  %2915 = vmatmul.mubr.f32.gmra.mxu0 %v2391_v62  ;;  %v781_v15 = vadd.f32 %v12141_v58, %v12140_v61  ;;  %v1788_v5 = vadd.f32 %v12144_v32, %v1314_v17 }
 0x214   :  { %v2394_v38 = vmax.f32 %v2330_v45, 0.0  ;;  %v2256_v39 = vadd.f32 %v2114_v27, %v1782_v44  ;;  %v2331_v31 = vadd.f32 %v9548_v25, %v2255_v30  ;;  %v1787_v44 = vadd.f32 %v9519_v28, %v12142_v51  ;;  %v9723_v35 = vpop.f32.mrf.mxu1 }
 0x215   :  { %v2118_v7 = vpop.f32.mrf.mxu0  ;;  %v1316_v18 = vadd.f32 %v12143_v34, %v781_v15  ;;  %v12156_v34 = vld [vmem:[#allocation66_spill] sm:$0xff] }
 0x216   :  { %v2332_v2 = vadd.f32 %v9554_v60, %v2256_v39  ;;  %v2257_v13 = vadd.f32 %v2118_v7, %v1783_v16  ;;  %6662 = vmatprep.mubr.msk.f32.mxu1 %vm2456_vm1, %v2394_v38  ;;  %6715 = vmatprep.mubr.msk.f32.mxu0 %vm2456_vm1, %v2394_v38  ;;  %v2395_v57 = vmax.f32 %v2331_v31, 0.0  ;;  %v12145_v16 = vld [vmem:[#allocation17_spill] sm:$0xff]  ;;  %v12146_v38 = vld [vmem:[#allocation18_spill] sm:$0xff] }
 0x217   :  { %v2120_v63 = vpop.f32.mrf.mxu0  ;;  %2673 = vmatmul.mubr.f32.gmra.mxu1 %v2393_v8  ;;  %2920 = vmatmul.mubr.f32.gmra.mxu0 %v2393_v8  ;;  %v787_v39 = vadd.f32 %v12146_v38, %v12145_v16  ;;  %v1789_v8 = vadd.f32 %v12148_v14, %v12147_v37  ;;  %v1790_v3 = vadd.f32 %v9556_v11, %v1316_v18  ;;  %v12152_v11 = vld [vmem:[#allocation64_spill] sm:$0xff]  ;;  %v12158_v38 = vld [vmem:[#allocation23_spill] sm:$0xff] }
 0x218   :  { %v2396_v59 = vmax.f32 %v2332_v2, 0.0  ;;  %v2258_v47 = vadd.f32 %v2120_v63, %v1784_v55  ;;  %v2333_v46 = vadd.f32 %v9548_v25, %v2257_v13  ;;  %v12149_v63 = vld [vmem:[#allocation65_spill] sm:$0xff]  ;;  %v1793_v18 = vadd.f32 %v9584_v1, %v12156_v34 }
 0x219   :  { %v2124_v43 = vpop.f32.mrf.mxu0  ;;  %v1318_v4 = vadd.f32 %v12149_v63, %v787_v39  ;;  %v12159_v39 = vld [vmem:[#allocation24_spill] sm:$0xff] }
 0x21a   :  { %v2334_v48 = vadd.f32 %v9554_v60, %v2258_v47  ;;  %v2259_v33 = vadd.f32 %v2124_v43, %v1785_v53  ;;  %6663 = vmatprep.mubr.msk.f32.mxu1 %vm2456_vm1, %v2396_v59  ;;  %6716 = vmatprep.mubr.msk.f32.mxu0 %vm2456_vm1, %v2396_v59  ;;  %v2397_v20 = vmax.f32 %v2333_v46, 0.0  ;;  %v12151_v53 = vld [vmem:[#allocation20_spill] sm:$0xff]  ;;  %v9737_v47 = vpop.f32.mrf.mxu1  ;;  %v805_v1 = vadd.f32 %v12159_v39, %v12158_v38  ;;  %v12171_v38 = vld [vmem:[#allocation30_spill] sm:$0xff] }
 0x21b   :  { %v2126_v49 = vpop.f32.mrf.mxu0  ;;  %2678 = vmatmul.mubr.f32.gmra.mxu1 %v2395_v57  ;;  %2925 = vmatmul.mubr.f32.gmra.mxu0 %v2395_v57  ;;  %v793_v59 = vadd.f32 %v12151_v53, %v12150_v0  ;;  %v1791_v57 = vadd.f32 %v9564_v29, %v12152_v11  ;;  %v1792_v58 = vadd.f32 %v9574_v10, %v1318_v4  ;;  %v12162_v53 = vld [vmem:[#allocation25_spill] sm:$0xff]  ;;  %v12164_v11 = vld [vmem:[#allocation70_spill] sm:$0xff] }
 0x21c   :  { %v2398_v62 = vmax.f32 %v2334_v48, 0.0  ;;  %v2260_v24 = vadd.f32 %v2126_v49, %v1786_v23  ;;  %v2335_v45 = vadd.f32 %v9548_v25, %v2259_v33  ;;  %v9747_v51 = vpop.f32.mrf.mxu1 }
 0x21d   :  { %v2130_v30 = vpop.f32.mrf.mxu0  ;;  %v1320_v17 = vadd.f32 %v12153_v54, %v793_v59  ;;  %v12163_v59 = vld [vmem:[#allocation26_spill] sm:$0xff] }
 0x21e   :  { %v2336_v19 = vadd.f32 %v9554_v60, %v2260_v24  ;;  %v2261_v27 = vadd.f32 %v2130_v30, %v1787_v44  ;;  %6664 = vmatprep.mubr.msk.f32.mxu1 %vm2456_vm1, %v2398_v62  ;;  %6717 = vmatprep.mubr.msk.f32.mxu0 %vm2456_vm1, %v2398_v62  ;;  %v2399_v55 = vmax.f32 %v2335_v45, 0.0  ;;  %v12154_v44 = vld [vmem:[#allocation21_spill] sm:$0xff]  ;;  %v12155_v62 = vld [vmem:[#allocation22_spill] sm:$0xff]  ;;  %v9761_v37 = vpop.f32.mrf.mxu1 }
 0x21f   :  { %v2132_v28 = vpop.f32.mrf.mxu0  ;;  %2683 = vmatmul.mubr.f32.gmra.mxu1 %v2397_v20  ;;  %2930 = vmatmul.mubr.f32.gmra.mxu0 %v2397_v20  ;;  %v799_v24 = vadd.f32 %v12155_v62, %v12154_v44  ;;  %v1794_v45 = vadd.f32 %v9594_v36, %v1320_v17  ;;  %v12160_v36 = vld [vmem:[#allocation68_spill] sm:$0xff] }
 0x220   :  { %v2400_v31 = vmax.f32 %v2336_v19, 0.0  ;;  %v2262_v7 = vadd.f32 %v2132_v28, %v1788_v5  ;;  %v2337_v2 = vadd.f32 %v9548_v25, %v2261_v27  ;;  %v12157_v19 = vld [vmem:[#allocation69_spill] sm:$0xff]  ;;  %v9771_v0 = vpop.f32.mrf.mxu1 }
 0x221   :  { %v2136_v13 = vpop.f32.mrf.mxu0  ;;  %v1322_v27 = vadd.f32 %v12157_v19, %v799_v24 }
 0x222   :  { %v2338_v40 = vadd.f32 %v9554_v60, %v2262_v7  ;;  %v2263_v50 = vadd.f32 %v2136_v13, %v1789_v8  ;;  %6665 = vmatprep.mubr.msk.f32.mxu1 %vm2456_vm1, %v2400_v31  ;;  %6718 = vmatprep.mubr.msk.f32.mxu0 %vm2456_vm1, %v2400_v31  ;;  %v2401_v48 = vmax.f32 %v2337_v2, 0.0  ;;  %v1795_v8 = vadd.f32 %v9604_v26, %v12160_v36  ;;  %v9785_v44 = vpop.f32.mrf.mxu1 }
 0x223   :  { %v2138_v23 = vpop.f32.mrf.mxu0  ;;  %2688 = vmatmul.mubr.f32.gmra.mxu1 %v2399_v55  ;;  %2935 = vmatmul.mubr.f32.gmra.mxu0 %v2399_v55  ;;  %v1796_v4 = vadd.f32 %v9616_v9, %v1322_v27 }
 0x224   :  { %v2402_v46 = vmax.f32 %v2338_v40, 0.0  ;;  %v2264_v43 = vadd.f32 %v2138_v23, %v1790_v3  ;;  %v2339_v33 = vadd.f32 %v9548_v25, %v2263_v50  ;;  %v12161_v3 = vld [vmem:[#allocation71_spill] sm:$0xff]  ;;  %v811_v23 = vadd.f32 %v12163_v59, %v12162_v53 }
 0x225   :  { %v2142_v61 = vpop.f32.mrf.mxu0  ;;  %v1324_v55 = vadd.f32 %v12161_v3, %v805_v1  ;;  %v12172_v1 = vld [vmem:[#allocation74_spill] sm:$0xff] }
 0x226   :  { %v2340_v15 = vadd.f32 %v9554_v60, %v2264_v43  ;;  %v2265_v49 = vadd.f32 %v2142_v61, %v1791_v57  ;;  %6666 = vmatprep.mubr.msk.f32.mxu1 %vm2456_vm1, %v2402_v46  ;;  %6719 = vmatprep.mubr.msk.f32.mxu0 %vm2456_vm1, %v2402_v46  ;;  %v2403_v30 = vmax.f32 %v2339_v33, 0.0  ;;  %v1797_v57 = vadd.f32 %v9627_v22, %v12164_v11  ;;  %v12165_v33 = vld [vmem:[#allocation73_spill] sm:$0xff]  ;;  %v12177_v11 = vld [vmem:[#allocation79_spill] sm:$0xff] }
 0x227   :  { %v2144_v29 = vpop.f32.mrf.mxu0  ;;  %2693 = vmatmul.mubr.f32.gmra.mxu1 %v2401_v48  ;;  %2940 = vmatmul.mubr.f32.gmra.mxu0 %v2401_v48  ;;  %v1798_v43 = vadd.f32 %v9641_v42, %v1324_v55  ;;  %v1326_v61 = vadd.f32 %v12165_v33, %v811_v23  ;;  %v12168_v42 = vld [vmem:[#allocation72_spill] sm:$0xff]  ;;  %v12173_v55 = vld [vmem:[#allocation77_spill] sm:$0xff] }
 0x228   :  { %v2404_v20 = vmax.f32 %v2340_v15, 0.0  ;;  %v2266_v10 = vadd.f32 %v2144_v29, %v1792_v58  ;;  %v2341_v32 = vadd.f32 %v9548_v25, %v2265_v49  ;;  %v12166_v49 = vld [vmem:[#allocation27_spill] sm:$0xff]  ;;  %v12167_v29 = vld [vmem:[#allocation28_spill] sm:$0xff]  ;;  %v1799_v24 = vadd.f32 %v9651_v21, %v12168_v42 }
 0x229   :  { %v2148_v5 = vpop.f32.mrf.mxu0  ;;  %v817_v22 = vadd.f32 %v12167_v29, %v12166_v49  ;;  %v12180_v49 = vld [vmem:[#allocation78_spill] sm:$0xff] }
 0x22a   :  { %v2342_v28 = vadd.f32 %v9554_v60, %v2266_v10  ;;  %v2267_v16 = vadd.f32 %v2148_v5, %v1793_v18  ;;  %6667 = vmatprep.mubr.msk.f32.mxu1 %vm2456_vm1, %v2404_v20  ;;  %6720 = vmatprep.mubr.msk.f32.mxu0 %vm2456_vm1, %v2404_v20  ;;  %v2405_v2 = vmax.f32 %v2341_v32, 0.0  ;;  %v12169_v20 = vld [vmem:[#allocation75_spill] sm:$0xff]  ;;  %v1800_v5 = vadd.f32 %v9665_v6, %v1326_v61  ;;  %v12178_v61 = vld [vmem:[#allocation33_spill] sm:$0xff] }
 0x22b   :  { %v2150_v14 = vpop.f32.mrf.mxu0  ;;  %2698 = vmatmul.mubr.f32.gmra.mxu1 %v2403_v30  ;;  %2945 = vmatmul.mubr.f32.gmra.mxu0 %v2403_v30  ;;  %v1328_v10 = vadd.f32 %v12169_v20, %v817_v22  ;;  %v1805_v29 = vadd.f32 %v9723_v35, %v12180_v49 }
 0x22c   :  { %v2406_v31 = vmax.f32 %v2342_v28, 0.0  ;;  %v2268_v7 = vadd.f32 %v2150_v14, %v1794_v45  ;;  %v2343_v13 = vadd.f32 %v9548_v25, %v2267_v16  ;;  %v9795_v28 = vpop.f32.mrf.mxu1  ;;  %v12170_v16 = vld [vmem:[#allocation29_spill] sm:$0xff]  ;;  %v1801_v14 = vadd.f32 %v9675_v12, %v12172_v1 }
 0x22d   :  { %v2154_v63 = vpop.f32.mrf.mxu0  ;;  %v823_v39 = vadd.f32 %v12171_v38, %v12170_v16  ;;  %v12185_v38 = vld [vmem:[#allocation84_spill] sm:$0xff] }
 0x22e   :  { %v2344_v40 = vadd.f32 %v9554_v60, %v2268_v7  ;;  %v2269_v50 = vadd.f32 %v2154_v63, %v1795_v8  ;;  %6668 = vmatprep.mubr.msk.f32.mxu1 %vm2456_vm1, %v2406_v31  ;;  %6721 = vmatprep.mubr.msk.f32.mxu0 %vm2456_vm1, %v2406_v31  ;;  %v2407_v54 = vmax.f32 %v2343_v13, 0.0  ;;  %v1802_v8 = vadd.f32 %v9689_v56, %v1328_v10  ;;  %v12176_v56 = vld [vmem:[#allocation76_spill] sm:$0xff] }
 0x22f   :  { %v2156_v26 = vpop.f32.mrf.mxu0  ;;  %2703 = vmatmul.mubr.f32.gmra.mxu1 %v2405_v2  ;;  %2950 = vmatmul.mubr.f32.gmra.mxu0 %v2405_v2  ;;  %v1330_v2 = vadd.f32 %v12173_v55, %v823_v39  ;;  %v1803_v53 = vadd.f32 %v9699_v41, %v12176_v56  ;;  %v12187_v55 = vld [vmem:[#allocation38_spill] sm:$0xff] }
 0x230   :  { %v2408_v46 = vmax.f32 %v2344_v40, 0.0  ;;  %v2270_v9 = vadd.f32 %v2156_v26, %v1796_v4  ;;  %v2345_v17 = vadd.f32 %v9548_v25, %v2269_v50  ;;  %v12174_v4 = vld [vmem:[#allocation31_spill] sm:$0xff]  ;;  %v12175_v40 = vld [vmem:[#allocation32_spill] sm:$0xff]  ;;  %v9809_v50 = vpop.f32.mrf.mxu1 }
 0x231   :  { %v2160_v48 = vpop.f32.mrf.mxu0  ;;  %v829_v12 = vadd.f32 %v12175_v40, %v12174_v4 }
 0x232   :  { %v2346_v58 = vadd.f32 %v9554_v60, %v2270_v9  ;;  %v2271_v15 = vadd.f32 %v2160_v48, %v1797_v57  ;;  %6669 = vmatprep.mubr.msk.f32.mxu1 %vm2456_vm1, %v2408_v46  ;;  %6722 = vmatprep.mubr.msk.f32.mxu0 %vm2456_vm1, %v2408_v46  ;;  %v2409_v45 = vmax.f32 %v2345_v17, 0.0  ;;  %v9819_v33 = vpop.f32.mrf.mxu1 }
 0x233   :  { %v2162_v62 = vpop.f32.mrf.mxu0  ;;  %2708 = vmatmul.mubr.f32.gmra.mxu1 %v2407_v54  ;;  %2955 = vmatmul.mubr.f32.gmra.mxu0 %v2407_v54  ;;  %v1332_v57 = vadd.f32 %v12177_v11, %v829_v12  ;;  %v1804_v54 = vadd.f32 %v9713_v52, %v1330_v2 }
 0x234   :  { %v2410_v34 = vmax.f32 %v2346_v58, 0.0  ;;  %v2272_v18 = vadd.f32 %v2162_v62, %v1798_v43  ;;  %v2347_v30 = vadd.f32 %v9548_v25, %v2271_v15  ;;  %v12179_v58 = vld [vmem:[#allocation34_spill] sm:$0xff] }
 0x235   :  { %v2166_v32 = vpop.f32.mrf.mxu0  ;;  %v835_v15 = vadd.f32 %v12179_v58, %v12178_v61  ;;  %v1806_v62 = vadd.f32 %v9737_v47, %v1332_v57  ;;  %v12184_v47 = vld [vmem:[#allocation80_spill] sm:$0xff]  ;;  %v12190_v57 = vld [vmem:[#allocation39_spill] sm:$0xff] }
 0x236   :  { %v2348_v19 = vadd.f32 %v9554_v60, %v2272_v18  ;;  %v2273_v27 = vadd.f32 %v2166_v32, %v1799_v24  ;;  %6670 = vmatprep.mubr.msk.f32.mxu1 %vm2456_vm1, %v2410_v34  ;;  %6723 = vmatprep.mubr.msk.f32.mxu0 %vm2456_vm1, %v2410_v34  ;;  %v2411_v31 = vmax.f32 %v2347_v30, 0.0  ;;  %v12181_v18 = vld [vmem:[#allocation81_spill] sm:$0xff]  ;;  %v12182_v30 = vld [vmem:[#allocation35_spill] sm:$0xff]  ;;  %v12183_v32 = vld [vmem:[#allocation36_spill] sm:$0xff] }
 0x237   :  { %v2168_v21 = vpop.f32.mrf.mxu0  ;;  %2713 = vmatmul.mubr.f32.gmra.mxu1 %v2409_v45  ;;  %2960 = vmatmul.mubr.f32.gmra.mxu0 %v2409_v45  ;;  %v1334_v20 = vadd.f32 %v12181_v18, %v835_v15  ;;  %v841_v35 = vadd.f32 %v12183_v32, %v12182_v30  ;;  %v12196_v18 = vld [vmem:[#allocation87_spill] sm:$0xff] }
 0x238   :  { %v2412_v36 = vmax.f32 %v2348_v19, 0.0  ;;  %v2274_v6 = vadd.f32 %v2168_v21, %v1800_v5  ;;  %v2349_v7 = vadd.f32 %v9548_v25, %v2273_v27  ;;  %v1736_v5 = vpop.f32.mrf.mxu1  ;;  %v1807_v27 = vadd.f32 %v9747_v51, %v12184_v47  ;;  %v12186_v51 = vld [vmem:[#allocation37_spill] sm:$0xff] }
 0x239   :  { %v2172_v3 = vpop.f32.mrf.mxu0  ;;  %v1336_v39 = vadd.f32 %v12185_v38, %v841_v35  ;;  %v847_v2 = vadd.f32 %v12187_v55, %v12186_v51  ;;  %v12199_v38 = vld [vmem:[#allocation44_spill] sm:$0xff] }
 0x23a   :  { %v2350_v13 = vadd.f32 %v9554_v60, %v2274_v6  ;;  %v2275_v63 = vadd.f32 %v2172_v3, %v1801_v14  ;;  %6671 = vmatprep.mubr.msk.f32.mxu1 %vm2456_vm1, %v2412_v36  ;;  %6724 = vmatprep.mubr.msk.f32.mxu0 %vm2456_vm1, %v2412_v36  ;;  %v2413_v46 = vmax.f32 %v2349_v7, 0.0  ;;  %v1808_v6 = vadd.f32 %v9761_v37, %v1334_v20  ;;  %v1740_v7 = vpop.f32.mrf.mxu1 }
 0x23b   :  { %v2174_v26 = vpop.f32.mrf.mxu0  ;;  %2718 = vmatmul.mubr.f32.gmra.mxu1 %v2411_v31  ;;  %2965 = vmatmul.mubr.f32.gmra.mxu0 %v2411_v31  ;;  %v1810_v37 = vadd.f32 %v9785_v44, %v1336_v39  ;;  %v12192_v44 = vld [vmem:[#allocation85_spill] sm:$0xff]  ;;  %v1813_v20 = vadd.f32 %v9819_v33, %v12196_v18 }
 0x23c   :  { %v2414_v59 = vmax.f32 %v2350_v13, 0.0  ;;  %v2276_v23 = vadd.f32 %v2174_v26, %v1802_v8  ;;  %v2351_v9 = vadd.f32 %v9548_v25, %v2275_v63  ;;  %v12188_v13 = vld [vmem:[#allocation82_spill] sm:$0xff] }
 0x23d   :  { %v2178_v43 = vpop.f32.mrf.mxu0  ;;  %v1809_v63 = vadd.f32 %v9771_v0, %v12188_v13 }
 0x23e   :  { %v2352_v17 = vadd.f32 %v9554_v60, %v2276_v23  ;;  %v2277_v48 = vadd.f32 %v2178_v43, %v1803_v53  ;;  %6672 = vmatprep.mubr.msk.f32.mxu1 %vm2456_vm1, %v2414_v59  ;;  %6725 = vmatprep.mubr.msk.f32.mxu0 %vm2456_vm1, %v2414_v59  ;;  %v2415_v42 = vmax.f32 %v2351_v9, 0.0  ;;  %v12189_v53 = vld [vmem:[#allocation86_spill] sm:$0xff]  ;;  %v1742_v9 = vpop.f32.mrf.mxu1 }
 0x23f   :  { %v2180_v41 = vpop.f32.mrf.mxu0  ;;  %2723 = vmatmul.mubr.f32.gmra.mxu1 %v2413_v46  ;;  %2970 = vmatmul.mubr.f32.gmra.mxu0 %v2413_v46  ;;  %v1338_v59 = vadd.f32 %v12189_v53, %v847_v2  ;;  %v12191_v46 = vld [vmem:[#allocation40_spill] sm:$0xff] }
 0x240   :  { %v2416_v22 = vmax.f32 %v2352_v17, 0.0  ;;  %v2278_v52 = vadd.f32 %v2180_v41, %v1804_v54  ;;  %v2353_v24 = vadd.f32 %v9548_v25, %v2277_v48  ;;  %v853_v0 = vadd.f32 %v12191_v46, %v12190_v57  ;;  %v12193_v41 = vld [vmem:[#allocation88_spill] sm:$0xff] }
 0x241   :  { %v2184_v34 = vpop.f32.mrf.mxu0  ;;  %v1811_v54 = vadd.f32 %v9795_v28, %v12192_v44  ;;  %v12194_v28 = vld [vmem:[#allocation41_spill] sm:$0xff] }
 0x242   :  { %v2354_v10 = vadd.f32 %v9554_v60, %v2278_v52  ;;  %v2279_v45 = vadd.f32 %v2184_v34, %v1805_v29  ;;  %6673 = vmatprep.mubr.msk.f32.mxu1 %vm2456_vm1, %v2416_v22  ;;  %6726 = vmatprep.mubr.msk.f32.mxu0 %vm2456_vm1, %v2416_v22  ;;  %v2417_v1 = vmax.f32 %v2353_v24, 0.0  ;;  %v1340_v61 = vadd.f32 %v12193_v41, %v853_v0  ;;  %v12195_v24 = vld [vmem:[#allocation42_spill] sm:$0xff]  ;;  %v12205_v0 = vld [vmem:[#allocation97_spill] sm:$0xff] }
 0x243   :  { %v2186_v19 = vpop.f32.mrf.mxu0  ;;  %2728 = vmatmul.mubr.f32.gmra.mxu1 %v2415_v42  ;;  %2975 = vmatmul.mubr.f32.gmra.mxu0 %v2415_v42  ;;  %v1812_v29 = vadd.f32 %v9809_v50, %v1338_v59  ;;  %v859_v34 = vadd.f32 %v12195_v24, %v12194_v28 }
 0x244   :  { %v2418_v21 = vmax.f32 %v2354_v10, 0.0  ;;  %v2280_v16 = vadd.f32 %v2186_v19, %v1806_v62  ;;  %v2355_v14 = vadd.f32 %v9548_v25, %v2279_v45  ;;  %v1746_v62 = vpop.f32.mrf.mxu1  ;;  %v1814_v50 = vadd.f32 %v1736_v5, %v1340_v61  ;;  %v12197_v19 = vld [vmem:[#allocation90_spill] sm:$0xff]  ;;  %v12200_v5 = vld [vmem:[#allocation89_spill] sm:$0xff] }
 0x245   :  { %v2190_v36 = vpop.f32.mrf.mxu0  ;;  %v1342_v47 = vadd.f32 %v12197_v19, %v859_v34 }
 0x246   :  { %v2356_v8 = vadd.f32 %v9554_v60, %v2280_v16  ;;  %v2281_v31 = vadd.f32 %v2190_v36, %v1807_v27  ;;  %6674 = vmatprep.mubr.msk.f32.mxu1 %vm2456_vm1, %v2418_v21  ;;  %6727 = vmatprep.mubr.msk.f32.mxu0 %vm2456_vm1, %v2418_v21  ;;  %v2419_v12 = vmax.f32 %v2355_v14, 0.0  ;;  %v12198_v16 = vld [vmem:[#allocation43_spill] sm:$0xff]  ;;  %v1748_v33 = vpop.f32.mrf.mxu1  ;;  %v1815_v14 = vadd.f32 %v1740_v7, %v12200_v5  ;;  %v12202_v7 = vld [vmem:[#allocation45_spill] sm:$0xff] }
 0x247   :  { %v2192_v3 = vpop.f32.mrf.mxu0  ;;  %2733 = vmatmul.mubr.f32.gmra.mxu1 %v2417_v1  ;;  %2980 = vmatmul.mubr.f32.gmra.mxu0 %v2417_v1  ;;  %v865_v39 = vadd.f32 %v12199_v38, %v12198_v16  ;;  %v1816_v2 = vadd.f32 %v1742_v9, %v1342_v47 }
 0x248   :  { %v2420_v4 = vmax.f32 %v2356_v8, 0.0  ;;  %v2282_v40 = vadd.f32 %v2192_v3, %v1808_v6  ;;  %v2357_v26 = vadd.f32 %v9548_v25, %v2281_v31  ;;  %v12201_v8 = vld [vmem:[#allocation94_spill] sm:$0xff] }
 0x249   :  { %v2196_v56 = vpop.f32.mrf.mxu0  ;;  %v1344_v31 = vadd.f32 %v12201_v8, %v865_v39 }
 0x24a   :  { %v2358_v23 = vadd.f32 %v9554_v60, %v2282_v40  ;;  %v2283_v11 = vadd.f32 %v2196_v56, %v1809_v63  ;;  %6675 = vmatprep.mubr.msk.f32.mxu1 %vm2456_vm1, %v2420_v4  ;;  %6728 = vmatprep.mubr.msk.f32.mxu0 %vm2456_vm1, %v2420_v4  ;;  %v2421_v58 = vmax.f32 %v2357_v26, 0.0  ;;  %v1752_v4 = vpop.f32.mrf.mxu1  ;;  %v12204_v26 = vld [vmem:[#allocation92_spill] sm:$0xff] }
 0x24b   :  { %v2198_v43 = vpop.f32.mrf.mxu0  ;;  %2738 = vmatmul.mubr.f32.gmra.mxu1 %v2419_v12  ;;  %2985 = vmatmul.mubr.f32.gmra.mxu0 %v2419_v12  ;;  %v1817_v56 = vadd.f32 %v1746_v62, %v12204_v26 }
 0x24c   :  { %v2422_v17 = vmax.f32 %v2358_v23, 0.0  ;;  %v2284_v48 = vadd.f32 %v2198_v43, %v1810_v37  ;;  %v2359_v15 = vadd.f32 %v9548_v25, %v2283_v11  ;;  %v12203_v37 = vld [vmem:[#allocation46_spill] sm:$0xff]  ;;  %v1818_v23 = vadd.f32 %v1748_v33, %v1344_v31 }
 0x24d   :  { %v2202_v49 = vpop.f32.mrf.mxu0  ;;  %v871_v12 = vadd.f32 %v12203_v37, %v12202_v7 }
 0x24e   :  { %v2360_v22 = vadd.f32 %v9554_v60, %v2284_v48  ;;  %v2285_v52 = vadd.f32 %v2202_v49, %v1811_v54  ;;  %6676 = vmatprep.mubr.msk.f32.mxu1 %vm2456_vm1, %v2422_v17  ;;  %6729 = vmatprep.mubr.msk.f32.mxu0 %vm2456_vm1, %v2422_v17  ;;  %v2423_v30 = vmax.f32 %v2359_v15, 0.0  ;;  %v1754_v54 = vpop.f32.mrf.mxu1  ;;  %v12206_v48 = vld [vmem:[#allocation95_spill] sm:$0xff] }
 0x24f   :  { %v2204_v42 = vpop.f32.mrf.mxu0  ;;  %2743 = vmatmul.mubr.f32.gmra.mxu1 %v2421_v58  ;;  %2990 = vmatmul.mubr.f32.gmra.mxu0 %v2421_v58  ;;  %v1346_v9 = vadd.f32 %v12205_v0, %v871_v12  ;;  %v1819_v41 = vadd.f32 %v1752_v4, %v12206_v48 }
 0x250   :  { %v2424_v10 = vmax.f32 %v2360_v22, 0.0  ;;  %v2286_v45 = vadd.f32 %v2204_v42, %v1812_v29  ;;  %v2361_v32 = vadd.f32 %v9548_v25, %v2285_v52 }
 0x251   :  { %v2208_v35 = vpop.f32.mrf.mxu0  ;;  %v1820_v22 = vadd.f32 %v1754_v54, %v1346_v9 }
 0x252   :  { %v2362_v27 = vadd.f32 %v9554_v60, %v2286_v45  ;;  %v2287_v21 = vadd.f32 %v2208_v35, %v1813_v20  ;;  %6677 = vmatprep.mubr.msk.f32.mxu1 %vm2456_vm1, %v2424_v10  ;;  %6730 = vmatprep.mubr.msk.f32.mxu0 %vm2456_vm1, %v2424_v10  ;;  %v2425_v3 = vmax.f32 %v2361_v32, 0.0 }
 0x253   :  { %v2210_v1 = vpop.f32.mrf.mxu0  ;;  %2748 = vmatmul.mubr.f32.gmra.mxu1 %v2423_v30  ;;  %2995 = vmatmul.mubr.f32.gmra.mxu0 %v2423_v30 }
 0x254   :  { %v2426_v36 = vmax.f32 %v2362_v27, 0.0  ;;  %v2288_v6 = vadd.f32 %v2210_v1, %v1814_v50  ;;  %v2363_v51 = vadd.f32 %v9548_v25, %v2287_v21  ;;  %v12207_v50 = vmov 0.0  }
 0x255   :  { %v2214_v55 = vpop.f32.mrf.mxu0 }
 0x256   :  { %v2364_v13 = vadd.f32 %v9554_v60, %v2288_v6  ;;  %v2289_v63 = vadd.f32 %v2214_v55, %v1815_v14  ;;  %6678 = vmatprep.mubr.msk.f32.mxu1 %vm2456_vm1, %v2426_v36  ;;  %6731 = vmatprep.mubr.msk.f32.mxu0 %vm2456_vm1, %v2426_v36  ;;  %v2427_v11 = vmax.f32 %v2363_v51, 0.0 }
 0x257   :  { %v2216_v40 = vpop.f32.mrf.mxu0  ;;  %2753 = vmatmul.mubr.f32.gmra.mxu1 %v2425_v3  ;;  %3000 = vmatmul.mubr.f32.gmra.mxu0 %v2425_v3 }
 0x258   :  { %v2428_v53 = vmax.f32 %v2364_v13, 0.0  ;;  %v2290_v59 = vadd.f32 %v2216_v40, %v1816_v2  ;;  %v2365_v57 = vadd.f32 %v9548_v25, %v2289_v63 }
 0x259   :  { %v2220_v46 = vpop.f32.mrf.mxu0 }
 0x25a   :  { %v2366_v43 = vadd.f32 %v9554_v60, %v2290_v59  ;;  %v2291_v44 = vadd.f32 %v2220_v46, %v1817_v56  ;;  %6679 = vmatprep.mubr.msk.f32.mxu1 %vm2456_vm1, %v2428_v53  ;;  %6732 = vmatprep.mubr.msk.f32.mxu0 %vm2456_vm1, %v2428_v53  ;;  %v2429_v15 = vmax.f32 %v2365_v57, 0.0  ;;  %v3058_v46 = vld [vmem:[%s11993_s4 + $0x8] sm:$0xff] }
 0x25b   :  { %v2222_v17 = vpop.f32.mrf.mxu0  ;;  %2758 = vmatmul.mubr.f32.gmra.mxu1 %v2427_v11  ;;  %3005 = vmatmul.mubr.f32.gmra.mxu0 %v2427_v11 }
 0x25c   :  { %v2430_v61 = vmax.f32 %v2366_v43, 0.0  ;;  %v2292_v58 = vadd.f32 %v2222_v17, %v1818_v23  ;;  %v2367_v49 = vadd.f32 %v9548_v25, %v2291_v44 }
 0x25d   :  { %v2226_v29 = vpop.f32.mrf.mxu0 }
 0x25e   :  { %v2368_v52 = vadd.f32 %v9554_v60, %v2292_v58  ;;  %v2293_v62 = vadd.f32 %v2226_v29, %v1819_v41  ;;  %6680 = vmatprep.mubr.msk.f32.mxu1 %vm2456_vm1, %v2430_v61  ;;  %6733 = vmatprep.mubr.msk.f32.mxu0 %vm2456_vm1, %v2430_v61  ;;  %v2431_v34 = vmax.f32 %v2367_v49, 0.0 }
 0x25f   :  { %v2228_v42 = vpop.f32.mrf.mxu0  ;;  %2763 = vmatmul.mubr.f32.gmra.mxu1 %v2429_v15  ;;  %3010 = vmatmul.mubr.f32.gmra.mxu0 %v2429_v15 }
 0x260   :  { %v2432_v28 = vmax.f32 %v2368_v52, 0.0  ;;  %v2294_v24 = vadd.f32 %v2228_v42, %v1820_v22  ;;  %v2369_v18 = vadd.f32 %v9548_v25, %v2293_v62 }
 0x262   :  { %v2370_v20 = vadd.f32 %v9554_v60, %v2294_v24  ;;  %6681 = vmatprep.mubr.msk.f32.mxu1 %vm2456_vm1, %v2432_v28  ;;  %6734 = vmatprep.mubr.msk.f32.mxu0 %vm2456_vm1, %v2432_v28  ;;  %v2433_v45 = vmax.f32 %v2369_v18, 0.0 }
 0x263   :  { %2768 = vmatmul.mubr.f32.gmra.mxu1 %v2431_v34  ;;  %3015 = vmatmul.mubr.f32.gmra.mxu0 %v2431_v34 }
 0x264   :  { %v2434_v10 = vmax.f32 %v2370_v20, 0.0 }
 0x266   :  { %6682 = vmatprep.mubr.msk.f32.mxu1 %vm2456_vm1, %v2434_v10  ;;  %6735 = vmatprep.mubr.msk.f32.mxu0 %vm2456_vm1, %v2434_v10 }
 0x267   :  { %2773 = vmatmul.mubr.f32.gmra.mxu1 %v2433_v45  ;;  %3020 = vmatmul.mubr.f32.gmra.mxu0 %v2433_v45 }
 0x268   :  { %3856 = vmatprep.mubr.f32.mxu0 %v12207_v50  ;;  %6737 = vmatprep.mubr.msk.f32.mxu1 %vm3085_vm2, %v3058_v46 }
 0x2ab   :  { %v2619_v30 = vpop.f32.mrf.mxu1  ;;  %v2866_v25 = vpop.f32.mrf.mxu0 }
 0x2ac   :  { %v9898_v32 = vmax.f32 %v2619_v30, %v2866_v25 }
 0x2ad   :  { %v2621_v60 = vpop.f32.mrf.mxu1  ;;  %v2868_v35 = vpop.f32.mrf.mxu0 }
 0x2af   :  { %v2624_v19 = vpop.f32.mrf.mxu1  ;;  %v2871_v47 = vpop.f32.mrf.mxu0 }
 0x2b0   :  { %v9900_v27 = vmax.f32 %v2624_v19, %v2871_v47 }
 0x2b1   :  { %v2626_v21 = vpop.f32.mrf.mxu1  ;;  %v2873_v16 = vpop.f32.mrf.mxu0 }
 0x2b3   :  { %v2629_v38 = vpop.f32.mrf.mxu1  ;;  %v2876_v39 = vpop.f32.mrf.mxu0 }
 0x2b4   :  { %v9902_v33 = vmax.f32 %v2629_v38, %v2876_v39 }
 0x2b5   :  { %v2631_v1 = vpop.f32.mrf.mxu1  ;;  %v2878_v5 = vpop.f32.mrf.mxu0 }
 0x2b7   :  { %v2634_v14 = vpop.f32.mrf.mxu1  ;;  %v2881_v36 = vpop.f32.mrf.mxu0 }
 0x2b8   :  { %v9904_v6 = vmax.f32 %v2634_v14, %v2881_v36 }
 0x2b9   :  { %v2636_v8 = vpop.f32.mrf.mxu1  ;;  %v2883_v31 = vpop.f32.mrf.mxu0 }
 0x2bb   :  { %v2639_v3 = vpop.f32.mrf.mxu1  ;;  %v2886_v51 = vpop.f32.mrf.mxu0 }
 0x2bc   :  { %v9906_v55 = vmax.f32 %v2639_v3, %v2886_v51 }
 0x2bd   :  { %v2641_v2 = vpop.f32.mrf.mxu1  ;;  %v2888_v13 = vpop.f32.mrf.mxu0 }
 0x2bf   :  { %v2644_v63 = vpop.f32.mrf.mxu1  ;;  %v2891_v4 = vpop.f32.mrf.mxu0 }
 0x2c0   :  { %v9908_v40 = vmax.f32 %v2644_v63, %v2891_v4 }
 0x2c1   :  { %v2646_v7 = vpop.f32.mrf.mxu1  ;;  %v2893_v37 = vpop.f32.mrf.mxu0 }
 0x2c3   :  { %v2649_v12 = vpop.f32.mrf.mxu1  ;;  %v2896_v26 = vpop.f32.mrf.mxu0 }
 0x2c4   :  { %v9910_v56 = vmax.f32 %v2649_v12, %v2896_v26 }
 0x2c5   :  { %v2651_v53 = vpop.f32.mrf.mxu1  ;;  %v2898_v59 = vpop.f32.mrf.mxu0 }
 0x2c7   :  { %v2654_v23 = vpop.f32.mrf.mxu1  ;;  %v2901_v11 = vpop.f32.mrf.mxu0 }
 0x2c8   :  { %v9912_v57 = vmax.f32 %v2654_v23, %v2901_v11 }
 0x2c9   :  { %v2656_v0 = vpop.f32.mrf.mxu1  ;;  %v2903_v9 = vpop.f32.mrf.mxu0 }
 0x2cb   :  { %v2659_v43 = vpop.f32.mrf.mxu1  ;;  %v2906_v44 = vpop.f32.mrf.mxu0 }
 0x2cc   :  { %v9918_v54 = vmax.f32 %v2659_v43, %v2906_v44 }
 0x2cd   :  { %v2661_v17 = vpop.f32.mrf.mxu1  ;;  %v2908_v48 = vpop.f32.mrf.mxu0 }
 0x2cf   :  { %v2664_v41 = vpop.f32.mrf.mxu1  ;;  %v2911_v61 = vpop.f32.mrf.mxu0 }
 0x2d0   :  { %v9920_v58 = vmax.f32 %v2664_v41, %v2911_v61 }
 0x2d1   :  { %v2666_v15 = vpop.f32.mrf.mxu1  ;;  %v2913_v49 = vpop.f32.mrf.mxu0 }
 0x2d3   :  { %v2669_v29 = vpop.f32.mrf.mxu1  ;;  %v2916_v22 = vpop.f32.mrf.mxu0 }
 0x2d4   :  { %v9922_v52 = vmax.f32 %v2669_v29, %v2916_v22 }
 0x2d5   :  { %v2671_v62 = vpop.f32.mrf.mxu1  ;;  %v2918_v42 = vpop.f32.mrf.mxu0 }
 0x2d7   :  { %v2674_v28 = vpop.f32.mrf.mxu1  ;;  %v2921_v24 = vpop.f32.mrf.mxu0 }
 0x2d8   :  { %v9924_v34 = vmax.f32 %v2674_v28, %v2921_v24 }
 0x2d9   :  { %v2676_v18 = vpop.f32.mrf.mxu1  ;;  %v2923_v20 = vpop.f32.mrf.mxu0 }
 0x2db   :  { %v2679_v10 = vpop.f32.mrf.mxu1  ;;  %v2926_v45 = vpop.f32.mrf.mxu0 }
 0x2dc   :  { %v9926_v30 = vmax.f32 %v2679_v10, %v2926_v45 }
 0x2dd   :  { %v2681_v25 = vpop.f32.mrf.mxu1  ;;  %v2928_v60 = vpop.f32.mrf.mxu0 }
 0x2df   :  { %v2684_v35 = vpop.f32.mrf.mxu1  ;;  %v2931_v19 = vpop.f32.mrf.mxu0 }
 0x2e0   :  { %v9928_v47 = vmax.f32 %v2684_v35, %v2931_v19 }
 0x2e1   :  { %v2686_v21 = vpop.f32.mrf.mxu1  ;;  %v2933_v16 = vpop.f32.mrf.mxu0 }
 0x2e3   :  { %v2689_v38 = vpop.f32.mrf.mxu1  ;;  %v2936_v39 = vpop.f32.mrf.mxu0 }
 0x2e4   :  { %v9930_v1 = vmax.f32 %v2689_v38, %v2936_v39 }
 0x2e5   :  { %v2691_v5 = vpop.f32.mrf.mxu1  ;;  %v2938_v14 = vpop.f32.mrf.mxu0 }
 0x2e7   :  { %v2694_v36 = vpop.f32.mrf.mxu1  ;;  %v2941_v8 = vpop.f32.mrf.mxu0 }
 0x2e8   :  { %v9932_v31 = vmax.f32 %v2694_v36, %v2941_v8 }
 0x2e9   :  { %v2696_v3 = vpop.f32.mrf.mxu1  ;;  %v2943_v51 = vpop.f32.mrf.mxu0 }
 0x2eb   :  { %v2699_v2 = vpop.f32.mrf.mxu1  ;;  %v2946_v13 = vpop.f32.mrf.mxu0 }
 0x2ec   :  { %v9934_v63 = vmax.f32 %v2699_v2, %v2946_v13 }
 0x2ed   :  { %v2701_v4 = vpop.f32.mrf.mxu1  ;;  %v2948_v7 = vpop.f32.mrf.mxu0 }
 0x2ef   :  { %v2704_v37 = vpop.f32.mrf.mxu1  ;;  %v2951_v12 = vpop.f32.mrf.mxu0 }
 0x2f0   :  { %v9936_v26 = vmax.f32 %v2704_v37, %v2951_v12 }
 0x2f1   :  { %v2706_v53 = vpop.f32.mrf.mxu1  ;;  %v2953_v59 = vpop.f32.mrf.mxu0 }
 0x2f3   :  { %v2709_v23 = vpop.f32.mrf.mxu1  ;;  %v2956_v11 = vpop.f32.mrf.mxu0 }
 0x2f4   :  { %v9938_v46 = vmax.f32 %v2709_v23, %v2956_v11 }
 0x2f5   :  { %v2711_v0 = vpop.f32.mrf.mxu1  ;;  %v2958_v9 = vpop.f32.mrf.mxu0 }
 0x2f7   :  { %v2714_v43 = vpop.f32.mrf.mxu1  ;;  %v2961_v44 = vpop.f32.mrf.mxu0 }
 0x2f8   :  { %v9940_v17 = vmax.f32 %v2714_v43, %v2961_v44 }
 0x2f9   :  { %v2716_v48 = vpop.f32.mrf.mxu1  ;;  %v2963_v41 = vpop.f32.mrf.mxu0 }
 0x2fb   :  { %v2719_v61 = vpop.f32.mrf.mxu1  ;;  %v2966_v15 = vpop.f32.mrf.mxu0 }
 0x2fc   :  { %v9942_v49 = vmax.f32 %v2719_v61, %v2966_v15 }
 0x2fd   :  { %v2721_v29 = vpop.f32.mrf.mxu1  ;;  %v2968_v22 = vpop.f32.mrf.mxu0 }
 0x2ff   :  { %v9944_v62 = vpop.f32.mrf.mxu1  ;;  %v9946_v42 = vpop.f32.mrf.mxu0 }
 0x301   :  { %v2726_v28 = vpop.f32.mrf.mxu1  ;;  %v2973_v24 = vpop.f32.mrf.mxu0 }
 0x303   :  { %v9948_v18 = vpop.f32.mrf.mxu1  ;;  %v9950_v20 = vpop.f32.mrf.mxu0 }
 0x305   :  { %v2731_v10 = vpop.f32.mrf.mxu1  ;;  %v2978_v45 = vpop.f32.mrf.mxu0 }
 0x307   :  { %v2734_v25 = vpop.f32.mrf.mxu1  ;;  %v2981_v60 = vpop.f32.mrf.mxu0 }
 0x309   :  { %v2736_v35 = vpop.f32.mrf.mxu1  ;;  %v2983_v19 = vpop.f32.mrf.mxu0 }
 0x30b   :  { %v2739_v21 = vpop.f32.mrf.mxu1  ;;  %v2986_v16 = vpop.f32.mrf.mxu0 }
 0x30d   :  { %v2741_v38 = vpop.f32.mrf.mxu1  ;;  %v2988_v39 = vpop.f32.mrf.mxu0 }
 0x30f   :  { %v2744_v5 = vpop.f32.mrf.mxu1  ;;  %v2991_v14 = vpop.f32.mrf.mxu0 }
 0x311   :  { %v2746_v36 = vpop.f32.mrf.mxu1  ;;  %v2993_v8 = vpop.f32.mrf.mxu0 }
 0x312   :  { %v3050_v36 = vmax.f32 %v2744_v5, %v2991_v14  ;;  %v3049_v8 = vmax.f32 %v2739_v21, %v2986_v16  ;;  %v3046_v5 = vmax.f32 %v9944_v62, %v9946_v42  ;;  %v3057_v62 = vld [vmem:[%s11993_s4] sm:$0xff]  ;;  %v3060_v42 = vld [vmem:[%s11993_s4 + $0x18] sm:$0xff]  ;;  %v6752_v21 = vld [vmem:[%s11993_s4 + $0xe8] sm:$0xff] }
 0x313   :  { %v2749_v3 = vpop.f32.mrf.mxu1  ;;  %v2996_v51 = vpop.f32.mrf.mxu0  ;;  %v6751_v16 = vld [vmem:[%s11993_s4 + $0xe0] sm:$0xff]  ;;  %v6754_v14 = vld [vmem:[%s11993_s4 + $0xf8] sm:$0xff] }
 0x314   :  { %v3051_v39 = vmax.f32 %v2749_v3, %v2996_v51  ;;  %v6753_v3 = vld [vmem:[%s11993_s4 + $0xf0] sm:$0xff]  ;;  %v6756_v51 = vld [vmem:[%s11993_s4 + $0x108] sm:$0xff] }
 0x315   :  { %v2751_v2 = vpop.f32.mrf.mxu1  ;;  %v2998_v13 = vpop.f32.mrf.mxu0 }
 0x316   :  { %v3048_v2 = vmax.f32 %v2734_v25, %v2981_v60  ;;  %v3047_v13 = vmax.f32 %v9948_v18, %v9950_v20  ;;  %v3059_v18 = vld [vmem:[%s11993_s4 + $0x10] sm:$0xff]  ;;  %v3062_v20 = vld [vmem:[%s11993_s4 + $0x28] sm:$0xff]  ;;  %v3064_v25 = vld [vmem:[%s11993_s4 + $0x38] sm:$0xff] }
 0x317   :  { %v2754_v4 = vpop.f32.mrf.mxu1  ;;  %v3001_v7 = vpop.f32.mrf.mxu0  ;;  %v3083_v60 = vld [vmem:[%s11993_s4 + $0xd0] sm:$0xff] }
 0x318   :  { %v3052_v38 = vmax.f32 %v2754_v4, %v3001_v7  ;;  %v6755_v4 = vld [vmem:[%s11993_s4 + $0x100] sm:$0xff]  ;;  %v6758_v7 = vld [vmem:[%s11993_s4 + $0x118] sm:$0xff] }
 0x319   :  { %v2756_v37 = vpop.f32.mrf.mxu1  ;;  %v3003_v12 = vpop.f32.mrf.mxu0 }
 0x31a   :  { %v6757_v37 = vld [vmem:[%s11993_s4 + $0x110] sm:$0xff]  ;;  %v6760_v12 = vld [vmem:[%s11993_s4 + $0x128] sm:$0xff] }
 0x31b   :  { %v2759_v53 = vpop.f32.mrf.mxu1  ;;  %v3006_v59 = vpop.f32.mrf.mxu0 }
 0x31c   :  { %v3053_v19 = vmax.f32 %v2759_v53, %v3006_v59  ;;  %v6759_v53 = vld [vmem:[%s11993_s4 + $0x120] sm:$0xff]  ;;  %v6762_v59 = vld [vmem:[%s11993_s4 + $0x138] sm:$0xff] }
 0x31d   :  { %v2761_v23 = vpop.f32.mrf.mxu1  ;;  %v3008_v11 = vpop.f32.mrf.mxu0 }
 0x31e   :  { %v6761_v23 = vld [vmem:[%s11993_s4 + $0x130] sm:$0xff]  ;;  %v6764_v11 = vld [vmem:[%s11993_s4 + $0x148] sm:$0xff] }
 0x31f   :  { %v2764_v0 = vpop.f32.mrf.mxu1  ;;  %v3011_v9 = vpop.f32.mrf.mxu0 }
 0x320   :  { %v3054_v35 = vmax.f32 %v2764_v0, %v3011_v9  ;;  %v6763_v0 = vld [vmem:[%s11993_s4 + $0x140] sm:$0xff]  ;;  %v6766_v9 = vld [vmem:[%s11993_s4 + $0x158] sm:$0xff] }
 0x321   :  { %v2766_v43 = vpop.f32.mrf.mxu1  ;;  %v3013_v44 = vpop.f32.mrf.mxu0 }
 0x322   :  { %v6765_v43 = vld [vmem:[%s11993_s4 + $0x150] sm:$0xff]  ;;  %v6768_v44 = vld [vmem:[%s11993_s4 + $0x168] sm:$0xff] }
 0x323   :  { %v2769_v48 = vpop.f32.mrf.mxu1  ;;  %v3016_v41 = vpop.f32.mrf.mxu0 }
 0x324   :  { %v3055_v45 = vmax.f32 %v2769_v48, %v3016_v41  ;;  %v6767_v48 = vld [vmem:[%s11993_s4 + $0x160] sm:$0xff]  ;;  %v6770_v41 = vld [vmem:[%s11993_s4 + $0x178] sm:$0xff] }
 0x325   :  { %v2771_v61 = vpop.f32.mrf.mxu1  ;;  %v3018_v15 = vpop.f32.mrf.mxu0 }
 0x326   :  { %v6769_v61 = vld [vmem:[%s11993_s4 + $0x170] sm:$0xff]  ;;  %v6772_v15 = vld [vmem:[%s11993_s4 + $0x188] sm:$0xff] }
 0x327   :  { %v2774_v29 = vpop.f32.mrf.mxu1  ;;  %v3021_v22 = vpop.f32.mrf.mxu0 }
 0x328   :  { %v3056_v28 = vmax.f32 %v2774_v29, %v3021_v22  ;;  %v6771_v29 = vld [vmem:[%s11993_s4 + $0x180] sm:$0xff]  ;;  %v6774_v22 = vld [vmem:[%s11993_s4 + $0x198] sm:$0xff] }
 0x329   :  { %v2776_v24 = vpop.f32.mrf.mxu1  ;;  %v3023_v10 = vpop.f32.mrf.mxu0 }
 0x32a   :  { %7087 = vmatprep.subr.msk.mxu1 %vm3128_vm3, %v3056_v28  ;;  %v6776_v24 = vld [vmem:[%s11993_s4 + $0x1a8] sm:$0xff]  ;;  %v6775_v10 = vld [vmem:[%s11993_s4 + $0x1a0] sm:$0xff] }
 0x32b   :  { %7088 = vmatpush3.msra.mxu1 %v9932_v31 }
 0x32c   :  { %7089 = vmatprep.subr.mxu1 %v3055_v45 }
 0x32d   :  { %7090 = vmatpush3.msra.mxu1 %v9930_v1 }
 0x32e   :  { %7091 = vmatprep.subr.mxu1 %v3054_v35 }
 0x32f   :  { %7092 = vmatpush3.msra.mxu1 %v9928_v47 }
 0x330   :  { %7093 = vmatprep.subr.mxu1 %v3053_v19 }
 0x331   :  { %7094 = vmatpush3.msra.mxu1 %v9926_v30 }
 0x332   :  { %7095 = vmatprep.subr.mxu1 %v3052_v38 }
 0x333   :  { %7096 = vmatpush3.msra.mxu1 %v9924_v34 }
 0x334   :  { %7097 = vmatprep.subr.mxu1 %v3051_v39 }
 0x335   :  { %7098 = vmatpush3.msra.mxu1 %v9922_v52 }
 0x336   :  { %7099 = vmatprep.subr.mxu1 %v3050_v36 }
 0x337   :  { %7100 = vmatpush3.msra.mxu1 %v9920_v58 }
 0x338   :  { %7101 = vmatprep.subr.mxu1 %v3049_v8 }
 0x339   :  { %7102 = vmatpush3.msra.mxu1 %v9918_v54 }
 0x33a   :  { %7103 = vmatprep.subr.mxu1 %v3048_v2 }
 0x33b   :  { %7104 = vmatpush3.msra.mxu1 %v9912_v57 }
 0x33c   :  { %7105 = vmatprep.subr.mxu1 %v3047_v13 }
 0x33d   :  { %7106 = vmatpush3.msra.mxu1 %v9910_v56 }
 0x33e   :  { %7107 = vmatprep.subr.mxu1 %v3046_v5 }
 0x33f   :  { %7108 = vmatpush3.msra.mxu1 %v9908_v40 }
 0x340   :  { %7109 = vmatprep.subr.mxu1 %v9942_v49 }
 0x341   :  { %7110 = vmatpush3.msra.mxu1 %v9906_v55 }
 0x342   :  { %7111 = vmatprep.subr.mxu1 %v9940_v17 }
 0x343   :  { %7112 = vmatpush3.msra.mxu1 %v9904_v6 }
 0x344   :  { %7113 = vmatprep.subr.mxu1 %v9938_v46 }
 0x345   :  { %7114 = vmatpush3.msra.mxu1 %v9902_v33 }
 0x346   :  { %7115 = vmatprep.subr.mxu1 %v9936_v26 }
 0x347   :  { %7116 = vmatpush3.msra.mxu1 %v9900_v27 }
 0x348   :  { %7117 = vmatprep.subr.mxu1 %v9934_v63 }
 0x349   :  { %7118 = vmatpush3.msra.mxu1 %v9898_v32 }
 0x34a   :  { %3197 = vmatmul.mubr.f32.vlgmr.msra.gmra.mxu1 %v3057_v62  ;;  %7161 = vmatprep.subr.msk.mxu1 %vm3128_vm3, %v3056_v28  ;;  %v6773_v28 = vld [vmem:[%s11993_s4 + $0x190] sm:$0xff] }
 0x34b   :  { %7162 = vmatpush3.msra.mxu1 %v9932_v31  ;;  %6738 = vmatprep.mubr.msk.f32.mxu1 %vm3085_vm2, %v3060_v42  ;;  %v3061_v31 = vld [vmem:[%s11993_s4 + $0x20] sm:$0xff]  ;;  %v3501_v62 = vld [vmem:[%s11994_s5 + $0x70] sm:$0xff] }
 0x34c   :  { %7163 = vmatprep.subr.mxu1 %v3055_v45  ;;  %v6778_v45 = vld [vmem:[%s11993_s4 + $0x1b8] sm:$0xff]  ;;  %v6814_v42 = vld [vmem:[%s11994_s5 + $0x150] sm:$0xf] }
 0x34d   :  { %7164 = vmatpush3.msra.mxu1 %v9930_v1  ;;  %v3066_v1 = vld [vmem:[%s11993_s4 + $0x48] sm:$0xff] }
 0x34e   :  { %3202 = vmatmul.mubr.f32.gmra.mxu1 %v3059_v18  ;;  %7165 = vmatprep.subr.mxu1 %v3054_v35  ;;  %v3508_v35 = vld [vmem:[%s11994_s5 + $0xa8] sm:$0xf] }
 0x34f   :  { %7166 = vmatpush3.msra.mxu1 %v9928_v47  ;;  %6739 = vmatprep.mubr.msk.f32.mxu1 %vm3085_vm2, %v3062_v20  ;;  %v3063_v47 = vld [vmem:[%s11993_s4 + $0x30] sm:$0xff]  ;;  %v3500_v18 = vld [vmem:[%s11994_s5 + $0x68] sm:$0xff] }
 0x350   :  { %7167 = vmatprep.subr.mxu1 %v3053_v19  ;;  %v6777_v19 = vld [vmem:[%s11993_s4 + $0x1b0] sm:$0xff]  ;;  %6832 = vmatprep.subr.msk.mxu0 %vm3128_vm3, %v3508_v35  ;;  %v6813_v20 = vld [vmem:[%s11994_s5 + $0x148] sm:$0xff] }
 0x351   :  { %7168 = vmatpush3.msra.mxu1 %v9926_v30  ;;  %v3068_v30 = vld [vmem:[%s11993_s4 + $0x58] sm:$0xff] }
 0x352   :  { %3207 = vmatmul.mubr.f32.gmra.mxu1 %v3061_v31  ;;  %7169 = vmatprep.subr.mxu1 %v3052_v38  ;;  %v3507_v38 = vld [vmem:[%s11994_s5 + $0xa0] sm:$0xf] }
 0x353   :  { %7170 = vmatpush3.msra.mxu1 %v9924_v34  ;;  %6740 = vmatprep.mubr.msk.f32.mxu1 %vm3085_vm2, %v3064_v25  ;;  %v3065_v34 = vld [vmem:[%s11993_s4 + $0x40] sm:$0xff] }
 0x354   :  { %7171 = vmatprep.subr.mxu1 %v3051_v39  ;;  %6833 = vmatpush1.msk.msra.mxu0 %vm3128_vm3, %v3507_v38  ;;  %v3506_v39 = vld [vmem:[%s11994_s5 + $0x98] sm:$0xff]  ;;  %v3499_v31 = vld [vmem:[%s11994_s5 + $0x60] sm:$0xff] }
 0x355   :  { %7172 = vmatpush3.msra.mxu1 %v9922_v52  ;;  %v3070_v52 = vld [vmem:[%s11993_s4 + $0x68] sm:$0xff]  ;;  %3804 = vmatprep.subr.mxu0 %v3506_v39  ;;  %v6812_v25 = vld [vmem:[%s11994_s5 + $0x140] sm:$0xff] }
 0x356   :  { %3212 = vmatmul.mubr.f32.gmra.mxu1 %v3063_v47  ;;  %7173 = vmatprep.subr.mxu1 %v3050_v36  ;;  %v3505_v36 = vld [vmem:[%s11994_s5 + $0x90] sm:$0xff]  ;;  %v3498_v47 = vld [vmem:[%s11994_s5 + $0x58] sm:$0xff] }
 0x357   :  { %7174 = vmatpush3.msra.mxu1 %v9920_v58  ;;  %6741 = vmatprep.mubr.msk.f32.mxu1 %vm3085_vm2, %v3066_v1  ;;  %v3067_v58 = vld [vmem:[%s11993_s4 + $0x50] sm:$0xff]  ;;  %v6811_v1 = vld [vmem:[%s11994_s5 + $0x138] sm:$0xff] }
 0x358   :  { %7175 = vmatprep.subr.mxu1 %v3049_v8  ;;  %3805 = vmatpush1.msra.mxu0 %v3505_v36  ;;  %v3504_v8 = vld [vmem:[%s11994_s5 + $0x88] sm:$0xff] }
 0x359   :  { %7176 = vmatpush3.msra.mxu1 %v9918_v54  ;;  %v3072_v54 = vld [vmem:[%s11993_s4 + $0x78] sm:$0xff]  ;;  %3806 = vmatprep.subr.mxu0 %v3504_v8 }
 0x35a   :  { %3217 = vmatmul.mubr.f32.gmra.mxu1 %v3065_v34  ;;  %7177 = vmatprep.subr.mxu1 %v3048_v2  ;;  %v3503_v2 = vld [vmem:[%s11994_s5 + $0x80] sm:$0xff]  ;;  %v3497_v34 = vld [vmem:[%s11994_s5 + $0x50] sm:$0xff] }
 0x35b   :  { %7178 = vmatpush3.msra.mxu1 %v9912_v57  ;;  %6742 = vmatprep.mubr.msk.f32.mxu1 %vm3085_vm2, %v3068_v30  ;;  %v3069_v57 = vld [vmem:[%s11993_s4 + $0x60] sm:$0xff]  ;;  %v6810_v30 = vld [vmem:[%s11994_s5 + $0x130] sm:$0xff] }
 0x35c   :  { %7179 = vmatprep.subr.mxu1 %v3047_v13  ;;  %3807 = vmatpush1.msra.mxu0 %v3503_v2  ;;  %v3502_v13 = vld [vmem:[%s11994_s5 + $0x78] sm:$0xff] }
 0x35d   :  { %7180 = vmatpush3.msra.mxu1 %v9910_v56  ;;  %v3074_v56 = vld [vmem:[%s11993_s4 + $0x88] sm:$0xff]  ;;  %3808 = vmatprep.subr.mxu0 %v3502_v13 }
 0x35e   :  { %3222 = vmatmul.mubr.f32.gmra.mxu1 %v3067_v58  ;;  %7181 = vmatprep.subr.mxu1 %v3046_v5  ;;  %v6815_v5 = vld [vmem:[%s11994_s5 + $0x158] sm:$0xf]  ;;  %v3496_v58 = vld [vmem:[%s11994_s5 + $0x48] sm:$0xff] }
 0x35f   :  { %7182 = vmatpush3.msra.mxu1 %v9908_v40  ;;  %6743 = vmatprep.mubr.msk.f32.mxu1 %vm3085_vm2, %v3070_v52  ;;  %v3071_v40 = vld [vmem:[%s11993_s4 + $0x70] sm:$0xff]  ;;  %v6809_v52 = vld [vmem:[%s11994_s5 + $0x128] sm:$0xff] }
 0x360   :  { %7183 = vmatprep.subr.mxu1 %v9942_v49  ;;  %v3084_v49 = vld [vmem:[%s11993_s4 + $0xd8] sm:$0xff]  ;;  %3809 = vmatpush1.msra.mxu0 %v3501_v62 }
 0x361   :  { %7184 = vmatpush3.msra.mxu1 %v9906_v55  ;;  %v3076_v55 = vld [vmem:[%s11993_s4 + $0x98] sm:$0xff]  ;;  %3810 = vmatprep.subr.mxu0 %v3500_v18 }
 0x362   :  { %3227 = vmatmul.mubr.f32.gmra.mxu1 %v3069_v57  ;;  %7185 = vmatprep.subr.mxu1 %v9940_v17  ;;  %v3081_v17 = vld [vmem:[%s11993_s4 + $0xc0] sm:$0xff] }
 0x363   :  { %7186 = vmatpush3.msra.mxu1 %v9904_v6  ;;  %6744 = vmatprep.mubr.msk.f32.mxu1 %vm3085_vm2, %v3072_v54  ;;  %v3073_v6 = vld [vmem:[%s11993_s4 + $0x80] sm:$0xff] }
 0x364   :  { %7187 = vmatprep.subr.mxu1 %v9938_v46  ;;  %v3082_v46 = vld [vmem:[%s11993_s4 + $0xc8] sm:$0xff]  ;;  %3811 = vmatpush1.msra.mxu0 %v3499_v31  ;;  %v3495_v57 = vld [vmem:[%s11994_s5 + $0x40] sm:$0xff] }
 0x365   :  { %7188 = vmatpush3.msra.mxu1 %v9902_v33  ;;  %v3078_v33 = vld [vmem:[%s11993_s4 + $0xa8] sm:$0xff]  ;;  %3812 = vmatprep.subr.mxu0 %v3498_v47  ;;  %v6808_v54 = vld [vmem:[%s11994_s5 + $0x120] sm:$0xff] }
 0x366   :  { %3232 = vmatmul.mubr.f32.gmra.mxu1 %v3071_v40  ;;  %7189 = vmatprep.subr.mxu1 %v9936_v26  ;;  %v3079_v26 = vld [vmem:[%s11993_s4 + $0xb0] sm:$0xff]  ;;  %v3494_v40 = vld [vmem:[%s11994_s5 + $0x38] sm:$0xff] }
 0x367   :  { %7190 = vmatpush3.msra.mxu1 %v9900_v27  ;;  %6745 = vmatprep.mubr.msk.f32.mxu1 %vm3085_vm2, %v3074_v56  ;;  %v3075_v27 = vld [vmem:[%s11993_s4 + $0x90] sm:$0xff]  ;;  %v6807_v56 = vld [vmem:[%s11994_s5 + $0x118] sm:$0xff] }
 0x368   :  { %7191 = vmatprep.subr.mxu1 %v9934_v63  ;;  %v3077_v63 = vld [vmem:[%s11993_s4 + $0xa0] sm:$0xff]  ;;  %3813 = vmatpush1.msra.mxu0 %v3497_v34 }
 0x369   :  { %7192 = vmatpush3.msra.mxu1 %v9898_v32  ;;  %v3080_v32 = vld [vmem:[%s11993_s4 + $0xb8] sm:$0xff]  ;;  %3814 = vmatprep.subr.mxu0 %v3496_v58 }
 0x36a   :  { %3237 = vmatmul.mubr.f32.gmra.mxu1 %v3073_v6  ;;  %6816 = vmatprep.subr.msk.mxu1 %vm3128_vm3, %v6815_v5  ;;  %v3493_v6 = vld [vmem:[%s11994_s5 + $0x30] sm:$0xff] }
 0x36b   :  { %6746 = vmatprep.mubr.msk.f32.mxu1 %vm3085_vm2, %v3076_v55  ;;  %3815 = vmatpush1.msra.mxu0 %v3495_v57  ;;  %v6806_v55 = vld [vmem:[%s11994_s5 + $0x110] sm:$0xff] }
 0x36c   :  { %3816 = vmatprep.subr.mxu0 %v3494_v40  ;;  %v6904_v40 = vld [vmem:[%s11994_s5 + $0x2a0] sm:$0xff] }
 0x36d   :  { %3817 = vmatpush1.msra.mxu0 %v3493_v6  ;;  %v6903_v6 = vld [vmem:[%s11994_s5 + $0x298] sm:$0xff] }
 0x36e   :  { %3242 = vmatmul.mubr.f32.gmra.mxu1 %v3075_v27  ;;  %v3492_v27 = vld [vmem:[%s11994_s5 + $0x28] sm:$0xff] }
 0x36f   :  { %6747 = vmatprep.mubr.msk.f32.mxu1 %vm3085_vm2, %v3078_v33  ;;  %3818 = vmatprep.subr.mxu0 %v3492_v27  ;;  %v6805_v33 = vld [vmem:[%s11994_s5 + $0x108] sm:$0xff]  ;;  %v6902_v27 = vld [vmem:[%s11994_s5 + $0x290] sm:$0xff] }
 0x372   :  { %3247 = vmatmul.mubr.f32.gmra.mxu1 %v3077_v63  ;;  %v3491_v63 = vld [vmem:[%s11994_s5 + $0x20] sm:$0xff] }
 0x373   :  { %6748 = vmatprep.mubr.msk.f32.mxu1 %vm3085_vm2, %v3080_v32  ;;  %3819 = vmatpush1.msra.mxu0 %v3491_v63  ;;  %v6804_v32 = vld [vmem:[%s11994_s5 + $0x100] sm:$0xff]  ;;  %v6901_v63 = vld [vmem:[%s11994_s5 + $0x288] sm:$0xff] }
 0x376   :  { %3252 = vmatmul.mubr.f32.gmra.mxu1 %v3079_v26  ;;  %v3490_v26 = vld [vmem:[%s11994_s5 + $0x18] sm:$0xff] }
 0x377   :  { %6749 = vmatprep.mubr.msk.f32.mxu1 %vm3085_vm2, %v3082_v46  ;;  %3820 = vmatprep.subr.mxu0 %v3490_v26  ;;  %v6803_v46 = vld [vmem:[%s11994_s5 + $0xf8] sm:$0xff] }
 0x37a   :  { %3257 = vmatmul.mubr.f32.gmra.mxu1 %v3081_v17  ;;  %v3489_v17 = vld [vmem:[%s11994_s5 + $0x10] sm:$0xff] }
 0x37b   :  { %6750 = vmatprep.mubr.msk.f32.mxu1 %vm3085_vm2, %v3084_v49  ;;  %3821 = vmatpush1.msra.mxu0 %v3489_v17  ;;  %v6802_v49 = vld [vmem:[%s11994_s5 + $0xf0] sm:$0xff] }
 0x37e   :  { %3262 = vmatmul.mubr.f32.gmra.mxu1 %v3083_v60  ;;  %v3488_v60 = vld [vmem:[%s11994_s5 + $0x8] sm:$0xff] }
 0x37f   :  { %6780 = vmatprep.mubr.msk.f32.mxu1 %vm3085_vm2, %v6752_v21  ;;  %3822 = vmatprep.subr.mxu0 %v3488_v60  ;;  %v6801_v21 = vld [vmem:[%s11994_s5 + $0xe8] sm:$0xff] }
 0x382   :  { %3403 = vmatmul.mubr.f32.vlgmr.msra.gmra.mxu1 %v6751_v16  ;;  %v3487_v16 = vld [vmem:[%s11994_s5] sm:$0xff] }
 0x383   :  { %6781 = vmatprep.mubr.msk.f32.mxu1 %vm3085_vm2, %v6754_v14  ;;  %6817 = vmatpush1.msk.msra.mxu1 %vm3128_vm3, %v6814_v42  ;;  %v6800_v14 = vld [vmem:[%s11994_s5 + $0xe0] sm:$0xff] }
 0x384   :  { %3621 = vmatprep.subr.mxu1 %v6813_v20  ;;  %3823 = vmatpush1.msra.mxu0 %v3487_v16 }
 0x385   :  { %3622 = vmatpush1.msra.mxu1 %v6812_v25 }
 0x386   :  { %3408 = vmatmul.mubr.f32.gmra.mxu1 %v6753_v3  ;;  %3623 = vmatprep.subr.mxu1 %v6811_v1  ;;  %v6799_v3 = vld [vmem:[%s11994_s5 + $0xd8] sm:$0xff] }
 0x387   :  { %6782 = vmatprep.mubr.msk.f32.mxu1 %vm3085_vm2, %v6756_v51  ;;  %3624 = vmatpush1.msra.mxu1 %v6810_v30  ;;  %v6798_v51 = vld [vmem:[%s11994_s5 + $0xd0] sm:$0xff] }
 0x388   :  { %3625 = vmatprep.subr.mxu1 %v6809_v52  ;;  %v6906_v30 = vld [vmem:[%s11994_s5 + $0x2b0] sm:$0xf]  ;;  %v6905_v52 = vld [vmem:[%s11994_s5 + $0x2a8] sm:$0xff] }
 0x389   :  { %3626 = vmatpush1.msra.mxu1 %v6808_v54 }
 0x38a   :  { %3413 = vmatmul.mubr.f32.gmra.mxu1 %v6755_v4  ;;  %3627 = vmatprep.subr.mxu1 %v6807_v56  ;;  %v6797_v4 = vld [vmem:[%s11994_s5 + $0xc8] sm:$0xff] }
 0x38b   :  { %6783 = vmatprep.mubr.msk.f32.mxu1 %vm3085_vm2, %v6758_v7  ;;  %3628 = vmatpush1.msra.mxu1 %v6806_v55  ;;  %v6796_v7 = vld [vmem:[%s11994_s5 + $0xc0] sm:$0xff] }
 0x38c   :  { %3629 = vmatprep.subr.mxu1 %v6805_v33 }
 0x38d   :  { %3630 = vmatpush1.msra.mxu1 %v6804_v32 }
 0x38e   :  { %3418 = vmatmul.mubr.f32.gmra.mxu1 %v6757_v37  ;;  %3631 = vmatprep.subr.mxu1 %v6803_v46  ;;  %v6795_v37 = vld [vmem:[%s11994_s5 + $0xb8] sm:$0xff] }
 0x38f   :  { %6784 = vmatprep.mubr.msk.f32.mxu1 %vm3085_vm2, %v6760_v12  ;;  %3632 = vmatpush1.msra.mxu1 %v6802_v49  ;;  %v6794_v12 = vld [vmem:[%s11994_s5 + $0xb0] sm:$0xff]  ;;  %v6900_v49 = vld [vmem:[%s11994_s5 + $0x280] sm:$0xff] }
 0x390   :  { %3633 = vmatprep.subr.mxu1 %v6801_v21 }
 0x391   :  { %3634 = vmatpush1.msra.mxu1 %v6800_v14 }
 0x392   :  { %3423 = vmatmul.mubr.f32.gmra.mxu1 %v6759_v53  ;;  %3635 = vmatprep.subr.mxu1 %v6799_v3  ;;  %v6907_v53 = vld [vmem:[%s11994_s5 + $0x2b8] sm:$0xf] }
 0x393   :  { %6785 = vmatprep.mubr.msk.f32.mxu1 %vm3085_vm2, %v6762_v59  ;;  %3636 = vmatpush1.msra.mxu1 %v6798_v51  ;;  %v6869_v59 = vld [vmem:[%s11994_s5 + $0x208] sm:$0xf]  ;;  %v6868_v51 = vld [vmem:[%s11994_s5 + $0x200] sm:$0xf] }
 0x394   :  { %3637 = vmatprep.subr.mxu1 %v6797_v4  ;;  %6908 = vmatprep.subr.msk.mxu0 %vm3128_vm3, %v6907_v53 }
 0x395   :  { %3638 = vmatpush1.msra.mxu1 %v6796_v7  ;;  %v6899_v7 = vld [vmem:[%s11994_s5 + $0x278] sm:$0xff] }
 0x396   :  { %3428 = vmatmul.mubr.f32.gmra.mxu1 %v6761_v23  ;;  %3639 = vmatprep.subr.mxu1 %v6795_v37  ;;  %v6867_v37 = vld [vmem:[%s11994_s5 + $0x1f8] sm:$0xff] }
 0x397   :  { %6786 = vmatprep.mubr.msk.f32.mxu1 %vm3085_vm2, %v6764_v11  ;;  %3640 = vmatpush1.msra.mxu1 %v6794_v12 }
 0x398   :  { %6870 = vmatprep.subr.msk.mxu1 %vm3128_vm3, %v6869_v59 }
 0x39a   :  { %3433 = vmatmul.mubr.f32.gmra.mxu1 %v6763_v0 }
 0x39b   :  { %6787 = vmatprep.mubr.msk.f32.mxu1 %vm3085_vm2, %v6766_v9 }
 0x39e   :  { %3438 = vmatmul.mubr.f32.gmra.mxu1 %v6765_v43 }
 0x39f   :  { %6788 = vmatprep.mubr.msk.f32.mxu1 %vm3085_vm2, %v6768_v44 }
 0x3a2   :  { %3443 = vmatmul.mubr.f32.gmra.mxu1 %v6767_v48 }
 0x3a3   :  { %6789 = vmatprep.mubr.msk.f32.mxu1 %vm3085_vm2, %v6770_v41 }
 0x3a6   :  { %3448 = vmatmul.mubr.f32.gmra.mxu1 %v6769_v61 }
 0x3a7   :  { %6790 = vmatprep.mubr.msk.f32.mxu1 %vm3085_vm2, %v6772_v15 }
 0x3aa   :  { %3453 = vmatmul.mubr.f32.gmra.mxu1 %v6771_v29 }
 0x3ab   :  { %6791 = vmatprep.mubr.msk.f32.mxu1 %vm3085_vm2, %v6774_v22 }
 0x3ae   :  { %3458 = vmatmul.mubr.f32.gmra.mxu1 %v6773_v28 }
 0x3af   :  { %6792 = vmatprep.mubr.msk.f32.mxu1 %vm3085_vm2, %v6776_v24 }
 0x3b2   :  { %3463 = vmatmul.mubr.f32.gmra.mxu1 %v6775_v10 }
 0x3b3   :  { %6793 = vmatprep.mubr.msk.f32.mxu1 %vm3085_vm2, %v6778_v45 }
 0x3b6   :  { %3468 = vmatmul.mubr.f32.gmra.mxu1 %v6777_v19 }
 0x3b7   :  { %3673 = vmatprep.mubr.f32.mxu1 %v12207_v50 }
 0x40a   :  { %v7119_v23 = vpop.f32.mrf.mxu1 }
 0x40c   :  { %v7120_v11 = vpop.f32.mrf.mxu1 }
 0x40d   :  { %v7121_v25 = vadd.f32 %v7120_v11, %v7119_v23  ;;  %v6898_v11 = vld [vmem:[%s11994_s5 + $0x270] sm:$0xff] }
 0x40e   :  { %v7122_v0 = vpop.f32.mrf.mxu1 }
 0x410   :  { %v7123_v9 = vpop.f32.mrf.mxu1 }
 0x411   :  { %v7124_v57 = vadd.f32 %v7123_v9, %v7122_v0 }
 0x412   :  { %v7125_v43 = vpop.f32.mrf.mxu1 }
 0x414   :  { %v7126_v44 = vpop.f32.mrf.mxu1 }
 0x415   :  { %v7127_v32 = vadd.f32 %v7126_v44, %v7125_v43 }
 0x416   :  { %v10337_v48 = vpop.f32.mrf.mxu1 }
 0x418   :  { %v10339_v41 = vpop.f32.mrf.mxu1 }
 0x419   :  { %v7130_v53 = vadd.f32 %v10339_v41, %v10337_v48  ;;  %v6866_v48 = vld [vmem:[%s11994_s5 + $0x1f0] sm:$0xff] }
 0x41a   :  { %v10341_v61 = vpop.f32.mrf.mxu1 }
 0x41c   :  { %v10343_v15 = vpop.f32.mrf.mxu1 }
 0x41e   :  { %v10345_v29 = vpop.f32.mrf.mxu1 }
 0x420   :  { %v10347_v22 = vpop.f32.mrf.mxu1 }
 0x422   :  { %v10349_v28 = vpop.f32.mrf.mxu1 }
 0x424   :  { %v10351_v24 = vpop.f32.mrf.mxu1 }
 0x426   :  { %v10353_v10 = vpop.f32.mrf.mxu1 }
 0x428   :  { %v10355_v45 = vpop.f32.mrf.mxu1 }
 0x42a   :  { %v10357_v35 = vpop.f32.mrf.mxu1 }
 0x42c   :  { %v10359_v19 = vpop.f32.mrf.mxu1 }
 0x42e   :  { %v10361_v38 = vpop.f32.mrf.mxu1 }
 0x430   :  { %v10363_v39 = vpop.f32.mrf.mxu1 }
 0x432   :  { %v10365_v36 = vpop.f32.mrf.mxu1 }
 0x434   :  { %v10367_v8 = vpop.f32.mrf.mxu1 }
 0x436   :  { %v10369_v2 = vpop.f32.mrf.mxu1 }
 0x438   :  { %v10371_v13 = vpop.f32.mrf.mxu1 }
 0x43a   :  { %v10373_v5 = vpop.f32.mrf.mxu1 }
 0x43c   :  { %v10375_v62 = vpop.f32.mrf.mxu1 }
 0x43e   :  { %v10377_v42 = vpop.f32.mrf.mxu1 }
 0x440   :  { %v10379_v18 = vpop.f32.mrf.mxu1 }
 0x442   :  { %v7193_v20 = vpop.f32.mrf.mxu1 }
 0x444   :  { %v7194_v31 = vpop.f32.mrf.mxu1 }
 0x445   :  { %v7195_v47 = vadd.f32 %v7194_v31, %v7193_v20  ;;  %v6897_v20 = vld [vmem:[%s11994_s5 + $0x268] sm:$0xff] }
 0x446   :  { %v7196_v1 = vpop.f32.mrf.mxu1  ;;  %v6865_v31 = vld [vmem:[%s11994_s5 + $0x1e8] sm:$0xff] }
 0x447   :  { %v10381_v34 = vmax.f32 %v7121_v25, %v7195_v47  ;;  %v7133_v47 = vadd.f32 %v10343_v15, %v10341_v61  ;;  %v6864_v15 = vld [vmem:[%s11994_s5 + $0x1e0] sm:$0xff] }
 0x448   :  { %v7197_v58 = vpop.f32.mrf.mxu1 }
 0x449   :  { %v7198_v54 = vadd.f32 %v7197_v58, %v7196_v1  ;;  %6834 = vmatmul.mubr.msk.f32.vlgmr.msra.gmra.mxu0 %vm3574_vm4, %v10381_v34  ;;  %v3547_v46 = vrot.slane %v10381_v34, 1  ;;  %v4488_v21 = vrot.slane %v10381_v34, 4  ;;  %v6896_v58 = vld [vmem:[%s11994_s5 + $0x260] sm:$0xff] }
 0x44a   :  { %v7199_v56 = vpop.f32.mrf.mxu1  ;;  %3862 = vmatprep.mubr.f32.mxu0 %v12207_v50  ;;  %6909 = vmatpush1.msk.msra.mxu0 %vm3128_vm3, %v6906_v30 }
 0x44b   :  { %v10399_v55 = vmax.f32 %v7124_v57, %v7198_v54  ;;  %4300 = vmatprep.subr.mxu0 %v6905_v52 }
 0x44c   :  { %v7200_v33 = vpop.f32.mrf.mxu1  ;;  %4301 = vmatpush1.msra.mxu0 %v6904_v40 }
 0x44d   :  { %v7201_v26 = vadd.f32 %v7200_v33, %v7199_v56  ;;  %6835 = vmatmul.mubr.msk.f32.gmra.mxu0 %vm3574_vm4, %v10399_v55  ;;  %v3548_v17 = vrot.slane %v10399_v55, 1  ;;  %4302 = vmatprep.subr.mxu0 %v6903_v6  ;;  %v4489_v16 = vrot.slane %v10399_v55, 4  ;;  %v6895_v56 = vld [vmem:[%s11994_s5 + $0x258] sm:$0xff]  ;;  %v7136_v33 = vadd.f32 %v10347_v22, %v10345_v29  ;;  %v6862_v22 = vld [vmem:[%s11994_s5 + $0x1d0] sm:$0xff] }
 0x44e   :  { %v7202_v60 = vpop.f32.mrf.mxu1  ;;  %3868 = vmatprep.mubr.f32.mxu0 %v12207_v50  ;;  %4303 = vmatpush1.msra.mxu0 %v6902_v27  ;;  %v6863_v6 = vld [vmem:[%s11994_s5 + $0x1d8] sm:$0xff] }
 0x44f   :  { %v10417_v14 = vmax.f32 %v7127_v32, %v7201_v26  ;;  %v3549_v3 = vsel %vm3546_vm5, %v3547_v46, %v3548_v17  ;;  %4304 = vmatprep.subr.mxu0 %v6901_v63  ;;  %v10431_v12 = vsel %vm3128_vm3, %v4488_v21, %v4489_v16  ;;  %v6894_v26 = vld [vmem:[%s11994_s5 + $0x250] sm:$0xff]  ;;  %v6893_v21 = vld [vmem:[%s11994_s5 + $0x248] sm:$0xff] }
 0x450   :  { %v7203_v4 = vpop.f32.mrf.mxu1  ;;  %6818 = vmatmul.mubr.msk.f32.vlgmr.msra.gmra.mxu1 %vm3574_vm4, %v3549_v3  ;;  %4305 = vmatpush1.msra.mxu0 %v6900_v49 }
 0x451   :  { %v7204_v59 = vadd.f32 %v7203_v4, %v7202_v60  ;;  %6836 = vmatmul.mubr.msk.f32.gmra.mxu0 %vm3574_vm4, %v10417_v14  ;;  %3679 = vmatprep.mubr.f32.mxu1 %v12207_v50  ;;  %v3550_v23 = vrot.slane %v10417_v14, 1  ;;  %v4491_v9 = vrot.slane %v10417_v14, 4 }
 0x452   :  { %v7205_v0 = vpop.f32.mrf.mxu1  ;;  %3874 = vmatprep.mubr.f32.mxu0 %v12207_v50  ;;  %6871 = vmatpush1.msk.msra.mxu1 %vm3128_vm3, %v6868_v51  ;;  %v7139_v51 = vadd.f32 %v10351_v24, %v10349_v28  ;;  %v6860_v24 = vld [vmem:[%s11994_s5 + $0x1c0] sm:$0xff] }
 0x453   :  { %v10445_v43 = vmax.f32 %v7130_v53, %v7204_v59  ;;  %v3551_v44 = vsel %vm3546_vm5, %v3548_v17, %v3550_v23  ;;  %4306 = vmatprep.subr.mxu0 %v6899_v7  ;;  %4038 = vmatprep.subr.mxu1 %v6867_v37  ;;  %v10459_v25 = vsel %vm3128_vm3, %v4489_v16, %v4491_v9  ;;  %v6861_v16 = vld [vmem:[%s11994_s5 + $0x1c8] sm:$0xff]  ;;  %v6892_v37 = vld [vmem:[%s11994_s5 + $0x240] sm:$0xff] }
 0x454   :  { %v7206_v41 = vpop.f32.mrf.mxu1  ;;  %6819 = vmatmul.mubr.msk.f32.gmra.mxu1 %vm3574_vm4, %v3551_v44  ;;  %4307 = vmatpush1.msra.mxu0 %v6898_v11 }
 0x455   :  { %v7207_v1 = vadd.f32 %v7206_v41, %v7205_v0  ;;  %6837 = vmatmul.mubr.msk.f32.gmra.mxu0 %vm3574_vm4, %v10445_v43  ;;  %3685 = vmatprep.mubr.f32.mxu1 %v12207_v50  ;;  %v3552_v30 = vrot.slane %v10445_v43, 1  ;;  %v4493_v57 = vrot.slane %v10445_v43, 4  ;;  %v6891_v0 = vld [vmem:[%s11994_s5 + $0x238] sm:$0xff] }
 0x456   :  { %v7208_v52 = vpop.f32.mrf.mxu1  ;;  %3880 = vmatprep.mubr.f32.mxu0 %v12207_v50  ;;  %4039 = vmatpush1.msra.mxu1 %v6866_v48  ;;  %v7142_v48 = vadd.f32 %v10355_v45, %v10353_v10  ;;  %v6858_v45 = vld [vmem:[%s11994_s5 + $0x1b0] sm:$0xff] }
 0x457   :  { %v10472_v54 = vmax.f32 %v7133_v47, %v7207_v1  ;;  %v3553_v61 = vsel %vm3546_vm5, %v3550_v23, %v3552_v30  ;;  %4308 = vmatprep.subr.mxu0 %v6897_v20  ;;  %4040 = vmatprep.subr.mxu1 %v6865_v31  ;;  %v10486_v27 = vsel %vm3128_vm3, %v4491_v9, %v4493_v57  ;;  %v6859_v9 = vld [vmem:[%s11994_s5 + $0x1b8] sm:$0xff]  ;;  %v6890_v31 = vld [vmem:[%s11994_s5 + $0x230] sm:$0xff] }
 0x458   :  { %v7209_v40 = vpop.f32.mrf.mxu1  ;;  %6820 = vmatmul.mubr.msk.f32.gmra.mxu1 %vm3574_vm4, %v3553_v61  ;;  %4309 = vmatpush1.msra.mxu0 %v6896_v58 }
 0x459   :  { %v7210_v63 = vadd.f32 %v7209_v40, %v7208_v52  ;;  %6838 = vmatmul.mubr.msk.f32.gmra.mxu0 %vm3574_vm4, %v10472_v54  ;;  %3691 = vmatprep.mubr.f32.mxu1 %v12207_v50  ;;  %v3554_v32 = vrot.slane %v10472_v54, 1  ;;  %v4495_v17 = vrot.slane %v10472_v54, 4  ;;  %v6889_v52 = vld [vmem:[%s11994_s5 + $0x228] sm:$0xff] }
 0x45a   :  { %v7211_v46 = vpop.f32.mrf.mxu1  ;;  %3886 = vmatprep.mubr.f32.mxu0 %v12207_v50  ;;  %4041 = vmatpush1.msra.mxu1 %v6864_v15  ;;  %v7145_v15 = vadd.f32 %v10359_v19, %v10357_v35  ;;  %v6856_v19 = vld [vmem:[%s11994_s5 + $0x1a0] sm:$0xff] }
 0x45b   :  { %v10499_v49 = vmax.f32 %v7136_v33, %v7210_v63  ;;  %v3555_v29 = vsel %vm3546_vm5, %v3552_v30, %v3554_v32  ;;  %4310 = vmatprep.subr.mxu0 %v6895_v56  ;;  %4042 = vmatprep.subr.mxu1 %v6863_v6  ;;  %v10513_v3 = vsel %vm3128_vm3, %v4493_v57, %v4495_v17  ;;  %v6857_v57 = vld [vmem:[%s11994_s5 + $0x1a8] sm:$0xff]  ;;  %v6888_v6 = vld [vmem:[%s11994_s5 + $0x220] sm:$0xff] }
 0x45c   :  { %v7212_v60 = vpop.f32.mrf.mxu1  ;;  %6821 = vmatmul.mubr.msk.f32.gmra.mxu1 %vm3574_vm4, %v3555_v29  ;;  %4311 = vmatpush1.msra.mxu0 %v6894_v26 }
 0x45d   :  { %v7213_v4 = vadd.f32 %v7212_v60, %v7211_v46  ;;  %6839 = vmatmul.mubr.msk.f32.gmra.mxu0 %vm3574_vm4, %v10499_v49  ;;  %3697 = vmatprep.mubr.f32.mxu1 %v12207_v50  ;;  %v3556_v7 = vrot.slane %v10499_v49, 1  ;;  %v4497_v59 = vrot.slane %v10499_v49, 4  ;;  %v6887_v46 = vld [vmem:[%s11994_s5 + $0x218] sm:$0xff] }
 0x45e   :  { %v7214_v53 = vpop.f32.mrf.mxu1  ;;  %3892 = vmatprep.mubr.f32.mxu0 %v12207_v50  ;;  %4043 = vmatpush1.msra.mxu1 %v6862_v22  ;;  %v7148_v22 = vadd.f32 %v10363_v39, %v10361_v38  ;;  %v6854_v39 = vld [vmem:[%s11994_s5 + $0x190] sm:$0xff] }
 0x45f   :  { %v10526_v23 = vmax.f32 %v7139_v51, %v7213_v4  ;;  %v3557_v28 = vsel %vm3546_vm5, %v3554_v32, %v3556_v7  ;;  %4312 = vmatprep.subr.mxu0 %v6893_v21  ;;  %4044 = vmatprep.subr.mxu1 %v6861_v16  ;;  %v10540_v44 = vsel %vm3128_vm3, %v4495_v17, %v4497_v59  ;;  %v6855_v17 = vld [vmem:[%s11994_s5 + $0x198] sm:$0xff]  ;;  %v6886_v16 = vld [vmem:[%s11994_s5 + $0x210] sm:$0xff] }
 0x460   :  { %v7215_v11 = vpop.f32.mrf.mxu1  ;;  %6822 = vmatmul.mubr.msk.f32.gmra.mxu1 %vm3574_vm4, %v3557_v28  ;;  %4313 = vmatpush1.msra.mxu0 %v6892_v37  ;;  %v7151_v28 = vadd.f32 %v10367_v8, %v10365_v36  ;;  %v6852_v36 = vld [vmem:[%s11994_s5 + $0x180] sm:$0xff] }
 0x461   :  { %v7216_v41 = vadd.f32 %v7215_v11, %v7214_v53  ;;  %6840 = vmatmul.mubr.msk.f32.gmra.mxu0 %vm3574_vm4, %v10526_v23  ;;  %3703 = vmatprep.mubr.f32.mxu1 %v12207_v50  ;;  %v3558_v20 = vrot.slane %v10526_v23, 1  ;;  %v4499_v1 = vrot.slane %v10526_v23, 4  ;;  %v6853_v53 = vld [vmem:[%s11994_s5 + $0x188] sm:$0xff] }
 0x462   :  { %v7217_v47 = vpop.f32.mrf.mxu1  ;;  %3898 = vmatprep.mubr.f32.mxu0 %v12207_v50  ;;  %4045 = vmatpush1.msra.mxu1 %v6860_v24 }
 0x463   :  { %v10553_v30 = vmax.f32 %v7142_v48, %v7216_v41  ;;  %v3559_v10 = vsel %vm3546_vm5, %v3556_v7, %v3558_v20  ;;  %4314 = vmatprep.subr.mxu0 %v6891_v0  ;;  %4046 = vmatprep.subr.mxu1 %v6859_v9  ;;  %v10567_v61 = vsel %vm3128_vm3, %v4497_v59, %v4499_v1 }
 0x464   :  { %v7218_v58 = vpop.f32.mrf.mxu1  ;;  %6823 = vmatmul.mubr.msk.f32.gmra.mxu1 %vm3574_vm4, %v3559_v10  ;;  %4315 = vmatpush1.msra.mxu0 %v6890_v31 }
 0x465   :  { %v7219_v40 = vadd.f32 %v7218_v58, %v7217_v47  ;;  %6841 = vmatmul.mubr.msk.f32.gmra.mxu0 %vm3574_vm4, %v10553_v30  ;;  %3709 = vmatprep.mubr.f32.mxu1 %v12207_v50  ;;  %v3560_v56 = vrot.slane %v10553_v30, 1  ;;  %v4501_v63 = vrot.slane %v10553_v30, 4  ;;  %v7154_v47 = vadd.f32 %v10371_v13, %v10369_v2  ;;  %v6850_v2 = vld [vmem:[%s11994_s5 + $0x170] sm:$0xff] }
 0x466   :  { %v7220_v33 = vpop.f32.mrf.mxu1  ;;  %3904 = vmatprep.mubr.f32.mxu0 %v12207_v50  ;;  %4047 = vmatpush1.msra.mxu1 %v6858_v45 }
 0x467   :  { %v10580_v32 = vmax.f32 %v7145_v15, %v7219_v40  ;;  %v3561_v35 = vsel %vm3546_vm5, %v3558_v20, %v3560_v56  ;;  %4316 = vmatprep.subr.mxu0 %v6889_v52  ;;  %4048 = vmatprep.subr.mxu1 %v6857_v57  ;;  %v10594_v29 = vsel %vm3128_vm3, %v4499_v1, %v4501_v63  ;;  %v6851_v20 = vld [vmem:[%s11994_s5 + $0x178] sm:$0xff]  ;;  %v6849_v15 = vld [vmem:[%s11994_s5 + $0x168] sm:$0xff] }
 0x468   :  { %v7221_v26 = vpop.f32.mrf.mxu1  ;;  %6824 = vmatmul.mubr.msk.f32.gmra.mxu1 %vm3574_vm4, %v3561_v35  ;;  %4317 = vmatpush1.msra.mxu0 %v6888_v6 }
 0x469   :  { %v7222_v60 = vadd.f32 %v7221_v26, %v7220_v33  ;;  %6842 = vmatmul.mubr.msk.f32.gmra.mxu0 %vm3574_vm4, %v10580_v32  ;;  %3715 = vmatprep.mubr.f32.mxu1 %v12207_v50  ;;  %v3562_v21 = vrot.slane %v10580_v32, 1  ;;  %v4503_v4 = vrot.slane %v10580_v32, 4 }
 0x46a   :  { %v7223_v51 = vpop.f32.mrf.mxu1  ;;  %3910 = vmatprep.mubr.f32.mxu0 %v12207_v50  ;;  %4049 = vmatpush1.msra.mxu1 %v6856_v19 }
 0x46b   :  { %v10607_v7 = vmax.f32 %v7148_v22, %v7222_v60  ;;  %v3563_v38 = vsel %vm3546_vm5, %v3560_v56, %v3562_v21  ;;  %4318 = vmatprep.subr.mxu0 %v6887_v46  ;;  %4050 = vmatprep.subr.mxu1 %v6855_v17  ;;  %v10618_v59 = vsel %vm3128_vm3, %v4501_v63, %v4503_v4  ;;  %v6945_v46 = vld [vmem:[%s11994_s5 + $0x368] sm:$0xf] }
 0x46c   :  { %v7224_v37 = vpop.f32.mrf.mxu1  ;;  %6825 = vmatmul.mubr.msk.f32.gmra.mxu1 %vm3574_vm4, %v3563_v38  ;;  %4319 = vmatpush1.msra.mxu0 %v6886_v16  ;;  %v7157_v56 = vadd.f32 %v10375_v62, %v10373_v5  ;;  %v6848_v5 = vld [vmem:[%s11994_s5 + $0x160] sm:$0xff]  ;;  %v7160_v22 = vadd.f32 %v10379_v18, %v10377_v42  ;;  %v4228_v42 = vrot.slane %v10399_v55, 3 }
 0x46d   :  { %v7225_v24 = vadd.f32 %v7224_v37, %v7223_v51  ;;  %6843 = vmatmul.mubr.msk.f32.gmra.mxu0 %vm3574_vm4, %v10607_v7  ;;  %3721 = vmatprep.mubr.f32.mxu1 %v12207_v50  ;;  %v3564_v11 = vrot.slane %v10607_v7, 1  ;;  %v4505_v9 = vrot.slane %v10607_v7, 4  ;;  %v4227_v37 = vrot.slane %v10381_v34, 3 }
 0x46e   :  { %v7226_v0 = vpop.f32.mrf.mxu1  ;;  %3916 = vmatprep.mubr.f32.mxu0 %v12207_v50  ;;  %4051 = vmatpush1.msra.mxu1 %v6854_v39 }
 0x46f   :  { %v10628_v48 = vmax.f32 %v7151_v28, %v7225_v24  ;;  %v3565_v41 = vsel %vm3546_vm5, %v3562_v21, %v3564_v11  ;;  %4052 = vmatprep.subr.mxu1 %v6853_v53  ;;  %v10639_v31 = vsel %vm3128_vm3, %v4503_v4, %v4505_v9  ;;  %4857 = vmatprep.subr.mxu0 %v12207_v50 }
 0x470   :  { %v7227_v8 = vpop.f32.mrf.mxu1  ;;  %6826 = vmatmul.mubr.msk.f32.gmra.mxu1 %vm3574_vm4, %v3565_v41  ;;  %v4229_v24 = vsel %vm4226_vm6, %v4227_v37, %v4228_v42  ;;  %v4232_v41 = vrot.slane %v10445_v43, 3  ;;  %v4244_v37 = vrot.slane %v10607_v7, 3 }
 0x471   :  { %v7228_v1 = vadd.f32 %v7227_v8, %v7226_v0  ;;  %6844 = vmatmul.mubr.msk.f32.gmra.mxu0 %vm3574_vm4, %v10628_v48  ;;  %3727 = vmatprep.mubr.f32.mxu1 %v12207_v50  ;;  %v3566_v10 = vrot.slane %v10628_v48, 1  ;;  %v4507_v58 = vrot.slane %v10628_v48, 4  ;;  %v3966_v0 = vrot.slane %v10399_v55, 2  ;;  %v6944_v55 = vld [vmem:[%s11994_s5 + $0x360] sm:$0xf] }
 0x472   :  { %v7229_v45 = vpop.f32.mrf.mxu1  ;;  %3922 = vmatprep.mubr.f32.mxu0 %v12207_v50  ;;  %4053 = vmatpush1.msra.mxu1 %v6852_v36  ;;  %v3965_v36 = vrot.slane %v10381_v34, 2  ;;  %v6943_v34 = vld [vmem:[%s11994_s5 + $0x358] sm:$0xff] }
 0x473   :  { %v10650_v52 = vmax.f32 %v7154_v47, %v7228_v1  ;;  %v3567_v57 = vsel %vm3546_vm5, %v3564_v11, %v3566_v10  ;;  %4054 = vmatprep.subr.mxu1 %v6851_v20  ;;  %v10661_v40 = vsel %vm3128_vm3, %v4505_v9, %v4507_v58  ;;  %v4230_v11 = vrot.slane %v10417_v14, 3 }
 0x474   :  { %v7230_v13 = vpop.f32.mrf.mxu1  ;;  %6827 = vmatmul.mubr.msk.f32.gmra.mxu1 %vm3574_vm4, %v3567_v57  ;;  %v3967_v8 = vsel %vm3964_vm7, %v3965_v36, %v3966_v0  ;;  %v3968_v20 = vrot.slane %v10417_v14, 2  ;;  %v4234_v1 = vrot.slane %v10472_v54, 3  ;;  %v4236_v57 = vrot.slane %v10499_v49, 3 }
 0x475   :  { %v7231_v6 = vadd.f32 %v7230_v13, %v7229_v45  ;;  %6845 = vmatmul.mubr.msk.f32.gmra.mxu0 %vm3574_vm4, %v10650_v52  ;;  %3733 = vmatprep.mubr.f32.mxu1 %v12207_v50  ;;  %v3568_v33 = vrot.slane %v10650_v52, 1  ;;  %v4509_v35 = vrot.slane %v10650_v52, 4  ;;  %v4231_v9 = vsel %vm4226_vm6, %v4228_v42, %v4230_v11  ;;  %v6942_v45 = vld [vmem:[%s11994_s5 + $0x350] sm:$0xff] }
 0x476   :  { %v7232_v63 = vpop.f32.mrf.mxu1  ;;  %3928 = vmatprep.mubr.f32.mxu0 %v12207_v50  ;;  %4055 = vmatpush1.msra.mxu1 %v6850_v2  ;;  %v4233_v47 = vsel %vm4226_vm6, %v4230_v11, %v4232_v41  ;;  %v3969_v14 = vsel %vm3964_vm7, %v3966_v0, %v3968_v20  ;;  %v6941_v2 = vld [vmem:[%s11994_s5 + $0x348] sm:$0xff]  ;;  %v3972_v13 = vrot.slane %v10472_v54, 2  ;;  %v6934_v42 = vld [vmem:[%s11994_s5 + $0x310] sm:$0xff]  ;;  %v6932_v11 = vld [vmem:[%s11994_s5 + $0x300] sm:$0xff]  ;;  %v3982_v36 = vrot.slane %v10607_v7, 2 }
 0x477   :  { %v10671_v19 = vmax.f32 %v7157_v56, %v7231_v6  ;;  %v3569_v26 = vsel %vm3546_vm5, %v3566_v10, %v3568_v33  ;;  %4056 = vmatprep.subr.mxu1 %v6849_v15  ;;  %v10682_v17 = vsel %vm3128_vm3, %v4507_v58, %v4509_v35  ;;  %v3970_v10 = vrot.slane %v10445_v43, 2  ;;  %v6940_v15 = vld [vmem:[%s11994_s5 + $0x340] sm:$0xff] }
 0x478   :  { %v7233_v62 = vpop.f32.mrf.mxu1  ;;  %6828 = vmatmul.mubr.msk.f32.gmra.mxu1 %vm3574_vm4, %v3569_v26  ;;  %v4235_v58 = vsel %vm4226_vm6, %v4232_v41, %v4234_v1  ;;  %v4237_v56 = vsel %vm4226_vm6, %v4234_v1, %v4236_v57  ;;  %v4238_v6 = vrot.slane %v10526_v23, 3  ;;  %v6931_v41 = vld [vmem:[%s11994_s5 + $0x2f8] sm:$0xff]  ;;  %v3984_v1 = vrot.slane %v10628_v48, 2 }
 0x479   :  { %v7234_v60 = vadd.f32 %v7233_v62, %v7232_v63  ;;  %6846 = vmatmul.mubr.msk.f32.gmra.mxu0 %vm3574_vm4, %v10671_v19  ;;  %3739 = vmatprep.mubr.f32.mxu1 %v12207_v50  ;;  %v3570_v21 = vrot.slane %v10671_v19, 1  ;;  %v4511_v16 = vrot.slane %v10671_v19, 4  ;;  %v3971_v43 = vsel %vm3964_vm7, %v3968_v20, %v3970_v10  ;;  %v6937_v62 = vld [vmem:[%s11994_s5 + $0x328] sm:$0xff] }
 0x47a   :  { %3934 = vmatprep.mubr.f32.mxu0 %v12207_v50  ;;  %4057 = vmatpush1.msra.mxu1 %v6848_v5  ;;  %v3973_v54 = vsel %vm3964_vm7, %v3970_v10, %v3972_v13  ;;  %v3974_v63 = vrot.slane %v10499_v49, 2  ;;  %v4239_v26 = vsel %vm4226_vm6, %v4236_v57, %v4238_v6  ;;  %v4240_v5 = vrot.slane %v10553_v30, 3  ;;  %v6926_v57 = vld [vmem:[%s11994_s5 + $0x2d0] sm:$0xff] }
 0x47b   :  { %v10692_v51 = vmax.f32 %v7160_v22, %v7234_v60  ;;  %v3571_v4 = vsel %vm3546_vm5, %v3568_v33, %v3570_v21  ;;  %6946 = vmatprep.subr.msk.mxu1 %vm3128_vm3, %v6945_v46  ;;  %v10699_v18 = vsel %vm3128_vm3, %v4509_v35, %v4511_v16  ;;  %v6939_v33 = vld [vmem:[%s11994_s5 + $0x338] sm:$0xff]  ;;  %v6938_v35 = vld [vmem:[%s11994_s5 + $0x330] sm:$0xff]  ;;  %v3976_v46 = vrot.slane %v10526_v23, 2  ;;  %v6936_v22 = vld [vmem:[%s11994_s5 + $0x320] sm:$0xff] }
 0x47c   :  { %6829 = vmatmul.mubr.msk.f32.gmra.mxu1 %vm3574_vm4, %v3571_v4  ;;  %v3975_v49 = vsel %vm3964_vm7, %v3972_v13, %v3974_v63  ;;  %v4241_v60 = vsel %vm4226_vm6, %v4238_v6, %v4240_v5  ;;  %v3978_v4 = vrot.slane %v10553_v30, 2  ;;  %v4250_v10 = vrot.slane %v10671_v19, 3  ;;  %v6925_v13 = vld [vmem:[%s11994_s5 + $0x2c8] sm:$0xff] }
 0x47d   :  { %6847 = vmatmul.mubr.msk.f32.gmra.mxu0 %vm3574_vm4, %v10692_v51  ;;  %3745 = vmatprep.mubr.f32.mxu1 %v12207_v50  ;;  %v3572_v38 = vrot.slane %v10692_v51, 1  ;;  %v4513_v39 = vrot.slane %v10692_v51, 4  ;;  %v3977_v23 = vsel %vm3964_vm7, %v3974_v63, %v3976_v46  ;;  %v4803_v63 = vld [vmem:[%s11995_s7 + $0x48] sm:$0xff] }
 0x47e   :  { %4352 = vmatprep.mubr.f32.mxu0 %v12207_v50  ;;  %v3979_v30 = vsel %vm3964_vm7, %v3976_v46, %v3978_v4  ;;  %v6981_v46 = vld [vmem:[%s11995_s7 + $0xc8] sm:$0xff] }
 0x47f   :  { %v3573_v53 = vsel %vm3546_vm5, %v3570_v21, %v3572_v38  ;;  %v10712_v28 = vsel %vm3128_vm3, %v4511_v16, %v4513_v39  ;;  %v4242_v21 = vrot.slane %v10580_v32, 3  ;;  %v6935_v16 = vld [vmem:[%s11994_s5 + $0x318] sm:$0xff] }
 0x480   :  { %6830 = vmatmul.mubr.msk.f32.gmra.mxu1 %vm3574_vm4, %v3573_v53  ;;  %v6933_v53 = vld [vmem:[%s11994_s5 + $0x308] sm:$0xff] }
 0x481   :  { %6910 = vmatmul.mubr.msk.f32.vlgmr.msra.gmra.mxu0 %vm3574_vm4, %v4229_v24  ;;  %3751 = vmatprep.mubr.f32.mxu1 %v12207_v50  ;;  %v3980_v24 = vrot.slane %v10580_v32, 2  ;;  %v4245_v0 = vsel %vm4226_vm6, %v4242_v21, %v4244_v37 }
 0x482   :  { %4358 = vmatprep.mubr.f32.mxu0 %v12207_v50 }
 0x483   :  { %v3981_v32 = vsel %vm3964_vm7, %v3978_v4, %v3980_v24  ;;  %v3983_v7 = vsel %vm3964_vm7, %v3980_v24, %v3982_v36  ;;  %v6978_v4 = vld [vmem:[%s11995_s7 + $0xb0] sm:$0xff]  ;;  %v6995_v24 = vld [vmem:[%s11995_s7 + $0x138] sm:$0xff] }
 0x484   :  { %6831 = vmatmul.mubr.msk.f32.gmra.mxu1 %vm3574_vm4, %v3572_v38  ;;  %v4243_v38 = vsel %vm4226_vm6, %v4240_v5, %v4242_v21  ;;  %v4801_v5 = vld [vmem:[%s11995_s7 + $0x38] sm:$0xff] }
 0x485   :  { %6911 = vmatmul.mubr.msk.f32.gmra.mxu0 %vm3574_vm4, %v4231_v9  ;;  %4090 = vmatprep.mubr.f32.mxu1 %v12207_v50  ;;  %v4246_v9 = vrot.slane %v10628_v48, 3  ;;  %v3985_v48 = vsel %vm3964_vm7, %v3982_v36, %v3984_v1  ;;  %v4797_v21 = vld [vmem:[%s11995_s7 + $0x18] sm:$0xff] }
 0x486   :  { %4364 = vmatprep.mubr.f32.mxu0 %v12207_v50 }
 0x487   :  { %v4247_v20 = vsel %vm4226_vm6, %v4244_v37, %v4246_v9  ;;  %v4794_v37 = vld [vmem:[%s11995_s7] sm:$0xff] }
 0x488   :  { %6872 = vmatmul.mubr.msk.f32.vlgmr.msra.gmra.mxu1 %vm3574_vm4, %v3967_v8  ;;  %v6930_v8 = vld [vmem:[%s11994_s5 + $0x2f0] sm:$0xff] }
 0x489   :  { %6912 = vmatmul.mubr.msk.f32.gmra.mxu0 %vm3574_vm4, %v4233_v47  ;;  %4096 = vmatprep.mubr.f32.mxu1 %v12207_v50  ;;  %v6929_v47 = vld [vmem:[%s11994_s5 + $0x2e8] sm:$0xff] }
 0x48a   :  { %4370 = vmatprep.mubr.f32.mxu0 %v12207_v50  ;;  %6947 = vmatpush1.msk.msra.mxu1 %vm3128_vm3, %v6944_v55  ;;  %v4248_v55 = vrot.slane %v10650_v52, 3 }
 0x48b   :  { %4561 = vmatprep.subr.mxu1 %v6943_v34  ;;  %v6928_v34 = vld [vmem:[%s11994_s5 + $0x2e0] sm:$0xff] }
 0x48c   :  { %6873 = vmatmul.mubr.msk.f32.gmra.mxu1 %vm3574_vm4, %v3969_v14  ;;  %v4249_v14 = vsel %vm4226_vm6, %v4246_v9, %v4248_v55 }
 0x48d   :  { %6913 = vmatmul.mubr.msk.f32.gmra.mxu0 %vm3574_vm4, %v4235_v58  ;;  %4102 = vmatprep.mubr.f32.mxu1 %v12207_v50  ;;  %v3986_v58 = vrot.slane %v10650_v52, 2 }
 0x48e   :  { %4376 = vmatprep.mubr.f32.mxu0 %v12207_v50  ;;  %4562 = vmatpush1.msra.mxu1 %v6942_v45  ;;  %v6927_v45 = vld [vmem:[%s11994_s5 + $0x2d8] sm:$0xff] }
 0x48f   :  { %4563 = vmatprep.subr.mxu1 %v6941_v2  ;;  %v4251_v2 = vsel %vm4226_vm6, %v4248_v55, %v4250_v10  ;;  %v3987_v52 = vsel %vm3964_vm7, %v3984_v1, %v3986_v58 }
 0x490   :  { %6874 = vmatmul.mubr.msk.f32.gmra.mxu1 %vm3574_vm4, %v3971_v43  ;;  %v4252_v43 = vrot.slane %v10692_v51, 3 }
 0x491   :  { %6914 = vmatmul.mubr.msk.f32.gmra.mxu0 %vm3574_vm4, %v4237_v56  ;;  %4108 = vmatprep.mubr.f32.mxu1 %v12207_v50  ;;  %v6924_v56 = vld [vmem:[%s11994_s5 + $0x2c0] sm:$0xff] }
 0x492   :  { %4382 = vmatprep.mubr.f32.mxu0 %v12207_v50  ;;  %4564 = vmatpush1.msra.mxu1 %v6940_v15  ;;  %v3988_v15 = vrot.slane %v10671_v19, 2  ;;  %v4253_v6 = vsel %vm4226_vm6, %v4250_v10, %v4252_v43  ;;  %v3990_v19 = vrot.slane %v10692_v51, 2  ;;  %v6983_v51 = vld [vmem:[%s11995_s7 + $0xd8] sm:$0xff] }
 0x493   :  { %4565 = vmatprep.subr.mxu1 %v6939_v33 }
 0x494   :  { %6875 = vmatmul.mubr.msk.f32.gmra.mxu1 %vm3574_vm4, %v3973_v54  ;;  %v3989_v33 = vsel %vm3964_vm7, %v3986_v58, %v3988_v15  ;;  %v3991_v54 = vsel %vm3964_vm7, %v3988_v15, %v3990_v19 }
 0x495   :  { %6915 = vmatmul.mubr.msk.f32.gmra.mxu0 %vm3574_vm4, %v4239_v26  ;;  %4114 = vmatprep.mubr.f32.mxu1 %v12207_v50  ;;  %v6984_v26 = vld [vmem:[%s11995_s7 + $0xe0] sm:$0xff] }
 0x496   :  { %4388 = vmatprep.mubr.f32.mxu0 %v12207_v50  ;;  %4566 = vmatpush1.msra.mxu1 %v6938_v35  ;;  %v6985_v35 = vld [vmem:[%s11995_s7 + $0xe8] sm:$0xff] }
 0x497   :  { %4567 = vmatprep.subr.mxu1 %v6937_v62  ;;  %v6982_v62 = vld [vmem:[%s11995_s7 + $0xd0] sm:$0xff] }
 0x498   :  { %6876 = vmatmul.mubr.msk.f32.gmra.mxu1 %vm3574_vm4, %v3975_v49  ;;  %v4799_v49 = vld [vmem:[%s11995_s7 + $0x28] sm:$0xff] }
 0x499   :  { %6916 = vmatmul.mubr.msk.f32.gmra.mxu0 %vm3574_vm4, %v4241_v60  ;;  %4120 = vmatprep.mubr.f32.mxu1 %v12207_v50  ;;  %v6980_v60 = vld [vmem:[%s11995_s7 + $0xc0] sm:$0xff] }
 0x49a   :  { %4394 = vmatprep.mubr.f32.mxu0 %v12207_v50  ;;  %4568 = vmatpush1.msra.mxu1 %v6936_v22  ;;  %v4798_v22 = vld [vmem:[%s11995_s7 + $0x20] sm:$0xff] }
 0x49b   :  { %4569 = vmatprep.subr.mxu1 %v6935_v16  ;;  %v6979_v16 = vld [vmem:[%s11995_s7 + $0xb8] sm:$0xff] }
 0x49c   :  { %6877 = vmatmul.mubr.msk.f32.gmra.mxu1 %vm3574_vm4, %v3977_v23  ;;  %v4796_v23 = vld [vmem:[%s11995_s7 + $0x10] sm:$0xff] }
 0x49d   :  { %6917 = vmatmul.mubr.msk.f32.gmra.mxu0 %vm3574_vm4, %v4243_v38  ;;  %4126 = vmatprep.mubr.f32.mxu1 %v12207_v50  ;;  %v6977_v38 = vld [vmem:[%s11995_s7 + $0xa8] sm:$0xff] }
 0x49e   :  { %4400 = vmatprep.mubr.f32.mxu0 %v12207_v50  ;;  %4570 = vmatpush1.msra.mxu1 %v6934_v42  ;;  %v4795_v42 = vld [vmem:[%s11995_s7 + $0x8] sm:$0xff] }
 0x49f   :  { %4571 = vmatprep.subr.mxu1 %v6933_v53  ;;  %v6976_v53 = vld [vmem:[%s11995_s7 + $0xa0] sm:$0xff] }
 0x4a0   :  { %6878 = vmatmul.mubr.msk.f32.gmra.mxu1 %vm3574_vm4, %v3979_v30  ;;  %v4813_v30 = vld [vmem:[%s11995_s7 + $0x98] sm:$0xff] }
 0x4a1   :  { %6918 = vmatmul.mubr.msk.f32.gmra.mxu0 %vm3574_vm4, %v4245_v0  ;;  %4132 = vmatprep.mubr.f32.mxu1 %v12207_v50  ;;  %v6994_v0 = vld [vmem:[%s11995_s7 + $0x130] sm:$0xff] }
 0x4a2   :  { %4406 = vmatprep.mubr.f32.mxu0 %v12207_v50  ;;  %4572 = vmatpush1.msra.mxu1 %v6932_v11  ;;  %v4812_v11 = vld [vmem:[%s11995_s7 + $0x90] sm:$0xff] }
 0x4a3   :  { %4573 = vmatprep.subr.mxu1 %v6931_v41  ;;  %v4811_v41 = vld [vmem:[%s11995_s7 + $0x88] sm:$0xff] }
 0x4a4   :  { %6879 = vmatmul.mubr.msk.f32.gmra.mxu1 %vm3574_vm4, %v3981_v32  ;;  %v6993_v32 = vld [vmem:[%s11995_s7 + $0x128] sm:$0xff] }
 0x4a5   :  { %6919 = vmatmul.mubr.msk.f32.gmra.mxu0 %vm3574_vm4, %v4247_v20  ;;  %4138 = vmatprep.mubr.f32.mxu1 %v12207_v50  ;;  %v6992_v20 = vld [vmem:[%s11995_s7 + $0x120] sm:$0xff] }
 0x4a6   :  { %4412 = vmatprep.mubr.f32.mxu0 %v12207_v50  ;;  %4574 = vmatpush1.msra.mxu1 %v6930_v8  ;;  %v4810_v8 = vld [vmem:[%s11995_s7 + $0x80] sm:$0xff] }
 0x4a7   :  { %4575 = vmatprep.subr.mxu1 %v6929_v47 }
 0x4a8   :  { %6880 = vmatmul.mubr.msk.f32.gmra.mxu1 %vm3574_vm4, %v3983_v7 }
 0x4a9   :  { %6920 = vmatmul.mubr.msk.f32.gmra.mxu0 %vm3574_vm4, %v4249_v14  ;;  %4144 = vmatprep.mubr.f32.mxu1 %v12207_v50 }
 0x4aa   :  { %4418 = vmatprep.mubr.f32.mxu0 %v12207_v50  ;;  %4576 = vmatpush1.msra.mxu1 %v6928_v34 }
 0x4ab   :  { %4577 = vmatprep.subr.mxu1 %v6927_v45 }
 0x4ac   :  { %6881 = vmatmul.mubr.msk.f32.gmra.mxu1 %vm3574_vm4, %v3985_v48 }
 0x4ad   :  { %6921 = vmatmul.mubr.msk.f32.gmra.mxu0 %vm3574_vm4, %v4251_v2  ;;  %4150 = vmatprep.mubr.f32.mxu1 %v12207_v50 }
 0x4ae   :  { %4424 = vmatprep.mubr.f32.mxu0 %v12207_v50  ;;  %4578 = vmatpush1.msra.mxu1 %v6926_v57 }
 0x4af   :  { %4579 = vmatprep.subr.mxu1 %v6925_v13 }
 0x4b0   :  { %6882 = vmatmul.mubr.msk.f32.gmra.mxu1 %vm3574_vm4, %v3987_v52 }
 0x4b1   :  { %6922 = vmatmul.mubr.msk.f32.gmra.mxu0 %vm3574_vm4, %v4253_v6  ;;  %4156 = vmatprep.mubr.f32.mxu1 %v12207_v50 }
 0x4b2   :  { %4430 = vmatprep.mubr.f32.mxu0 %v12207_v50  ;;  %4580 = vmatpush1.msra.mxu1 %v6924_v56 }
 0x4b3   :  { %5013 = vmatprep.subr.mxu1 %v12207_v50 }
 0x4b4   :  { %6883 = vmatmul.mubr.msk.f32.gmra.mxu1 %vm3574_vm4, %v3989_v33 }
 0x4b5   :  { %6923 = vmatmul.mubr.msk.f32.gmra.mxu0 %vm3574_vm4, %v4252_v43  ;;  %4162 = vmatprep.mubr.f32.mxu1 %v12207_v50 }
 0x4b8   :  { %6884 = vmatmul.mubr.msk.f32.gmra.mxu1 %vm3574_vm4, %v3991_v54 }
 0x4b9   :  { %4168 = vmatprep.mubr.f32.mxu1 %v12207_v50 }
 0x4bc   :  { %6885 = vmatmul.mubr.msk.f32.gmra.mxu1 %vm3574_vm4, %v3990_v19 }
 0x4bd   :  { %4613 = vmatprep.mubr.f32.mxu1 %v12207_v50 }
 0x4c0   :  { %6948 = vmatmul.mubr.msk.f32.vlgmr.msra.gmra.mxu1 %vm3574_vm4, %v10431_v12  ;;  %v4809_v12 = vld [vmem:[%s11995_s7 + $0x78] sm:$0xff] }
 0x4c1   :  { %4619 = vmatprep.mubr.f32.mxu1 %v12207_v50  ;;  %4858 = vmatpush1.msra.mxu0 %v4809_v12 }
 0x4c2   :  { %4859 = vmatprep.subr.mxu0 %v12207_v50 }
 0x4c4   :  { %6949 = vmatmul.mubr.msk.f32.gmra.mxu1 %vm3574_vm4, %v10459_v25  ;;  %v6991_v25 = vld [vmem:[%s11995_s7 + $0x118] sm:$0xff] }
 0x4c5   :  { %4625 = vmatprep.mubr.f32.mxu1 %v12207_v50  ;;  %5014 = vmatpush1.msra.mxu1 %v6991_v25 }
 0x4c6   :  { %5015 = vmatprep.subr.mxu1 %v12207_v50 }
 0x4c8   :  { %6950 = vmatmul.mubr.msk.f32.gmra.mxu1 %vm3574_vm4, %v10486_v27  ;;  %v4808_v27 = vld [vmem:[%s11995_s7 + $0x70] sm:$0xff] }
 0x4c9   :  { %4631 = vmatprep.mubr.f32.mxu1 %v12207_v50  ;;  %4860 = vmatpush1.msra.mxu0 %v4808_v27 }
 0x4ca   :  { %4861 = vmatprep.subr.mxu0 %v12207_v50 }
 0x4cc   :  { %6951 = vmatmul.mubr.msk.f32.gmra.mxu1 %vm3574_vm4, %v10513_v3  ;;  %v6990_v3 = vld [vmem:[%s11995_s7 + $0x110] sm:$0xff] }
 0x4cd   :  { %4637 = vmatprep.mubr.f32.mxu1 %v12207_v50  ;;  %5016 = vmatpush1.msra.mxu1 %v6990_v3 }
 0x4ce   :  { %5017 = vmatprep.subr.mxu1 %v12207_v50 }
 0x4d0   :  { %6952 = vmatmul.mubr.msk.f32.gmra.mxu1 %vm3574_vm4, %v10540_v44  ;;  %v4807_v44 = vld [vmem:[%s11995_s7 + $0x68] sm:$0xff] }
 0x4d1   :  { %4643 = vmatprep.mubr.f32.mxu1 %v12207_v50  ;;  %4862 = vmatpush1.msra.mxu0 %v4807_v44 }
 0x4d2   :  { %4863 = vmatprep.subr.mxu0 %v12207_v50 }
 0x4d4   :  { %6953 = vmatmul.mubr.msk.f32.gmra.mxu1 %vm3574_vm4, %v10567_v61  ;;  %v6989_v61 = vld [vmem:[%s11995_s7 + $0x108] sm:$0xff] }
 0x4d5   :  { %4649 = vmatprep.mubr.f32.mxu1 %v12207_v50  ;;  %5018 = vmatpush1.msra.mxu1 %v6989_v61 }
 0x4d6   :  { %5019 = vmatprep.subr.mxu1 %v12207_v50 }
 0x4d8   :  { %6954 = vmatmul.mubr.msk.f32.gmra.mxu1 %vm3574_vm4, %v10594_v29  ;;  %v4806_v29 = vld [vmem:[%s11995_s7 + $0x60] sm:$0xff] }
 0x4d9   :  { %4655 = vmatprep.mubr.f32.mxu1 %v12207_v50  ;;  %4864 = vmatpush1.msra.mxu0 %v4806_v29 }
 0x4da   :  { %4865 = vmatprep.subr.mxu0 %v12207_v50 }
 0x4dc   :  { %6955 = vmatmul.mubr.msk.f32.gmra.mxu1 %vm3574_vm4, %v10618_v59  ;;  %v6988_v59 = vld [vmem:[%s11995_s7 + $0x100] sm:$0xff] }
 0x4dd   :  { %4661 = vmatprep.mubr.f32.mxu1 %v12207_v50  ;;  %5020 = vmatpush1.msra.mxu1 %v6988_v59 }
 0x4de   :  { %5021 = vmatprep.subr.mxu1 %v12207_v50 }
 0x4e0   :  { %6956 = vmatmul.mubr.msk.f32.gmra.mxu1 %vm3574_vm4, %v10639_v31  ;;  %v4805_v31 = vld [vmem:[%s11995_s7 + $0x58] sm:$0xff] }
 0x4e1   :  { %4667 = vmatprep.mubr.f32.mxu1 %v12207_v50  ;;  %4866 = vmatpush1.msra.mxu0 %v4805_v31 }
 0x4e2   :  { %4867 = vmatprep.subr.mxu0 %v12207_v50 }
 0x4e4   :  { %6957 = vmatmul.mubr.msk.f32.gmra.mxu1 %vm3574_vm4, %v10661_v40  ;;  %v6987_v40 = vld [vmem:[%s11995_s7 + $0xf8] sm:$0xff] }
 0x4e5   :  { %4673 = vmatprep.mubr.f32.mxu1 %v12207_v50  ;;  %5022 = vmatpush1.msra.mxu1 %v6987_v40 }
 0x4e6   :  { %5023 = vmatprep.subr.mxu1 %v12207_v50 }
 0x4e8   :  { %6958 = vmatmul.mubr.msk.f32.gmra.mxu1 %vm3574_vm4, %v10682_v17  ;;  %v4804_v17 = vld [vmem:[%s11995_s7 + $0x50] sm:$0xff] }
 0x4e9   :  { %4679 = vmatprep.mubr.f32.mxu1 %v12207_v50  ;;  %4868 = vmatpush1.msra.mxu0 %v4804_v17 }
 0x4ea   :  { %4869 = vmatprep.subr.mxu0 %v12207_v50 }
 0x4eb   :  { %4870 = vmatpush1.msra.mxu0 %v4803_v63 }
 0x4ec   :  { %6959 = vmatmul.mubr.msk.f32.gmra.mxu1 %vm3574_vm4, %v10699_v18  ;;  %v6986_v18 = vld [vmem:[%s11995_s7 + $0xf0] sm:$0xff]  ;;  %4871 = vmatprep.subr.mxu0 %v12207_v50 }
 0x4ed   :  { %4685 = vmatprep.mubr.f32.mxu1 %v12207_v50  ;;  %5024 = vmatpush1.msra.mxu1 %v6986_v18 }
 0x4ee   :  { %5025 = vmatprep.subr.mxu1 %v12207_v50 }
 0x4ef   :  { %5026 = vmatpush1.msra.mxu1 %v6985_v35 }
 0x4f0   :  { %6960 = vmatmul.mubr.msk.f32.gmra.mxu1 %vm3574_vm4, %v10712_v28  ;;  %v4802_v28 = vld [vmem:[%s11995_s7 + $0x40] sm:$0xff]  ;;  %5027 = vmatprep.subr.mxu1 %v12207_v50 }
 0x4f1   :  { %4691 = vmatprep.mubr.f32.mxu1 %v12207_v50  ;;  %4872 = vmatpush1.msra.mxu0 %v4802_v28 }
 0x4f2   :  { %5028 = vmatpush1.msra.mxu1 %v6984_v26  ;;  %4873 = vmatprep.subr.mxu0 %v12207_v50 }
 0x4f3   :  { %5029 = vmatprep.subr.mxu1 %v12207_v50  ;;  %4874 = vmatpush1.msra.mxu0 %v4801_v5 }
 0x4f4   :  { %6961 = vmatmul.mubr.msk.f32.gmra.mxu1 %vm3574_vm4, %v4513_v39  ;;  %v4800_v39 = vld [vmem:[%s11995_s7 + $0x30] sm:$0xff]  ;;  %4875 = vmatprep.subr.mxu0 %v12207_v50 }
 0x4f5   :  { %5030 = vmatpush1.msra.mxu1 %v6983_v51  ;;  %4876 = vmatpush1.msra.mxu0 %v4800_v39 }
 0x4f6   :  { %5031 = vmatprep.subr.mxu1 %v12207_v50  ;;  %4877 = vmatprep.subr.mxu0 %v12207_v50 }
 0x4f7   :  { %5032 = vmatpush1.msra.mxu1 %v6982_v62  ;;  %4878 = vmatpush1.msra.mxu0 %v4799_v49 }
 0x4f8   :  { %5033 = vmatprep.subr.mxu1 %v12207_v50  ;;  %4879 = vmatprep.subr.mxu0 %v12207_v50 }
 0x4f9   :  { %5034 = vmatpush1.msra.mxu1 %v6981_v46  ;;  %4880 = vmatpush1.msra.mxu0 %v4798_v22 }
 0x4fa   :  { %5035 = vmatprep.subr.mxu1 %v12207_v50  ;;  %4881 = vmatprep.subr.mxu0 %v12207_v50 }
 0x4fb   :  { %5036 = vmatpush1.msra.mxu1 %v6980_v60  ;;  %4882 = vmatpush1.msra.mxu0 %v4797_v21 }
 0x4fc   :  { %5037 = vmatprep.subr.mxu1 %v12207_v50  ;;  %4883 = vmatprep.subr.mxu0 %v12207_v50 }
 0x4fd   :  { %5038 = vmatpush1.msra.mxu1 %v6979_v16  ;;  %4884 = vmatpush1.msra.mxu0 %v4796_v23 }
 0x4fe   :  { %5039 = vmatprep.subr.mxu1 %v12207_v50  ;;  %4885 = vmatprep.subr.mxu0 %v12207_v50 }
 0x4ff   :  { %5040 = vmatpush1.msra.mxu1 %v6978_v4  ;;  %4886 = vmatpush1.msra.mxu0 %v4795_v42 }
 0x500   :  { %5041 = vmatprep.subr.mxu1 %v12207_v50  ;;  %4887 = vmatprep.subr.mxu0 %v12207_v50 }
 0x501   :  { %5042 = vmatpush1.msra.mxu1 %v6977_v38  ;;  %4888 = vmatpush1.msra.mxu0 %v4794_v37 }
 0x502   :  { %5043 = vmatprep.subr.mxu1 %v12207_v50  ;;  %4913 = vmatprep.subr.mxu0 %v12207_v50 }
 0x503   :  { %5044 = vmatpush1.msra.mxu1 %v6976_v53  ;;  %4914 = vmatpush2.msra.mxu0 %v4813_v30 }
 0x504   :  { %5069 = vmatprep.subr.mxu1 %v12207_v50  ;;  %4915 = vmatprep.subr.mxu0 %v12207_v50 }
 0x505   :  { %5070 = vmatpush2.msra.mxu1 %v6995_v24  ;;  %4916 = vmatpush2.msra.mxu0 %v4812_v11 }
 0x506   :  { %5071 = vmatprep.subr.mxu1 %v12207_v50  ;;  %4917 = vmatprep.subr.mxu0 %v12207_v50 }
 0x507   :  { %5072 = vmatpush2.msra.mxu1 %v6994_v0  ;;  %4918 = vmatpush2.msra.mxu0 %v4811_v41 }
 0x508   :  { %5073 = vmatprep.subr.mxu1 %v12207_v50  ;;  %4919 = vmatprep.subr.mxu0 %v12207_v50 }
 0x509   :  { %v11072_v9 = vpop.f32.mrf.mxu0  ;;  %5074 = vmatpush2.msra.mxu1 %v6993_v32  ;;  %4920 = vmatpush2.msra.mxu0 %v4810_v8 }
 0x50a   :  { %5075 = vmatprep.subr.mxu1 %v12207_v50  ;;  %7386 = vmatprep.subr.mxu0 %v12207_v50 }
 0x50b   :  { %v11082_v36 = vpop.f32.mrf.mxu0  ;;  %5076 = vmatpush2.msra.mxu1 %v6992_v20 }
 0x50c   :  { %7472 = vmatprep.subr.mxu1 %v12207_v50 }
 0x50d   :  { %v11092_v55 = vpop.f32.mrf.mxu0 }
 0x50f   :  { %v11096_v47 = vpop.f32.mrf.mxu0 }
 0x510   :  { %v11099_v7 = vpop.f32.mrf.mxu1 }
 0x511   :  { %v11102_v1 = vpop.f32.mrf.mxu0 }
 0x512   :  { %v11104_v34 = vpop.f32.mrf.mxu1 }
 0x513   :  { %v11106_v14 = vpop.f32.mrf.mxu0 }
 0x514   :  { %v11108_v10 = vpop.f32.mrf.mxu1 }
 0x515   :  { %v11110_v45 = vpop.f32.mrf.mxu0 }
 0x516   :  { %v11112_v48 = vpop.f32.mrf.mxu1 }
 0x517   :  { %v11114_v58 = vpop.f32.mrf.mxu0 }
 0x518   :  { %v11116_v57 = vpop.f32.mrf.mxu1 }
 0x519   :  { %v11118_v2 = vpop.f32.mrf.mxu0 }
 0x51a   :  { %v11120_v43 = vpop.f32.mrf.mxu1 }
 0x51b   :  { %v11122_v13 = vpop.f32.mrf.mxu0 }
 0x51c   :  { %v11124_v52 = vpop.f32.mrf.mxu1 }
 0x51d   :  { %v11126_v15 = vpop.f32.mrf.mxu0 }
 0x51e   :  { %v11128_v56 = vpop.f32.mrf.mxu1 }
 0x51f   :  { %v11130_v6 = vpop.f32.mrf.mxu0 }
 0x520   :  { %v11132_v33 = vpop.f32.mrf.mxu1 }
 0x521   :  { %v11134_v19 = vpop.f32.mrf.mxu0 }
 0x522   :  { %v11136_v54 = vpop.f32.mrf.mxu1 }
 0x523   :  { %v11138_v12 = vpop.f32.mrf.mxu0 }
 0x524   :  { %v11140_v25 = vpop.f32.mrf.mxu1 }
 0x525   :  { %v11142_v27 = vpop.f32.mrf.mxu0 }
 0x526   :  { %v11144_v3 = vpop.f32.mrf.mxu1 }
 0x527   :  { %v11146_v44 = vpop.f32.mrf.mxu0 }
 0x528   :  { %12208 = vst [vmem:[#allocation2_spill] sm:$0xff] %v11146_v44  ;;  %v11148_v61 = vpop.f32.mrf.mxu1 }
 0x529   :  { %v11150_v29 = vpop.f32.mrf.mxu0 }
 0x52a   :  { %12209 = vst [vmem:[#allocation47_spill] sm:$0xff] %v11150_v29  ;;  %v11152_v59 = vpop.f32.mrf.mxu1 }
 0x52b   :  { %v11154_v31 = vpop.f32.mrf.mxu0 }
 0x52c   :  { %12210 = vst [vmem:[#allocation49_spill] sm:$0xff] %v11154_v31  ;;  %v11156_v40 = vpop.f32.mrf.mxu1 }
 0x52d   :  { %v11158_v17 = vpop.f32.mrf.mxu0 }
 0x52e   :  { %12211 = vst [vmem:[#allocation3_spill] sm:$0xff] %v11158_v17  ;;  %v11160_v18 = vpop.f32.mrf.mxu1 }
 0x52f   :  { %12212 = vst [vmem:[#allocation4_spill] sm:$0xff] %v11160_v18  ;;  %v11162_v63 = vpop.f32.mrf.mxu0 }
 0x530   :  { %12213 = vst [vmem:[#allocation48_spill] sm:$0xff] %v11162_v63  ;;  %v11164_v35 = vpop.f32.mrf.mxu1 }
 0x531   :  { %12214 = vst [vmem:[#allocation51_spill] sm:$0xff] %v11164_v35  ;;  %v11166_v28 = vpop.f32.mrf.mxu0 }
 0x532   :  { %12215 = vst [vmem:[#allocation5_spill] sm:$0xff] %v11166_v28  ;;  %v11168_v26 = vpop.f32.mrf.mxu1 }
 0x533   :  { %12216 = vst [vmem:[#allocation6_spill] sm:$0xff] %v11168_v26  ;;  %v11170_v5 = vpop.f32.mrf.mxu0 }
 0x534   :  { %12217 = vst [vmem:[#allocation50_spill] sm:$0xff] %v11170_v5  ;;  %v11172_v51 = vpop.f32.mrf.mxu1 }
 0x535   :  { %12218 = vst [vmem:[#allocation53_spill] sm:$0xff] %v11172_v51  ;;  %v11174_v39 = vpop.f32.mrf.mxu0 }
 0x536   :  { %12219 = vst [vmem:[#allocation7_spill] sm:$0xff] %v11174_v39  ;;  %v11176_v62 = vpop.f32.mrf.mxu1 }
 0x537   :  { %12220 = vst [vmem:[#allocation8_spill] sm:$0xff] %v11176_v62  ;;  %v11178_v49 = vpop.f32.mrf.mxu0 }
 0x538   :  { %12221 = vst [vmem:[#allocation52_spill] sm:$0xff] %v11178_v49  ;;  %v11180_v46 = vpop.f32.mrf.mxu1 }
 0x539   :  { %12222 = vst [vmem:[#allocation55_spill] sm:$0xff] %v11180_v46  ;;  %v11182_v22 = vpop.f32.mrf.mxu0 }
 0x53a   :  { %12223 = vst [vmem:[#allocation9_spill] sm:$0xff] %v11182_v22  ;;  %v11184_v60 = vpop.f32.mrf.mxu1 }
 0x53b   :  { %12224 = vst [vmem:[#allocation10_spill] sm:$0xff] %v11184_v60  ;;  %v11186_v21 = vpop.f32.mrf.mxu0 }
 0x53c   :  { %12225 = vst [vmem:[#allocation54_spill] sm:$0xff] %v11186_v21  ;;  %v11188_v16 = vpop.f32.mrf.mxu1 }
 0x53d   :  { %12226 = vst [vmem:[#allocation57_spill] sm:$0xff] %v11188_v16  ;;  %v11192_v4 = vpop.f32.mrf.mxu0 }
 0x53e   :  { %v11190_v23 = vpop.f32.mrf.mxu1  ;;  %12228 = vst [vmem:[#allocation12_spill] sm:$0xff] %v11192_v4 }
 0x53f   :  { %12227 = vst [vmem:[#allocation11_spill] sm:$0xff] %v11190_v23  ;;  %v11198_v37 = vpop.f32.mrf.mxu0 }
 0x540   :  { %v11194_v42 = vpop.f32.mrf.mxu1  ;;  %12231 = vst [vmem:[#allocation83_spill] sm:$0xff] %v11198_v37 }
 0x541   :  { %12229 = vst [vmem:[#allocation56_spill] sm:$0xff] %v11194_v42  ;;  %v4354_v24 = vpop.f32.mrf.mxu0 }
 0x542   :  { %v11196_v38 = vpop.f32.mrf.mxu1 }
 0x543   :  { %12230 = vst [vmem:[#allocation59_spill] sm:$0xff] %v11196_v38  ;;  %v4356_v41 = vpop.f32.mrf.mxu0 }
 0x544   :  { %v11200_v53 = vpop.f32.mrf.mxu1 }
 0x545   :  { %12232 = vst [vmem:[#allocation13_spill] sm:$0xff] %v11200_v53  ;;  %v4360_v20 = vpop.f32.mrf.mxu0 }
 0x546   :  { %v11202_v30 = vpop.f32.mrf.mxu1 }
 0x547   :  { %12233 = vst [vmem:[#allocation14_spill] sm:$0xff] %v11202_v30  ;;  %v11204_v4 = vpop.f32.mrf.mxu0 }
 0x548   :  { %v4092_v11 = vpop.f32.mrf.mxu1 }
 0x549   :  { %v11210_v37 = vpop.f32.mrf.mxu0 }
 0x54a   :  { %v4094_v0 = vpop.f32.mrf.mxu1 }
 0x54b   :  { %v11216_v42 = vpop.f32.mrf.mxu0 }
 0x54c   :  { %v4098_v32 = vpop.f32.mrf.mxu1 }
 0x54d   :  { %v11222_v39 = vpop.f32.mrf.mxu0 }
 0x54e   :  { %v4100_v8 = vpop.f32.mrf.mxu1 }
 0x54f   :  { %v11228_v60 = vpop.f32.mrf.mxu0 }
 0x550   :  { %v4104_v50 = vpop.f32.mrf.mxu1 }
 0x551   :  { %v11234_v63 = vpop.f32.mrf.mxu0 }
 0x552   :  { %v4106_v21 = vpop.f32.mrf.mxu1 }
 0x553   :  { %v11240_v51 = vpop.f32.mrf.mxu0 }
 0x554   :  { %v11206_v22 = vpop.f32.mrf.mxu1 }
 0x555   :  { %v11246_v29 = vpop.f32.mrf.mxu0 }
 0x556   :  { %v11208_v38 = vpop.f32.mrf.mxu1 }
 0x558   :  { %v11212_v53 = vpop.f32.mrf.mxu1 }
 0x55a   :  { %v11214_v30 = vpop.f32.mrf.mxu1 }
 0x55c   :  { %v11218_v49 = vpop.f32.mrf.mxu1 }
 0x55e   :  { %v11220_v23 = vpop.f32.mrf.mxu1 }
 0x560   :  { %v11224_v16 = vpop.f32.mrf.mxu1 }
 0x562   :  { %v11226_v5 = vpop.f32.mrf.mxu1 }
 0x563   :  { %12234 = vst [vmem:[#allocation58_spill] sm:$0xff] %v11226_v5 }
 0x564   :  { %v11230_v28 = vpop.f32.mrf.mxu1 }
 0x565   :  { %12235 = vst [vmem:[#allocation61_spill] sm:$0xff] %v11230_v28  ;;  %v11252_v28 = vpop.f32.mrf.mxu0 }
 0x566   :  { %v11232_v46 = vpop.f32.mrf.mxu1  ;;  %12243 = vst [vmem:[#allocation62_spill] sm:$0xff] %v11252_v28 }
 0x567   :  { %12236 = vst [vmem:[#allocation15_spill] sm:$0xff] %v11232_v46 }
 0x568   :  { %v11236_v62 = vpop.f32.mrf.mxu1 }
 0x569   :  { %12237 = vst [vmem:[#allocation16_spill] sm:$0xff] %v11236_v62  ;;  %v11258_v62 = vpop.f32.mrf.mxu0 }
 0x56a   :  { %v11238_v17 = vpop.f32.mrf.mxu1  ;;  %12246 = vst [vmem:[#allocation19_spill] sm:$0xff] %v11258_v62 }
 0x56b   :  { %12238 = vst [vmem:[#allocation60_spill] sm:$0xff] %v11238_v17 }
 0x56c   :  { %v11242_v31 = vpop.f32.mrf.mxu1 }
 0x56d   :  { %12239 = vst [vmem:[#allocation63_spill] sm:$0xff] %v11242_v31  ;;  %v3859_v31 = vadd.f32 %v11072_v9, %v11099_v7  ;;  %v3867_v9 = vadd.f32 %v11096_v47, %v11112_v48  ;;  %v3873_v47 = vadd.f32 %v11106_v14, %v11120_v43  ;;  %v3879_v14 = vadd.f32 %v11114_v58, %v11128_v56 }
 0x56e   :  { %v11244_v26 = vpop.f32.mrf.mxu1 }
 0x56f   :  { %12240 = vst [vmem:[#allocation93_spill] sm:$0xff] %v11244_v26  ;;  %v4175_v5 = vadd.f32 %v4092_v11, %v3859_v31  ;;  %v12252_v11 = vld [vmem:[#allocation91_spill] sm:$0xff]  ;;  %v4182_v58 = vadd.f32 %v11208_v38, %v3879_v14  ;;  %v3889_v38 = vadd.f32 %v11126_v15, %v11140_v25  ;;  %v3891_v15 = vadd.f32 %v11130_v6, %v11144_v3 }
 0x570   :  { %v11248_v35 = vpop.f32.mrf.mxu1 }
 0x571   :  { %12241 = vst [vmem:[#allocation17_spill] sm:$0xff] %v11248_v35  ;;  %v3861_v35 = vadd.f32 %v11082_v36, %v11104_v34  ;;  %v4437_v36 = vadd.f32 %v4354_v24, %v4175_v5  ;;  %v4186_v3 = vadd.f32 %v11220_v23, %v3891_v15  ;;  %v3901_v23 = vadd.f32 %v11142_v27, %v11156_v40 }
 0x572   :  { %v11250_v44 = vpop.f32.mrf.mxu1 }
 0x573   :  { %12242 = vst [vmem:[#allocation18_spill] sm:$0xff] %v11250_v44  ;;  %v11268_v44 = vpop.f32.mrf.mxu0 }
 0x574   :  { %v11254_v46 = vpop.f32.mrf.mxu1  ;;  %12249 = vst [vmem:[#allocation67_spill] sm:$0xff] %v11268_v44 }
 0x575   :  { %12244 = vst [vmem:[#allocation96_spill] sm:$0xff] %v11254_v46  ;;  %v4176_v46 = vadd.f32 %v4094_v0, %v3861_v35  ;;  %v11281_v34 = vpop.f32.mrf.mxu0  ;;  %v3871_v35 = vadd.f32 %v11102_v1, %v11116_v57  ;;  %v4178_v0 = vadd.f32 %v4100_v8, %v3867_v9 }
 0x576   :  { %v11256_v18 = vpop.f32.mrf.mxu1 }
 0x577   :  { %12245 = vst [vmem:[#allocation65_spill] sm:$0xff] %v11256_v18  ;;  %v3865_v18 = vadd.f32 %v11092_v55, %v11108_v10  ;;  %v12254_v55 = vsub.s32 1, %v12252_v11  ;;  %v4438_v44 = vadd.f32 %v4356_v41, %v4176_v46  ;;  %v4440_v46 = vadd.f32 %v11204_v4, %v4178_v0 }
 0x578   :  { %v11260_v17 = vpop.f32.mrf.mxu1  ;;  %v3883_v41 = vadd.f32 %v11118_v2, %v11132_v33  ;;  %v3885_v2 = vadd.f32 %v11122_v13, %v11136_v54 }
 0x579   :  { %12247 = vst [vmem:[#allocation20_spill] sm:$0xff] %v11260_v17  ;;  %v4726_v17 = vld [vmem:[%s11996_s6] sm:$0x3]  ;;  %v4177_v7 = vadd.f32 %v4098_v32, %v3865_v18  ;;  %v4179_v18 = vadd.f32 %v4104_v50, %v3871_v35  ;;  %v4180_v32 = vadd.f32 %v4106_v21, %v3873_v47 }
 0x57a   :  { %v11264_v26 = vpop.f32.mrf.mxu1  ;;  %v11289_v10 = vrot.slane %v4726_v17, %v12254_v55  ;;  %v3877_v55 = vadd.f32 %v11110_v45, %v11124_v52 }
 0x57b   :  { %12248 = vst [vmem:[#allocation64_spill] sm:$0xff] %v11264_v26  ;;  %v4439_v24 = vadd.f32 %v4360_v20, %v4177_v7  ;;  %v4442_v20 = vadd.f32 %v11216_v42, %v4180_v32 }
 0x57c   :  { %v11270_v28 = vpop.f32.mrf.mxu1  ;;  %v4181_v43 = vadd.f32 %v11206_v22, %v3877_v55 }
 0x57d   :  { %12250 = vst [vmem:[#allocation21_spill] sm:$0xff] %v11270_v28  ;;  %v12253_v28 = vsub.s32 0, %v12252_v11 }
 0x57e   :  { %v11277_v62 = vpop.f32.mrf.mxu1  ;;  %v4443_v42 = vadd.f32 %v11222_v39, %v4181_v43  ;;  %v4444_v39 = vadd.f32 %v11228_v60, %v4182_v58 }
 0x57f   :  { %12251 = vst [vmem:[#allocation22_spill] sm:$0xff] %v11277_v62  ;;  %v11285_v26 = vrot.slane %v4726_v17, %v12253_v28  ;;  %v11295_v28 = vpop.f32.mrf.mxu0 }
 0x580   :  { %v4615_v31 = vpop.f32.mrf.mxu1 }
 0x581   :  { %v4698_v62 = vadd.f32 %v4615_v31, %v4437_v36  ;;  %v11308_v45 = vpop.f32.mrf.mxu0  ;;  %v4184_v36 = vadd.f32 %v11214_v30, %v3885_v2 }
 0x582   :  { %v4617_v48 = vpop.f32.mrf.mxu1 }
 0x583   :  { %v4699_v5 = vadd.f32 %v4617_v48, %v4438_v44  ;;  %v4738_v11 = vadd.f32 %v11285_v26, %v4698_v62  ;;  %v4441_v62 = vadd.f32 %v11210_v37, %v4179_v18  ;;  %v4183_v37 = vadd.f32 %v11212_v53, %v3883_v41  ;;  %v11323_v31 = vpop.f32.mrf.mxu0  ;;  %v12259_v41 = vld [vmem:[#allocation61_spill] sm:$0xff] }
 0x584   :  { %v4621_v17 = vpop.f32.mrf.mxu1  ;;  %v4185_v53 = vadd.f32 %v11218_v49, %v3889_v38  ;;  %v4446_v6 = vadd.f32 %v11240_v51, %v4184_v36  ;;  %v12264_v36 = vld [vmem:[#allocation15_spill] sm:$0xff] }
 0x585   :  { %v4739_v1 = vadd.f32 %v11289_v10, %v4699_v5  ;;  %v4700_v57 = vadd.f32 %v4621_v17, %v4439_v24  ;;  %v4766_v52 = vmax.f32 %v4738_v11, 0.0  ;;  %v4445_v18 = vadd.f32 %v11234_v63, %v4183_v37  ;;  %v11336_v24 = vpop.f32.mrf.mxu0 }
 0x586   :  { %v4623_v50 = vpop.f32.mrf.mxu1  ;;  %v3895_v5 = vadd.f32 %v11134_v19, %v11148_v61  ;;  %v3897_v19 = vadd.f32 %v11138_v12, %v11152_v59  ;;  %v4447_v51 = vadd.f32 %v11246_v29, %v4185_v53 }
 0x587   :  { %v4767_v44 = vmax.f32 %v4739_v1, 0.0  ;;  %v4701_v21 = vadd.f32 %v4623_v50, %v4440_v46  ;;  %v4740_v8 = vadd.f32 %v11285_v26, %v4700_v57  ;;  %v12255_v57 = vld [vmem:[#allocation58_spill] sm:$0xff]  ;;  %v11351_v14 = vpop.f32.mrf.mxu0 }
 0x588   :  { %v4627_v4 = vpop.f32.mrf.mxu1  ;;  %v4187_v63 = vadd.f32 %v11224_v16, %v3895_v5  ;;  %v4188_v46 = vadd.f32 %v12255_v57, %v3897_v19  ;;  %v12256_v16 = vld [vmem:[#allocation62_spill] sm:$0xff]  ;;  %v12268_v5 = vld [vmem:[#allocation53_spill] sm:$0xff]  ;;  %v12273_v57 = vld [vmem:[#allocation63_spill] sm:$0xff] }
 0x589   :  { %v4741_v56 = vadd.f32 %v11289_v10, %v4701_v21  ;;  %v4702_v22 = vadd.f32 %v4627_v4, %v4441_v62  ;;  %6962 = vmatprep.mubr.msk.f32.mxu0 %vm4814_vm8, %v4767_v44  ;;  %6996 = vmatprep.mubr.msk.f32.mxu1 %vm4814_vm8, %v4767_v44  ;;  %v4768_v35 = vmax.f32 %v4740_v8, 0.0  ;;  %v4448_v29 = vadd.f32 %v12256_v16, %v4186_v3  ;;  %v12257_v21 = vld [vmem:[#allocation4_spill] sm:$0xff]  ;;  %v12258_v62 = vld [vmem:[#allocation2_spill] sm:$0xff] }
 0x58a   :  { %v4629_v33 = vpop.f32.mrf.mxu1  ;;  %4922 = vmatmul.mubr.f32.vlgmr.msra.gmra.mxu0 %v4766_v52  ;;  %5078 = vmatmul.mubr.f32.vlgmr.msra.gmra.mxu1 %v4766_v52  ;;  %v3903_v27 = vadd.f32 %v12258_v62, %v12257_v21  ;;  %v4189_v52 = vadd.f32 %v12259_v41, %v3901_v23 }
 0x58b   :  { %v4769_v9 = vmax.f32 %v4741_v56, 0.0  ;;  %v4703_v7 = vadd.f32 %v4629_v33, %v4442_v20  ;;  %v4742_v0 = vadd.f32 %v11285_v26, %v4702_v22  ;;  %v12260_v20 = vld [vmem:[#allocation19_spill] sm:$0xff]  ;;  %v11364_v33 = vpop.f32.mrf.mxu0 }
 0x58c   :  { %v4633_v13 = vpop.f32.mrf.mxu1  ;;  %v4449_v58 = vadd.f32 %v12260_v20, %v4187_v63  ;;  %v12261_v56 = vld [vmem:[#allocation51_spill] sm:$0xff] }
 0x58d   :  { %v4743_v54 = vadd.f32 %v11289_v10, %v4703_v7  ;;  %v4704_v47 = vadd.f32 %v4633_v13, %v4443_v42  ;;  %6963 = vmatprep.mubr.msk.f32.mxu0 %vm4814_vm8, %v4769_v9  ;;  %6997 = vmatprep.mubr.msk.f32.mxu1 %vm4814_vm8, %v4769_v9  ;;  %v4770_v32 = vmax.f32 %v4742_v0, 0.0  ;;  %v12262_v22 = vld [vmem:[#allocation47_spill] sm:$0xff]  ;;  %v4416_v3 = vpop.f32.mrf.mxu0 }
 0x58e   :  { %v4635_v25 = vpop.f32.mrf.mxu1  ;;  %4927 = vmatmul.mubr.f32.gmra.mxu0 %v4768_v35  ;;  %5083 = vmatmul.mubr.f32.gmra.mxu1 %v4768_v35  ;;  %v3907_v2 = vadd.f32 %v12262_v22, %v12261_v56  ;;  %v12263_v42 = vld [vmem:[#allocation67_spill] sm:$0xff]  ;;  %v4190_v35 = vadd.f32 %v12264_v36, %v3903_v27  ;;  %v12279_v56 = vld [vmem:[#allocation17_spill] sm:$0xff]  ;;  %v12282_v36 = vld [vmem:[#allocation18_spill] sm:$0xff] }
 0x58f   :  { %v4771_v30 = vmax.f32 %v4743_v54, 0.0  ;;  %v4705_v48 = vadd.f32 %v4635_v25, %v4444_v39  ;;  %v4744_v60 = vadd.f32 %v11285_v26, %v4704_v47  ;;  %v4450_v38 = vadd.f32 %v12263_v42, %v4188_v46  ;;  %v12265_v54 = vld [vmem:[#allocation6_spill] sm:$0xff]  ;;  %v12266_v47 = vld [vmem:[#allocation49_spill] sm:$0xff]  ;;  %v12267_v25 = vld [vmem:[#allocation16_spill] sm:$0xff] }
 0x590   :  { %v4639_v11 = vpop.f32.mrf.mxu1  ;;  %v3909_v39 = vadd.f32 %v12266_v47, %v12265_v54  ;;  %v4191_v53 = vadd.f32 %v12267_v25, %v3907_v2  ;;  %v12284_v25 = vld [vmem:[#allocation52_spill] sm:$0xff] }
 0x591   :  { %v4745_v17 = vadd.f32 %v11289_v10, %v4705_v48  ;;  %v4706_v49 = vadd.f32 %v4639_v11, %v4445_v18  ;;  %6964 = vmatprep.mubr.msk.f32.mxu0 %vm4814_vm8, %v4771_v30  ;;  %6998 = vmatprep.mubr.msk.f32.mxu1 %vm4814_vm8, %v4771_v30  ;;  %v4772_v50 = vmax.f32 %v4744_v60, 0.0  ;;  %v4451_v18 = vadd.f32 %v11281_v34, %v4189_v52  ;;  %v12270_v11 = vld [vmem:[#allocation60_spill] sm:$0xff] }
 0x592   :  { %v4641_v61 = vpop.f32.mrf.mxu1  ;;  %4932 = vmatmul.mubr.f32.gmra.mxu0 %v4770_v32  ;;  %5088 = vmatmul.mubr.f32.gmra.mxu1 %v4770_v32  ;;  %v12269_v32 = vld [vmem:[#allocation3_spill] sm:$0xff]  ;;  %v12271_v34 = vld [vmem:[#allocation8_spill] sm:$0xff] }
 0x593   :  { %v4773_v55 = vmax.f32 %v4745_v17, 0.0  ;;  %v4707_v1 = vadd.f32 %v4641_v61, %v4446_v6  ;;  %v4746_v43 = vadd.f32 %v11285_v26, %v4706_v49  ;;  %v3913_v60 = vadd.f32 %v12269_v32, %v12268_v5 }
 0x594   :  { %v4645_v12 = vpop.f32.mrf.mxu1  ;;  %v4192_v6 = vadd.f32 %v12270_v11, %v3909_v39  ;;  %v12286_v11 = vld [vmem:[#allocation56_spill] sm:$0xff] }
 0x595   :  { %v4747_v59 = vadd.f32 %v11289_v10, %v4707_v1  ;;  %v4708_v44 = vadd.f32 %v4645_v12, %v4447_v51  ;;  %6965 = vmatprep.mubr.msk.f32.mxu0 %vm4814_vm8, %v4773_v55  ;;  %6999 = vmatprep.mubr.msk.f32.mxu1 %vm4814_vm8, %v4773_v55  ;;  %v4774_v37 = vmax.f32 %v4746_v43, 0.0  ;;  %v4452_v55 = vadd.f32 %v11295_v28, %v4190_v35  ;;  %v12272_v1 = vld [vmem:[#allocation48_spill] sm:$0xff] }
 0x596   :  { %v4647_v40 = vpop.f32.mrf.mxu1  ;;  %4937 = vmatmul.mubr.f32.gmra.mxu0 %v4772_v50  ;;  %5093 = vmatmul.mubr.f32.gmra.mxu1 %v4772_v50  ;;  %v3915_v51 = vadd.f32 %v12272_v1, %v12271_v34  ;;  %v4193_v46 = vadd.f32 %v12273_v57, %v3913_v60  ;;  %v4453_v12 = vadd.f32 %v11308_v45, %v4191_v53  ;;  %v12277_v45 = vld [vmem:[#allocation10_spill] sm:$0xff] }
 0x597   :  { %v4775_v8 = vmax.f32 %v4747_v59, 0.0  ;;  %v4709_v4 = vadd.f32 %v4647_v40, %v4448_v29  ;;  %v4748_v9 = vadd.f32 %v11285_v26, %v4708_v44  ;;  %v12274_v59 = vld [vmem:[#allocation55_spill] sm:$0xff]  ;;  %v12275_v44 = vld [vmem:[#allocation5_spill] sm:$0xff]  ;;  %v4420_v29 = vpop.f32.mrf.mxu0  ;;  %v4454_v27 = vadd.f32 %v11323_v31, %v4192_v6 }
 0x598   :  { %v4651_v7 = vpop.f32.mrf.mxu1  ;;  %v3919_v16 = vadd.f32 %v12275_v44, %v12274_v59  ;;  %v12276_v40 = vld [vmem:[#allocation93_spill] sm:$0xff]  ;;  %v4455_v31 = vadd.f32 %v11336_v24, %v4193_v46  ;;  %v12283_v24 = vld [vmem:[#allocation11_spill] sm:$0xff] }
 0x599   :  { %v4749_v0 = vadd.f32 %v11289_v10, %v4709_v4  ;;  %v4710_v13 = vadd.f32 %v4651_v7, %v4449_v58  ;;  %6966 = vmatprep.mubr.msk.f32.mxu0 %vm4814_vm8, %v4775_v8  ;;  %7000 = vmatprep.mubr.msk.f32.mxu1 %vm4814_vm8, %v4775_v8  ;;  %v4776_v17 = vmax.f32 %v4748_v9, 0.0  ;;  %v4194_v41 = vadd.f32 %v12276_v40, %v3915_v51  ;;  %v12278_v4 = vld [vmem:[#allocation50_spill] sm:$0xff]  ;;  %v12280_v9 = vld [vmem:[#allocation57_spill] sm:$0xff]  ;;  %v12281_v7 = vld [vmem:[#allocation7_spill] sm:$0xff] }
 0x59a   :  { %v4653_v15 = vpop.f32.mrf.mxu1  ;;  %4942 = vmatmul.mubr.f32.gmra.mxu0 %v4774_v37  ;;  %5098 = vmatmul.mubr.f32.gmra.mxu1 %v4774_v37  ;;  %v3921_v20 = vadd.f32 %v12278_v4, %v12277_v45  ;;  %v4195_v22 = vadd.f32 %v12279_v56, %v3919_v16  ;;  %v3925_v42 = vadd.f32 %v12281_v7, %v12280_v9  ;;  %v12287_v6 = vld [vmem:[#allocation9_spill] sm:$0xff]  ;;  %v12293_v16 = vld [vmem:[#allocation12_spill] sm:$0xff] }
 0x59b   :  { %v4777_v30 = vmax.f32 %v4749_v0, 0.0  ;;  %v4711_v48 = vadd.f32 %v4653_v15, %v4450_v38  ;;  %v4750_v49 = vadd.f32 %v11285_v26, %v4710_v13  ;;  %v4422_v38 = vpop.f32.mrf.mxu0  ;;  %v4456_v15 = vadd.f32 %v11351_v14, %v4194_v41  ;;  %v12292_v44 = vld [vmem:[#allocation13_spill] sm:$0xff] }
 0x59c   :  { %v4657_v19 = vpop.f32.mrf.mxu1  ;;  %v4196_v35 = vadd.f32 %v12282_v36, %v3921_v20  ;;  %v3927_v53 = vadd.f32 %v12284_v25, %v12283_v24  ;;  %v4457_v60 = vadd.f32 %v11364_v33, %v4195_v22  ;;  %v12290_v33 = vld [vmem:[#allocation54_spill] sm:$0xff]  ;;  %v12297_v22 = vld [vmem:[#allocation21_spill] sm:$0xff] }
 0x59d   :  { %v4751_v61 = vadd.f32 %v11289_v10, %v4711_v48  ;;  %v4712_v63 = vadd.f32 %v4657_v19, %v4451_v18  ;;  %6967 = vmatprep.mubr.msk.f32.mxu0 %vm4814_vm8, %v4777_v30  ;;  %7001 = vmatprep.mubr.msk.f32.mxu1 %vm4814_vm8, %v4777_v30  ;;  %v4778_v21 = vmax.f32 %v4750_v49, 0.0  ;;  %v12285_v48 = vld [vmem:[#allocation96_spill] sm:$0xff]  ;;  %v4426_v49 = vpop.f32.mrf.mxu0  ;;  %v12295_v20 = vld [vmem:[#allocation14_spill] sm:$0xff] }
 0x59e   :  { %v4659_v23 = vpop.f32.mrf.mxu1  ;;  %4947 = vmatmul.mubr.f32.gmra.mxu0 %v4776_v17  ;;  %5103 = vmatmul.mubr.f32.gmra.mxu1 %v4776_v17  ;;  %v4197_v18 = vadd.f32 %v12285_v48, %v3925_v42  ;;  %v3931_v17 = vadd.f32 %v12287_v6, %v12286_v11 }
 0x59f   :  { %v4779_v50 = vmax.f32 %v4751_v61, 0.0  ;;  %v4713_v43 = vadd.f32 %v4659_v23, %v4452_v55  ;;  %v4752_v62 = vadd.f32 %v11285_v26, %v4712_v63  ;;  %v4458_v63 = vadd.f32 %v4416_v3, %v4196_v35  ;;  %v12288_v55 = vld [vmem:[#allocation65_spill] sm:$0xff]  ;;  %v12289_v23 = vld [vmem:[#allocation59_spill] sm:$0xff] }
 0x5a0   :  { %v4663_v28 = vpop.f32.mrf.mxu1  ;;  %v4198_v34 = vadd.f32 %v12288_v55, %v3927_v53  ;;  %v3933_v57 = vadd.f32 %v12290_v33, %v12289_v23  ;;  %v4459_v3 = vadd.f32 %v4420_v29, %v4197_v18  ;;  %v12296_v29 = vld [vmem:[#allocation83_spill] sm:$0xff]  ;;  %v12299_v55 = vmov 0.0  }
 0x5a1   :  { %v4753_v52 = vadd.f32 %v11289_v10, %v4713_v43  ;;  %v4714_v8 = vadd.f32 %v4663_v28, %v4453_v12  ;;  %6968 = vmatprep.mubr.msk.f32.mxu0 %vm4814_vm8, %v4779_v50  ;;  %7002 = vmatprep.mubr.msk.f32.mxu1 %vm4814_vm8, %v4779_v50  ;;  %v4780_v0 = vmax.f32 %v4752_v62, 0.0  ;;  %v12291_v50 = vld [vmem:[#allocation20_spill] sm:$0xff]  ;;  %v4428_v62 = vpop.f32.mrf.mxu0 }
 0x5a2   :  { %v4665_v58 = vpop.f32.mrf.mxu1  ;;  %4952 = vmatmul.mubr.f32.gmra.mxu0 %v4778_v21  ;;  %5108 = vmatmul.mubr.f32.gmra.mxu1 %v4778_v21  ;;  %v4199_v43 = vadd.f32 %v12291_v50, %v3931_v17  ;;  %v3937_v21 = vadd.f32 %v12293_v16, %v12292_v44  ;;  %v12294_v28 = vld [vmem:[#allocation64_spill] sm:$0xff]  ;;  %v4460_v4 = vadd.f32 %v4422_v38, %v4198_v34 }
 0x5a3   :  { %v4781_v2 = vmax.f32 %v4753_v52, 0.0  ;;  %v4715_v37 = vadd.f32 %v4665_v58, %v4454_v27  ;;  %v4754_v13 = vadd.f32 %v11285_v26, %v4714_v8  ;;  %v4200_v27 = vadd.f32 %v12294_v28, %v3933_v57  ;;  %v4432_v7 = vpop.f32.mrf.mxu0 }
 0x5a4   :  { %v4669_v54 = vpop.f32.mrf.mxu1  ;;  %v3939_v58 = vadd.f32 %v12296_v29, %v12295_v20  ;;  %v4461_v9 = vadd.f32 %v4426_v49, %v4199_v43 }
 0x5a5   :  { %v4755_v47 = vadd.f32 %v11289_v10, %v4715_v37  ;;  %v4716_v39 = vadd.f32 %v4669_v54, %v4455_v31  ;;  %6969 = vmatprep.mubr.msk.f32.mxu0 %vm4814_vm8, %v4781_v2  ;;  %7003 = vmatprep.mubr.msk.f32.mxu1 %vm4814_vm8, %v4781_v2  ;;  %v4782_v19 = vmax.f32 %v4754_v13, 0.0  ;;  %v4201_v2 = vadd.f32 %v12297_v22, %v3937_v21  ;;  %v12298_v13 = vld [vmem:[#allocation22_spill] sm:$0xff]  ;;  %v4434_v53 = vpop.f32.mrf.mxu0 }
 0x5a6   :  { %v4671_v30 = vpop.f32.mrf.mxu1  ;;  %4957 = vmatmul.mubr.f32.gmra.mxu0 %v4780_v0  ;;  %5113 = vmatmul.mubr.f32.gmra.mxu1 %v4780_v0  ;;  %v4462_v0 = vadd.f32 %v4428_v62, %v4200_v27  ;;  %v4202_v54 = vadd.f32 %v12298_v13, %v3939_v58 }
 0x5a7   :  { %v4783_v5 = vmax.f32 %v4755_v47, 0.0  ;;  %v4717_v32 = vadd.f32 %v4671_v30, %v4456_v15  ;;  %v4756_v61 = vadd.f32 %v11285_v26, %v4716_v39  ;;  %v4463_v25 = vadd.f32 %v4432_v7, %v4201_v2 }
 0x5a8   :  { %v4675_v14 = vpop.f32.mrf.mxu1 }
 0x5a9   :  { %v4757_v1 = vadd.f32 %v11289_v10, %v4717_v32  ;;  %v4718_v51 = vadd.f32 %v4675_v14, %v4457_v60  ;;  %6970 = vmatprep.mubr.msk.f32.mxu0 %vm4814_vm8, %v4783_v5  ;;  %7004 = vmatprep.mubr.msk.f32.mxu1 %vm4814_vm8, %v4783_v5  ;;  %v4784_v40 = vmax.f32 %v4756_v61, 0.0  ;;  %v4464_v60 = vadd.f32 %v4434_v53, %v4202_v54 }
 0x5aa   :  { %v4677_v46 = vpop.f32.mrf.mxu1  ;;  %4962 = vmatmul.mubr.f32.gmra.mxu0 %v4782_v19  ;;  %5118 = vmatmul.mubr.f32.gmra.mxu1 %v4782_v19 }
 0x5ab   :  { %v4785_v12 = vmax.f32 %v4757_v1, 0.0  ;;  %v4719_v59 = vadd.f32 %v4677_v46, %v4458_v63  ;;  %v4758_v41 = vadd.f32 %v11285_v26, %v4718_v51 }
 0x5ac   :  { %v4681_v52 = vpop.f32.mrf.mxu1 }
 0x5ad   :  { %v4759_v8 = vadd.f32 %v11289_v10, %v4719_v59  ;;  %v4720_v45 = vadd.f32 %v4681_v52, %v4459_v3  ;;  %6971 = vmatprep.mubr.msk.f32.mxu0 %vm4814_vm8, %v4785_v12  ;;  %7005 = vmatprep.mubr.msk.f32.mxu1 %vm4814_vm8, %v4785_v12  ;;  %v4786_v42 = vmax.f32 %v4758_v41, 0.0 }
 0x5ae   :  { %v4683_v56 = vpop.f32.mrf.mxu1  ;;  %4967 = vmatmul.mubr.f32.gmra.mxu0 %v4784_v40  ;;  %5123 = vmatmul.mubr.f32.gmra.mxu1 %v4784_v40 }
 0x5af   :  { %v4787_v37 = vmax.f32 %v4759_v8, 0.0  ;;  %v4721_v31 = vadd.f32 %v4683_v56, %v4460_v4  ;;  %v4760_v36 = vadd.f32 %v11285_v26, %v4720_v45 }
 0x5b0   :  { %v4687_v35 = vpop.f32.mrf.mxu1 }
 0x5b1   :  { %v4761_v38 = vadd.f32 %v11289_v10, %v4721_v31  ;;  %v4722_v47 = vadd.f32 %v4687_v35, %v4461_v9  ;;  %6972 = vmatprep.mubr.msk.f32.mxu0 %vm4814_vm8, %v4787_v37  ;;  %7006 = vmatprep.mubr.msk.f32.mxu1 %vm4814_vm8, %v4787_v37  ;;  %v4788_v30 = vmax.f32 %v4760_v36, 0.0 }
 0x5b2   :  { %v4689_v39 = vpop.f32.mrf.mxu1  ;;  %4972 = vmatmul.mubr.f32.gmra.mxu0 %v4786_v42  ;;  %5128 = vmatmul.mubr.f32.gmra.mxu1 %v4786_v42 }
 0x5b3   :  { %v4789_v15 = vmax.f32 %v4761_v38, 0.0  ;;  %v4723_v24 = vadd.f32 %v4689_v39, %v4462_v0  ;;  %v4762_v48 = vadd.f32 %v11285_v26, %v4722_v47 }
 0x5b4   :  { %v4693_v18 = vpop.f32.mrf.mxu1 }
 0x5b5   :  { %v4763_v5 = vadd.f32 %v11289_v10, %v4723_v24  ;;  %v4724_v32 = vadd.f32 %v4693_v18, %v4463_v25  ;;  %6973 = vmatprep.mubr.msk.f32.mxu0 %vm4814_vm8, %v4789_v15  ;;  %7007 = vmatprep.mubr.msk.f32.mxu1 %vm4814_vm8, %v4789_v15  ;;  %v4790_v49 = vmax.f32 %v4762_v48, 0.0 }
 0x5b6   :  { %v4695_v11 = vpop.f32.mrf.mxu1  ;;  %4977 = vmatmul.mubr.f32.gmra.mxu0 %v4788_v30  ;;  %5133 = vmatmul.mubr.f32.gmra.mxu1 %v4788_v30 }
 0x5b7   :  { %v4791_v6 = vmax.f32 %v4763_v5, 0.0  ;;  %v4725_v17 = vadd.f32 %v4695_v11, %v4464_v60  ;;  %v4764_v19 = vadd.f32 %v11285_v26, %v4724_v32 }
 0x5b9   :  { %v4765_v61 = vadd.f32 %v11289_v10, %v4725_v17  ;;  %6974 = vmatprep.mubr.msk.f32.mxu0 %vm4814_vm8, %v4791_v6  ;;  %7008 = vmatprep.mubr.msk.f32.mxu1 %vm4814_vm8, %v4791_v6  ;;  %v4792_v63 = vmax.f32 %v4764_v19, 0.0 }
 0x5ba   :  { %4982 = vmatmul.mubr.f32.gmra.mxu0 %v4790_v49  ;;  %5138 = vmatmul.mubr.f32.gmra.mxu1 %v4790_v49 }
 0x5bb   :  { %v4793_v14 = vmax.f32 %v4765_v61, 0.0 }
 0x5bd   :  { %6975 = vmatprep.mubr.msk.f32.mxu0 %vm4814_vm8, %v4793_v14  ;;  %7009 = vmatprep.mubr.msk.f32.mxu1 %vm4814_vm8, %v4793_v14 }
 0x5be   :  { %4987 = vmatmul.mubr.f32.gmra.mxu0 %v4792_v63  ;;  %5143 = vmatmul.mubr.f32.gmra.mxu1 %v4792_v63 }
 0x5bf   :  { %7414 = vmatprep.mubr.msk.f32.mxu0 %vm7713_vm9, %v12299_v55  ;;  %7482 = vmatprep.mubr.msk.f32.mxu1 %vm7713_vm9, %v12299_v55 }
 0x64a   :  { %v4923_v26 = vpop.f32.mrf.mxu0  ;;  %v5079_v10 = vpop.f32.mrf.mxu1 }
 0x64b   :  { %v11451_v34 = vmax.f32 %v4923_v26, %v5079_v10 }
 0x64c   :  { %v4925_v1 = vpop.f32.mrf.mxu0  ;;  %v5081_v51 = vpop.f32.mrf.mxu1 }
 0x64e   :  { %v4928_v23 = vpop.f32.mrf.mxu0  ;;  %v5084_v33 = vpop.f32.mrf.mxu1 }
 0x64f   :  { %v11453_v57 = vmax.f32 %v4928_v23, %v5084_v33 }
 0x650   :  { %v4930_v46 = vpop.f32.mrf.mxu0  ;;  %v5086_v50 = vpop.f32.mrf.mxu1 }
 0x651   :  { %v5162_v50 = vld [vmem:[%s11997_s8] sm:$0xff] }
 0x652   :  { %v4933_v43 = vpop.f32.mrf.mxu0  ;;  %v5089_v12 = vpop.f32.mrf.mxu1 }
 0x653   :  { %v11455_v59 = vmax.f32 %v4933_v43, %v5089_v12  ;;  %v5163_v43 = vld [vmem:[%s11997_s8 + $0x8] sm:$0xff]  ;;  %v5164_v12 = vld [vmem:[%s11997_s8 + $0x10] sm:$0xff] }
 0x654   :  { %v4935_v3 = vpop.f32.mrf.mxu0  ;;  %v5091_v44 = vpop.f32.mrf.mxu1 }
 0x655   :  { %v5165_v3 = vld [vmem:[%s11997_s8 + $0x18] sm:$0xff]  ;;  %v5166_v44 = vld [vmem:[%s11997_s8 + $0x20] sm:$0xff] }
 0x656   :  { %v11457_v16 = vpop.f32.mrf.mxu0  ;;  %v11459_v21 = vpop.f32.mrf.mxu1 }
 0x657   :  { %v5151_v46 = vmax.f32 %v11457_v16, %v11459_v21  ;;  %v7016_v16 = vld [vmem:[%s11997_s8 + $0x28] sm:$0xff] }
 0x658   :  { %v4940_v62 = vpop.f32.mrf.mxu0  ;;  %v5096_v28 = vpop.f32.mrf.mxu1  ;;  %v7020_v21 = vld [vmem:[%s11997_s8 + $0x48] sm:$0xff] }
 0x65a   :  { %v11461_v27 = vpop.f32.mrf.mxu0  ;;  %v11463_v40 = vpop.f32.mrf.mxu1 }
 0x65b   :  { %v5152_v33 = vmax.f32 %v11461_v27, %v11463_v40 }
 0x65c   :  { %v4945_v41 = vpop.f32.mrf.mxu0  ;;  %v5101_v52 = vpop.f32.mrf.mxu1 }
 0x65e   :  { %v4948_v8 = vpop.f32.mrf.mxu0  ;;  %v5104_v45 = vpop.f32.mrf.mxu1 }
 0x65f   :  { %v5153_v23 = vmax.f32 %v4948_v8, %v5104_v45 }
 0x660   :  { %v4950_v4 = vpop.f32.mrf.mxu0  ;;  %v5106_v20 = vpop.f32.mrf.mxu1 }
 0x662   :  { %v4953_v29 = vpop.f32.mrf.mxu0  ;;  %v5109_v58 = vpop.f32.mrf.mxu1 }
 0x663   :  { %v5154_v51 = vmax.f32 %v4953_v29, %v5109_v58 }
 0x664   :  { %v4955_v56 = vpop.f32.mrf.mxu0  ;;  %v5111_v22 = vpop.f32.mrf.mxu1 }
 0x666   :  { %v4958_v2 = vpop.f32.mrf.mxu0  ;;  %v5114_v37 = vpop.f32.mrf.mxu1 }
 0x667   :  { %v5155_v1 = vmax.f32 %v4958_v2, %v5114_v37 }
 0x668   :  { %v4960_v31 = vpop.f32.mrf.mxu0  ;;  %v5116_v9 = vpop.f32.mrf.mxu1 }
 0x66a   :  { %v4963_v7 = vpop.f32.mrf.mxu0  ;;  %v5119_v42 = vpop.f32.mrf.mxu1 }
 0x66b   :  { %v5156_v10 = vmax.f32 %v4963_v7, %v5119_v42 }
 0x66c   :  { %v4965_v36 = vpop.f32.mrf.mxu0  ;;  %v5121_v35 = vpop.f32.mrf.mxu1 }
 0x66e   :  { %v4968_v0 = vpop.f32.mrf.mxu0  ;;  %v5124_v13 = vpop.f32.mrf.mxu1 }
 0x66f   :  { %v5157_v26 = vmax.f32 %v4968_v0, %v5124_v13 }
 0x670   :  { %v4970_v54 = vpop.f32.mrf.mxu0  ;;  %v5126_v38 = vpop.f32.mrf.mxu1 }
 0x671   :  { %v7028_v38 = vld [vmem:[%s11998_s9 + $0x8] sm:$0xff] }
 0x672   :  { %v4973_v47 = vpop.f32.mrf.mxu0  ;;  %v5129_v39 = vpop.f32.mrf.mxu1 }
 0x673   :  { %v5158_v63 = vmax.f32 %v4973_v47, %v5129_v39  ;;  %v5392_v47 = vld [vmem:[%s11998_s9] sm:$0xff]  ;;  %v7039_v39 = vld [vmem:[%s11999_s10 + $0x98] sm:$0xff] }
 0x674   :  { %v4975_v15 = vpop.f32.mrf.mxu0  ;;  %v5131_v24 = vpop.f32.mrf.mxu1 }
 0x675   :  { %v7038_v15 = vld [vmem:[%s11999_s10 + $0x90] sm:$0xff]  ;;  %v7037_v24 = vld [vmem:[%s11999_s10 + $0x88] sm:$0xff] }
 0x676   :  { %v4978_v25 = vpop.f32.mrf.mxu0  ;;  %v5134_v53 = vpop.f32.mrf.mxu1 }
 0x677   :  { %v5159_v14 = vmax.f32 %v4978_v25, %v5134_v53  ;;  %v7036_v25 = vld [vmem:[%s11999_s10 + $0x80] sm:$0xff]  ;;  %v7035_v53 = vld [vmem:[%s11999_s10 + $0x78] sm:$0xff] }
 0x678   :  { %v4980_v30 = vpop.f32.mrf.mxu0  ;;  %v5136_v48 = vpop.f32.mrf.mxu1 }
 0x679   :  { %v7034_v30 = vld [vmem:[%s11999_s10 + $0x70] sm:$0xff]  ;;  %v7033_v48 = vld [vmem:[%s11999_s10 + $0x68] sm:$0xff] }
 0x67a   :  { %v4983_v18 = vpop.f32.mrf.mxu0  ;;  %v5139_v5 = vpop.f32.mrf.mxu1 }
 0x67b   :  { %v5160_v61 = vmax.f32 %v4983_v18, %v5139_v5  ;;  %v7032_v18 = vld [vmem:[%s11999_s10 + $0x60] sm:$0xff]  ;;  %v7031_v5 = vld [vmem:[%s11999_s10 + $0x58] sm:$0xff] }
 0x67c   :  { %v4985_v32 = vpop.f32.mrf.mxu0  ;;  %v5141_v60 = vpop.f32.mrf.mxu1 }
 0x67d   :  { %v7030_v32 = vld [vmem:[%s11999_s10 + $0x50] sm:$0xff]  ;;  %v5475_v60 = vld [vmem:[%s11999_s10 + $0x48] sm:$0xff] }
 0x67e   :  { %v4988_v11 = vpop.f32.mrf.mxu0  ;;  %v5144_v6 = vpop.f32.mrf.mxu1 }
 0x67f   :  { %v5161_v17 = vmax.f32 %v4988_v11, %v5144_v6  ;;  %v5474_v11 = vld [vmem:[%s11999_s10 + $0x40] sm:$0xff]  ;;  %v5473_v6 = vld [vmem:[%s11999_s10 + $0x38] sm:$0xff] }
 0x680   :  { %v4990_v49 = vpop.f32.mrf.mxu0  ;;  %v5146_v19 = vpop.f32.mrf.mxu1 }
 0x681   :  { %7387 = vmatpush3.msk.msra.mxu0 %vm3128_vm3, %v5161_v17  ;;  %v5471_v49 = vld [vmem:[%s11999_s10 + $0x28] sm:$0xff]  ;;  %v5470_v19 = vld [vmem:[%s11999_s10 + $0x20] sm:$0xff] }
 0x682   :  { %7388 = vmatprep.subr.mxu0 %v12299_v55 }
 0x683   :  { %7389 = vmatpush3.msra.mxu0 %v5160_v61 }
 0x684   :  { %7390 = vmatprep.subr.mxu0 %v12299_v55 }
 0x685   :  { %7391 = vmatpush3.msra.mxu0 %v5159_v14 }
 0x686   :  { %7392 = vmatprep.subr.mxu0 %v12299_v55 }
 0x687   :  { %7393 = vmatpush3.msra.mxu0 %v5158_v63 }
 0x688   :  { %7394 = vmatprep.subr.mxu0 %v12299_v55 }
 0x689   :  { %7395 = vmatpush3.msra.mxu0 %v5157_v26 }
 0x68a   :  { %7396 = vmatprep.subr.mxu0 %v12299_v55 }
 0x68b   :  { %7397 = vmatpush3.msra.mxu0 %v5156_v10 }
 0x68c   :  { %7398 = vmatprep.subr.mxu0 %v12299_v55 }
 0x68d   :  { %7399 = vmatpush3.msra.mxu0 %v5155_v1 }
 0x68e   :  { %7400 = vmatprep.subr.mxu0 %v12299_v55 }
 0x68f   :  { %7401 = vmatpush3.msra.mxu0 %v5154_v51 }
 0x690   :  { %7402 = vmatprep.subr.mxu0 %v12299_v55 }
 0x691   :  { %7403 = vmatpush3.msra.mxu0 %v5153_v23 }
 0x692   :  { %7404 = vmatprep.subr.mxu0 %v12299_v55 }
 0x693   :  { %7405 = vmatpush3.msra.mxu0 %v5152_v33 }
 0x694   :  { %7406 = vmatprep.subr.mxu0 %v12299_v55 }
 0x695   :  { %7407 = vmatpush3.msra.mxu0 %v5151_v46 }
 0x696   :  { %7408 = vmatprep.subr.mxu0 %v12299_v55 }
 0x697   :  { %7409 = vmatpush3.msra.mxu0 %v11455_v59 }
 0x698   :  { %7410 = vmatprep.subr.mxu0 %v12299_v55 }
 0x699   :  { %7411 = vmatpush3.msra.mxu0 %v11453_v57 }
 0x69a   :  { %7412 = vmatprep.subr.mxu0 %v12299_v55 }
 0x69b   :  { %7413 = vmatpush3.msra.mxu0 %v11451_v34 }
 0x69c   :  { %7429 = vmatprep.subr.mxu0 %v12299_v55  ;;  %7415 = vmatmul.mubr.msk.f32.vlgmr.msra.gmra.mxu0 %vm5167_vm10, %v5162_v50  ;;  %v7051_v50 = vld [vmem:[%s11999_s10 + $0xd8] sm:$0xff] }
 0x69d   :  { %7430 = vmatpush3.msk.msra.mxu0 %vm3128_vm3, %v5161_v17  ;;  %7417 = vmatprep.mubr.msk.f32.mxu0 %vm7713_vm9, %v12299_v55  ;;  %v5472_v17 = vld [vmem:[%s11999_s10 + $0x30] sm:$0xff] }
 0x69e   :  { %7431 = vmatprep.subr.mxu0 %v12299_v55 }
 0x69f   :  { %7432 = vmatpush3.msra.mxu0 %v5160_v61  ;;  %v5469_v61 = vld [vmem:[%s11999_s10 + $0x18] sm:$0xff] }
 0x6a0   :  { %7433 = vmatprep.subr.mxu0 %v12299_v55  ;;  %7418 = vmatmul.mubr.msk.f32.gmra.mxu0 %vm5167_vm10, %v5163_v43  ;;  %v7050_v43 = vld [vmem:[%s11999_s10 + $0xd0] sm:$0xff] }
 0x6a1   :  { %7434 = vmatpush3.msra.mxu0 %v5159_v14  ;;  %7420 = vmatprep.mubr.msk.f32.mxu0 %vm7713_vm9, %v12299_v55  ;;  %v5468_v14 = vld [vmem:[%s11999_s10 + $0x10] sm:$0xff] }
 0x6a2   :  { %7435 = vmatprep.subr.mxu0 %v12299_v55 }
 0x6a3   :  { %7436 = vmatpush3.msra.mxu0 %v5158_v63  ;;  %v5467_v63 = vld [vmem:[%s11999_s10 + $0x8] sm:$0xff] }
 0x6a4   :  { %7437 = vmatprep.subr.mxu0 %v12299_v55  ;;  %7421 = vmatmul.mubr.msk.f32.gmra.mxu0 %vm5167_vm10, %v5164_v12  ;;  %v7042_v12 = vld [vmem:[%s11998_s9 + $0x10] sm:$0xff] }
 0x6a5   :  { %7438 = vmatpush3.msra.mxu0 %v5157_v26  ;;  %7423 = vmatprep.mubr.msk.f32.mxu0 %vm7713_vm9, %v12299_v55  ;;  %v5466_v26 = vld [vmem:[%s11999_s10] sm:$0xff] }
 0x6a6   :  { %7439 = vmatprep.subr.mxu0 %v12299_v55 }
 0x6a7   :  { %7440 = vmatpush3.msra.mxu0 %v5156_v10 }
 0x6a8   :  { %7441 = vmatprep.subr.mxu0 %v12299_v55  ;;  %7424 = vmatmul.mubr.msk.f32.gmra.mxu0 %vm5167_vm10, %v5165_v3  ;;  %v7049_v3 = vld [vmem:[%s11999_s10 + $0xc8] sm:$0xff] }
 0x6a9   :  { %7442 = vmatpush3.msra.mxu0 %v5155_v1  ;;  %7426 = vmatprep.mubr.msk.f32.mxu0 %vm7713_vm9, %v12299_v55 }
 0x6aa   :  { %7443 = vmatprep.subr.mxu0 %v12299_v55 }
 0x6ab   :  { %7444 = vmatpush3.msra.mxu0 %v5154_v51  ;;  %v7053_v51 = vld [vmem:[%s11999_s10 + $0xe8] sm:$0xff] }
 0x6ac   :  { %7445 = vmatprep.subr.mxu0 %v12299_v55  ;;  %7427 = vmatmul.mubr.msk.f32.gmra.mxu0 %vm5167_vm10, %v5166_v44  ;;  %v7048_v44 = vld [vmem:[%s11999_s10 + $0xc0] sm:$0xff] }
 0x6ad   :  { %7446 = vmatpush3.msra.mxu0 %v5153_v23  ;;  %7457 = vmatprep.mubr.msk.f32.mxu0 %vm7713_vm9, %v12299_v55 }
 0x6ae   :  { %7447 = vmatprep.subr.mxu0 %v12299_v55 }
 0x6af   :  { %7448 = vmatpush3.msra.mxu0 %v5152_v33  ;;  %v7052_v33 = vld [vmem:[%s11999_s10 + $0xe0] sm:$0xff] }
 0x6b0   :  { %7449 = vmatprep.subr.mxu0 %v12299_v55 }
 0x6b1   :  { %7450 = vmatpush3.msra.mxu0 %v5151_v46 }
 0x6b2   :  { %7451 = vmatprep.subr.mxu0 %v12299_v55 }
 0x6b3   :  { %7452 = vmatpush3.msra.mxu0 %v11455_v59  ;;  %v7017_v59 = vld [vmem:[%s11997_s8 + $0x30] sm:$0xff] }
 0x6b4   :  { %7453 = vmatprep.subr.mxu0 %v12299_v55 }
 0x6b5   :  { %7454 = vmatpush3.msra.mxu0 %v11453_v57  ;;  %v7019_v57 = vld [vmem:[%s11997_s8 + $0x40] sm:$0xff] }
 0x6b6   :  { %7455 = vmatprep.subr.mxu0 %v12299_v55 }
 0x6b7   :  { %7456 = vmatpush3.msra.mxu0 %v11451_v34  ;;  %v7018_v34 = vld [vmem:[%s11997_s8 + $0x38] sm:$0xff] }
 0x6b8   :  { %7458 = vmatmul.mubr.msk.f32.vlgmr.msra.gmra.mxu0 %vm5167_vm10, %v7016_v16  ;;  %7485 = vmatprep.subr.mxu0 %v12299_v55  ;;  %v7047_v16 = vld [vmem:[%s11999_s10 + $0xb8] sm:$0xff] }
 0x6b9   :  { %7460 = vmatprep.mubr.msk.f32.mxu0 %vm7713_vm9, %v12299_v55 }
 0x6bc   :  { %7461 = vmatmul.mubr.msk.f32.gmra.mxu0 %vm5167_vm10, %v7017_v59  ;;  %v7046_v59 = vld [vmem:[%s11999_s10 + $0xb0] sm:$0xff] }
 0x6bd   :  { %7463 = vmatprep.mubr.msk.f32.mxu0 %vm7713_vm9, %v12299_v55 }
 0x6c0   :  { %7464 = vmatmul.mubr.msk.f32.gmra.mxu0 %vm5167_vm10, %v7018_v34  ;;  %v7055_v34 = vld [vmem:[%s11998_s9 + $0x18] sm:$0xff] }
 0x6c1   :  { %7466 = vmatprep.mubr.msk.f32.mxu0 %vm7713_vm9, %v12299_v55 }
 0x6c4   :  { %7467 = vmatmul.mubr.msk.f32.gmra.mxu0 %vm5167_vm10, %v7019_v57  ;;  %v7066_v57 = vld [vmem:[%s11999_s10 + $0x138] sm:$0xff] }
 0x6c5   :  { %7469 = vmatprep.mubr.msk.f32.mxu0 %vm7713_vm9, %v12299_v55 }
 0x6c8   :  { %7470 = vmatmul.mubr.msk.f32.gmra.mxu0 %vm5167_vm10, %v7020_v21  ;;  %v7065_v21 = vld [vmem:[%s11999_s10 + $0x130] sm:$0xff] }
 0x6c9   :  { %7495 = vmatprep.mubr.msk.f32.mxu0 %vm7713_vm9, %v12299_v55 }
 0x75c   :  { %v5252_v62 = vpop.f32.mrf.mxu0 }
 0x75e   :  { %v7416_v28 = vpop.f32.mrf.mxu0 }
 0x75f   :  { %v7045_v28 = vld [vmem:[%s11999_s10 + $0xa8] sm:$0xff] }
 0x760   :  { %v5257_v27 = vpop.f32.mrf.mxu0 }
 0x762   :  { %v7419_v40 = vpop.f32.mrf.mxu0 }
 0x763   :  { %v7044_v40 = vld [vmem:[%s11999_s10 + $0xa0] sm:$0xff] }
 0x764   :  { %v5262_v41 = vpop.f32.mrf.mxu0 }
 0x766   :  { %v7422_v52 = vpop.f32.mrf.mxu0 }
 0x767   :  { %v7061_v52 = vld [vmem:[%s11999_s10 + $0x110] sm:$0xff] }
 0x768   :  { %v5267_v8 = vpop.f32.mrf.mxu0 }
 0x76a   :  { %v7425_v45 = vpop.f32.mrf.mxu0 }
 0x76b   :  { %v7059_v45 = vld [vmem:[%s11999_s10 + $0x100] sm:$0xff] }
 0x76c   :  { %v5272_v4 = vpop.f32.mrf.mxu0 }
 0x76e   :  { %v7428_v20 = vpop.f32.mrf.mxu0 }
 0x76f   :  { %v7057_v20 = vld [vmem:[%s11999_s10 + $0xf0] sm:$0xff] }
 0x778   :  { %v5363_v29 = vpop.f32.mrf.mxu0 }
 0x779   :  { %v11585_v54 = vmax.f32 %v5252_v62, %v5363_v29  ;;  %v7064_v62 = vld [vmem:[%s11999_s10 + $0x128] sm:$0xff] }
 0x77a   :  { %v7459_v58 = vpop.f32.mrf.mxu0 }
 0x77c   :  { %v5368_v56 = vpop.f32.mrf.mxu0 }
 0x77d   :  { %v11579_v13 = vmax.f32 %v5257_v27, %v5368_v56  ;;  %v7063_v27 = vld [vmem:[%s11999_s10 + $0x120] sm:$0xff] }
 0x77e   :  { %v7462_v22 = vpop.f32.mrf.mxu0 }
 0x780   :  { %v5373_v2 = vpop.f32.mrf.mxu0 }
 0x781   :  { %v11573_v0 = vmax.f32 %v5262_v41, %v5373_v2  ;;  %v7062_v41 = vld [vmem:[%s11999_s10 + $0x118] sm:$0xff] }
 0x782   :  { %v7465_v37 = vpop.f32.mrf.mxu0 }
 0x784   :  { %v5378_v31 = vpop.f32.mrf.mxu0 }
 0x785   :  { %v11567_v35 = vmax.f32 %v5267_v8, %v5378_v31  ;;  %v7060_v8 = vld [vmem:[%s11999_s10 + $0x108] sm:$0xff] }
 0x786   :  { %v7468_v9 = vpop.f32.mrf.mxu0 }
 0x787   :  { %v7068_v9 = vld [vmem:[%s11998_s9 + $0x20] sm:$0xff] }
 0x788   :  { %v5383_v7 = vpop.f32.mrf.mxu0 }
 0x789   :  { %v11565_v42 = vmax.f32 %v5272_v4, %v5383_v7  ;;  %v7058_v4 = vld [vmem:[%s11999_s10 + $0xf8] sm:$0xff] }
 0x78a   :  { %v7471_v36 = vpop.f32.mrf.mxu0 }
 0x78b   :  { %7486 = vmatpush3.msra.mxu0 %v11565_v42  ;;  %7473 = vmatpush3.msra.mxu1 %v11565_v42  ;;  %v7078_v36 = vld [vmem:[%s11999_s10 + $0x180] sm:$0xff] }
 0x78c   :  { %7487 = vmatprep.subr.mxu0 %v12299_v55  ;;  %7474 = vmatprep.subr.mxu1 %v12299_v55 }
 0x78d   :  { %7488 = vmatpush3.msra.mxu0 %v11567_v35  ;;  %7475 = vmatpush3.msra.mxu1 %v11567_v35 }
 0x78e   :  { %7489 = vmatprep.subr.mxu0 %v12299_v55  ;;  %7476 = vmatprep.subr.mxu1 %v12299_v55 }
 0x78f   :  { %7490 = vmatpush3.msra.mxu0 %v11573_v0  ;;  %7477 = vmatpush3.msra.mxu1 %v11573_v0 }
 0x790   :  { %7491 = vmatprep.subr.mxu0 %v12299_v55  ;;  %7478 = vmatprep.subr.mxu1 %v12299_v55 }
 0x791   :  { %7492 = vmatpush3.msra.mxu0 %v11579_v13  ;;  %7479 = vmatpush3.msra.mxu1 %v11579_v13 }
 0x792   :  { %7493 = vmatprep.subr.mxu0 %v12299_v55  ;;  %7480 = vmatprep.subr.mxu1 %v12299_v55 }
 0x793   :  { %7494 = vmatpush3.msra.mxu0 %v11585_v54  ;;  %7481 = vmatpush3.msra.mxu1 %v11585_v54 }
 0x794   :  { %7496 = vmatmul.mubr.msk.f32.vlgmr.msra.gmra.mxu0 %vm2456_vm1, %v7028_v38  ;;  %7483 = vmatmul.mubr.msk.f32.vlgmr.msra.gmra.mxu1 %vm2456_vm1, %v5392_v47  ;;  %v7074_v38 = vld [vmem:[%s11999_s10 + $0x160] sm:$0xff]  ;;  %v7073_v47 = vld [vmem:[%s11999_s10 + $0x158] sm:$0xff] }
 0x795   :  { %7498 = vmatprep.subr.mxu1 %v12299_v55  ;;  %7518 = vmatprep.mubr.msk.f32.mxu1 %vm7713_vm9, %v12299_v55 }
 0x796   :  { %7499 = vmatpush3.msra.mxu1 %v7039_v39  ;;  %7521 = vmatprep.subr.mxu0 %v12299_v55  ;;  %v7072_v39 = vld [vmem:[%s11999_s10 + $0x150] sm:$0xff] }
 0x797   :  { %7500 = vmatprep.subr.mxu1 %v12299_v55  ;;  %7541 = vmatprep.mubr.msk.f32.mxu0 %vm7713_vm9, %v12299_v55 }
 0x798   :  { %7501 = vmatpush3.msra.mxu1 %v7038_v15  ;;  %7522 = vmatpush3.msra.mxu0 %v5475_v60  ;;  %v7071_v15 = vld [vmem:[%s11999_s10 + $0x148] sm:$0xff]  ;;  %v6205_v60 = vld [vmem:[%s12000_s12 + $0x38] sm:$0xff] }
 0x799   :  { %7502 = vmatprep.subr.mxu1 %v12299_v55  ;;  %7523 = vmatprep.subr.mxu0 %v12299_v55 }
 0x79a   :  { %7503 = vmatpush3.msra.mxu1 %v7037_v24  ;;  %7524 = vmatpush3.msra.mxu0 %v5474_v11  ;;  %v7070_v24 = vld [vmem:[%s11999_s10 + $0x140] sm:$0xff]  ;;  %v6204_v11 = vld [vmem:[%s12000_s12 + $0x30] sm:$0xff] }
 0x79b   :  { %7504 = vmatprep.subr.mxu1 %v12299_v55  ;;  %7525 = vmatprep.subr.mxu0 %v12299_v55 }
 0x79c   :  { %7505 = vmatpush3.msra.mxu1 %v7036_v25  ;;  %7526 = vmatpush3.msra.mxu0 %v5473_v6  ;;  %v6212_v25 = vld [vmem:[%s12000_s12 + $0x70] sm:$0xff]  ;;  %v6203_v6 = vld [vmem:[%s12000_s12 + $0x28] sm:$0xff] }
 0x79d   :  { %7506 = vmatprep.subr.mxu1 %v12299_v55  ;;  %7527 = vmatprep.subr.mxu0 %v12299_v55 }
 0x79e   :  { %7507 = vmatpush3.msra.mxu1 %v7035_v53  ;;  %7528 = vmatpush3.msra.mxu0 %v5472_v17  ;;  %v6211_v53 = vld [vmem:[%s12000_s12 + $0x68] sm:$0xff]  ;;  %v6202_v17 = vld [vmem:[%s12000_s12 + $0x20] sm:$0xff] }
 0x79f   :  { %7508 = vmatprep.subr.mxu1 %v12299_v55  ;;  %7529 = vmatprep.subr.mxu0 %v12299_v55 }
 0x7a0   :  { %7509 = vmatpush3.msra.mxu1 %v7034_v30  ;;  %7530 = vmatpush3.msra.mxu0 %v5471_v49  ;;  %v6210_v30 = vld [vmem:[%s12000_s12 + $0x60] sm:$0xff] }
 0x7a1   :  { %7510 = vmatprep.subr.mxu1 %v12299_v55  ;;  %7531 = vmatprep.subr.mxu0 %v12299_v55 }
 0x7a2   :  { %7511 = vmatpush3.msra.mxu1 %v7033_v48  ;;  %7532 = vmatpush3.msra.mxu0 %v5470_v19  ;;  %v6209_v48 = vld [vmem:[%s12000_s12 + $0x58] sm:$0xff] }
 0x7a3   :  { %7512 = vmatprep.subr.mxu1 %v12299_v55  ;;  %7533 = vmatprep.subr.mxu0 %v12299_v55 }
 0x7a4   :  { %7513 = vmatpush3.msra.mxu1 %v7032_v18  ;;  %7534 = vmatpush3.msra.mxu0 %v5469_v61  ;;  %v6208_v18 = vld [vmem:[%s12000_s12 + $0x50] sm:$0xff] }
 0x7a5   :  { %7514 = vmatprep.subr.mxu1 %v12299_v55  ;;  %7535 = vmatprep.subr.mxu0 %v12299_v55 }
 0x7a6   :  { %7515 = vmatpush3.msra.mxu1 %v7031_v5  ;;  %7536 = vmatpush3.msra.mxu0 %v5468_v14  ;;  %v6207_v5 = vld [vmem:[%s12000_s12 + $0x48] sm:$0xff] }
 0x7a7   :  { %7516 = vmatprep.subr.mxu1 %v12299_v55  ;;  %7537 = vmatprep.subr.mxu0 %v12299_v55 }
 0x7a8   :  { %7517 = vmatpush3.msra.mxu1 %v7030_v32  ;;  %7538 = vmatpush3.msra.mxu0 %v5467_v63  ;;  %v6206_v32 = vld [vmem:[%s12000_s12 + $0x40] sm:$0xff] }
 0x7a9   :  { %7544 = vmatprep.subr.mxu1 %v12299_v55  ;;  %7539 = vmatprep.subr.mxu0 %v12299_v55 }
 0x7aa   :  { %7540 = vmatpush3.msra.mxu0 %v5466_v26 }
 0x7ab   :  { %7557 = vmatprep.subr.mxu0 %v12299_v55 }
 0x854   :  { %v5547_v10 = vpop.f32.mrf.mxu0  ;;  %v5462_v1 = vpop.f32.mrf.mxu1 }
 0x855   :  { %7519 = vmatmul.mubr.msk.f32.vlgmr.msra.gmra.mxu1 %vm5562_vm11, %v5547_v10  ;;  %7542 = vmatmul.mubr.msk.f32.vlgmr.msra.gmra.mxu0 %vm5562_vm11, %v5462_v1 }
 0x856   :  { %7545 = vmatpush3.msra.mxu1 %v11565_v42  ;;  %7554 = vmatprep.mubr.msk.f32.mxu1 %vm7713_vm9, %v12299_v55  ;;  %v7497_v23 = vpop.f32.mrf.mxu0  ;;  %v7484_v46 = vpop.f32.mrf.mxu1 }
 0x857   :  { %7546 = vmatprep.subr.mxu1 %v12299_v55  ;;  %7558 = vmatpush3.msra.mxu0 %v7053_v51  ;;  %v6201_v51 = vld [vmem:[%s12000_s12 + $0x18] sm:$0xff]  ;;  %v6200_v23 = vld [vmem:[%s12000_s12 + $0x10] sm:$0xff]  ;;  %v6198_v46 = vld [vmem:[%s12000_s12] sm:$0xff] }
 0x858   :  { %7547 = vmatpush3.msra.mxu1 %v11567_v35  ;;  %7559 = vmatprep.subr.mxu0 %v12299_v55 }
 0x859   :  { %7548 = vmatprep.subr.mxu1 %v12299_v55  ;;  %7560 = vmatpush3.msra.mxu0 %v7052_v33  ;;  %v6199_v33 = vld [vmem:[%s12000_s12 + $0x8] sm:$0xff] }
 0x85a   :  { %7549 = vmatpush3.msra.mxu1 %v11573_v0  ;;  %7561 = vmatprep.subr.mxu0 %v12299_v55 }
 0x85b   :  { %7550 = vmatprep.subr.mxu1 %v12299_v55  ;;  %7562 = vmatpush3.msra.mxu0 %v7051_v50  ;;  %v6305_v50 = vld [vmem:[%s12001_s14 + $0x50] sm:$0xf] }
 0x85c   :  { %7551 = vmatpush3.msra.mxu1 %v11579_v13  ;;  %7563 = vmatprep.subr.mxu0 %v12299_v55 }
 0x85d   :  { %7552 = vmatprep.subr.mxu1 %v12299_v55  ;;  %7564 = vmatpush3.msra.mxu0 %v7050_v43  ;;  %v6304_v43 = vld [vmem:[%s12001_s14 + $0x48] sm:$0xff] }
 0x85e   :  { %7553 = vmatpush3.msra.mxu1 %v11585_v54  ;;  %7565 = vmatprep.subr.mxu0 %v12299_v55 }
 0x85f   :  { %7555 = vmatmul.mubr.msk.f32.vlgmr.msra.gmra.mxu1 %vm2456_vm1, %v7042_v12  ;;  %7580 = vmatprep.subr.mxu1 %v12299_v55  ;;  %v6303_v12 = vld [vmem:[%s12001_s14 + $0x40] sm:$0xff] }
 0x860   :  { %7581 = vmatpush3.msra.mxu1 %v11565_v42  ;;  %7590 = vmatprep.mubr.msk.f32.mxu1 %vm7713_vm9, %v12299_v55 }
 0x861   :  { %7582 = vmatprep.subr.mxu1 %v12299_v55  ;;  %7566 = vmatpush3.msra.mxu0 %v7049_v3  ;;  %v6302_v3 = vld [vmem:[%s12001_s14 + $0x38] sm:$0xff] }
 0x862   :  { %7583 = vmatpush3.msra.mxu1 %v11567_v35  ;;  %7567 = vmatprep.subr.mxu0 %v12299_v55 }
 0x863   :  { %7584 = vmatprep.subr.mxu1 %v12299_v55  ;;  %7568 = vmatpush3.msra.mxu0 %v7048_v44  ;;  %v6301_v44 = vld [vmem:[%s12001_s14 + $0x30] sm:$0xff] }
 0x864   :  { %7585 = vmatpush3.msra.mxu1 %v11573_v0  ;;  %7569 = vmatprep.subr.mxu0 %v12299_v55 }
 0x865   :  { %7586 = vmatprep.subr.mxu1 %v12299_v55  ;;  %7570 = vmatpush3.msra.mxu0 %v7047_v16  ;;  %v6300_v16 = vld [vmem:[%s12001_s14 + $0x28] sm:$0xff] }
 0x866   :  { %7587 = vmatpush3.msra.mxu1 %v11579_v13  ;;  %7571 = vmatprep.subr.mxu0 %v12299_v55 }
 0x867   :  { %7588 = vmatprep.subr.mxu1 %v12299_v55  ;;  %7572 = vmatpush3.msra.mxu0 %v7046_v59  ;;  %v6299_v59 = vld [vmem:[%s12001_s14 + $0x20] sm:$0xff] }
 0x868   :  { %7589 = vmatpush3.msra.mxu1 %v11585_v54  ;;  %7573 = vmatprep.subr.mxu0 %v12299_v55 }
 0x869   :  { %7591 = vmatmul.mubr.msk.f32.vlgmr.msra.gmra.mxu1 %vm2456_vm1, %v7055_v34  ;;  %7593 = vmatprep.subr.mxu1 %v12299_v55  ;;  %v6298_v34 = vld [vmem:[%s12001_s14 + $0x18] sm:$0xff] }
 0x86a   :  { %7594 = vmatpush3.msra.mxu1 %v7066_v57  ;;  %7577 = vmatprep.mubr.msk.f32.mxu0 %vm7713_vm9, %v12299_v55 }
 0x86b   :  { %7595 = vmatprep.subr.mxu1 %v12299_v55  ;;  %7613 = vmatprep.mubr.msk.f32.mxu1 %vm7713_vm9, %v12299_v55 }
 0x86c   :  { %7596 = vmatpush3.msra.mxu1 %v7065_v21  ;;  %7574 = vmatpush3.msra.mxu0 %v7045_v28  ;;  %v7081_v21 = vld [vmem:[%s12002_s11] ss:$0 sm:$0xff] }
 0x86d   :  { %7597 = vmatprep.subr.mxu1 %v12299_v55  ;;  %7575 = vmatprep.subr.mxu0 %v12299_v55 }
 0x86e   :  { %7598 = vmatpush3.msra.mxu1 %v7064_v62  ;;  %7576 = vmatpush3.msra.mxu0 %v7044_v40 }
 0x86f   :  { %7599 = vmatprep.subr.mxu1 %v12299_v55  ;;  %7616 = vmatprep.subr.mxu0 %v12299_v55 }
 0x870   :  { %7600 = vmatpush3.msra.mxu1 %v7063_v27 }
 0x871   :  { %7601 = vmatprep.subr.mxu1 %v12299_v55 }
 0x872   :  { %7602 = vmatpush3.msra.mxu1 %v7062_v41  ;;  %v6297_v41 = vld [vmem:[%s12001_s14 + $0x10] sm:$0xff] }
 0x873   :  { %7603 = vmatprep.subr.mxu1 %v12299_v55 }
 0x874   :  { %7604 = vmatpush3.msra.mxu1 %v7061_v52  ;;  %v6296_v52 = vld [vmem:[%s12001_s14 + $0x8] sm:$0xff] }
 0x875   :  { %7605 = vmatprep.subr.mxu1 %v12299_v55 }
 0x876   :  { %7606 = vmatpush3.msra.mxu1 %v7060_v8  ;;  %v6295_v8 = vld [vmem:[%s12001_s14] sm:$0xff] }
 0x877   :  { %7607 = vmatprep.subr.mxu1 %v12299_v55 }
 0x878   :  { %7608 = vmatpush3.msra.mxu1 %v7059_v45  ;;  %v7082_v45 = vld [vmem:[%s12003_s13] ss:$0 sm:$0xff] }
 0x879   :  { %7609 = vmatprep.subr.mxu1 %v12299_v55 }
 0x87a   :  { %7610 = vmatpush3.msra.mxu1 %v7058_v4 }
 0x87b   :  { %7611 = vmatprep.subr.mxu1 %v12299_v55 }
 0x87c   :  { %7612 = vmatpush3.msra.mxu1 %v7057_v20 }
 0x87d   :  { %7652 = vmatprep.subr.mxu1 %v12299_v55 }
 0x915   :  { %v5632_v29 = vpop.f32.mrf.mxu1  ;;  %v5705_v58 = vpop.f32.mrf.mxu0 }
 0x916   :  { %v11805_v56 = vadd.f32 %v5705_v58, %v5632_v29 }
 0x917   :  { %v7520_v22 = vpop.f32.mrf.mxu1  ;;  %v7543_v2 = vpop.f32.mrf.mxu0 }
 0x91f   :  { %v5780_v37 = vpop.f32.mrf.mxu1 }
 0x920   :  { %7578 = vmatmul.mubr.msk.f32.vlgmr.msra.gmra.mxu0 %vm5562_vm11, %v5780_v37 }
 0x921   :  { %7617 = vmatpush3.msra.mxu0 %v11565_v42  ;;  %v7556_v31 = vpop.f32.mrf.mxu1  ;;  %7626 = vmatprep.mubr.msk.f32.mxu0 %vm7713_vm9, %v12299_v55  ;;  %v7079_v42 = vld [vmem:[%s11999_s10 + $0x188] sm:$0xff] }
 0x922   :  { %7618 = vmatprep.subr.mxu0 %v12299_v55 }
 0x923   :  { %7619 = vmatpush3.msra.mxu0 %v11567_v35 }
 0x924   :  { %7620 = vmatprep.subr.mxu0 %v12299_v55 }
 0x925   :  { %7621 = vmatpush3.msra.mxu0 %v11573_v0  ;;  %v7077_v0 = vld [vmem:[%s11999_s10 + $0x178] sm:$0xff] }
 0x926   :  { %7622 = vmatprep.subr.mxu0 %v12299_v55 }
 0x927   :  { %7623 = vmatpush3.msra.mxu0 %v11579_v13  ;;  %v7076_v13 = vld [vmem:[%s11999_s10 + $0x170] sm:$0xff] }
 0x928   :  { %7624 = vmatprep.subr.mxu0 %v12299_v55 }
 0x929   :  { %7625 = vmatpush3.msra.mxu0 %v11585_v54  ;;  %v5940_v7 = vpop.f32.mrf.mxu1  ;;  %v7075_v54 = vld [vmem:[%s11999_s10 + $0x168] sm:$0xff] }
 0x92a   :  { %7627 = vmatmul.mubr.msk.f32.vlgmr.msra.gmra.mxu0 %vm2456_vm1, %v7068_v9  ;;  %7614 = vmatmul.mubr.msk.f32.vlgmr.msra.gmra.mxu1 %vm5562_vm11, %v5940_v7 }
 0x92b   :  { %7629 = vmatprep.subr.mxu0 %v12299_v55  ;;  %v7592_v35 = vpop.f32.mrf.mxu1  ;;  %7649 = vmatprep.mubr.msk.f32.mxu0 %vm7713_vm9, %v12299_v55 }
 0x92c   :  { %7630 = vmatpush3.msra.mxu0 %v7079_v42  ;;  %7682 = vmatprep.mubr.msk.f32.mxu1 %vm7713_vm9, %v12299_v55 }
 0x92d   :  { %7631 = vmatprep.subr.mxu0 %v12299_v55  ;;  %7653 = vmatpush3.msra.mxu1 %v6212_v25 }
 0x92e   :  { %7632 = vmatpush3.msra.mxu0 %v7078_v36  ;;  %7654 = vmatprep.subr.mxu1 %v12299_v55 }
 0x92f   :  { %7633 = vmatprep.subr.mxu0 %v12299_v55  ;;  %7655 = vmatpush3.msra.mxu1 %v6211_v53 }
 0x930   :  { %7634 = vmatpush3.msra.mxu0 %v7077_v0  ;;  %7656 = vmatprep.subr.mxu1 %v12299_v55 }
 0x931   :  { %7635 = vmatprep.subr.mxu0 %v12299_v55  ;;  %7657 = vmatpush3.msra.mxu1 %v6210_v30 }
 0x932   :  { %7636 = vmatpush3.msra.mxu0 %v7076_v13  ;;  %7658 = vmatprep.subr.mxu1 %v12299_v55 }
 0x933   :  { %7637 = vmatprep.subr.mxu0 %v12299_v55  ;;  %7659 = vmatpush3.msra.mxu1 %v6209_v48 }
 0x934   :  { %7638 = vmatpush3.msra.mxu0 %v7075_v54  ;;  %7660 = vmatprep.subr.mxu1 %v12299_v55 }
 0x935   :  { %7639 = vmatprep.subr.mxu0 %v12299_v55  ;;  %7661 = vmatpush3.msra.mxu1 %v6208_v18 }
 0x936   :  { %7640 = vmatpush3.msra.mxu0 %v7074_v38  ;;  %7662 = vmatprep.subr.mxu1 %v12299_v55 }
 0x937   :  { %7641 = vmatprep.subr.mxu0 %v12299_v55  ;;  %7663 = vmatpush3.msra.mxu1 %v6207_v5 }
 0x938   :  { %7642 = vmatpush3.msra.mxu0 %v7073_v47  ;;  %7664 = vmatprep.subr.mxu1 %v12299_v55 }
 0x939   :  { %7643 = vmatprep.subr.mxu0 %v12299_v55  ;;  %7665 = vmatpush3.msra.mxu1 %v6206_v32 }
 0x93a   :  { %7644 = vmatpush3.msra.mxu0 %v7072_v39  ;;  %7666 = vmatprep.subr.mxu1 %v12299_v55 }
 0x93b   :  { %7645 = vmatprep.subr.mxu0 %v12299_v55  ;;  %7667 = vmatpush3.msra.mxu1 %v6205_v60 }
 0x93c   :  { %7646 = vmatpush3.msra.mxu0 %v7071_v15  ;;  %7668 = vmatprep.subr.mxu1 %v12299_v55 }
 0x93d   :  { %7647 = vmatprep.subr.mxu0 %v12299_v55  ;;  %7669 = vmatpush3.msra.mxu1 %v6204_v11 }
 0x93e   :  { %7648 = vmatpush3.msra.mxu0 %v7070_v24  ;;  %7670 = vmatprep.subr.mxu1 %v12299_v55 }
 0x93f   :  { %7685 = vmatprep.subr.mxu0 %v12299_v55  ;;  %7671 = vmatpush3.msra.mxu1 %v6203_v6 }
 0x940   :  { %7672 = vmatprep.subr.mxu1 %v12299_v55 }
 0x941   :  { %7673 = vmatpush3.msra.mxu1 %v6202_v17 }
 0x942   :  { %7674 = vmatprep.subr.mxu1 %v12299_v55 }
 0x943   :  { %7675 = vmatpush3.msra.mxu1 %v6201_v51 }
 0x944   :  { %7676 = vmatprep.subr.mxu1 %v12299_v55 }
 0x945   :  { %7677 = vmatpush3.msra.mxu1 %v6200_v23 }
 0x946   :  { %7678 = vmatprep.subr.mxu1 %v12299_v55 }
 0x947   :  { %7679 = vmatpush3.msra.mxu1 %v6199_v33 }
 0x948   :  { %7680 = vmatprep.subr.mxu1 %v12299_v55 }
 0x949   :  { %7681 = vmatpush3.msra.mxu1 %v6198_v46 }
 0x9e0   :  { %v5864_v49 = vpop.f32.mrf.mxu0 }
 0x9e1   :  { %v5868_v19 = vadd.f32 %v5864_v49, %v11805_v56  ;;  %v7084_v56 = vld [vmem:[%s12004_s15] ss:$0 sm:$0xff] }
 0x9e2   :  { %v7579_v61 = vpop.f32.mrf.mxu0 }
 0x9ea   :  { %v6100_v14 = vpop.f32.mrf.mxu0  ;;  %v6024_v63 = vpop.f32.mrf.mxu1 }
 0x9eb   :  { %v6028_v26 = vadd.f32 %v6024_v63, %v5868_v19  ;;  %7650 = vmatmul.mubr.msk.f32.vlgmr.msra.gmra.mxu0 %vm5562_vm11, %v6100_v14 }
 0x9ec   :  { %v7628_v10 = vpop.f32.mrf.mxu0  ;;  %v7615_v1 = vpop.f32.mrf.mxu1  ;;  %7707 = vmatprep.mubr.msk.f32.mxu0 %vm7713_vm9, %v12299_v55  ;;  %7686 = vmatpush3.msk.msra.mxu0 %vm3128_vm3, %v6305_v50 }
 0x9ed   :  { %7687 = vmatprep.subr.mxu0 %v12299_v55 }
 0x9ee   :  { %7688 = vmatpush3.msra.mxu0 %v6304_v43 }
 0x9ef   :  { %7689 = vmatprep.subr.mxu0 %v12299_v55 }
 0x9f0   :  { %7690 = vmatpush3.msra.mxu0 %v6303_v12 }
 0x9f1   :  { %7691 = vmatprep.subr.mxu0 %v12299_v55 }
 0x9f2   :  { %7692 = vmatpush3.msra.mxu0 %v6302_v3 }
 0x9f3   :  { %7693 = vmatprep.subr.mxu0 %v12299_v55 }
 0x9f4   :  { %7694 = vmatpush3.msra.mxu0 %v6301_v44 }
 0x9f5   :  { %7695 = vmatprep.subr.mxu0 %v12299_v55 }
 0x9f6   :  { %7696 = vmatpush3.msra.mxu0 %v6300_v16 }
 0x9f7   :  { %7697 = vmatprep.subr.mxu0 %v12299_v55 }
 0x9f8   :  { %7698 = vmatpush3.msra.mxu0 %v6299_v59 }
 0x9f9   :  { %7699 = vmatprep.subr.mxu0 %v12299_v55 }
 0x9fa   :  { %7700 = vmatpush3.msra.mxu0 %v6298_v34 }
 0x9fb   :  { %7701 = vmatprep.subr.mxu0 %v12299_v55 }
 0x9fc   :  { %7702 = vmatpush3.msra.mxu0 %v6297_v41 }
 0x9fd   :  { %7703 = vmatprep.subr.mxu0 %v12299_v55 }
 0x9fe   :  { %7704 = vmatpush3.msra.mxu0 %v6296_v52 }
 0x9ff   :  { %7705 = vmatprep.subr.mxu0 %v12299_v55 }
 0xa00   :  { %7706 = vmatpush3.msra.mxu0 %v6295_v8 }
 0xaab   :  { %v6184_v57 = vpop.f32.mrf.mxu0 }
 0xaac   :  { %v6188_v62 = vadd.f32 %v6184_v57, %v6028_v26 }
 0xaad   :  { %v7651_v28 = vpop.f32.mrf.mxu0 }
 0xaae   :  { %v6196_v27 = vadd.f32 %v7081_v21, %v6188_v62 }
 0xab0   :  { %v6197_v40 = vmax.f32 %v6196_v27, 0.0 }
 0xab2   :  { %7683 = vmatmul.mubr.msk.f32.vlgmr.msra.gmra.mxu1 %vm6220_vm12, %v6197_v40 }
 0xb72   :  { %v6290_v4 = vpop.f32.mrf.mxu1 }
 0xb73   :  { %v6291_v20 = vadd.f32 %v7082_v45, %v6290_v4 }
 0xb74   :  { %v7684_v29 = vpop.f32.mrf.mxu1 }
 0xb75   :  { %v6294_v58 = vmax.f32 %v6291_v20, 0.0 }
 0xb77   :  { %7708 = vmatmul.mubr.msk.f32.vlgmr.msra.gmra.mxu0 %vm3574_vm4, %v6294_v58 }
 0xc37   :  { %v6385_v55 = vpop.f32.mrf.mxu0 }
 0xc38   :  { %v6386_v22 = vadd.f32 %v7084_v56, %v6385_v55 }
 0xc39   :  { %v7709_v2 = vpop.f32.mrf.mxu0 }
 0xc3a   :  { %6390 = vst.msk [vmem:[%s12005_s16] sm:$0xff] %vm6389_vm13, %v6386_v22 }

</bundles_post_ra>
